<compile_context>
chip_gen: v7x
topology: tpu7x:2x2x1
jax: 0.10.0
libtpu: 0.0.40
codegen_flags: <defaults>
</compile_context>

<pallas_src>
import jax
import jax.numpy as jnp
from jax import lax
from jax.experimental import pallas as pl
from jax.experimental.pallas import tpu as pltpu

BN_EPS = 1e-5

# Geometry (fixed by the architecture).
L_IN = 400
N1, RS2 = 100, 112     # block-2 map rows, flat row stride (mult of 16)
N2, RS3 = 25, 32       # block-3 map rows, flat row stride
N3, RS4 = 5, 16        # block-4 map rows, flat row stride


def _dw_expand(p, n, stride, dtype):
    """(n,64) map row -> (stride,192) = [shift-1 | center | shift+1], zero padded."""
    z = jnp.zeros((1, 64), jnp.float32)
    row = jnp.concatenate(
        [jnp.concatenate([z, p[:n - 1, :]], axis=0), p,
         jnp.concatenate([p[1:, :], z], axis=0)], axis=1)
    pad = jnp.zeros((stride - n, 192), jnp.float32)
    return jnp.concatenate([row, pad], axis=0).astype(dtype)


# ==========================================================================
# Single fused kernel: conv1d+BN+pool (prefolded) -> outer product -> 3x
# [conv2d 3x3 + BN + ReLU + AvgPool2d] -> FC head.   Grid: (B,)
# ==========================================================================
def cnet_kernel(xim_ref, w1_ref, s1_ref, t1_ref,
                w2_ref, s2_ref, t2_ref, pool2_ref,
                w3_ref, s3_ref, t3_ref, pool3_ref,
                w4_ref, s4_ref, t4_ref, pool4_ref,
                fw1_ref, fs_ref, ft_ref, fw2_ref, fb2_ref,
                out_ref,
                v3_ref, spad_ref, gslab_ref, acc2_ref, slab3_ref, slab4_ref):
    f32 = jnp.float32
    bf16 = jnp.bfloat16

    # ---- stage 1: conv1d(4->64,k=11,pad=5) + BN1 (AvgPool1d(4) folded into
    # the wrapper-built pooled im2col)  ->  v (100, 64) f32.
    v = jnp.dot(xim_ref[...], w1_ref[...], preferred_element_type=f32)
    v = v * s1_ref[...] + t1_ref[...]

    # ---- rank-1 outer product: map[i,j,c] = v[i,c] * v[j,c].  Pre-shift v
    # along j so every conv2 window read below is sublane-aligned.
    spad_ref[...] = _dw_expand(v, N1, RS2, f32)                       # (112,192)
    v3_ref[...] = jnp.concatenate(
        [jnp.concatenate([v, v, v], axis=1),
         jnp.zeros((RS2 - N1, 192), f32)], axis=0)                    # (112,192)

    # ---- build the dw-expanded outer-product slab (bf16):
    # gslab[(m+1)*112 + j, dw*64+c] = v[m,c] * v[j+dw-1,c]  (zero halos).
    gslab_ref[pl.ds(0, RS2), :] = jnp.zeros((RS2, 192), bf16)
    gslab_ref[pl.ds((N1 + 1) * RS2, RS2), :] = jnp.zeros((RS2, 192), bf16)

    def build_g(m, carry):
        row = v3_ref[pl.ds(m, 1), :]                                  # (1,192)
        blk = (spad_ref[...] * row).astype(bf16)                      # (112,192)
        gslab_ref[pl.ds(pl.multiple_of((m + 1) * RS2, 16), RS2), :] = blk
        return carry
    lax.fori_loop(0, N1, build_g, 0)

    # ---- block 2: conv2d(64->64,3x3,pad=1) + BN2 + ReLU + AvgPool2d(4).
    # 25 pool row-groups; per group 3 aligned K=192 matmuls (one per kh tap).
    slab3_ref[pl.ds(0, RS3), :] = jnp.zeros((RS3, 192), bf16)
    slab3_ref[pl.ds((N2 + 1) * RS3, RS3), :] = jnp.zeros((RS3, 192), bf16)

    def block2_group(g, carry):
        for dh in range(3):
            start = pl.multiple_of(g * (4 * RS2) + dh * RS2, 16)
            part = jnp.dot(gslab_ref[pl.ds(start, 4 * RS2), :], w2_ref[dh],
                           preferred_element_type=f32)                # (448,64)
            if dh == 0:
                acc2_ref[...] = part
            else:
                acc2_ref[...] += part
        a = jnp.maximum(acc2_ref[...] * s2_ref[...] + t2_ref[...], 0.0).astype(bf16)
        p = jnp.dot(pool2_ref[...], a, preferred_element_type=f32)    # (25,64)
        slab3_ref[pl.ds(pl.multiple_of((g + 1) * RS3, 16), RS3), :] = \
            _dw_expand(p, N2, RS3, bf16)
        return carry
    lax.fori_loop(0, N2, block2_group, 0)

    # ---- block 3: conv2d(64->64,3x3,pad=1) + BN3 + ReLU + AvgPool2d(5).
    slab4_ref[pl.ds(0, RS4), :] = jnp.zeros((RS4, 192), bf16)
    slab4_ref[pl.ds((N3 + 1) * RS4, RS4), :] = jnp.zeros((RS4, 192), bf16)
    for g in range(5):
        a = jnp.zeros((5 * RS3, 64), f32)
        for dh in range(3):
            start = g * (5 * RS3) + dh * RS3
            a = a + jnp.dot(slab3_ref[pl.ds(start, 5 * RS3), :], w3_ref[dh],
                            preferred_element_type=f32)               # (160,64)
        a = jnp.maximum(a * s3_ref[...] + t3_ref[...], 0.0).astype(bf16)
        p = jnp.dot(pool3_ref[...], a, preferred_element_type=f32)    # (5,64)
        slab4_ref[pl.ds((g + 1) * RS4, RS4), :] = _dw_expand(p, N3, RS4, bf16)

    # ---- block 4: conv2d(64->128,3x3,pad=1) + BN4 + ReLU + AvgPool2d(5).
    a = jnp.zeros((5 * RS4, 128), f32)
    for dh in range(3):
        a = a + jnp.dot(slab4_ref[pl.ds(dh * RS4, 5 * RS4), :], w4_ref[dh],
                        preferred_element_type=f32)                   # (80,128)
    a = jnp.maximum(a * s4_ref[...] + t4_ref[...], 0.0).astype(bf16)
    feat = jnp.dot(pool4_ref[...], a, preferred_element_type=f32)     # (1,128)

    # ---- FC head: Linear(128->32)+BN+ReLU, Linear(32->D).
    h = jnp.dot(feat, fw1_ref[...], preferred_element_type=f32)
    h = jnp.maximum(h * fs_ref[...] + ft_ref[...], 0.0)
    out_ref[...] = jnp.dot(h, fw2_ref[...],
                           preferred_element_type=f32) + fb2_ref[...]


def _cnet_pallas(params, xim):
    B = xim.shape[0]
    D = params["fw2"].shape[1]
    return pl.pallas_call(
        cnet_kernel,
        out_shape=jax.ShapeDtypeStruct((B, 1, D), jnp.float32),
        grid=(B,),
        in_specs=[
            pl.BlockSpec((None, N1, 128), lambda b: (b, 0, 0)),   # pooled im2col
            pl.BlockSpec((128, 64), lambda b: (0, 0)),            # w1
            pl.BlockSpec((1, 64), lambda b: (0, 0)),              # bn1 scale
            pl.BlockSpec((1, 64), lambda b: (0, 0)),              # bn1 shift
            pl.BlockSpec((3, 192, 64), lambda b: (0, 0, 0)),      # w2 (per kh)
            pl.BlockSpec((1, 64), lambda b: (0, 0)),              # bn2 scale
            pl.BlockSpec((1, 64), lambda b: (0, 0)),              # bn2 shift
            pl.BlockSpec((25, 4 * RS2), lambda b: (0, 0)),        # pool2 (0/1)
            pl.BlockSpec((3, 192, 64), lambda b: (0, 0, 0)),      # w3
            pl.BlockSpec((1, 64), lambda b: (0, 0)),              # bn3 scale
            pl.BlockSpec((1, 64), lambda b: (0, 0)),              # bn3 shift
            pl.BlockSpec((5, 5 * RS3), lambda b: (0, 0)),         # pool3 (0/1)
            pl.BlockSpec((3, 192, 128), lambda b: (0, 0, 0)),     # w4
            pl.BlockSpec((1, 128), lambda b: (0, 0)),             # bn4 scale
            pl.BlockSpec((1, 128), lambda b: (0, 0)),             # bn4 shift
            pl.BlockSpec((1, 5 * RS4), lambda b: (0, 0)),         # pool4 (0/1)
            pl.BlockSpec((128, 32), lambda b: (0, 0)),            # fc1 w
            pl.BlockSpec((1, 32), lambda b: (0, 0)),              # bnf scale
            pl.BlockSpec((1, 32), lambda b: (0, 0)),              # bnf shift
            pl.BlockSpec((32, D), lambda b: (0, 0)),              # fc2 w
            pl.BlockSpec((1, D), lambda b: (0, 0)),               # fc2 b
        ],
        out_specs=pl.BlockSpec((None, 1, D), lambda b: (b, 0, 0)),
        scratch_shapes=[
            pltpu.VMEM((RS2, 192), jnp.float32),                  # tile3(v)
            pltpu.VMEM((RS2, 192), jnp.float32),                  # shifted-v block
            pltpu.VMEM(((N1 + 2) * RS2, 192), jnp.bfloat16),      # block-2 slab
            pltpu.VMEM((4 * RS2, 64), jnp.float32),               # conv2 accumulator
            pltpu.VMEM(((N2 + 2) * RS3, 192), jnp.bfloat16),      # block-3 slab
            pltpu.VMEM(((N3 + 2) * RS4, 192), jnp.bfloat16),      # block-4 slab
        ],
        compiler_params=pltpu.CompilerParams(
            dimension_semantics=("parallel",),
            vmem_limit_bytes=32 * 1024 * 1024),
    )(xim, params["w1"], params["s1"], params["t1"],
      params["w2"], params["s2"], params["t2"], params["pool2"],
      params["w3"], params["s3"], params["t3"], params["pool3"],
      params["w4"], params["s4"], params["t4"], params["pool4"],
      params["fw1"], params["fs"], params["ft"], params["fw2"], params["fb2"])


# ==========================================================================
# Parameters (deterministic init), pool selectors, pooled im2col glue.
# ==========================================================================
def _bn_fold(bias, cout):
    # Eval-mode BN with init stats (mean=0, var=1, gamma=1, beta=0) folded
    # together with the preceding conv/linear bias.
    scale = jnp.full((1, cout), 1.0 / jnp.sqrt(1.0 + BN_EPS), jnp.float32)
    shift = bias.reshape(1, cout) * scale
    return scale, shift


def init_params(key, output_dim=1):
    ks = jax.random.split(key, 12)
    s = 0.05
    p = {}
    # conv1d weight stored (k, cin, cout) flattened as rows t*4+cin (a PyTorch
    # (cout, cin, k) weight would need .transpose(2, 1, 0) to import).
    w1 = jax.random.normal(ks[0], (11, 4, 64), jnp.float32) * s
    p["w1"] = jnp.pad(w1.reshape(44, 64), ((0, 128 - 44), (0, 0))).astype(jnp.bfloat16)
    p["s1"], p["t1"] = _bn_fold(jax.random.normal(ks[1], (64,), jnp.float32) * s, 64)
    # conv2d weights stored (kh, kw*cin, cout); the preceding AvgPool's 1/P^2
    # is folded into the following conv / fc weight.
    w2 = jax.random.normal(ks[2], (3, 3, 64, 64), jnp.float32) * s
    p["w2"] = w2.reshape(3, 192, 64).astype(jnp.bfloat16)
    p["s2"], p["t2"] = _bn_fold(jax.random.normal(ks[3], (64,), jnp.float32) * s, 64)
    w3 = jax.random.normal(ks[4], (3, 3, 64, 64), jnp.float32) * s
    p["w3"] = (w3 / 16.0).reshape(3, 192, 64).astype(jnp.bfloat16)      # pool2: 1/16
    p["s3"], p["t3"] = _bn_fold(jax.random.normal(ks[5], (64,), jnp.float32) * s, 64)
    w4 = jax.random.normal(ks[6], (3, 3, 64, 128), jnp.float32) * s
    p["w4"] = (w4 / 25.0).reshape(3, 192, 128).astype(jnp.bfloat16)     # pool3: 1/25
    p["s4"], p["t4"] = _bn_fold(jax.random.normal(ks[7], (128,), jnp.float32) * s, 128)
    fw1 = jax.random.normal(ks[8], (128, 32), jnp.float32) * s
    p["fw1"] = fw1 / 25.0                                               # pool4: 1/25
    p["fs"], p["ft"] = _bn_fold(jax.random.normal(ks[9], (32,), jnp.float32) * s, 32)
    p["fw2"] = jax.random.normal(ks[10], (32, output_dim), jnp.float32) * s
    p["fb2"] = (jax.random.normal(ks[11], (output_dim,), jnp.float32) * s
                ).reshape(1, output_dim)
    # Exact 0/1 pool selectors (averaging scales already folded above).
    o2 = jnp.arange(4 * RS2)
    p["pool2"] = ((((o2 % RS2) // 4) == jnp.arange(25)[:, None])
                  & ((o2 % RS2) < 100)).astype(jnp.bfloat16)
    o3 = jnp.arange(5 * RS3)
    p["pool3"] = ((((o3 % RS3) // 5) == jnp.arange(5)[:, None])
                  & ((o3 % RS3) < 25)).astype(jnp.bfloat16)
    o4 = jnp.arange(5 * RS4)
    p["pool4"] = ((o4 % RS4) < 5).astype(jnp.bfloat16)[None, :]
    return p


def _pooled_im2col(x_ncl):
    # (B, 4, 400) -> (B, 100, 128) bf16: im2col of conv1d(k=11, pad=5) with the
    # AvgPool1d(4) average folded in (conv and avg-pool are both linear, and
    # eval-mode BN commutes with channel-wise averaging).
    B, _, L = x_ncl.shape
    x = jnp.transpose(x_ncl, (0, 2, 1)).astype(jnp.float32)          # (B, 400, 4)
    xp = jnp.pad(x, ((0, 0), (5, 5), (0, 0)))
    xim = jnp.concatenate([xp[:, t:t + L, :] for t in range(11)], axis=-1)  # (B,400,44)
    xim = xim.reshape(B, L // 4, 4, 44).sum(axis=2) * 0.25           # (B, 100, 44)
    xim = jnp.pad(xim, ((0, 0), (0, 0), (0, 128 - 44)))
    return xim.astype(jnp.bfloat16)


def cnet_v10_3_forward(params, x_ncl, ss_str=None, ss_score=None, l=None):
    # x_ncl: (B, 4, 400), PyTorch (N, C, L) layout.  ss_str / ss_score / l are
    # unused by the reference forward.
    B = x_ncl.shape[0]
    out = _cnet_pallas(params, _pooled_im2col(x_ncl))
    return out.reshape(B, -1)


if __name__ == "__main__":
    key = jax.random.PRNGKey(0)
    kx, kp = jax.random.split(key)

    # L=400 is required by the architecture (400 / 4 / 4 / 5 / 5 == 1).
    B, C, L = 2, 4, 400
    x = jax.random.normal(kx, (B, C, L), jnp.float32)
    ss_str = jnp.zeros((B, 1), jnp.float32)    # unused in forward
    ss_score = jnp.zeros((B, 1), jnp.float32)  # unused in forward
    seq_len = jnp.full((B,), L, jnp.int32)     # unused in forward

    params = init_params(kp, output_dim=1)

    out = jax.jit(cnet_v10_3_forward)(params, x, ss_str, ss_score, seq_len)
    out = jax.block_until_ready(out)
    assert out.shape == (B, 1) and out.dtype == jnp.float32
    print("KERNEL_OK")
</pallas_src>

<mosaic_0001>
module attributes {stable_mosaic.version = 11 : i64} {
  func.func @cnet_kernel(%arg0: i32, %arg1: memref<1x100x128xbf16, #tpu.memory_space<vmem>>, %arg2: memref<128x64xbf16, #tpu.memory_space<vmem>>, %arg3: memref<1x64xf32, #tpu.memory_space<vmem>>, %arg4: memref<1x64xf32, #tpu.memory_space<vmem>>, %arg5: memref<3x192x64xbf16, #tpu.memory_space<vmem>>, %arg6: memref<1x64xf32, #tpu.memory_space<vmem>>, %arg7: memref<1x64xf32, #tpu.memory_space<vmem>>, %arg8: memref<25x448xbf16, #tpu.memory_space<vmem>>, %arg9: memref<3x192x64xbf16, #tpu.memory_space<vmem>>, %arg10: memref<1x64xf32, #tpu.memory_space<vmem>>, %arg11: memref<1x64xf32, #tpu.memory_space<vmem>>, %arg12: memref<5x160xbf16, #tpu.memory_space<vmem>>, %arg13: memref<3x192x128xbf16, #tpu.memory_space<vmem>>, %arg14: memref<1x128xf32, #tpu.memory_space<vmem>>, %arg15: memref<1x128xf32, #tpu.memory_space<vmem>>, %arg16: memref<1x80xbf16, #tpu.memory_space<vmem>>, %arg17: memref<128x32xf32, #tpu.memory_space<vmem>>, %arg18: memref<1x32xf32, #tpu.memory_space<vmem>>, %arg19: memref<1x32xf32, #tpu.memory_space<vmem>>, %arg20: memref<32x1xf32, #tpu.memory_space<vmem>>, %arg21: memref<1x1xf32, #tpu.memory_space<vmem>>, %arg22: memref<1x1x1xf32, #tpu.memory_space<vmem>>, %arg23: memref<112x192xf32, #tpu.memory_space<vmem>>, %arg24: memref<112x192xf32, #tpu.memory_space<vmem>>, %arg25: memref<11424x192xbf16, #tpu.memory_space<vmem>>, %arg26: memref<448x64xf32, #tpu.memory_space<vmem>>, %arg27: memref<864x192xbf16, #tpu.memory_space<vmem>>, %arg28: memref<112x192xbf16, #tpu.memory_space<vmem>>) attributes {dimension_semantics = [#tpu.dimension_semantics<parallel>], iteration_bounds = array<i64: 2>, scalar_prefetch = 0 : i64, scratch_operands = 6 : i64, tpu.core_type = #tpu.core_type<tc>, window_params = [{transform_indices = @transform_0, window_bounds = array<i64: 1, 100, 128>}, {pipeline_mode = #tpu.pipeline_mode<synchronous>, transform_indices = @transform_1, window_bounds = array<i64: 128, 64>}, {pipeline_mode = #tpu.pipeline_mode<synchronous>, transform_indices = @transform_2, window_bounds = array<i64: 1, 64>}, {pipeline_mode = #tpu.pipeline_mode<synchronous>, transform_indices = @transform_3, window_bounds = array<i64: 1, 64>}, {pipeline_mode = #tpu.pipeline_mode<synchronous>, transform_indices = @transform_4, window_bounds = array<i64: 3, 192, 64>}, {pipeline_mode = #tpu.pipeline_mode<synchronous>, transform_indices = @transform_5, window_bounds = array<i64: 1, 64>}, {pipeline_mode = #tpu.pipeline_mode<synchronous>, transform_indices = @transform_6, window_bounds = array<i64: 1, 64>}, {pipeline_mode = #tpu.pipeline_mode<synchronous>, transform_indices = @transform_7, window_bounds = array<i64: 25, 448>}, {pipeline_mode = #tpu.pipeline_mode<synchronous>, transform_indices = @transform_8, window_bounds = array<i64: 3, 192, 64>}, {pipeline_mode = #tpu.pipeline_mode<synchronous>, transform_indices = @transform_9, window_bounds = array<i64: 1, 64>}, {pipeline_mode = #tpu.pipeline_mode<synchronous>, transform_indices = @transform_10, window_bounds = array<i64: 1, 64>}, {pipeline_mode = #tpu.pipeline_mode<synchronous>, transform_indices = @transform_11, window_bounds = array<i64: 5, 160>}, {pipeline_mode = #tpu.pipeline_mode<synchronous>, transform_indices = @transform_12, window_bounds = array<i64: 3, 192, 128>}, {pipeline_mode = #tpu.pipeline_mode<synchronous>, transform_indices = @transform_13, window_bounds = array<i64: 1, 128>}, {pipeline_mode = #tpu.pipeline_mode<synchronous>, transform_indices = @transform_14, window_bounds = array<i64: 1, 128>}, {pipeline_mode = #tpu.pipeline_mode<synchronous>, transform_indices = @transform_15, window_bounds = array<i64: 1, 80>}, {pipeline_mode = #tpu.pipeline_mode<synchronous>, transform_indices = @transform_16, window_bounds = array<i64: 128, 32>}, {pipeline_mode = #tpu.pipeline_mode<synchronous>, transform_indices = @transform_17, window_bounds = array<i64: 1, 32>}, {pipeline_mode = #tpu.pipeline_mode<synchronous>, transform_indices = @transform_18, window_bounds = array<i64: 1, 32>}, {pipeline_mode = #tpu.pipeline_mode<synchronous>, transform_indices = @transform_19, window_bounds = array<i64: 32, 1>}, {pipeline_mode = #tpu.pipeline_mode<synchronous>, transform_indices = @transform_20, window_bounds = array<i64: 1, 1>}, {transform_indices = @transform_21, window_bounds = array<i64: 1, 1, 1>}]} {
    %c0 = arith.constant 0 : index
    %c0_0 = arith.constant 0 : index
    %c0_1 = arith.constant 0 : index
    %0 = vector.load %arg1[%c0, %c0_0, %c0_1] : memref<1x100x128xbf16, #tpu.memory_space<vmem>>, vector<1x100x128xbf16>
    %1 = vector.shape_cast %0 : vector<1x100x128xbf16> to vector<100x128xbf16>
    %c0_2 = arith.constant 0 : index
    %c0_3 = arith.constant 0 : index
    %2 = vector.load %arg2[%c0_2, %c0_3] : memref<128x64xbf16, #tpu.memory_space<vmem>>, vector<128x64xbf16>
    %cst = arith.constant dense<0.000000e+00> : vector<100x64xf32>
    %3 = tpu.matmul %1, %2, %cst {dimension_numbers = #tpu.dot_dimension_numbers<[1], [0], [0], [1], [0, 0, 1, 1], [], []>} : vector<100x128xbf16>, vector<128x64xbf16>, vector<100x64xf32> -> vector<100x64xf32>
    %c0_4 = arith.constant 0 : index
    %c0_5 = arith.constant 0 : index
    %4 = vector.load %arg3[%c0_4, %c0_5] : memref<1x64xf32, #tpu.memory_space<vmem>>, vector<1x64xf32>
    %5 = vector.broadcast %4 : vector<1x64xf32> to vector<100x64xf32>
    %6 = arith.mulf %3, %5 : vector<100x64xf32>
    %c0_6 = arith.constant 0 : index
    %c0_7 = arith.constant 0 : index
    %7 = vector.load %arg4[%c0_6, %c0_7] : memref<1x64xf32, #tpu.memory_space<vmem>>, vector<1x64xf32>
    %8 = vector.broadcast %7 : vector<1x64xf32> to vector<100x64xf32>
    %9 = arith.addf %6, %8 : vector<100x64xf32>
    %cst_8 = arith.constant 0.000000e+00 : f32
    %10 = vector.broadcast %cst_8 : f32 to vector<1x64xf32>
    %11 = vector.extract_strided_slice %9 {offsets = [0, 0], sizes = [99, 64], strides = [1, 1]} : vector<100x64xf32> to vector<99x64xf32>
    %12 = tpu.concatenate %10, %11 in 0 : vector<1x64xf32>, vector<99x64xf32> -> vector<100x64xf32>
    %13 = vector.extract_strided_slice %9 {offsets = [1, 0], sizes = [99, 64], strides = [1, 1]} : vector<100x64xf32> to vector<99x64xf32>
    %14 = tpu.concatenate %13, %10 in 0 : vector<99x64xf32>, vector<1x64xf32> -> vector<100x64xf32>
    %15 = tpu.concatenate %12, %9, %14 in 1 : vector<100x64xf32>, vector<100x64xf32>, vector<100x64xf32> -> vector<100x192xf32>
    %cst_9 = arith.constant 0.000000e+00 : f32
    %16 = vector.broadcast %cst_9 : f32 to vector<12x192xf32>
    %17 = tpu.concatenate %15, %16 in 0 : vector<100x192xf32>, vector<12x192xf32> -> vector<112x192xf32>
    %c0_10 = arith.constant 0 : index
    %c0_11 = arith.constant 0 : index
    %18 = vector.load %arg24[%c0_10, %c0_11] : memref<112x192xf32, #tpu.memory_space<vmem>>, vector<112x192xf32>
    tpu.vector_store %arg24[%c0_10, %c0_11], %17 {strides = array<i32>} : memref<112x192xf32, #tpu.memory_space<vmem>>, vector<112x192xf32>,
    %19 = tpu.concatenate %9, %9, %9 in 1 : vector<100x64xf32>, vector<100x64xf32>, vector<100x64xf32> -> vector<100x192xf32>
    %cst_12 = arith.constant 0.000000e+00 : f32
    %20 = vector.broadcast %cst_12 : f32 to vector<12x192xf32>
    %21 = tpu.concatenate %19, %20 in 0 : vector<100x192xf32>, vector<12x192xf32> -> vector<112x192xf32>
    %c0_13 = arith.constant 0 : index
    %c0_14 = arith.constant 0 : index
    %22 = vector.load %arg23[%c0_13, %c0_14] : memref<112x192xf32, #tpu.memory_space<vmem>>, vector<112x192xf32>
    tpu.vector_store %arg23[%c0_13, %c0_14], %21 {strides = array<i32>} : memref<112x192xf32, #tpu.memory_space<vmem>>, vector<112x192xf32>,
    %cst_15 = arith.constant 0.000000e+00 : bf16
    %23 = vector.broadcast %cst_15 : bf16 to vector<112x192xbf16>
    %c0_16 = arith.constant 0 : index
    %c0_17 = arith.constant 0 : index
    %24 = vector.load %arg25[%c0_16, %c0_17] : memref<11424x192xbf16, #tpu.memory_space<vmem>>, vector<112x192xbf16>
    tpu.vector_store %arg25[%c0_16, %c0_17], %23 {strides = array<i32>} : memref<11424x192xbf16, #tpu.memory_space<vmem>>, vector<112x192xbf16>,
    %cst_18 = arith.constant 0.000000e+00 : bf16
    %25 = vector.broadcast %cst_18 : bf16 to vector<112x192xbf16>
    %c11312 = arith.constant 11312 : index
    %c0_19 = arith.constant 0 : index
    %26 = vector.load %arg25[%c11312, %c0_19] : memref<11424x192xbf16, #tpu.memory_space<vmem>>, vector<112x192xbf16>
    tpu.vector_store %arg25[%c11312, %c0_19], %25 {strides = array<i32>} : memref<11424x192xbf16, #tpu.memory_space<vmem>>, vector<112x192xbf16>,
    %c0_i32 = arith.constant 0 : i32
    %c100_i32 = arith.constant 100 : i32
    %27 = arith.addi %c0_i32, %c100_i32 : i32
    %c1_i32 = arith.constant 1 : i32
    scf.for %arg29 = %c0_i32 to %27 step %c1_i32  : i32 {
      %264 = arith.index_cast %arg29 : i32 to index
      %c0_213 = arith.constant 0 : index
      %265 = vector.load %arg23[%264, %c0_213] : memref<112x192xf32, #tpu.memory_space<vmem>>, vector<1x192xf32>
      %c0_214 = arith.constant 0 : index
      %c0_215 = arith.constant 0 : index
      %266 = vector.load %arg24[%c0_214, %c0_215] : memref<112x192xf32, #tpu.memory_space<vmem>>, vector<112x192xf32>
      %267 = vector.broadcast %265 : vector<1x192xf32> to vector<112x192xf32>
      %268 = arith.mulf %266, %267 : vector<112x192xf32>
      %269 = arith.truncf %268 : vector<112x192xf32> to vector<112x192xbf16>
      %c1_i32_216 = arith.constant 1 : i32
      %270 = arith.addi %arg29, %c1_i32_216 : i32
      %c112_i32 = arith.constant 112 : i32
      %271 = arith.muli %270, %c112_i32 : i32
      %272 = tpu.assume_multiple %271, 16 : i32
      %273 = arith.index_cast %272 : i32 to index
      %c0_217 = arith.constant 0 : index
      %274 = vector.load %arg25[%273, %c0_217] : memref<11424x192xbf16, #tpu.memory_space<vmem>>, vector<112x192xbf16>
      tpu.vector_store %arg25[%273, %c0_217], %269 {strides = array<i32>} : memref<11424x192xbf16, #tpu.memory_space<vmem>>, vector<112x192xbf16>,
    }
    %c100_i32_20 = arith.constant 100 : i32
    %cst_21 = arith.constant 0.000000e+00 : bf16
    %28 = vector.broadcast %cst_21 : bf16 to vector<32x192xbf16>
    %c0_22 = arith.constant 0 : index
    %c0_23 = arith.constant 0 : index
    %29 = vector.load %arg27[%c0_22, %c0_23] : memref<864x192xbf16, #tpu.memory_space<vmem>>, vector<32x192xbf16>
    tpu.vector_store %arg27[%c0_22, %c0_23], %28 {strides = array<i32>} : memref<864x192xbf16, #tpu.memory_space<vmem>>, vector<32x192xbf16>,
    %cst_24 = arith.constant 0.000000e+00 : bf16
    %30 = vector.broadcast %cst_24 : bf16 to vector<32x192xbf16>
    %c832 = arith.constant 832 : index
    %c0_25 = arith.constant 0 : index
    %31 = vector.load %arg27[%c832, %c0_25] : memref<864x192xbf16, #tpu.memory_space<vmem>>, vector<32x192xbf16>
    tpu.vector_store %arg27[%c832, %c0_25], %30 {strides = array<i32>} : memref<864x192xbf16, #tpu.memory_space<vmem>>, vector<32x192xbf16>,
    %c0_i32_26 = arith.constant 0 : i32
    %c25_i32 = arith.constant 25 : i32
    %32 = arith.addi %c0_i32_26, %c25_i32 : i32
    %c1_i32_27 = arith.constant 1 : i32
    scf.for %arg29 = %c0_i32_26 to %32 step %c1_i32_27  : i32 {
      %c448_i32 = arith.constant 448 : i32
      %264 = arith.muli %arg29, %c448_i32 : i32
      %c0_i32_213 = arith.constant 0 : i32
      %265 = arith.addi %264, %c0_i32_213 : i32
      %266 = tpu.assume_multiple %265, 16 : i32
      %267 = arith.index_cast %266 : i32 to index
      %c0_214 = arith.constant 0 : index
      %268 = vector.load %arg25[%267, %c0_214] : memref<11424x192xbf16, #tpu.memory_space<vmem>>, vector<448x192xbf16>
      %c0_215 = arith.constant 0 : index
      %c0_216 = arith.constant 0 : index
      %c0_217 = arith.constant 0 : index
      %269 = vector.load %arg5[%c0_215, %c0_216, %c0_217] : memref<3x192x64xbf16, #tpu.memory_space<vmem>>, vector<1x192x64xbf16>
      %270 = vector.shape_cast %269 : vector<1x192x64xbf16> to vector<192x64xbf16>
      %cst_218 = arith.constant dense<0.000000e+00> : vector<448x64xf32>
      %271 = tpu.matmul %268, %270, %cst_218 {dimension_numbers = #tpu.dot_dimension_numbers<[1], [0], [0], [1], [0, 0, 1, 1], [], []>} : vector<448x192xbf16>, vector<192x64xbf16>, vector<448x64xf32> -> vector<448x64xf32>
      %c0_219 = arith.constant 0 : index
      %c0_220 = arith.constant 0 : index
      %272 = vector.load %arg26[%c0_219, %c0_220] : memref<448x64xf32, #tpu.memory_space<vmem>>, vector<448x64xf32>
      tpu.vector_store %arg26[%c0_219, %c0_220], %271 {strides = array<i32>} : memref<448x64xf32, #tpu.memory_space<vmem>>, vector<448x64xf32>,
      %c448_i32_221 = arith.constant 448 : i32
      %273 = arith.muli %arg29, %c448_i32_221 : i32
      %c112_i32 = arith.constant 112 : i32
      %274 = arith.addi %273, %c112_i32 : i32
      %275 = tpu.assume_multiple %274, 16 : i32
      %276 = arith.index_cast %275 : i32 to index
      %c0_222 = arith.constant 0 : index
      %277 = vector.load %arg25[%276, %c0_222] : memref<11424x192xbf16, #tpu.memory_space<vmem>>, vector<448x192xbf16>
      %c1_223 = arith.constant 1 : index
      %c0_224 = arith.constant 0 : index
      %c0_225 = arith.constant 0 : index
      %278 = vector.load %arg5[%c1_223, %c0_224, %c0_225] : memref<3x192x64xbf16, #tpu.memory_space<vmem>>, vector<1x192x64xbf16>
      %279 = vector.shape_cast %278 : vector<1x192x64xbf16> to vector<192x64xbf16>
      %cst_226 = arith.constant dense<0.000000e+00> : vector<448x64xf32>
      %280 = tpu.matmul %277, %279, %cst_226 {dimension_numbers = #tpu.dot_dimension_numbers<[1], [0], [0], [1], [0, 0, 1, 1], [], []>} : vector<448x192xbf16>, vector<192x64xbf16>, vector<448x64xf32> -> vector<448x64xf32>
      %c0_227 = arith.constant 0 : index
      %c0_228 = arith.constant 0 : index
      %281 = vector.load %arg26[%c0_227, %c0_228] : memref<448x64xf32, #tpu.memory_space<vmem>>, vector<448x64xf32>
      %282 = arith.addf %281, %280 : vector<448x64xf32>
      %c0_229 = arith.constant 0 : index
      %c0_230 = arith.constant 0 : index
      %283 = vector.load %arg26[%c0_229, %c0_230] : memref<448x64xf32, #tpu.memory_space<vmem>>, vector<448x64xf32>
      tpu.vector_store %arg26[%c0_229, %c0_230], %282 {strides = array<i32>} : memref<448x64xf32, #tpu.memory_space<vmem>>, vector<448x64xf32>,
      %c448_i32_231 = arith.constant 448 : i32
      %284 = arith.muli %arg29, %c448_i32_231 : i32
      %c224_i32 = arith.constant 224 : i32
      %285 = arith.addi %284, %c224_i32 : i32
      %286 = tpu.assume_multiple %285, 16 : i32
      %287 = arith.index_cast %286 : i32 to index
      %c0_232 = arith.constant 0 : index
      %288 = vector.load %arg25[%287, %c0_232] : memref<11424x192xbf16, #tpu.memory_space<vmem>>, vector<448x192xbf16>
      %c2_233 = arith.constant 2 : index
      %c0_234 = arith.constant 0 : index
      %c0_235 = arith.constant 0 : index
      %289 = vector.load %arg5[%c2_233, %c0_234, %c0_235] : memref<3x192x64xbf16, #tpu.memory_space<vmem>>, vector<1x192x64xbf16>
      %290 = vector.shape_cast %289 : vector<1x192x64xbf16> to vector<192x64xbf16>
      %cst_236 = arith.constant dense<0.000000e+00> : vector<448x64xf32>
      %291 = tpu.matmul %288, %290, %cst_236 {dimension_numbers = #tpu.dot_dimension_numbers<[1], [0], [0], [1], [0, 0, 1, 1], [], []>} : vector<448x192xbf16>, vector<192x64xbf16>, vector<448x64xf32> -> vector<448x64xf32>
      %c0_237 = arith.constant 0 : index
      %c0_238 = arith.constant 0 : index
      %292 = vector.load %arg26[%c0_237, %c0_238] : memref<448x64xf32, #tpu.memory_space<vmem>>, vector<448x64xf32>
      %293 = arith.addf %292, %291 : vector<448x64xf32>
      %c0_239 = arith.constant 0 : index
      %c0_240 = arith.constant 0 : index
      %294 = vector.load %arg26[%c0_239, %c0_240] : memref<448x64xf32, #tpu.memory_space<vmem>>, vector<448x64xf32>
      tpu.vector_store %arg26[%c0_239, %c0_240], %293 {strides = array<i32>} : memref<448x64xf32, #tpu.memory_space<vmem>>, vector<448x64xf32>,
      %c0_241 = arith.constant 0 : index
      %c0_242 = arith.constant 0 : index
      %295 = vector.load %arg26[%c0_241, %c0_242] : memref<448x64xf32, #tpu.memory_space<vmem>>, vector<448x64xf32>
      %c0_243 = arith.constant 0 : index
      %c0_244 = arith.constant 0 : index
      %296 = vector.load %arg6[%c0_243, %c0_244] : memref<1x64xf32, #tpu.memory_space<vmem>>, vector<1x64xf32>
      %297 = vector.broadcast %296 : vector<1x64xf32> to vector<448x64xf32>
      %298 = arith.mulf %295, %297 : vector<448x64xf32>
      %c0_245 = arith.constant 0 : index
      %c0_246 = arith.constant 0 : index
      %299 = vector.load %arg7[%c0_245, %c0_246] : memref<1x64xf32, #tpu.memory_space<vmem>>, vector<1x64xf32>
      %300 = vector.broadcast %299 : vector<1x64xf32> to vector<448x64xf32>
      %301 = arith.addf %298, %300 : vector<448x64xf32>
      %cst_247 = arith.constant 0.000000e+00 : f32
      %302 = vector.broadcast %cst_247 : f32 to vector<448x64xf32>
      %303 = arith.maximumf %301, %302 : vector<448x64xf32>
      %304 = arith.truncf %303 : vector<448x64xf32> to vector<448x64xbf16>
      %c0_248 = arith.constant 0 : index
      %c0_249 = arith.constant 0 : index
      %305 = vector.load %arg8[%c0_248, %c0_249] : memref<25x448xbf16, #tpu.memory_space<vmem>>, vector<25x448xbf16>
      %cst_250 = arith.constant dense<0.000000e+00> : vector<25x64xf32>
      %306 = tpu.matmul %305, %304, %cst_250 {dimension_numbers = #tpu.dot_dimension_numbers<[1], [0], [0], [1], [0, 0, 1, 1], [], []>} : vector<25x448xbf16>, vector<448x64xbf16>, vector<25x64xf32> -> vector<25x64xf32>
      %cst_251 = arith.constant 0.000000e+00 : f32
      %307 = vector.broadcast %cst_251 : f32 to vector<1x64xf32>
      %308 = vector.extract_strided_slice %306 {offsets = [0, 0], sizes = [24, 64], strides = [1, 1]} : vector<25x64xf32> to vector<24x64xf32>
      %309 = tpu.concatenate %307, %308 in 0 : vector<1x64xf32>, vector<24x64xf32> -> vector<25x64xf32>
      %310 = vector.extract_strided_slice %306 {offsets = [1, 0], sizes = [24, 64], strides = [1, 1]} : vector<25x64xf32> to vector<24x64xf32>
      %311 = tpu.concatenate %310, %307 in 0 : vector<24x64xf32>, vector<1x64xf32> -> vector<25x64xf32>
      %312 = tpu.concatenate %309, %306, %311 in 1 : vector<25x64xf32>, vector<25x64xf32>, vector<25x64xf32> -> vector<25x192xf32>
      %cst_252 = arith.constant 0.000000e+00 : f32
      %313 = vector.broadcast %cst_252 : f32 to vector<7x192xf32>
      %314 = tpu.concatenate %312, %313 in 0 : vector<25x192xf32>, vector<7x192xf32> -> vector<32x192xf32>
      %315 = arith.truncf %314 : vector<32x192xf32> to vector<32x192xbf16>
      %c1_i32_253 = arith.constant 1 : i32
      %316 = arith.addi %arg29, %c1_i32_253 : i32
      %c32_i32 = arith.constant 32 : i32
      %317 = arith.muli %316, %c32_i32 : i32
      %318 = tpu.assume_multiple %317, 16 : i32
      %319 = arith.index_cast %318 : i32 to index
      %c0_254 = arith.constant 0 : index
      %320 = vector.load %arg27[%319, %c0_254] : memref<864x192xbf16, #tpu.memory_space<vmem>>, vector<32x192xbf16>
      tpu.vector_store %arg27[%319, %c0_254], %315 {strides = array<i32>} : memref<864x192xbf16, #tpu.memory_space<vmem>>, vector<32x192xbf16>,
    }
    %c25_i32_28 = arith.constant 25 : i32
    %cst_29 = arith.constant 0.000000e+00 : bf16
    %33 = vector.broadcast %cst_29 : bf16 to vector<16x192xbf16>
    %c0_30 = arith.constant 0 : index
    %c0_31 = arith.constant 0 : index
    %34 = vector.load %arg28[%c0_30, %c0_31] : memref<112x192xbf16, #tpu.memory_space<vmem>>, vector<16x192xbf16>
    tpu.vector_store %arg28[%c0_30, %c0_31], %33 {strides = array<i32>} : memref<112x192xbf16, #tpu.memory_space<vmem>>, vector<16x192xbf16>,
    %cst_32 = arith.constant 0.000000e+00 : bf16
    %35 = vector.broadcast %cst_32 : bf16 to vector<16x192xbf16>
    %c96 = arith.constant 96 : index
    %c0_33 = arith.constant 0 : index
    %36 = vector.load %arg28[%c96, %c0_33] : memref<112x192xbf16, #tpu.memory_space<vmem>>, vector<16x192xbf16>
    tpu.vector_store %arg28[%c96, %c0_33], %35 {strides = array<i32>} : memref<112x192xbf16, #tpu.memory_space<vmem>>, vector<16x192xbf16>,
    %cst_34 = arith.constant 0.000000e+00 : f32
    %37 = vector.broadcast %cst_34 : f32 to vector<160x64xf32>
    %c0_35 = arith.constant 0 : index
    %c0_36 = arith.constant 0 : index
    %38 = vector.load %arg27[%c0_35, %c0_36] : memref<864x192xbf16, #tpu.memory_space<vmem>>, vector<160x192xbf16>
    %c0_37 = arith.constant 0 : index
    %c0_38 = arith.constant 0 : index
    %c0_39 = arith.constant 0 : index
    %39 = vector.load %arg9[%c0_37, %c0_38, %c0_39] : memref<3x192x64xbf16, #tpu.memory_space<vmem>>, vector<1x192x64xbf16>
    %40 = vector.shape_cast %39 : vector<1x192x64xbf16> to vector<192x64xbf16>
    %cst_40 = arith.constant dense<0.000000e+00> : vector<160x64xf32>
    %41 = tpu.matmul %38, %40, %cst_40 {dimension_numbers = #tpu.dot_dimension_numbers<[1], [0], [0], [1], [0, 0, 1, 1], [], []>} : vector<160x192xbf16>, vector<192x64xbf16>, vector<160x64xf32> -> vector<160x64xf32>
    %42 = arith.addf %37, %41 : vector<160x64xf32>
    %c32 = arith.constant 32 : index
    %c0_41 = arith.constant 0 : index
    %43 = vector.load %arg27[%c32, %c0_41] : memref<864x192xbf16, #tpu.memory_space<vmem>>, vector<160x192xbf16>
    %c1 = arith.constant 1 : index
    %c0_42 = arith.constant 0 : index
    %c0_43 = arith.constant 0 : index
    %44 = vector.load %arg9[%c1, %c0_42, %c0_43] : memref<3x192x64xbf16, #tpu.memory_space<vmem>>, vector<1x192x64xbf16>
    %45 = vector.shape_cast %44 : vector<1x192x64xbf16> to vector<192x64xbf16>
    %cst_44 = arith.constant dense<0.000000e+00> : vector<160x64xf32>
    %46 = tpu.matmul %43, %45, %cst_44 {dimension_numbers = #tpu.dot_dimension_numbers<[1], [0], [0], [1], [0, 0, 1, 1], [], []>} : vector<160x192xbf16>, vector<192x64xbf16>, vector<160x64xf32> -> vector<160x64xf32>
    %47 = arith.addf %42, %46 : vector<160x64xf32>
    %c64 = arith.constant 64 : index
    %c0_45 = arith.constant 0 : index
    %48 = vector.load %arg27[%c64, %c0_45] : memref<864x192xbf16, #tpu.memory_space<vmem>>, vector<160x192xbf16>
    %c2 = arith.constant 2 : index
    %c0_46 = arith.constant 0 : index
    %c0_47 = arith.constant 0 : index
    %49 = vector.load %arg9[%c2, %c0_46, %c0_47] : memref<3x192x64xbf16, #tpu.memory_space<vmem>>, vector<1x192x64xbf16>
    %50 = vector.shape_cast %49 : vector<1x192x64xbf16> to vector<192x64xbf16>
    %cst_48 = arith.constant dense<0.000000e+00> : vector<160x64xf32>
    %51 = tpu.matmul %48, %50, %cst_48 {dimension_numbers = #tpu.dot_dimension_numbers<[1], [0], [0], [1], [0, 0, 1, 1], [], []>} : vector<160x192xbf16>, vector<192x64xbf16>, vector<160x64xf32> -> vector<160x64xf32>
    %52 = arith.addf %47, %51 : vector<160x64xf32>
    %c0_49 = arith.constant 0 : index
    %c0_50 = arith.constant 0 : index
    %53 = vector.load %arg10[%c0_49, %c0_50] : memref<1x64xf32, #tpu.memory_space<vmem>>, vector<1x64xf32>
    %54 = vector.broadcast %53 : vector<1x64xf32> to vector<160x64xf32>
    %55 = arith.mulf %52, %54 : vector<160x64xf32>
    %c0_51 = arith.constant 0 : index
    %c0_52 = arith.constant 0 : index
    %56 = vector.load %arg11[%c0_51, %c0_52] : memref<1x64xf32, #tpu.memory_space<vmem>>, vector<1x64xf32>
    %57 = vector.broadcast %56 : vector<1x64xf32> to vector<160x64xf32>
    %58 = arith.addf %55, %57 : vector<160x64xf32>
    %cst_53 = arith.constant 0.000000e+00 : f32
    %59 = vector.broadcast %cst_53 : f32 to vector<160x64xf32>
    %60 = arith.maximumf %58, %59 : vector<160x64xf32>
    %61 = arith.truncf %60 : vector<160x64xf32> to vector<160x64xbf16>
    %c0_54 = arith.constant 0 : index
    %c0_55 = arith.constant 0 : index
    %62 = vector.load %arg12[%c0_54, %c0_55] : memref<5x160xbf16, #tpu.memory_space<vmem>>, vector<5x160xbf16>
    %cst_56 = arith.constant dense<0.000000e+00> : vector<5x64xf32>
    %63 = tpu.matmul %62, %61, %cst_56 {dimension_numbers = #tpu.dot_dimension_numbers<[1], [0], [0], [1], [0, 0, 1, 1], [], []>} : vector<5x160xbf16>, vector<160x64xbf16>, vector<5x64xf32> -> vector<5x64xf32>
    %cst_57 = arith.constant 0.000000e+00 : f32
    %64 = vector.broadcast %cst_57 : f32 to vector<1x64xf32>
    %65 = vector.extract_strided_slice %63 {offsets = [0, 0], sizes = [4, 64], strides = [1, 1]} : vector<5x64xf32> to vector<4x64xf32>
    %66 = tpu.concatenate %64, %65 in 0 : vector<1x64xf32>, vector<4x64xf32> -> vector<5x64xf32>
    %67 = vector.extract_strided_slice %63 {offsets = [1, 0], sizes = [4, 64], strides = [1, 1]} : vector<5x64xf32> to vector<4x64xf32>
    %68 = tpu.concatenate %67, %64 in 0 : vector<4x64xf32>, vector<1x64xf32> -> vector<5x64xf32>
    %69 = tpu.concatenate %66, %63, %68 in 1 : vector<5x64xf32>, vector<5x64xf32>, vector<5x64xf32> -> vector<5x192xf32>
    %cst_58 = arith.constant 0.000000e+00 : f32
    %70 = vector.broadcast %cst_58 : f32 to vector<11x192xf32>
    %71 = tpu.concatenate %69, %70 in 0 : vector<5x192xf32>, vector<11x192xf32> -> vector<16x192xf32>
    %72 = arith.truncf %71 : vector<16x192xf32> to vector<16x192xbf16>
    %c16 = arith.constant 16 : index
    %c0_59 = arith.constant 0 : index
    %73 = vector.load %arg28[%c16, %c0_59] : memref<112x192xbf16, #tpu.memory_space<vmem>>, vector<16x192xbf16>
    tpu.vector_store %arg28[%c16, %c0_59], %72 {strides = array<i32>} : memref<112x192xbf16, #tpu.memory_space<vmem>>, vector<16x192xbf16>,
    %cst_60 = arith.constant 0.000000e+00 : f32
    %74 = vector.broadcast %cst_60 : f32 to vector<160x64xf32>
    %c160 = arith.constant 160 : index
    %c0_61 = arith.constant 0 : index
    %75 = vector.load %arg27[%c160, %c0_61] : memref<864x192xbf16, #tpu.memory_space<vmem>>, vector<160x192xbf16>
    %c0_62 = arith.constant 0 : index
    %c0_63 = arith.constant 0 : index
    %c0_64 = arith.constant 0 : index
    %76 = vector.load %arg9[%c0_62, %c0_63, %c0_64] : memref<3x192x64xbf16, #tpu.memory_space<vmem>>, vector<1x192x64xbf16>
    %77 = vector.shape_cast %76 : vector<1x192x64xbf16> to vector<192x64xbf16>
    %cst_65 = arith.constant dense<0.000000e+00> : vector<160x64xf32>
    %78 = tpu.matmul %75, %77, %cst_65 {dimension_numbers = #tpu.dot_dimension_numbers<[1], [0], [0], [1], [0, 0, 1, 1], [], []>} : vector<160x192xbf16>, vector<192x64xbf16>, vector<160x64xf32> -> vector<160x64xf32>
    %79 = arith.addf %74, %78 : vector<160x64xf32>
    %c192 = arith.constant 192 : index
    %c0_66 = arith.constant 0 : index
    %80 = vector.load %arg27[%c192, %c0_66] : memref<864x192xbf16, #tpu.memory_space<vmem>>, vector<160x192xbf16>
    %c1_67 = arith.constant 1 : index
    %c0_68 = arith.constant 0 : index
    %c0_69 = arith.constant 0 : index
    %81 = vector.load %arg9[%c1_67, %c0_68, %c0_69] : memref<3x192x64xbf16, #tpu.memory_space<vmem>>, vector<1x192x64xbf16>
    %82 = vector.shape_cast %81 : vector<1x192x64xbf16> to vector<192x64xbf16>
    %cst_70 = arith.constant dense<0.000000e+00> : vector<160x64xf32>
    %83 = tpu.matmul %80, %82, %cst_70 {dimension_numbers = #tpu.dot_dimension_numbers<[1], [0], [0], [1], [0, 0, 1, 1], [], []>} : vector<160x192xbf16>, vector<192x64xbf16>, vector<160x64xf32> -> vector<160x64xf32>
    %84 = arith.addf %79, %83 : vector<160x64xf32>
    %c224 = arith.constant 224 : index
    %c0_71 = arith.constant 0 : index
    %85 = vector.load %arg27[%c224, %c0_71] : memref<864x192xbf16, #tpu.memory_space<vmem>>, vector<160x192xbf16>
    %c2_72 = arith.constant 2 : index
    %c0_73 = arith.constant 0 : index
    %c0_74 = arith.constant 0 : index
    %86 = vector.load %arg9[%c2_72, %c0_73, %c0_74] : memref<3x192x64xbf16, #tpu.memory_space<vmem>>, vector<1x192x64xbf16>
    %87 = vector.shape_cast %86 : vector<1x192x64xbf16> to vector<192x64xbf16>
    %cst_75 = arith.constant dense<0.000000e+00> : vector<160x64xf32>
    %88 = tpu.matmul %85, %87, %cst_75 {dimension_numbers = #tpu.dot_dimension_numbers<[1], [0], [0], [1], [0, 0, 1, 1], [], []>} : vector<160x192xbf16>, vector<192x64xbf16>, vector<160x64xf32> -> vector<160x64xf32>
    %89 = arith.addf %84, %88 : vector<160x64xf32>
    %c0_76 = arith.constant 0 : index
    %c0_77 = arith.constant 0 : index
    %90 = vector.load %arg10[%c0_76, %c0_77] : memref<1x64xf32, #tpu.memory_space<vmem>>, vector<1x64xf32>
    %91 = vector.broadcast %90 : vector<1x64xf32> to vector<160x64xf32>
    %92 = arith.mulf %89, %91 : vector<160x64xf32>
    %c0_78 = arith.constant 0 : index
    %c0_79 = arith.constant 0 : index
    %93 = vector.load %arg11[%c0_78, %c0_79] : memref<1x64xf32, #tpu.memory_space<vmem>>, vector<1x64xf32>
    %94 = vector.broadcast %93 : vector<1x64xf32> to vector<160x64xf32>
    %95 = arith.addf %92, %94 : vector<160x64xf32>
    %cst_80 = arith.constant 0.000000e+00 : f32
    %96 = vector.broadcast %cst_80 : f32 to vector<160x64xf32>
    %97 = arith.maximumf %95, %96 : vector<160x64xf32>
    %98 = arith.truncf %97 : vector<160x64xf32> to vector<160x64xbf16>
    %c0_81 = arith.constant 0 : index
    %c0_82 = arith.constant 0 : index
    %99 = vector.load %arg12[%c0_81, %c0_82] : memref<5x160xbf16, #tpu.memory_space<vmem>>, vector<5x160xbf16>
    %cst_83 = arith.constant dense<0.000000e+00> : vector<5x64xf32>
    %100 = tpu.matmul %99, %98, %cst_83 {dimension_numbers = #tpu.dot_dimension_numbers<[1], [0], [0], [1], [0, 0, 1, 1], [], []>} : vector<5x160xbf16>, vector<160x64xbf16>, vector<5x64xf32> -> vector<5x64xf32>
    %cst_84 = arith.constant 0.000000e+00 : f32
    %101 = vector.broadcast %cst_84 : f32 to vector<1x64xf32>
    %102 = vector.extract_strided_slice %100 {offsets = [0, 0], sizes = [4, 64], strides = [1, 1]} : vector<5x64xf32> to vector<4x64xf32>
    %103 = tpu.concatenate %101, %102 in 0 : vector<1x64xf32>, vector<4x64xf32> -> vector<5x64xf32>
    %104 = vector.extract_strided_slice %100 {offsets = [1, 0], sizes = [4, 64], strides = [1, 1]} : vector<5x64xf32> to vector<4x64xf32>
    %105 = tpu.concatenate %104, %101 in 0 : vector<4x64xf32>, vector<1x64xf32> -> vector<5x64xf32>
    %106 = tpu.concatenate %103, %100, %105 in 1 : vector<5x64xf32>, vector<5x64xf32>, vector<5x64xf32> -> vector<5x192xf32>
    %cst_85 = arith.constant 0.000000e+00 : f32
    %107 = vector.broadcast %cst_85 : f32 to vector<11x192xf32>
    %108 = tpu.concatenate %106, %107 in 0 : vector<5x192xf32>, vector<11x192xf32> -> vector<16x192xf32>
    %109 = arith.truncf %108 : vector<16x192xf32> to vector<16x192xbf16>
    %c32_86 = arith.constant 32 : index
    %c0_87 = arith.constant 0 : index
    %110 = vector.load %arg28[%c32_86, %c0_87] : memref<112x192xbf16, #tpu.memory_space<vmem>>, vector<16x192xbf16>
    tpu.vector_store %arg28[%c32_86, %c0_87], %109 {strides = array<i32>} : memref<112x192xbf16, #tpu.memory_space<vmem>>, vector<16x192xbf16>,
    %cst_88 = arith.constant 0.000000e+00 : f32
    %111 = vector.broadcast %cst_88 : f32 to vector<160x64xf32>
    %c320 = arith.constant 320 : index
    %c0_89 = arith.constant 0 : index
    %112 = vector.load %arg27[%c320, %c0_89] : memref<864x192xbf16, #tpu.memory_space<vmem>>, vector<160x192xbf16>
    %c0_90 = arith.constant 0 : index
    %c0_91 = arith.constant 0 : index
    %c0_92 = arith.constant 0 : index
    %113 = vector.load %arg9[%c0_90, %c0_91, %c0_92] : memref<3x192x64xbf16, #tpu.memory_space<vmem>>, vector<1x192x64xbf16>
    %114 = vector.shape_cast %113 : vector<1x192x64xbf16> to vector<192x64xbf16>
    %cst_93 = arith.constant dense<0.000000e+00> : vector<160x64xf32>
    %115 = tpu.matmul %112, %114, %cst_93 {dimension_numbers = #tpu.dot_dimension_numbers<[1], [0], [0], [1], [0, 0, 1, 1], [], []>} : vector<160x192xbf16>, vector<192x64xbf16>, vector<160x64xf32> -> vector<160x64xf32>
    %116 = arith.addf %111, %115 : vector<160x64xf32>
    %c352 = arith.constant 352 : index
    %c0_94 = arith.constant 0 : index
    %117 = vector.load %arg27[%c352, %c0_94] : memref<864x192xbf16, #tpu.memory_space<vmem>>, vector<160x192xbf16>
    %c1_95 = arith.constant 1 : index
    %c0_96 = arith.constant 0 : index
    %c0_97 = arith.constant 0 : index
    %118 = vector.load %arg9[%c1_95, %c0_96, %c0_97] : memref<3x192x64xbf16, #tpu.memory_space<vmem>>, vector<1x192x64xbf16>
    %119 = vector.shape_cast %118 : vector<1x192x64xbf16> to vector<192x64xbf16>
    %cst_98 = arith.constant dense<0.000000e+00> : vector<160x64xf32>
    %120 = tpu.matmul %117, %119, %cst_98 {dimension_numbers = #tpu.dot_dimension_numbers<[1], [0], [0], [1], [0, 0, 1, 1], [], []>} : vector<160x192xbf16>, vector<192x64xbf16>, vector<160x64xf32> -> vector<160x64xf32>
    %121 = arith.addf %116, %120 : vector<160x64xf32>
    %c384 = arith.constant 384 : index
    %c0_99 = arith.constant 0 : index
    %122 = vector.load %arg27[%c384, %c0_99] : memref<864x192xbf16, #tpu.memory_space<vmem>>, vector<160x192xbf16>
    %c2_100 = arith.constant 2 : index
    %c0_101 = arith.constant 0 : index
    %c0_102 = arith.constant 0 : index
    %123 = vector.load %arg9[%c2_100, %c0_101, %c0_102] : memref<3x192x64xbf16, #tpu.memory_space<vmem>>, vector<1x192x64xbf16>
    %124 = vector.shape_cast %123 : vector<1x192x64xbf16> to vector<192x64xbf16>
    %cst_103 = arith.constant dense<0.000000e+00> : vector<160x64xf32>
    %125 = tpu.matmul %122, %124, %cst_103 {dimension_numbers = #tpu.dot_dimension_numbers<[1], [0], [0], [1], [0, 0, 1, 1], [], []>} : vector<160x192xbf16>, vector<192x64xbf16>, vector<160x64xf32> -> vector<160x64xf32>
    %126 = arith.addf %121, %125 : vector<160x64xf32>
    %c0_104 = arith.constant 0 : index
    %c0_105 = arith.constant 0 : index
    %127 = vector.load %arg10[%c0_104, %c0_105] : memref<1x64xf32, #tpu.memory_space<vmem>>, vector<1x64xf32>
    %128 = vector.broadcast %127 : vector<1x64xf32> to vector<160x64xf32>
    %129 = arith.mulf %126, %128 : vector<160x64xf32>
    %c0_106 = arith.constant 0 : index
    %c0_107 = arith.constant 0 : index
    %130 = vector.load %arg11[%c0_106, %c0_107] : memref<1x64xf32, #tpu.memory_space<vmem>>, vector<1x64xf32>
    %131 = vector.broadcast %130 : vector<1x64xf32> to vector<160x64xf32>
    %132 = arith.addf %129, %131 : vector<160x64xf32>
    %cst_108 = arith.constant 0.000000e+00 : f32
    %133 = vector.broadcast %cst_108 : f32 to vector<160x64xf32>
    %134 = arith.maximumf %132, %133 : vector<160x64xf32>
    %135 = arith.truncf %134 : vector<160x64xf32> to vector<160x64xbf16>
    %c0_109 = arith.constant 0 : index
    %c0_110 = arith.constant 0 : index
    %136 = vector.load %arg12[%c0_109, %c0_110] : memref<5x160xbf16, #tpu.memory_space<vmem>>, vector<5x160xbf16>
    %cst_111 = arith.constant dense<0.000000e+00> : vector<5x64xf32>
    %137 = tpu.matmul %136, %135, %cst_111 {dimension_numbers = #tpu.dot_dimension_numbers<[1], [0], [0], [1], [0, 0, 1, 1], [], []>} : vector<5x160xbf16>, vector<160x64xbf16>, vector<5x64xf32> -> vector<5x64xf32>
    %cst_112 = arith.constant 0.000000e+00 : f32
    %138 = vector.broadcast %cst_112 : f32 to vector<1x64xf32>
    %139 = vector.extract_strided_slice %137 {offsets = [0, 0], sizes = [4, 64], strides = [1, 1]} : vector<5x64xf32> to vector<4x64xf32>
    %140 = tpu.concatenate %138, %139 in 0 : vector<1x64xf32>, vector<4x64xf32> -> vector<5x64xf32>
    %141 = vector.extract_strided_slice %137 {offsets = [1, 0], sizes = [4, 64], strides = [1, 1]} : vector<5x64xf32> to vector<4x64xf32>
    %142 = tpu.concatenate %141, %138 in 0 : vector<4x64xf32>, vector<1x64xf32> -> vector<5x64xf32>
    %143 = tpu.concatenate %140, %137, %142 in 1 : vector<5x64xf32>, vector<5x64xf32>, vector<5x64xf32> -> vector<5x192xf32>
    %cst_113 = arith.constant 0.000000e+00 : f32
    %144 = vector.broadcast %cst_113 : f32 to vector<11x192xf32>
    %145 = tpu.concatenate %143, %144 in 0 : vector<5x192xf32>, vector<11x192xf32> -> vector<16x192xf32>
    %146 = arith.truncf %145 : vector<16x192xf32> to vector<16x192xbf16>
    %c48 = arith.constant 48 : index
    %c0_114 = arith.constant 0 : index
    %147 = vector.load %arg28[%c48, %c0_114] : memref<112x192xbf16, #tpu.memory_space<vmem>>, vector<16x192xbf16>
    tpu.vector_store %arg28[%c48, %c0_114], %146 {strides = array<i32>} : memref<112x192xbf16, #tpu.memory_space<vmem>>, vector<16x192xbf16>,
    %cst_115 = arith.constant 0.000000e+00 : f32
    %148 = vector.broadcast %cst_115 : f32 to vector<160x64xf32>
    %c480 = arith.constant 480 : index
    %c0_116 = arith.constant 0 : index
    %149 = vector.load %arg27[%c480, %c0_116] : memref<864x192xbf16, #tpu.memory_space<vmem>>, vector<160x192xbf16>
    %c0_117 = arith.constant 0 : index
    %c0_118 = arith.constant 0 : index
    %c0_119 = arith.constant 0 : index
    %150 = vector.load %arg9[%c0_117, %c0_118, %c0_119] : memref<3x192x64xbf16, #tpu.memory_space<vmem>>, vector<1x192x64xbf16>
    %151 = vector.shape_cast %150 : vector<1x192x64xbf16> to vector<192x64xbf16>
    %cst_120 = arith.constant dense<0.000000e+00> : vector<160x64xf32>
    %152 = tpu.matmul %149, %151, %cst_120 {dimension_numbers = #tpu.dot_dimension_numbers<[1], [0], [0], [1], [0, 0, 1, 1], [], []>} : vector<160x192xbf16>, vector<192x64xbf16>, vector<160x64xf32> -> vector<160x64xf32>
    %153 = arith.addf %148, %152 : vector<160x64xf32>
    %c512 = arith.constant 512 : index
    %c0_121 = arith.constant 0 : index
    %154 = vector.load %arg27[%c512, %c0_121] : memref<864x192xbf16, #tpu.memory_space<vmem>>, vector<160x192xbf16>
    %c1_122 = arith.constant 1 : index
    %c0_123 = arith.constant 0 : index
    %c0_124 = arith.constant 0 : index
    %155 = vector.load %arg9[%c1_122, %c0_123, %c0_124] : memref<3x192x64xbf16, #tpu.memory_space<vmem>>, vector<1x192x64xbf16>
    %156 = vector.shape_cast %155 : vector<1x192x64xbf16> to vector<192x64xbf16>
    %cst_125 = arith.constant dense<0.000000e+00> : vector<160x64xf32>
    %157 = tpu.matmul %154, %156, %cst_125 {dimension_numbers = #tpu.dot_dimension_numbers<[1], [0], [0], [1], [0, 0, 1, 1], [], []>} : vector<160x192xbf16>, vector<192x64xbf16>, vector<160x64xf32> -> vector<160x64xf32>
    %158 = arith.addf %153, %157 : vector<160x64xf32>
    %c544 = arith.constant 544 : index
    %c0_126 = arith.constant 0 : index
    %159 = vector.load %arg27[%c544, %c0_126] : memref<864x192xbf16, #tpu.memory_space<vmem>>, vector<160x192xbf16>
    %c2_127 = arith.constant 2 : index
    %c0_128 = arith.constant 0 : index
    %c0_129 = arith.constant 0 : index
    %160 = vector.load %arg9[%c2_127, %c0_128, %c0_129] : memref<3x192x64xbf16, #tpu.memory_space<vmem>>, vector<1x192x64xbf16>
    %161 = vector.shape_cast %160 : vector<1x192x64xbf16> to vector<192x64xbf16>
    %cst_130 = arith.constant dense<0.000000e+00> : vector<160x64xf32>
    %162 = tpu.matmul %159, %161, %cst_130 {dimension_numbers = #tpu.dot_dimension_numbers<[1], [0], [0], [1], [0, 0, 1, 1], [], []>} : vector<160x192xbf16>, vector<192x64xbf16>, vector<160x64xf32> -> vector<160x64xf32>
    %163 = arith.addf %158, %162 : vector<160x64xf32>
    %c0_131 = arith.constant 0 : index
    %c0_132 = arith.constant 0 : index
    %164 = vector.load %arg10[%c0_131, %c0_132] : memref<1x64xf32, #tpu.memory_space<vmem>>, vector<1x64xf32>
    %165 = vector.broadcast %164 : vector<1x64xf32> to vector<160x64xf32>
    %166 = arith.mulf %163, %165 : vector<160x64xf32>
    %c0_133 = arith.constant 0 : index
    %c0_134 = arith.constant 0 : index
    %167 = vector.load %arg11[%c0_133, %c0_134] : memref<1x64xf32, #tpu.memory_space<vmem>>, vector<1x64xf32>
    %168 = vector.broadcast %167 : vector<1x64xf32> to vector<160x64xf32>
    %169 = arith.addf %166, %168 : vector<160x64xf32>
    %cst_135 = arith.constant 0.000000e+00 : f32
    %170 = vector.broadcast %cst_135 : f32 to vector<160x64xf32>
    %171 = arith.maximumf %169, %170 : vector<160x64xf32>
    %172 = arith.truncf %171 : vector<160x64xf32> to vector<160x64xbf16>
    %c0_136 = arith.constant 0 : index
    %c0_137 = arith.constant 0 : index
    %173 = vector.load %arg12[%c0_136, %c0_137] : memref<5x160xbf16, #tpu.memory_space<vmem>>, vector<5x160xbf16>
    %cst_138 = arith.constant dense<0.000000e+00> : vector<5x64xf32>
    %174 = tpu.matmul %173, %172, %cst_138 {dimension_numbers = #tpu.dot_dimension_numbers<[1], [0], [0], [1], [0, 0, 1, 1], [], []>} : vector<5x160xbf16>, vector<160x64xbf16>, vector<5x64xf32> -> vector<5x64xf32>
    %cst_139 = arith.constant 0.000000e+00 : f32
    %175 = vector.broadcast %cst_139 : f32 to vector<1x64xf32>
    %176 = vector.extract_strided_slice %174 {offsets = [0, 0], sizes = [4, 64], strides = [1, 1]} : vector<5x64xf32> to vector<4x64xf32>
    %177 = tpu.concatenate %175, %176 in 0 : vector<1x64xf32>, vector<4x64xf32> -> vector<5x64xf32>
    %178 = vector.extract_strided_slice %174 {offsets = [1, 0], sizes = [4, 64], strides = [1, 1]} : vector<5x64xf32> to vector<4x64xf32>
    %179 = tpu.concatenate %178, %175 in 0 : vector<4x64xf32>, vector<1x64xf32> -> vector<5x64xf32>
    %180 = tpu.concatenate %177, %174, %179 in 1 : vector<5x64xf32>, vector<5x64xf32>, vector<5x64xf32> -> vector<5x192xf32>
    %cst_140 = arith.constant 0.000000e+00 : f32
    %181 = vector.broadcast %cst_140 : f32 to vector<11x192xf32>
    %182 = tpu.concatenate %180, %181 in 0 : vector<5x192xf32>, vector<11x192xf32> -> vector<16x192xf32>
    %183 = arith.truncf %182 : vector<16x192xf32> to vector<16x192xbf16>
    %c64_141 = arith.constant 64 : index
    %c0_142 = arith.constant 0 : index
    %184 = vector.load %arg28[%c64_141, %c0_142] : memref<112x192xbf16, #tpu.memory_space<vmem>>, vector<16x192xbf16>
    tpu.vector_store %arg28[%c64_141, %c0_142], %183 {strides = array<i32>} : memref<112x192xbf16, #tpu.memory_space<vmem>>, vector<16x192xbf16>,
    %cst_143 = arith.constant 0.000000e+00 : f32
    %185 = vector.broadcast %cst_143 : f32 to vector<160x64xf32>
    %c640 = arith.constant 640 : index
    %c0_144 = arith.constant 0 : index
    %186 = vector.load %arg27[%c640, %c0_144] : memref<864x192xbf16, #tpu.memory_space<vmem>>, vector<160x192xbf16>
    %c0_145 = arith.constant 0 : index
    %c0_146 = arith.constant 0 : index
    %c0_147 = arith.constant 0 : index
    %187 = vector.load %arg9[%c0_145, %c0_146, %c0_147] : memref<3x192x64xbf16, #tpu.memory_space<vmem>>, vector<1x192x64xbf16>
    %188 = vector.shape_cast %187 : vector<1x192x64xbf16> to vector<192x64xbf16>
    %cst_148 = arith.constant dense<0.000000e+00> : vector<160x64xf32>
    %189 = tpu.matmul %186, %188, %cst_148 {dimension_numbers = #tpu.dot_dimension_numbers<[1], [0], [0], [1], [0, 0, 1, 1], [], []>} : vector<160x192xbf16>, vector<192x64xbf16>, vector<160x64xf32> -> vector<160x64xf32>
    %190 = arith.addf %185, %189 : vector<160x64xf32>
    %c672 = arith.constant 672 : index
    %c0_149 = arith.constant 0 : index
    %191 = vector.load %arg27[%c672, %c0_149] : memref<864x192xbf16, #tpu.memory_space<vmem>>, vector<160x192xbf16>
    %c1_150 = arith.constant 1 : index
    %c0_151 = arith.constant 0 : index
    %c0_152 = arith.constant 0 : index
    %192 = vector.load %arg9[%c1_150, %c0_151, %c0_152] : memref<3x192x64xbf16, #tpu.memory_space<vmem>>, vector<1x192x64xbf16>
    %193 = vector.shape_cast %192 : vector<1x192x64xbf16> to vector<192x64xbf16>
    %cst_153 = arith.constant dense<0.000000e+00> : vector<160x64xf32>
    %194 = tpu.matmul %191, %193, %cst_153 {dimension_numbers = #tpu.dot_dimension_numbers<[1], [0], [0], [1], [0, 0, 1, 1], [], []>} : vector<160x192xbf16>, vector<192x64xbf16>, vector<160x64xf32> -> vector<160x64xf32>
    %195 = arith.addf %190, %194 : vector<160x64xf32>
    %c704 = arith.constant 704 : index
    %c0_154 = arith.constant 0 : index
    %196 = vector.load %arg27[%c704, %c0_154] : memref<864x192xbf16, #tpu.memory_space<vmem>>, vector<160x192xbf16>
    %c2_155 = arith.constant 2 : index
    %c0_156 = arith.constant 0 : index
    %c0_157 = arith.constant 0 : index
    %197 = vector.load %arg9[%c2_155, %c0_156, %c0_157] : memref<3x192x64xbf16, #tpu.memory_space<vmem>>, vector<1x192x64xbf16>
    %198 = vector.shape_cast %197 : vector<1x192x64xbf16> to vector<192x64xbf16>
    %cst_158 = arith.constant dense<0.000000e+00> : vector<160x64xf32>
    %199 = tpu.matmul %196, %198, %cst_158 {dimension_numbers = #tpu.dot_dimension_numbers<[1], [0], [0], [1], [0, 0, 1, 1], [], []>} : vector<160x192xbf16>, vector<192x64xbf16>, vector<160x64xf32> -> vector<160x64xf32>
    %200 = arith.addf %195, %199 : vector<160x64xf32>
    %c0_159 = arith.constant 0 : index
    %c0_160 = arith.constant 0 : index
    %201 = vector.load %arg10[%c0_159, %c0_160] : memref<1x64xf32, #tpu.memory_space<vmem>>, vector<1x64xf32>
    %202 = vector.broadcast %201 : vector<1x64xf32> to vector<160x64xf32>
    %203 = arith.mulf %200, %202 : vector<160x64xf32>
    %c0_161 = arith.constant 0 : index
    %c0_162 = arith.constant 0 : index
    %204 = vector.load %arg11[%c0_161, %c0_162] : memref<1x64xf32, #tpu.memory_space<vmem>>, vector<1x64xf32>
    %205 = vector.broadcast %204 : vector<1x64xf32> to vector<160x64xf32>
    %206 = arith.addf %203, %205 : vector<160x64xf32>
    %cst_163 = arith.constant 0.000000e+00 : f32
    %207 = vector.broadcast %cst_163 : f32 to vector<160x64xf32>
    %208 = arith.maximumf %206, %207 : vector<160x64xf32>
    %209 = arith.truncf %208 : vector<160x64xf32> to vector<160x64xbf16>
    %c0_164 = arith.constant 0 : index
    %c0_165 = arith.constant 0 : index
    %210 = vector.load %arg12[%c0_164, %c0_165] : memref<5x160xbf16, #tpu.memory_space<vmem>>, vector<5x160xbf16>
    %cst_166 = arith.constant dense<0.000000e+00> : vector<5x64xf32>
    %211 = tpu.matmul %210, %209, %cst_166 {dimension_numbers = #tpu.dot_dimension_numbers<[1], [0], [0], [1], [0, 0, 1, 1], [], []>} : vector<5x160xbf16>, vector<160x64xbf16>, vector<5x64xf32> -> vector<5x64xf32>
    %cst_167 = arith.constant 0.000000e+00 : f32
    %212 = vector.broadcast %cst_167 : f32 to vector<1x64xf32>
    %213 = vector.extract_strided_slice %211 {offsets = [0, 0], sizes = [4, 64], strides = [1, 1]} : vector<5x64xf32> to vector<4x64xf32>
    %214 = tpu.concatenate %212, %213 in 0 : vector<1x64xf32>, vector<4x64xf32> -> vector<5x64xf32>
    %215 = vector.extract_strided_slice %211 {offsets = [1, 0], sizes = [4, 64], strides = [1, 1]} : vector<5x64xf32> to vector<4x64xf32>
    %216 = tpu.concatenate %215, %212 in 0 : vector<4x64xf32>, vector<1x64xf32> -> vector<5x64xf32>
    %217 = tpu.concatenate %214, %211, %216 in 1 : vector<5x64xf32>, vector<5x64xf32>, vector<5x64xf32> -> vector<5x192xf32>
    %cst_168 = arith.constant 0.000000e+00 : f32
    %218 = vector.broadcast %cst_168 : f32 to vector<11x192xf32>
    %219 = tpu.concatenate %217, %218 in 0 : vector<5x192xf32>, vector<11x192xf32> -> vector<16x192xf32>
    %220 = arith.truncf %219 : vector<16x192xf32> to vector<16x192xbf16>
    %c80 = arith.constant 80 : index
    %c0_169 = arith.constant 0 : index
    %221 = vector.load %arg28[%c80, %c0_169] : memref<112x192xbf16, #tpu.memory_space<vmem>>, vector<16x192xbf16>
    tpu.vector_store %arg28[%c80, %c0_169], %220 {strides = array<i32>} : memref<112x192xbf16, #tpu.memory_space<vmem>>, vector<16x192xbf16>,
    %cst_170 = arith.constant 0.000000e+00 : f32
    %222 = vector.broadcast %cst_170 : f32 to vector<80x128xf32>
    %c0_171 = arith.constant 0 : index
    %c0_172 = arith.constant 0 : index
    %223 = vector.load %arg28[%c0_171, %c0_172] : memref<112x192xbf16, #tpu.memory_space<vmem>>, vector<80x192xbf16>
    %c0_173 = arith.constant 0 : index
    %c0_174 = arith.constant 0 : index
    %c0_175 = arith.constant 0 : index
    %224 = vector.load %arg13[%c0_173, %c0_174, %c0_175] : memref<3x192x128xbf16, #tpu.memory_space<vmem>>, vector<1x192x128xbf16>
    %225 = vector.shape_cast %224 : vector<1x192x128xbf16> to vector<192x128xbf16>
    %cst_176 = arith.constant dense<0.000000e+00> : vector<80x128xf32>
    %226 = tpu.matmul %223, %225, %cst_176 {dimension_numbers = #tpu.dot_dimension_numbers<[1], [0], [0], [1], [0, 0, 1, 1], [], []>} : vector<80x192xbf16>, vector<192x128xbf16>, vector<80x128xf32> -> vector<80x128xf32>
    %227 = arith.addf %222, %226 : vector<80x128xf32>
    %c16_177 = arith.constant 16 : index
    %c0_178 = arith.constant 0 : index
    %228 = vector.load %arg28[%c16_177, %c0_178] : memref<112x192xbf16, #tpu.memory_space<vmem>>, vector<80x192xbf16>
    %c1_179 = arith.constant 1 : index
    %c0_180 = arith.constant 0 : index
    %c0_181 = arith.constant 0 : index
    %229 = vector.load %arg13[%c1_179, %c0_180, %c0_181] : memref<3x192x128xbf16, #tpu.memory_space<vmem>>, vector<1x192x128xbf16>
    %230 = vector.shape_cast %229 : vector<1x192x128xbf16> to vector<192x128xbf16>
    %cst_182 = arith.constant dense<0.000000e+00> : vector<80x128xf32>
    %231 = tpu.matmul %228, %230, %cst_182 {dimension_numbers = #tpu.dot_dimension_numbers<[1], [0], [0], [1], [0, 0, 1, 1], [], []>} : vector<80x192xbf16>, vector<192x128xbf16>, vector<80x128xf32> -> vector<80x128xf32>
    %232 = arith.addf %227, %231 : vector<80x128xf32>
    %c32_183 = arith.constant 32 : index
    %c0_184 = arith.constant 0 : index
    %233 = vector.load %arg28[%c32_183, %c0_184] : memref<112x192xbf16, #tpu.memory_space<vmem>>, vector<80x192xbf16>
    %c2_185 = arith.constant 2 : index
    %c0_186 = arith.constant 0 : index
    %c0_187 = arith.constant 0 : index
    %234 = vector.load %arg13[%c2_185, %c0_186, %c0_187] : memref<3x192x128xbf16, #tpu.memory_space<vmem>>, vector<1x192x128xbf16>
    %235 = vector.shape_cast %234 : vector<1x192x128xbf16> to vector<192x128xbf16>
    %cst_188 = arith.constant dense<0.000000e+00> : vector<80x128xf32>
    %236 = tpu.matmul %233, %235, %cst_188 {dimension_numbers = #tpu.dot_dimension_numbers<[1], [0], [0], [1], [0, 0, 1, 1], [], []>} : vector<80x192xbf16>, vector<192x128xbf16>, vector<80x128xf32> -> vector<80x128xf32>
    %237 = arith.addf %232, %236 : vector<80x128xf32>
    %c0_189 = arith.constant 0 : index
    %c0_190 = arith.constant 0 : index
    %238 = vector.load %arg14[%c0_189, %c0_190] : memref<1x128xf32, #tpu.memory_space<vmem>>, vector<1x128xf32>
    %239 = vector.broadcast %238 : vector<1x128xf32> to vector<80x128xf32>
    %240 = arith.mulf %237, %239 : vector<80x128xf32>
    %c0_191 = arith.constant 0 : index
    %c0_192 = arith.constant 0 : index
    %241 = vector.load %arg15[%c0_191, %c0_192] : memref<1x128xf32, #tpu.memory_space<vmem>>, vector<1x128xf32>
    %242 = vector.broadcast %241 : vector<1x128xf32> to vector<80x128xf32>
    %243 = arith.addf %240, %242 : vector<80x128xf32>
    %cst_193 = arith.constant 0.000000e+00 : f32
    %244 = vector.broadcast %cst_193 : f32 to vector<80x128xf32>
    %245 = arith.maximumf %243, %244 : vector<80x128xf32>
    %246 = arith.truncf %245 : vector<80x128xf32> to vector<80x128xbf16>
    %c0_194 = arith.constant 0 : index
    %c0_195 = arith.constant 0 : index
    %247 = vector.load %arg16[%c0_194, %c0_195] : memref<1x80xbf16, #tpu.memory_space<vmem>>, vector<1x80xbf16>
    %cst_196 = arith.constant dense<0.000000e+00> : vector<1x128xf32>
    %248 = tpu.matmul %247, %246, %cst_196 {dimension_numbers = #tpu.dot_dimension_numbers<[1], [0], [0], [1], [0, 0, 1, 1], [], []>} : vector<1x80xbf16>, vector<80x128xbf16>, vector<1x128xf32> -> vector<1x128xf32>
    %c0_197 = arith.constant 0 : index
    %c0_198 = arith.constant 0 : index
    %249 = vector.load %arg17[%c0_197, %c0_198] : memref<128x32xf32, #tpu.memory_space<vmem>>, vector<128x32xf32>
    %cst_199 = arith.constant dense<0.000000e+00> : vector<1x32xf32>
    %250 = tpu.matmul %248, %249, %cst_199 {dimension_numbers = #tpu.dot_dimension_numbers<[1], [0], [0], [1], [0, 0, 1, 1], [], []>} : vector<1x128xf32>, vector<128x32xf32>, vector<1x32xf32> -> vector<1x32xf32>
    %c0_200 = arith.constant 0 : index
    %c0_201 = arith.constant 0 : index
    %251 = vector.load %arg18[%c0_200, %c0_201] : memref<1x32xf32, #tpu.memory_space<vmem>>, vector<1x32xf32>
    %252 = arith.mulf %250, %251 : vector<1x32xf32>
    %c0_202 = arith.constant 0 : index
    %c0_203 = arith.constant 0 : index
    %253 = vector.load %arg19[%c0_202, %c0_203] : memref<1x32xf32, #tpu.memory_space<vmem>>, vector<1x32xf32>
    %254 = arith.addf %252, %253 : vector<1x32xf32>
    %cst_204 = arith.constant 0.000000e+00 : f32
    %255 = vector.broadcast %cst_204 : f32 to vector<1x32xf32>
    %256 = arith.maximumf %254, %255 : vector<1x32xf32>
    %c0_205 = arith.constant 0 : index
    %c0_206 = arith.constant 0 : index
    %257 = vector.load %arg20[%c0_205, %c0_206] : memref<32x1xf32, #tpu.memory_space<vmem>>, vector<32x1xf32>
    %cst_207 = arith.constant dense<0.000000e+00> : vector<1x1xf32>
    %258 = tpu.matmul %256, %257, %cst_207 {dimension_numbers = #tpu.dot_dimension_numbers<[1], [0], [0], [1], [0, 0, 1, 1], [], []>} : vector<1x32xf32>, vector<32x1xf32>, vector<1x1xf32> -> vector<1x1xf32>
    %c0_208 = arith.constant 0 : index
    %c0_209 = arith.constant 0 : index
    %259 = vector.load %arg21[%c0_208, %c0_209] : memref<1x1xf32, #tpu.memory_space<vmem>>, vector<1x1xf32>
    %260 = arith.addf %258, %259 : vector<1x1xf32>
    %c0_210 = arith.constant 0 : index
    %c0_211 = arith.constant 0 : index
    %c0_212 = arith.constant 0 : index
    %261 = vector.load %arg22[%c0_210, %c0_211, %c0_212] : memref<1x1x1xf32, #tpu.memory_space<vmem>>, vector<1x1x1xf32>
    %262 = vector.shape_cast %261 : vector<1x1x1xf32> to vector<1x1xf32>
    %263 = vector.shape_cast %260 : vector<1x1xf32> to vector<1x1x1xf32>
    tpu.vector_store %arg22[%c0_210, %c0_211, %c0_212], %263 {strides = array<i32>} : memref<1x1x1xf32, #tpu.memory_space<vmem>>, vector<1x1x1xf32>,
    return
  }
  func.func @transform_0(%arg0: i32) -> (i32, i32, i32) {
    %c0_i32 = arith.constant 0 : i32
    %c0_i32_0 = arith.constant 0 : i32
    %c0_i32_1 = arith.constant 0 : i32
    return %arg0, %c0_i32, %c0_i32_0 : i32, i32, i32
  }
  func.func @transform_1(%arg0: i32) -> (i32, i32) {
    %c0_i32 = arith.constant 0 : i32
    %c0_i32_0 = arith.constant 0 : i32
    %c0_i32_1 = arith.constant 0 : i32
    return %c0_i32, %c0_i32_0 : i32, i32
  }
  func.func @transform_2(%arg0: i32) -> (i32, i32) {
    %c0_i32 = arith.constant 0 : i32
    %c0_i32_0 = arith.constant 0 : i32
    %c0_i32_1 = arith.constant 0 : i32
    return %c0_i32, %c0_i32_0 : i32, i32
  }
  func.func @transform_3(%arg0: i32) -> (i32, i32) {
    %c0_i32 = arith.constant 0 : i32
    %c0_i32_0 = arith.constant 0 : i32
    %c0_i32_1 = arith.constant 0 : i32
    return %c0_i32, %c0_i32_0 : i32, i32
  }
  func.func @transform_4(%arg0: i32) -> (i32, i32, i32) {
    %c0_i32 = arith.constant 0 : i32
    %c0_i32_0 = arith.constant 0 : i32
    %c0_i32_1 = arith.constant 0 : i32
    %c0_i32_2 = arith.constant 0 : i32
    return %c0_i32, %c0_i32_0, %c0_i32_1 : i32, i32, i32
  }
  func.func @transform_5(%arg0: i32) -> (i32, i32) {
    %c0_i32 = arith.constant 0 : i32
    %c0_i32_0 = arith.constant 0 : i32
    %c0_i32_1 = arith.constant 0 : i32
    return %c0_i32, %c0_i32_0 : i32, i32
  }
  func.func @transform_6(%arg0: i32) -> (i32, i32) {
    %c0_i32 = arith.constant 0 : i32
    %c0_i32_0 = arith.constant 0 : i32
    %c0_i32_1 = arith.constant 0 : i32
    return %c0_i32, %c0_i32_0 : i32, i32
  }
  func.func @transform_7(%arg0: i32) -> (i32, i32) {
    %c0_i32 = arith.constant 0 : i32
    %c0_i32_0 = arith.constant 0 : i32
    %c0_i32_1 = arith.constant 0 : i32
    return %c0_i32, %c0_i32_0 : i32, i32
  }
  func.func @transform_8(%arg0: i32) -> (i32, i32, i32) {
    %c0_i32 = arith.constant 0 : i32
    %c0_i32_0 = arith.constant 0 : i32
    %c0_i32_1 = arith.constant 0 : i32
    %c0_i32_2 = arith.constant 0 : i32
    return %c0_i32, %c0_i32_0, %c0_i32_1 : i32, i32, i32
  }
  func.func @transform_9(%arg0: i32) -> (i32, i32) {
    %c0_i32 = arith.constant 0 : i32
    %c0_i32_0 = arith.constant 0 : i32
    %c0_i32_1 = arith.constant 0 : i32
    return %c0_i32, %c0_i32_0 : i32, i32
  }
  func.func @transform_10(%arg0: i32) -> (i32, i32) {
    %c0_i32 = arith.constant 0 : i32
    %c0_i32_0 = arith.constant 0 : i32
    %c0_i32_1 = arith.constant 0 : i32
    return %c0_i32, %c0_i32_0 : i32, i32
  }
  func.func @transform_11(%arg0: i32) -> (i32, i32) {
    %c0_i32 = arith.constant 0 : i32
    %c0_i32_0 = arith.constant 0 : i32
    %c0_i32_1 = arith.constant 0 : i32
    return %c0_i32, %c0_i32_0 : i32, i32
  }
  func.func @transform_12(%arg0: i32) -> (i32, i32, i32) {
    %c0_i32 = arith.constant 0 : i32
    %c0_i32_0 = arith.constant 0 : i32
    %c0_i32_1 = arith.constant 0 : i32
    %c0_i32_2 = arith.constant 0 : i32
    return %c0_i32, %c0_i32_0, %c0_i32_1 : i32, i32, i32
  }
  func.func @transform_13(%arg0: i32) -> (i32, i32) {
    %c0_i32 = arith.constant 0 : i32
    %c0_i32_0 = arith.constant 0 : i32
    %c0_i32_1 = arith.constant 0 : i32
    return %c0_i32, %c0_i32_0 : i32, i32
  }
  func.func @transform_14(%arg0: i32) -> (i32, i32) {
    %c0_i32 = arith.constant 0 : i32
    %c0_i32_0 = arith.constant 0 : i32
    %c0_i32_1 = arith.constant 0 : i32
    return %c0_i32, %c0_i32_0 : i32, i32
  }
  func.func @transform_15(%arg0: i32) -> (i32, i32) {
    %c0_i32 = arith.constant 0 : i32
    %c0_i32_0 = arith.constant 0 : i32
    %c0_i32_1 = arith.constant 0 : i32
    return %c0_i32, %c0_i32_0 : i32, i32
  }
  func.func @transform_16(%arg0: i32) -> (i32, i32) {
    %c0_i32 = arith.constant 0 : i32
    %c0_i32_0 = arith.constant 0 : i32
    %c0_i32_1 = arith.constant 0 : i32
    return %c0_i32, %c0_i32_0 : i32, i32
  }
  func.func @transform_17(%arg0: i32) -> (i32, i32) {
    %c0_i32 = arith.constant 0 : i32
    %c0_i32_0 = arith.constant 0 : i32
    %c0_i32_1 = arith.constant 0 : i32
    return %c0_i32, %c0_i32_0 : i32, i32
  }
  func.func @transform_18(%arg0: i32) -> (i32, i32) {
    %c0_i32 = arith.constant 0 : i32
    %c0_i32_0 = arith.constant 0 : i32
    %c0_i32_1 = arith.constant 0 : i32
    return %c0_i32, %c0_i32_0 : i32, i32
  }
  func.func @transform_19(%arg0: i32) -> (i32, i32) {
    %c0_i32 = arith.constant 0 : i32
    %c0_i32_0 = arith.constant 0 : i32
    %c0_i32_1 = arith.constant 0 : i32
    return %c0_i32, %c0_i32_0 : i32, i32
  }
  func.func @transform_20(%arg0: i32) -> (i32, i32) {
    %c0_i32 = arith.constant 0 : i32
    %c0_i32_0 = arith.constant 0 : i32
    %c0_i32_1 = arith.constant 0 : i32
    return %c0_i32, %c0_i32_0 : i32, i32
  }
  func.func @transform_21(%arg0: i32) -> (i32, i32, i32) {
    %c0_i32 = arith.constant 0 : i32
    %c0_i32_0 = arith.constant 0 : i32
    %c0_i32_1 = arith.constant 0 : i32
    return %arg0, %c0_i32, %c0_i32_0 : i32, i32, i32
  }
}

</mosaic_0001>

<bundles_post_ra>
// kernel: cnet_v10_3_forward.1
= control target key start
LH: loop header
LB: loop body
LE: loop exit
PB: predicated region body
PF: predicated region fallthrough
CT: control target
= control target key end

     0   :  { %s11210_s26 = smov 0   ;;  %s14496_s0 = inlined_call_operand.vmem [shape: bf16[2,100,128], index: 0, kind: input, shape index: {}]   ;;  %s14497_s1 = inlined_call_operand.vmem [shape: bf16[128,64], index: 1, kind: input, shape index: {}]   ;;  %s14498_s2 = inlined_call_operand.vmem [shape: f32[1,64], index: 2, kind: input, shape index: {}]   ;;  %s14499_s3 = inlined_call_operand.vmem [shape: f32[1,64], index: 3, kind: input, shape index: {}]   ;;  %s14500_s4 = inlined_call_operand.vmem [shape: bf16[3,192,64], index: 4, kind: input, shape index: {}]   ;;  %s14501_s5 = inlined_call_operand.vmem [shape: f32[1,64], index: 5, kind: input, shape index: {}]   ;;  %s14502_s6 = inlined_call_operand.vmem [shape: f32[1,64], index: 6, kind: input, shape index: {}]   ;;  %s14503_s7 = inlined_call_operand.vmem [shape: bf16[25,448], index: 7, kind: input, shape index: {}]   ;;  %s14504_s8 = inlined_call_operand.vmem [shape: bf16[3,192,64], index: 8, kind: input, shape index: {}]   ;;  %s14505_s9 = inlined_call_operand.vmem [shape: f32[1,64], index: 9, kind: input, shape index: {}]   ;;  %s14506_s10 = inlined_call_operand.vmem [shape: f32[1,64], index: 10, kind: input, shape index: {}]   ;;  %s14507_s11 = inlined_call_operand.vmem [shape: bf16[5,160], index: 11, kind: input, shape index: {}]   ;;  %s14508_s12 = inlined_call_operand.vmem [shape: bf16[3,192,128], index: 12, kind: input, shape index: {}]   ;;  %s14509_s13 = inlined_call_operand.vmem [shape: f32[1,128], index: 13, kind: input, shape index: {}]   ;;  %s14510_s14 = inlined_call_operand.vmem [shape: f32[1,128], index: 14, kind: input, shape index: {}]   ;;  %s14511_s15 = inlined_call_operand.vmem [shape: bf16[1,80], index: 15, kind: input, shape index: {}]   ;;  %s14512_s16 = inlined_call_operand.vmem [shape: f32[128,32], index: 16, kind: input, shape index: {}]   ;;  %s14513_s17 = inlined_call_operand.vmem [shape: f32[1,32], index: 17, kind: input, shape index: {}]   ;;  %s14514_s18 = inlined_call_operand.vmem [shape: f32[1,32], index: 18, kind: input, shape index: {}]   ;;  %s14515_s19 = inlined_call_operand.vmem [shape: f32[32,1], index: 19, kind: input, shape index: {}]   ;;  %s14516_s20 = inlined_call_operand.<no memory space> [shape: f32[1,1], index: 20, kind: input, shape index: {}]   ;;  %s14517_s21 = inlined_call_operand.vmem [shape: f32[2,1,1], index: 21, kind: output, shape index: {}]  }
   0x1   :  { %14521 = sst [smem:[#allocation9_spill]] %s14496_s0  ;;  %v26_v0 = vstv %s14516_s20 }
   0x2   :  { %14522 = sst [smem:[#allocation10_spill]] %s14497_s1  ;;  %27 = vst [vmem:[#allocation8] sm:$0x1] %v26_v0 }
   0x3   :  { %14523 = sst [smem:[#allocation11_spill]] %s14498_s2 }
   0x4   :  { %14524 = sst [smem:[#allocation12_spill]] %s14499_s3 }
   0x5   :  { %14525 = sst [smem:[#allocation13_spill]] %s14500_s4 }
   0x6   :  { %14526 = sst [smem:[#allocation14_spill]] %s14501_s5 }
   0x7 LB: > { %s9101_s27 = sadd.s32 4294967295, %s11078_s26   ;;  %p9105_p0 = scmp.ge.s32.totalorder %s11078_s26, 1  ;;  %s11078_s26 = sphi %s11210_s26, %s33_s26  }
   0x8   : > { %p589_p1 = scmp.lt.s32.totalorder %s11078_s26, 3 }
   0xa   : > { %p590_p2 = pnand %p9105_p0, %p589_p1 }
   0xb   : > { %vm1034_vm0 = vcmask (!%p590_p2), 523264   ;;  %v11088_v1 = vmov (!%p590_p2), 0.0   ;;  %s14527_s28 = sld [smem:[#allocation10_spill]] (!%p590_p2)  ;;  %vm11089_vm1 = vmmov (!%p590_p2), 0   ;;  %p647_p3 = scmp.lt.s32.totalorder (!%p590_p2), %s9101_s27, 1  ;;  %vm954_vm2 = vcmask (!%p590_p2), 1046528  }
   0xc   : > { %593 = sbr.rel (%p590_p2) target bundleno = 4679 (0x1247), region = 104  ;;  %10096 = vmatprep.subr.bf16.mxu0 (!%p590_p2), %v11088_v1  ;;  %1077 = vst [vmem:[#allocation3 + $0xd0] sm:$0xff] (!%p590_p2), %v11088_v1  ;;  %1078 = vst.msk [vmem:[#allocation3 + $0xd8] sm:$0xff] (!%p590_p2), %vm1034_vm0, %v11088_v1  ;;  %10230 = vmatprep.subr.bf16.mxu1 (!%p590_p2), %v11088_v1  ;;  %s14528_s25 = sld [smem:[#allocation9_spill]] (!%p590_p2)  ;;  %vm1048_vm3 = vcmask (!%p590_p2), 1043456   ;;  %vm993_vm4 = vcmask (!%p590_p2), 1042432  }
   0xd   : > { %1120 = vst [vmem:[#allocation2 + $0xd0] sm:$0xff] (!%p590_p2), %v11088_v1  ;;  %1121 = vst.msk [vmem:[#allocation2 + $0xd8] sm:$0xff] (!%p590_p2), %vm1034_vm0, %v11088_v1  ;;  %10112 = vmatprep.mubr.msk.bf16.mxu0 (!%p590_p2), %vm11089_vm1, %v11088_v1  ;;  %10128 = vmatprep.mubr.msk.bf16.mxu1 (!%p590_p2), %vm11089_vm1, %v11088_v1  ;;  %s14529_s29 = sld [smem:[#allocation11_spill]] (!%p590_p2)  ;;  %vm914_vm5 = vcmask (!%p590_p2), 1040384   ;;  %s11572_s5 = smov (!%p590_p2), 0  }
  0x11   : > { %v10743_v2 = vld [vmem:[%s14527_s28] sm:$0xff] (!%p590_p2)   ;;  %v10744_v3 = vld [vmem:[%s14527_s28 + $0x8] sm:$0xff] (!%p590_p2)   ;;  %v10745_v4 = vld [vmem:[%s14527_s28 + $0x10] sm:$0xff] (!%p590_p2)  }
  0x12   : > { %10097 = vmatpush3.bf16.msra.mxu0 (!%p590_p2), %v10743_v2  ;;  %10238 = vmatpush3.bf16.msra.mxu1 (!%p590_p2), %v10743_v2  ;;  %v10746_v5 = vld [vmem:[%s14527_s28 + $0x18] sm:$0xff] (!%p590_p2)   ;;  %v10747_v6 = vld [vmem:[%s14527_s28 + $0x20] sm:$0xff] (!%p590_p2)   ;;  %v10748_v7 = vld [vmem:[%s14527_s28 + $0x28] sm:$0xff] (!%p590_p2)  }
  0x13   : > { %10098 = vmatprep.subr.bf16.mxu0 %v11088_v1  ;;  %10231 = vmatprep.subr.bf16.mxu1 %v11088_v1  ;;  %s14536_s27 = smov (!%p647_p3, %s9101_s27), 1  ;;  %v10749_v8 = vld [vmem:[%s14527_s28 + $0x30] sm:$0xff]   ;;  %v10750_v9 = vld [vmem:[%s14527_s28 + $0x38] sm:$0xff]   ;;  %v11300_v17 = vld [vmem:[%s14529_s29] ss:$0 sm:$0xff] }
  0x14   : > { %s10710_s4 = smul.u32 52, %s14536_s27  ;;  %s654_s22 = scalar_lea.vmem %s14517_s21, %s14536_s27 }
  0x16   : > { %10099 = vmatpush3.bf16.msra.mxu0 %v10744_v3  ;;  %10239 = vmatpush3.bf16.msra.mxu1 %v10744_v3  ;;  %s11253_s20 = scalar_lea.vmem %s14528_s25, %s10710_s4  ;;  %s14530_s4 = sld [smem:[#allocation12_spill]] }
  0x17   : > { %10100 = vmatprep.subr.bf16.mxu0 %v11088_v1  ;;  %10232 = vmatprep.subr.bf16.mxu1 %v11088_v1  ;;  %v10751_v10 = vld [vmem:[%s11253_s20] sm:$0xff]   ;;  %v10753_v12 = vld [vmem:[%s11253_s20 + $0x8] sm:$0xff]   ;;  %v10755_v14 = vld [vmem:[%s11253_s20 + $0x10] sm:$0xff]  }
  0x18   : > { %v10752_v11 = vld [vmem:[%s11253_s20 + $0x20] sm:$0xff]   ;;  %v10754_v13 = vld [vmem:[%s11253_s20 + $0x28] sm:$0xff]   ;;  %v10756_v15 = vld [vmem:[%s11253_s20 + $0x30] ss:$0 sps:$4 sm:$0x33]  }
  0x19   : > { %v10757_v16 = vld [vmem:[%s11253_s20 + $0x18] sm:$0xff]   ;;  %s11090_s20 = smov 64  }
  0x1a   : > { %10101 = vmatpush3.bf16.msra.mxu0 %v10745_v4  ;;  %10240 = vmatpush3.bf16.msra.mxu1 %v10745_v4 }
  0x1b   : > { %10102 = vmatprep.subr.bf16.mxu0 %v11088_v1  ;;  %10233 = vmatprep.subr.bf16.mxu1 %v11088_v1 }
  0x1c   : > { %v11305_v19 = vld [vmem:[%s14530_s4] ss:$0 sm:$0xff] }
  0x1e   : > { %10103 = vmatpush3.bf16.msra.mxu0 %v10746_v5  ;;  %10241 = vmatpush3.bf16.msra.mxu1 %v10746_v5 }
  0x1f   : > { %10104 = vmatprep.subr.bf16.mxu0 %v11088_v1  ;;  %10234 = vmatprep.subr.bf16.mxu1 %v11088_v1 }
  0x22   : > { %10105 = vmatpush3.bf16.msra.mxu0 %v10747_v6  ;;  %10242 = vmatpush3.bf16.msra.mxu1 %v10747_v6 }
  0x23   : > { %10106 = vmatprep.subr.bf16.mxu0 %v11088_v1  ;;  %10235 = vmatprep.subr.bf16.mxu1 %v11088_v1 }
  0x26   : > { %10107 = vmatpush3.bf16.msra.mxu0 %v10748_v7  ;;  %10243 = vmatpush3.bf16.msra.mxu1 %v10748_v7 }
  0x27   : > { %10108 = vmatprep.subr.bf16.mxu0 %v11088_v1  ;;  %10236 = vmatprep.subr.bf16.mxu1 %v11088_v1 }
  0x2a   : > { %10109 = vmatpush3.bf16.msra.mxu0 %v10749_v8  ;;  %10244 = vmatpush3.bf16.msra.mxu1 %v10749_v8 }
  0x2b   : > { %10110 = vmatprep.subr.bf16.mxu0 %v11088_v1  ;;  %10237 = vmatprep.subr.bf16.mxu1 %v11088_v1 }
  0x2e   : > { %10111 = vmatpush3.bf16.msra.mxu0 %v10750_v9  ;;  %10245 = vmatpush3.bf16.msra.mxu1 %v10750_v9 }
  0x31   : > { %10113 = vmatmul.mubr.bf16.vlgmr.msra.gmra.mrb[0].mxu0 %v10751_v10  ;;  %10129 = vmatmul.mubr.bf16.vlgmr.msra.gmra.mrb[0].mxu1 %v10752_v11 }
  0x32   : > { %10116 = vmatprep.mubr.msk.bf16.mxu0 %vm11089_vm1, %v11088_v1  ;;  %10132 = vmatprep.mubr.msk.bf16.mxu1 %vm11089_vm1, %v11088_v1 }
  0x39   : > { %10117 = vmatmul.mubr.bf16.gmra.mrb[4].mxu0 %v10753_v12  ;;  %10133 = vmatmul.mubr.bf16.gmra.mrb[4].mxu1 %v10754_v13 }
  0x3a   : > { %10120 = vmatprep.mubr.msk.bf16.mxu0 %vm11089_vm1, %v11088_v1  ;;  %10136 = vmatprep.mubr.msk.bf16.mxu1 %vm11089_vm1, %v11088_v1 }
  0x41   : > { %10121 = vmatmul.mubr.bf16.gmra.mrb[8].mxu0 %v10755_v14  ;;  %10137 = vmatmul.mubr.bf16.gmra.mrb[8].mxu1 %v10756_v15 }
  0x42   : > { %10124 = vmatprep.mubr.msk.bf16.mxu0 %vm11089_vm1, %v11088_v1 }
  0x49   : > { %10125 = vmatmul.mubr.bf16.gmra.mrb[12].mxu0 %v10757_v16 }
 0x104   : > { %v807_v18 = vpop.f32.mrb[0].mxu0  ;;  %v839_v20 = vpop.f32.mrb[0].mxu1 }
 0x105   : > { %v868_v21 = vmul.f32 %v11300_v17, %v807_v18  ;;  %v876_v22 = vmul.f32 %v11300_v17, %v839_v20  ;;  %v10114_v23 = vpop.f32.mrb[1].mxu0  ;;  %v10130_v24 = vpop.f32.mrb[1].mxu1 }
 0x106   : > { %v810_v25 = vpop.f32.mrb[2].mxu0  ;;  %v842_v26 = vpop.f32.mrb[2].mxu1 }
 0x107   : > { %v11310_v27 = vadd.f32 %v11305_v19, %v868_v21  ;;  %v11313_v28 = vadd.f32 %v11305_v19, %v876_v22  ;;  %v869_v29 = vmul.f32 %v11300_v17, %v810_v25  ;;  %v877_v30 = vmul.f32 %v11300_v17, %v842_v26  ;;  %v10115_v31 = vpop.f32.mrb[3].mxu0  ;;  %v10131_v32 = vpop.f32.mrb[3].mxu1 }
 0x108   : > { %v11091_v32 = vmov 0  }
 0x109   : > { %1095 = vst.msk [vmem:[#allocation2 + $0x8] sm:$0xff] %vm1034_vm0, %v11310_v27  ;;  %v970_v33 = vrot.slane %v11313_v28, 1  ;;  %1111 = vst.msk [vmem:[#allocation2 + $0x88] sm:$0xff] %vm1034_vm0, %v11313_v28  ;;  %v11323_v34 = vadd.f32 %v11305_v19, %v869_v29  ;;  %v11326_v35 = vadd.f32 %v11305_v19, %v877_v30  ;;  %1011 = vrot.lane.b32.xlu1 %v11313_v28, %s11090_s20  ;;  %995 = vrot.lane.b32.xlu0 %v11310_v27, %s11090_s20 }
 0x10a   : > { %v955_v36 = vrot.slane %v11310_v27, 1  ;;  %1122 = vst [vmem:[#allocation4] sm:$0xff] %v11091_v32  ;;  %1123 = vst.msk [vmem:[#allocation4 + $0x8] sm:$0xff] %vm1034_vm0, %v11091_v32 }
 0x10b   : > { %v956_v37 = vrot.slane %v11323_v34, 1  ;;  %1097 = vst.msk [vmem:[#allocation2 + $0x18] sm:$0xff] %vm1034_vm0, %v11323_v34  ;;  %v972_v38 = vrot.slane %v11326_v35, 1  ;;  %1113 = vst.msk [vmem:[#allocation2 + $0x98] sm:$0xff] %vm1034_vm0, %v11326_v35 }
 0x10c   : > { %v815_v39 = vpop.f32.mrb[4].mxu0  ;;  %v847_v40 = vpop.f32.mrb[4].mxu1  ;;  %1124 = vst [vmem:[#allocation4 + $0x10] sm:$0xff] %v11091_v32  ;;  %1125 = vst.msk [vmem:[#allocation4 + $0x18] sm:$0xff] %vm1034_vm0, %v11091_v32 }
 0x10d   : > { %v957_v41 = vsel %vm954_vm2, %v955_v36, %v956_v37  ;;  %v973_v42 = vsel %vm954_vm2, %v970_v33, %v972_v38  ;;  %v870_v43 = vmul.f32 %v11300_v17, %v815_v39  ;;  %v878_v44 = vmul.f32 %v11300_v17, %v847_v40  ;;  %v10134_v45 = vpop.f32.mrb[5].mxu1  ;;  %1013 = vrot.lane.b32.xlu0 %v11326_v35, %s11090_s20  ;;  %v10118_v46 = vpop.f32.mrb[5].mxu0 }
 0x10e   : > { %1052 = vst.msk [vmem:[#allocation3 + $0x8] sm:$0xff] %vm1034_vm0, %v957_v41  ;;  %1068 = vst.msk [vmem:[#allocation3 + $0x88] sm:$0xff] %vm1034_vm0, %v973_v42  ;;  %997 = vrot.lane.b32.xlu1 %v11323_v34, %s11090_s20  ;;  %v818_v47 = vpop.f32.mrb[6].mxu0  ;;  %v850_v48 = vpop.f32.mrb[6].mxu1  ;;  %v915_v45 = vrot.slane %v11310_v27, 7  ;;  %v930_v46 = vrot.slane %v11313_v28, 7 }
 0x10f   : > { %v11352_v49 = vadd.f32 %v11305_v19, %v870_v43  ;;  %v11355_v50 = vadd.f32 %v11305_v19, %v878_v44  ;;  %v871_v51 = vmul.f32 %v11300_v17, %v818_v47  ;;  %v879_v52 = vmul.f32 %v11300_v17, %v850_v48  ;;  %v10119_v53 = vpop.f32.mrb[7].mxu0  ;;  %v10135_v54 = vpop.f32.mrb[7].mxu1  ;;  %1126 = vst [vmem:[#allocation4 + $0x20] sm:$0xff] %v11091_v32 }
 0x110   : > { %1127 = vst.msk [vmem:[#allocation4 + $0x28] sm:$0xff] %vm1034_vm0, %v11091_v32  ;;  %1128 = vst [vmem:[#allocation4 + $0x30] sm:$0xff] %v11091_v32  ;;  %v916_v53 = vrot.slane %v11323_v34, 7 }
 0x111   : > { %v958_v55 = vrot.slane %v11352_v49, 1  ;;  %1099 = vst.msk [vmem:[#allocation2 + $0x28] sm:$0xff] %vm1034_vm0, %v11352_v49  ;;  %v974_v56 = vrot.slane %v11355_v50, 1  ;;  %1115 = vst.msk [vmem:[#allocation2 + $0xa8] sm:$0xff] %vm1034_vm0, %v11355_v50  ;;  %v11366_v57 = vadd.f32 %v11305_v19, %v871_v51  ;;  %v11369_v58 = vadd.f32 %v11305_v19, %v879_v52 }
 0x112   : > { %999 = vrot.lane.b32.xlu1 %v11352_v49, %s11090_s20  ;;  %1129 = vst.msk [vmem:[#allocation4 + $0x38] sm:$0xff] %vm1034_vm0, %v11091_v32  ;;  %1130 = vst [vmem:[#allocation4 + $0x40] sm:$0xff] %v11091_v32  ;;  %v953_v51 = vsel %vm914_vm5, 0.0, %v915_v45  ;;  %v932_v52 = vrot.slane %v11326_v35, 7 }
 0x113   : > { %v959_v59 = vsel %vm954_vm2, %v956_v37, %v958_v55  ;;  %v975_v60 = vsel %vm954_vm2, %v972_v38, %v974_v56  ;;  %v960_v61 = vrot.slane %v11366_v57, 1  ;;  %1101 = vst.msk [vmem:[#allocation2 + $0x38] sm:$0xff] %vm1034_vm0, %v11366_v57  ;;  %v976_v62 = vrot.slane %v11369_v58, 1  ;;  %1117 = vst.msk [vmem:[#allocation2 + $0xb8] sm:$0xff] %vm1034_vm0, %v11369_v58  ;;  %1001 = vrot.lane.b32.xlu0 %v11366_v57, %s11090_s20 }
 0x114   : > { %1054 = vst.msk [vmem:[#allocation3 + $0x18] sm:$0xff] %vm1034_vm0, %v959_v59  ;;  %1070 = vst.msk [vmem:[#allocation3 + $0x98] sm:$0xff] %vm1034_vm0, %v975_v60  ;;  %v823_v63 = vpop.f32.mrb[8].mxu0  ;;  %v855_v0 = vpop.f32.mrb[8].mxu1  ;;  %v933_v60 = vsel %vm914_vm5, %v930_v46, %v932_v52 }
 0x115   : > { %v961_v2 = vsel %vm954_vm2, %v958_v55, %v960_v61  ;;  %v977_v3 = vsel %vm954_vm2, %v974_v56, %v976_v62  ;;  %v872_v4 = vmul.f32 %v11300_v17, %v823_v63  ;;  %v880_v5 = vmul.f32 %v11300_v17, %v855_v0  ;;  %v10122_v6 = vpop.f32.mrb[9].mxu0  ;;  %v10138_v7 = vpop.f32.mrb[9].mxu1  ;;  %1131 = vst.msk [vmem:[#allocation4 + $0x48] sm:$0xff] %vm1034_vm0, %v11091_v32 }
 0x116   : > { %1056 = vst.msk [vmem:[#allocation3 + $0x28] sm:$0xff] %vm1034_vm0, %v961_v2  ;;  %1072 = vst.msk [vmem:[#allocation3 + $0xa8] sm:$0xff] %vm1034_vm0, %v977_v3  ;;  %v826_v8 = vpop.f32.mrb[10].mxu0  ;;  %v858_v9 = vpop.f32.mrb[10].mxu1  ;;  %v917_v0 = vsel %vm914_vm5, %v915_v45, %v916_v53  ;;  %v918_v2 = vrot.slane %v11352_v49, 7 }
 0x117   : > { %v11392_v10 = vadd.f32 %v11305_v19, %v872_v4  ;;  %v11395_v11 = vadd.f32 %v11305_v19, %v880_v5  ;;  %v873_v12 = vmul.f32 %v11300_v17, %v826_v8  ;;  %v10123_v13 = vpop.f32.mrb[11].mxu0  ;;  %v10139_v14 = vpop.f32.mrb[11].mxu1  ;;  %1132 = vst [vmem:[#allocation4 + $0x50] sm:$0xff] %v11091_v32  ;;  %1133 = vst.msk [vmem:[#allocation4 + $0x58] sm:$0xff] %vm1034_vm0, %v11091_v32  ;;  %v920_v4 = vrot.slane %v11366_v57, 7 }
 0x118   : > { %1134 = vst [vmem:[#allocation4 + $0x60] sm:$0xff] %v11091_v32  ;;  %1135 = vst.msk [vmem:[#allocation4 + $0x68] sm:$0xff] %vm1034_vm0, %v11091_v32  ;;  %v919_v6 = vsel %vm914_vm5, %v916_v53, %v918_v2 }
 0x119   : > { %v962_v15 = vrot.slane %v11392_v10, 1  ;;  %1103 = vst.msk [vmem:[#allocation2 + $0x48] sm:$0xff] %vm1034_vm0, %v11392_v10  ;;  %v11402_v16 = vadd.f32 %v11305_v19, %v873_v12  ;;  %1019 = vrot.lane.b32.xlu0 %v11395_v11, %s11090_s20  ;;  %1003 = vrot.lane.b32.xlu1 %v11392_v10, %s11090_s20  ;;  %v978_v18 = vrot.slane %v11395_v11, 1  ;;  %v1093_v20 = vsel %vm1048_vm3, %v11395_v11, 0.0  ;;  %1136 = vst [vmem:[#allocation4 + $0x2c30] sm:$0xff] %v11091_v32 }
 0x11a   : > { %1119 = vst.msk [vmem:[#allocation2 + $0xc8] sm:$0xff] %vm1034_vm0, %v1093_v20  ;;  %1137 = vst.msk [vmem:[#allocation4 + $0x2c38] sm:$0xff] %vm1034_vm0, %v11091_v32  ;;  %v921_v12 = vsel %vm914_vm5, %v918_v2, %v920_v4  ;;  %v938_v14 = vrot.slane %v11395_v11, 7 }
 0x11b   : > { %v963_v21 = vsel %vm954_vm2, %v960_v61, %v962_v15  ;;  %v964_v22 = vrot.slane %v11402_v16, 1  ;;  %1105 = vst.msk [vmem:[#allocation2 + $0x58] sm:$0xff] %vm1034_vm0, %v11402_v16  ;;  %v979_v23 = vsel %vm954_vm2, %v976_v62, %v978_v18  ;;  %v994_v25 = vsel %vm993_vm4, %v978_v18, 0.0  ;;  %1138 = vst [vmem:[#allocation4 + $0x2c40] sm:$0xff] %v11091_v32 }
 0x11c   : > { %1058 = vst.msk [vmem:[#allocation3 + $0x38] sm:$0xff] %vm1034_vm0, %v963_v21  ;;  %v831_v24 = vpop.f32.mrb[12].mxu0  ;;  %1074 = vst.msk [vmem:[#allocation3 + $0xb8] sm:$0xff] %vm1034_vm0, %v979_v23  ;;  %v1050_v31 = vsel %vm1048_vm3, %v994_v25, 0.0  ;;  %v936_v18 = vrot.slane %v11369_v58, 7  ;;  %v924_v23 = vrot.slane %v11402_v16, 7 }
 0x11d   : > { %v965_v26 = vsel %vm954_vm2, %v962_v15, %v964_v22  ;;  %v874_v29 = vmul.f32 %v11300_v17, %v831_v24  ;;  %1005 = vrot.lane.b32.xlu0 %v11402_v16, %s11090_s20  ;;  %v10126_v30 = vpop.f32.mrb[13].mxu0  ;;  %1139 = vst.msk [vmem:[#allocation4 + $0x2c48] sm:$0xff] %vm1034_vm0, %v11091_v32  ;;  %1140 = vst [vmem:[#allocation4 + $0x2c50] sm:$0xff] %v11091_v32  ;;  %v922_v15 = vrot.slane %v11392_v10, 7 }
 0x11e   : > { %1141 = vst.msk [vmem:[#allocation4 + $0x2c58] sm:$0xff] %vm1034_vm0, %v11091_v32  ;;  %1142 = vst [vmem:[#allocation4 + $0x2c60] sm:$0xff] %v11091_v32  ;;  %v834_v36 = vpop.f32.mrb[14].mxu0 }
 0x11f   : > { %1143 = vst.msk [vmem:[#allocation4 + $0x2c68] sm:$0xff] %vm1034_vm0, %v11091_v32  ;;  %1144 = vst [vmem:[#allocation4 + $0x2c70] sm:$0xff] %v11091_v32  ;;  %v11469_v37 = vadd.f32 %v11305_v19, %v874_v29  ;;  %v875_v38 = vmul.f32 %v11300_v17, %v834_v36  ;;  %v10127_v39 = vpop.f32.mrb[15].mxu0  ;;  %v925_v36 = vsel %vm914_vm5, %v922_v15, %v924_v23 }
 0x120   : > { %1145 = vst.msk [vmem:[#allocation4 + $0x2c78] sm:$0xff] %vm1034_vm0, %v11091_v32  ;;  %1146 = vst [vmem:[#allocation4 + $0x2c80] sm:$0xff] %v11091_v32 }
 0x121   : > { %1147 = vst.msk [vmem:[#allocation4 + $0x2c88] sm:$0xff] %vm1034_vm0, %v11091_v32  ;;  %1148 = vst [vmem:[#allocation4 + $0x2c90] sm:$0xff] %v11091_v32  ;;  %v966_v40 = vrot.slane %v11469_v37, 1  ;;  %v11476_v41 = vadd.f32 %v11305_v19, %v875_v38  ;;  %1007 = vrot.lane.b32.xlu1 %v11469_v37, %s11090_s20  ;;  %v926_v38 = vrot.slane %v11469_v37, 7 }
 0x122   : > { %1149 = vst.msk [vmem:[#allocation4 + $0x2c98] sm:$0xff] %vm1034_vm0, %v11091_v32  ;;  %1060 = vst.msk [vmem:[#allocation3 + $0x48] sm:$0xff] %vm1034_vm0, %v965_v26 }
 0x123   : > { %1076 = vst.msk [vmem:[#allocation3 + $0xc8] sm:$0xff] %vm1034_vm0, %v1050_v31  ;;  %1107 = vst.msk [vmem:[#allocation2 + $0x68] sm:$0xff] %vm1034_vm0, %v11469_v37  ;;  %v967_v42 = vsel %vm954_vm2, %v964_v22, %v966_v40  ;;  %v968_v43 = vrot.slane %v11476_v41, 1  ;;  %1009 = vrot.lane.b32.xlu0 %v11476_v41, %s11090_s20  ;;  %v928_v44 = vrot.slane %v11476_v41, 7  ;;  %v923_v22 = vsel %vm914_vm5, %v920_v4, %v922_v15 }
 0x124   : > { %1109 = vst.msk [vmem:[#allocation2 + $0x78] sm:$0xff] %vm1034_vm0, %v11476_v41  ;;  %1062 = vst.msk [vmem:[#allocation3 + $0x58] sm:$0xff] %vm1034_vm0, %v967_v42  ;;  %v934_v42 = vrot.slane %v11355_v50, 7 }
 0x125   : > { %v969_v17 = vsel %vm954_vm2, %v966_v40, %v968_v43  ;;  %v971_v19 = vsel %vm954_vm2, %v968_v43, %v970_v33  ;;  %1015 = vrot.lane.b32.xlu1 %v11355_v50, %s11090_s20  ;;  %v931_v33 = vsel %vm914_vm5, %v928_v44, %v930_v46  ;;  %v927_v40 = vsel %vm914_vm5, %v924_v23, %v926_v38 }
 0x126   : > { %1064 = vst.msk [vmem:[#allocation3 + $0x68] sm:$0xff] %vm1034_vm0, %v969_v17  ;;  %1066 = vst.msk [vmem:[#allocation3 + $0x78] sm:$0xff] %vm1034_vm0, %v971_v19  ;;  %v929_v45 = vsel %vm914_vm5, %v926_v38, %v928_v44  ;;  %v937_v44 = vsel %vm914_vm5, %v934_v42, %v936_v18 }
 0x127   : > { %1017 = vrot.lane.b32.xlu0 %v11369_v58, %s11090_s20 }
 0x17b   : > { %v1012_v47 = vpop.permute.xlu1 %1011  ;;  %v996_v48 = vpop.permute.xlu0 %995 }
 0x17c   : > { %v1043_v54 = vsel %vm1034_vm0, %v931_v33, %v1012_v47  ;;  %v1087_v55 = vsel %vm1034_vm0, %v11313_v28, %v1012_v47  ;;  %v1035_v56 = vsel %vm1034_vm0, %v953_v51, %v996_v48  ;;  %v1079_v59 = vsel %vm1034_vm0, %v11310_v27, %v996_v48 }
 0x17d   : > { %1067 = vst [vmem:[#allocation3 + $0x80] sm:$0xff] %v1043_v54  ;;  %1110 = vst [vmem:[#allocation2 + $0x80] sm:$0xff] %v1087_v55  ;;  %v935_v47 = vsel %vm914_vm5, %v932_v52, %v934_v42 }
 0x17e   : > { %1051 = vst [vmem:[#allocation3] sm:$0xff] %v1035_v56  ;;  %1094 = vst [vmem:[#allocation2] sm:$0xff] %v1079_v59 }
 0x17f   : > { %v1014_v61 = vpop.permute.xlu0 %1013 }
 0x180   : > { %v1044_v62 = vsel %vm1034_vm0, %v933_v60, %v1014_v61  ;;  %v1088_v63 = vsel %vm1034_vm0, %v11326_v35, %v1014_v61  ;;  %v998_v28 = vpop.permute.xlu1 %997 }
 0x181   : > { %1069 = vst [vmem:[#allocation3 + $0x90] sm:$0xff] %v1044_v62  ;;  %1112 = vst [vmem:[#allocation2 + $0x90] sm:$0xff] %v1088_v63  ;;  %v1036_v27 = vsel %vm1034_vm0, %v917_v0, %v998_v28  ;;  %v1080_v3 = vsel %vm1034_vm0, %v11323_v34, %v998_v28 }
 0x182   : > { %1053 = vst [vmem:[#allocation3 + $0x10] sm:$0xff] %v1036_v27  ;;  %1096 = vst [vmem:[#allocation2 + $0x10] sm:$0xff] %v1080_v3 }
 0x184   : > { %v1000_v5 = vpop.permute.xlu1 %999 }
 0x185   : > { %v1037_v7 = vsel %vm1034_vm0, %v919_v6, %v1000_v5  ;;  %v1081_v8 = vsel %vm1034_vm0, %v11352_v49, %v1000_v5  ;;  %v1002_v9 = vpop.permute.xlu0 %1001  ;;  %v939_v49 = vsel %vm914_vm5, %v936_v18, %v938_v14 }
 0x186   : > { %1055 = vst [vmem:[#allocation3 + $0x20] sm:$0xff] %v1037_v7  ;;  %1098 = vst [vmem:[#allocation2 + $0x20] sm:$0xff] %v1081_v8  ;;  %v1038_v13 = vsel %vm1034_vm0, %v921_v12, %v1002_v9  ;;  %v1082_v34 = vsel %vm1034_vm0, %v11366_v57, %v1002_v9 }
 0x187   : > { %1057 = vst [vmem:[#allocation3 + $0x30] sm:$0xff] %v1038_v13  ;;  %1100 = vst [vmem:[#allocation2 + $0x30] sm:$0xff] %v1082_v34 }
 0x18b   : > { %v1020_v20 = vpop.permute.xlu0 %1019  ;;  %v1004_v21 = vpop.permute.xlu1 %1003 }
 0x18c   : > { %v1047_v24 = vsel %vm1034_vm0, %v939_v49, %v1020_v20  ;;  %v1091_v57 = vsel %vm1034_vm0, %v11395_v11, %v1020_v20  ;;  %v1039_v25 = vsel %vm1034_vm0, %v923_v22, %v1004_v21  ;;  %v1083_v26 = vsel %vm1034_vm0, %v11392_v10, %v1004_v21 }
 0x18d   : > { %v1049_v29 = vsel %vm1048_vm3, %v1047_v24, 0.0  ;;  %v1092_v30 = vsel %vm1048_vm3, %v1091_v57, 0.0  ;;  %1059 = vst [vmem:[#allocation3 + $0x40] sm:$0xff] %v1039_v25  ;;  %1102 = vst [vmem:[#allocation2 + $0x40] sm:$0xff] %v1083_v26 }
 0x18e   : > { %1075 = vst [vmem:[#allocation3 + $0xc0] sm:$0xff] %v1049_v29  ;;  %1118 = vst [vmem:[#allocation2 + $0xc0] sm:$0xff] %v1092_v30 }
 0x18f   : > { %v1006_v31 = vpop.permute.xlu0 %1005 }
 0x190   : > { %v1040_v11 = vsel %vm1034_vm0, %v925_v36, %v1006_v31  ;;  %v1084_v39 = vsel %vm1034_vm0, %v11402_v16, %v1006_v31 }
 0x191   : > { %1061 = vst [vmem:[#allocation3 + $0x50] sm:$0xff] %v1040_v11  ;;  %1104 = vst [vmem:[#allocation2 + $0x50] sm:$0xff] %v1084_v39 }
 0x193   : > { %v1008_v10 = vpop.permute.xlu1 %1007 }
 0x194   : > { %v1041_v43 = vsel %vm1034_vm0, %v927_v40, %v1008_v10  ;;  %v1085_v17 = vsel %vm1034_vm0, %v11469_v37, %v1008_v10 }
 0x195   : > { %1063 = vst [vmem:[#allocation3 + $0x60] sm:$0xff] %v1041_v43  ;;  %1106 = vst [vmem:[#allocation2 + $0x60] sm:$0xff] %v1085_v17  ;;  %v1010_v19 = vpop.permute.xlu0 %1009 }
 0x196   : > { %v1042_v16 = vsel %vm1034_vm0, %v929_v45, %v1010_v19  ;;  %v1086_v46 = vsel %vm1034_vm0, %v11476_v41, %v1010_v19 }
 0x197   : > { %1065 = vst [vmem:[#allocation3 + $0x70] sm:$0xff] %v1042_v16  ;;  %1108 = vst [vmem:[#allocation2 + $0x70] sm:$0xff] %v1086_v46  ;;  %v1016_v33 = vpop.permute.xlu1 %1015 }
 0x198   : > { %v1045_v37 = vsel %vm1034_vm0, %v935_v47, %v1016_v33  ;;  %v1089_v48 = vsel %vm1034_vm0, %v11355_v50, %v1016_v33 }
 0x199   : > { %1071 = vst [vmem:[#allocation3 + $0xa0] sm:$0xff] %v1045_v37  ;;  %1114 = vst [vmem:[#allocation2 + $0xa0] sm:$0xff] %v1089_v48  ;;  %v1018_v51 = vpop.permute.xlu0 %1017 }
 0x19a   : > { %v1046_v53 = vsel %vm1034_vm0, %v937_v44, %v1018_v51  ;;  %v1090_v41 = vsel %vm1034_vm0, %v11369_v58, %v1018_v51 }
 0x19b   : > { %1073 = vst [vmem:[#allocation3 + $0xb0] sm:$0xff] %v1046_v53  ;;  %1116 = vst [vmem:[#allocation2 + $0xb0] sm:$0xff] %v1090_v41 }
 0x19c LB: >> { %v1194_v35 = vlaneseq  ;;  %s1156_s23 = sshra.s32 %s11082_s5, 3  ;;  %s1159_s1 = sand.u32 7, %s11082_s5  ;;  %v1165_v58 = vld [vmem:[#allocation3] sm:$0xff]  ;;  %v1167_v55 = vld [vmem:[#allocation3 + $0x10] sm:$0xff]  ;;  %v1166_v56 = vld [vmem:[#allocation3 + $0x8] sm:$0xff]  ;;  %s11082_s5 = sphi %s11572_s5, %s11575_s5  }
 0x19d   : >> { %s10017_s24 = sshll.u32 %s1156_s23, 4  ;;  %s11575_s5 = sadd.s32 1, %s11082_s5   ;;  %v1168_v60 = vld [vmem:[#allocation3 + $0x18] sm:$0xff]  ;;  %v1169_v61 = vld [vmem:[#allocation3 + $0x20] sm:$0xff]  ;;  %v1171_v28 = vld [vmem:[#allocation3 + $0x30] sm:$0xff] }
 0x19e   : >> { %v1195_v50 = vshrl.u32 %v1194_v35, 7  ;;  %s1162_s2 = sadd.s32 %s10017_s24, %s1159_s1  ;;  %s1247_s25 = smul.u32 112, %s11575_s5  ;;  %v1170_v0 = vld [vmem:[#allocation3 + $0x28] sm:$0xff]  ;;  %v1172_v2 = vld [vmem:[#allocation3 + $0x38] sm:$0xff]  ;;  %v1173_v27 = vld [vmem:[#allocation3 + $0x40] sm:$0xff] }
 0x19f   : >> { %s1163_s3 = scalar_lea.vmem [#allocation2], %s1162_s2  ;;  %v1175_v3 = vld [vmem:[#allocation3 + $0x50] sm:$0xff]  ;;  %v1174_v8 = vld [vmem:[#allocation3 + $0x48] sm:$0xff]  ;;  %v1176_v9 = vld [vmem:[#allocation3 + $0x58] sm:$0xff]  ;;  %p1152_p4 = scmp.ge.s32.totalorder %s11575_s5, 100  }
 0x1a0   : >> { %v1196_v52 = vsub.s32 0, %v1195_v50  ;;  %v1200_v54 = vsub.s32 1, %v1195_v50  ;;  %s11578_s29 = sshra.s32 %s1247_s25, 4  ;;  %v1177_v15 = vld [vmem:[#allocation3 + $0x60] sm:$0xff]  ;;  %v1179_v18 = vld [vmem:[#allocation3 + $0x70] sm:$0xff]  ;;  %v1178_v49 = vld [vmem:[#allocation3 + $0x68] sm:$0xff] }
 0x1a1   : >> { %s10018_s0 = sshll.u32 %s11578_s29, 4  ;;  %v1180_v24 = vld [vmem:[#allocation3 + $0x78] sm:$0xff]  ;;  %v1181_v57 = vld [vmem:[#allocation3 + $0x80] sm:$0xff]  ;;  %v1183_v25 = vld [vmem:[#allocation3 + $0x90] sm:$0xff]  ;;  %1267 = vst [vmem:[#allocation6] sm:$0xff] (%p1152_p4), %v11091_v32  ;;  %s11654_s4 = smov (%p1152_p4), 0  }
 0x1a2   : >> { %v1164_v59 = vld [vmem:[%s1163_s3] ss:$8 sm:$0x3]  ;;  %v1184_v38 = vld [vmem:[#allocation3 + $0x98] sm:$0xff]  ;;  %s11599_s30 = scalar_lea.vmem [#allocation4], %s10018_s0  ;;  %v1187_v43 = vld [vmem:[#allocation3 + $0xb0] sm:$0xff] }
 0x1a3   : >> { %v11580_v62 = vrot.slane %v1164_v59, %v1196_v52  ;;  %v11582_v63 = vrot.slane %v1164_v59, %v1200_v54  ;;  %v1182_v36 = vld [vmem:[#allocation3 + $0x88] sm:$0xff]  ;;  %v1185_v11 = vld [vmem:[#allocation3 + $0xa0] sm:$0xff]  ;;  %v1188_v47 = vld [vmem:[#allocation3 + $0xb8] sm:$0xff]  ;;  %1268 = vst.msk [vmem:[#allocation6 + $0x8] sm:$0xff] (%p1152_p4), %vm1034_vm0, %v11091_v32 }
 0x1a4   : >> { %v1186_v17 = vld [vmem:[#allocation3 + $0xa8] sm:$0xff]  ;;  %v1189_v33 = vld [vmem:[#allocation3 + $0xc0] sm:$0xff]  ;;  %v1191_v37 = vld [vmem:[#allocation3 + $0xd0] sm:$0xff]  ;;  %1269 = vst [vmem:[#allocation6 + $0x10] sm:$0xff] (%p1152_p4), %v11091_v32 }
 0x1a5   : >> { %v1204_v4 = vmul.f32 %v11580_v62, %v1165_v58  ;;  %v1206_v5 = vmul.f32 %v11580_v62, %v1167_v55  ;;  %v1205_v6 = vmul.f32 %v11582_v63, %v1166_v56  ;;  %v1207_v7 = vmul.f32 %v11582_v63, %v1168_v60  ;;  %v1190_v41 = vld [vmem:[#allocation3 + $0xc8] sm:$0xff]  ;;  %v1192_v35 = vld [vmem:[#allocation3 + $0xd8] sm:$0xff]  ;;  %1270 = vst.msk [vmem:[#allocation6 + $0x18] sm:$0xff] (%p1152_p4), %vm1034_vm0, %v11091_v32 }
 0x1a6   : >> { %v1208_v12 = vmul.f32 %v11580_v62, %v1169_v61  ;;  %v1210_v13 = vmul.f32 %v11580_v62, %v1171_v28  ;;  %v1209_v34 = vmul.f32 %v11582_v63, %v1170_v0  ;;  %v1211_v14 = vmul.f32 %v11582_v63, %v1172_v2  ;;  %1271 = vst [vmem:[#allocation6 + $0x340] sm:$0xff] (%p1152_p4), %v11091_v32 }
 0x1a7   : >> { %v1232_v20 = vpack.c.bf16 %v1206_v5, %v1204_v4  ;;  %v1233_v21 = vpack.c.bf16 %v1207_v7, %v1205_v6  ;;  %v1212_v22 = vmul.f32 %v11580_v62, %v1173_v27  ;;  %v1214_v23 = vmul.f32 %v11580_v62, %v1175_v3  ;;  %1272 = vst.msk [vmem:[#allocation6 + $0x348] sm:$0xff] (%p1152_p4), %vm1034_vm0, %v11091_v32 }
 0x1a8   : >> { %v1234_v26 = vpack.c.bf16 %v1210_v13, %v1208_v12  ;;  %v1235_v29 = vpack.c.bf16 %v1211_v14, %v1209_v34  ;;  %v1213_v30 = vmul.f32 %v11582_v63, %v1174_v8  ;;  %v1215_v31 = vmul.f32 %v11582_v63, %v1176_v9  ;;  %1273 = vst [vmem:[#allocation6 + $0x350] sm:$0xff] (%p1152_p4), %v11091_v32 }
 0x1a9   : >> { %1253 = vst [vmem:[%s11599_s30] sm:$0xff] %v1232_v20  ;;  %1254 = vst.msk [vmem:[%s11599_s30 + $0x8] sm:$0xff] %vm1034_vm0, %v1233_v21  ;;  %v1236_v39 = vpack.c.bf16 %v1214_v23, %v1212_v22  ;;  %v1216_v10 = vmul.f32 %v11580_v62, %v1177_v15  ;;  %v1218_v40 = vmul.f32 %v11580_v62, %v1179_v18 }
 0x1aa   : >> { %v1217_v42 = vmul.f32 %v11582_v63, %v1178_v49  ;;  %1255 = vst [vmem:[%s11599_s30 + $0x10] sm:$0xff] %v1234_v26  ;;  %1256 = vst.msk [vmem:[%s11599_s30 + $0x18] sm:$0xff] %vm1034_vm0, %v1235_v29  ;;  %v1237_v19 = vpack.c.bf16 %v1215_v31, %v1213_v30  ;;  %v1219_v45 = vmul.f32 %v11582_v63, %v1180_v24 }
 0x1ab   : >> { %v1220_v16 = vmul.f32 %v11580_v62, %v1181_v57  ;;  %v1222_v46 = vmul.f32 %v11580_v62, %v1183_v25  ;;  %1257 = vst [vmem:[%s11599_s30 + $0x20] sm:$0xff] %v1236_v39  ;;  %v1238_v48 = vpack.c.bf16 %v1218_v40, %v1216_v10  ;;  %v1221_v44 = vmul.f32 %v11582_v63, %v1182_v36 }
 0x1ac   : >> { %v1223_v51 = vmul.f32 %v11582_v63, %v1184_v38  ;;  %v1224_v53 = vmul.f32 %v11580_v62, %v1185_v11  ;;  %1258 = vst.msk [vmem:[%s11599_s30 + $0x28] sm:$0xff] %vm1034_vm0, %v1237_v19  ;;  %v1239_v50 = vpack.c.bf16 %v1219_v45, %v1217_v42  ;;  %v1226_v54 = vmul.f32 %v11580_v62, %v1187_v43 }
 0x1ad   : >> { %v1240_v52 = vpack.c.bf16 %v1222_v46, %v1220_v16  ;;  %v1225_v58 = vmul.f32 %v11582_v63, %v1186_v17  ;;  %1259 = vst [vmem:[%s11599_s30 + $0x30] sm:$0xff] %v1238_v48  ;;  %v1227_v56 = vmul.f32 %v11582_v63, %v1188_v47  ;;  %v1228_v59 = vmul.f32 %v11580_v62, %v1189_v33  ;;  %1154 = sbr.rel (!%p1152_p4) target bundleno = 412 (0x19c), region = 160 }
 0x1ae   : >> { %v1241_v55 = vpack.c.bf16 %v1223_v51, %v1221_v44  ;;  %v1230_v60 = vmul.f32 %v11580_v62, %v1191_v37  ;;  %1260 = vst.msk [vmem:[%s11599_s30 + $0x38] sm:$0xff] %vm1034_vm0, %v1239_v50  ;;  %v1242_v61 = vpack.c.bf16 %v1226_v54, %v1224_v53  ;;  %v1229_v28 = vmul.f32 %v11582_v63, %v1190_v41 }
 0x1af   : >> { %1261 = vst [vmem:[%s11599_s30 + $0x40] sm:$0xff] %v1240_v52  ;;  %v1231_v0 = vmul.f32 %v11582_v63, %v1192_v35  ;;  %v1243_v2 = vpack.c.bf16 %v1227_v56, %v1225_v58  ;;  %1274 = vst.msk [vmem:[#allocation6 + $0x358] sm:$0xff] (%p1152_p4), %vm1034_vm0, %v11091_v32 }
 0x1b0   : >> { %1262 = vst.msk [vmem:[%s11599_s30 + $0x48] sm:$0xff] %vm1034_vm0, %v1241_v55  ;;  %v1244_v27 = vpack.c.bf16 %v1230_v60, %v1228_v59  ;;  %1263 = vst [vmem:[%s11599_s30 + $0x50] sm:$0xff] %v1242_v61 }
 0x1b1   : >> { %v1245_v3 = vpack.c.bf16 %v1231_v0, %v1229_v28  ;;  %1264 = vst.msk [vmem:[%s11599_s30 + $0x58] sm:$0xff] %vm1034_vm0, %v1243_v2 }
 0x1b2   : >> { %1265 = vst [vmem:[%s11599_s30 + $0x60] sm:$0xff] %v1244_v27 }
 0x1b3   : >> { %1266 = vst.msk [vmem:[%s11599_s30 + $0x68] sm:$0xff] %vm1034_vm0, %v1245_v3 }
 0x1b4 LB: >> { %s14531_s1 = sld [smem:[#allocation13_spill]]  ;;  %v11092_v63 = vmov 0   ;;  %s11668_s25 = smul.u32 448, %s11086_s4  ;;  %s11086_s4 = sphi %s11654_s4, %s1280_s4  }
 0x1b5   : >> { %1523 = vmatprep.subr.bf16.mxu0 %v11092_v63  ;;  %10246 = vmatprep.subr.bf16.mxu1 %v11092_v63 }
 0x1b6   : >> { %s1282_s3 = sshra.s32 %s11668_s25, 4  ;;  %s2504_s5 = sadd.s32 224, %s11668_s25 }
 0x1b7   : >> { %s10019_s30 = sshll.u32 %s1282_s3, 4  ;;  %s1836_s3 = sadd.s32 112, %s11668_s25 }
 0x1b8   : >> { %s11683_s24 = scalar_lea.vmem [#allocation4], %s10019_s30  ;;  %s1837_s29 = sshra.s32 %s1836_s3, 4 }
 0x1b9   : >> { %s10020_s0 = sshll.u32 %s1837_s29, 4  ;;  %s2505_s23 = sshra.s32 %s2504_s5, 4 }
 0x1ba   : >> { %v10768_v62 = vld [vmem:[%s14531_s1] sm:$0xff]   ;;  %v10769_v4 = vld [vmem:[%s14531_s1 + $0x8] sm:$0xff]   ;;  %v10770_v5 = vld [vmem:[%s14531_s1 + $0x10] sm:$0xff]   ;;  %s11883_s30 = scalar_lea.vmem [#allocation4], %s10020_s0  ;;  %s10021_s2 = sshll.u32 %s2505_s23, 4 }
 0x1bb   : >> { %1524 = vmatpush1.bf16.msra.mxu0 %v10768_v62  ;;  %10258 = vmatpush1.bf16.msra.mxu1 %v10768_v62  ;;  %v10771_v6 = vld [vmem:[%s14531_s1 + $0x18] sm:$0xff]   ;;  %v1288_v7 = vld [vmem:[%s11683_s24 + $0x8] sm:$0xff]  ;;  %v10772_v9 = vld [vmem:[%s14531_s1 + $0x20] sm:$0xff]   ;;  %s11934_s3 = scalar_lea.vmem [#allocation4], %s10021_s2  ;;  %s10022_s25 = sshll.u32 %s11086_s4, 5 }
 0x1bc   : >> { %1525 = vmatprep.subr.bf16.mxu0 %v11092_v63  ;;  %10247 = vmatprep.subr.bf16.mxu1 %v11092_v63  ;;  %v1324_v8 = vld [vmem:[%s11683_s24 + $0x128] sm:$0xff]  ;;  %v10774_v13 = vld [vmem:[%s14531_s1 + $0x30] sm:$0xff]   ;;  %v10775_v34 = vld [vmem:[%s14531_s1 + $0x38] sm:$0xff]   ;;  %s11093_s5 = smov 64   ;;  %s1280_s4 = sadd.s32 1, %s11086_s4  }
 0x1bd   : >> { %9142 = vmatprep.mubr.msk.bf16.mxu0 %vm1034_vm0, %v1288_v7  ;;  %9160 = vmatprep.mubr.msk.bf16.mxu1 %vm1034_vm0, %v1324_v8  ;;  %v10773_v12 = vld [vmem:[%s14531_s1 + $0x28] sm:$0xff]   ;;  %v10776_v14 = vld [vmem:[%s14531_s1 + $0x40] sm:$0xff]   ;;  %v10778_v18 = vld [vmem:[%s14531_s1 + $0x50] sm:$0xff]   ;;  %p1277_p5 = scmp.ge.s32.totalorder %s1280_s4, 25  }
 0x1be   : >> { %v10777_v15 = vld [vmem:[%s14531_s1 + $0x48] sm:$0xff]   ;;  %v10779_v49 = vld [vmem:[%s14531_s1 + $0x58] sm:$0xff]   ;;  %v1287_v20 = vld [vmem:[%s11683_s24] sm:$0xff]  ;;  %3645 = vst.msk [vmem:[#allocation7 + $0x8] sm:$0xff] (%p1277_p5), %vm1034_vm0, %v11091_v32  ;;  %vm4498_vm6 = vcmask (%p1277_p5), 261120   ;;  %vm4553_vm7 = vcmask (%p1277_p5), 1044480  }
 0x1bf   : >> { %1526 = vmatpush1.bf16.msra.mxu0 %v10769_v4  ;;  %10259 = vmatpush1.bf16.msra.mxu1 %v10769_v4  ;;  %v1323_v21 = vld [vmem:[%s11683_s24 + $0x120] sm:$0xff]  ;;  %v1290_v22 = vld [vmem:[%s11683_s24 + $0x18] sm:$0xff]  ;;  %v10781_v25 = vld [vmem:[%s14531_s1 + $0x68] sm:$0xff]   ;;  %3644 = vst [vmem:[#allocation7] sm:$0xff] (%p1277_p5), %v11091_v32  ;;  %vm11095_vm8 = vmmov (%p1277_p5), 1   ;;  %vm8816_vm10 = vcmask (%p1277_p5), 654336  }
 0x1c0   : >> { %1527 = vmatprep.subr.bf16.mxu0 %v11092_v63  ;;  %10248 = vmatprep.subr.bf16.mxu1 %v11092_v63  ;;  %v1326_v23 = vld [vmem:[%s11683_s24 + $0x138] sm:$0xff]  ;;  %v10780_v24 = vld [vmem:[%s14531_s1 + $0x60] sm:$0xff]   ;;  %v10793_v26 = vld [vmem:[%s14531_s1 + $0xc8] sm:$0xff]   ;;  %3647 = vst.msk [vmem:[#allocation7 + $0x68] sm:$0xff] (%p1277_p5), %vm1034_vm0, %v11091_v32  ;;  %vm9029_vm11 = vcmask (%p1277_p5), 0  }
 0x1c1   : >> { %v10792_v57 = vld [vmem:[%s14531_s1 + $0xc0] sm:$0xff]   ;;  %v1289_v29 = vld [vmem:[%s11683_s24 + $0x10] sm:$0xff]  ;;  %v1292_v31 = vld [vmem:[%s11683_s24 + $0x28] sm:$0xff] }
 0x1c2   : >> { %v1325_v30 = vld [vmem:[%s11683_s24 + $0x130] sm:$0xff]  ;;  %v1328_v36 = vld [vmem:[%s11683_s24 + $0x148] sm:$0xff]  ;;  %v10783_v39 = vld [vmem:[%s14531_s1 + $0x78] sm:$0xff]  }
 0x1c3   : >> { %1528 = vmatpush1.bf16.msra.mxu0 %v10770_v5  ;;  %10260 = vmatpush1.bf16.msra.mxu1 %v10770_v5  ;;  %v10782_v38 = vld [vmem:[%s14531_s1 + $0x70] sm:$0xff]   ;;  %v10795_v10 = vld [vmem:[%s14531_s1 + $0xd8] sm:$0xff]   ;;  %v1291_v40 = vld [vmem:[%s11683_s24 + $0x20] sm:$0xff] }
 0x1c4   : >> { %1529 = vmatprep.subr.bf16.mxu0 %v11092_v63  ;;  %10249 = vmatprep.subr.bf16.mxu1 %v11092_v63  ;;  %v10794_v11 = vld [vmem:[%s14531_s1 + $0xd0] sm:$0xff]   ;;  %v1327_v42 = vld [vmem:[%s11683_s24 + $0x140] sm:$0xff]  ;;  %v1294_v43 = vld [vmem:[%s11683_s24 + $0x38] sm:$0xff] }
 0x1c5   : >> { %v1330_v17 = vld [vmem:[%s11683_s24 + $0x158] sm:$0xff]  ;;  %v10784_v19 = vld [vmem:[%s14531_s1 + $0x80] sm:$0xff]   ;;  %v10785_v16 = vld [vmem:[%s14531_s1 + $0x88] sm:$0xff]  }
 0x1c6   : >> { %v10796_v45 = vld [vmem:[%s14531_s1 + $0xe0] sm:$0xff]   ;;  %v10797_v46 = vld [vmem:[%s14531_s1 + $0xe8] sm:$0xff]   ;;  %v1293_v47 = vld [vmem:[%s11683_s24 + $0x30] sm:$0xff] }
 0x1c7   : >> { %1530 = vmatpush1.bf16.msra.mxu0 %v10771_v6  ;;  %10261 = vmatpush1.bf16.msra.mxu1 %v10771_v6  ;;  %v1329_v33 = vld [vmem:[%s11683_s24 + $0x150] sm:$0xff]  ;;  %v1296_v37 = vld [vmem:[%s11683_s24 + $0x48] sm:$0xff]  ;;  %v10787_v53 = vld [vmem:[%s14531_s1 + $0x98] sm:$0xff]  }
 0x1c8   : >> { %1531 = vmatprep.subr.bf16.mxu0 %v11092_v63  ;;  %10250 = vmatprep.subr.bf16.mxu1 %v11092_v63  ;;  %v1332_v48 = vld [vmem:[%s11683_s24 + $0x168] sm:$0xff]  ;;  %v10786_v44 = vld [vmem:[%s14531_s1 + $0x90] sm:$0xff]   ;;  %v10799_v41 = vld [vmem:[%s14531_s1 + $0xf8] sm:$0xff]  }
 0x1c9   : >> { %v10798_v51 = vld [vmem:[%s14531_s1 + $0xf0] sm:$0xff]   ;;  %v1295_v35 = vld [vmem:[%s11683_s24 + $0x40] sm:$0xff]  ;;  %v1298_v52 = vld [vmem:[%s11683_s24 + $0x58] sm:$0xff] }
 0x1ca   : >> { %v1331_v50 = vld [vmem:[%s11683_s24 + $0x160] sm:$0xff]  ;;  %v1334_v54 = vld [vmem:[%s11683_s24 + $0x178] sm:$0xff]  ;;  %v10789_v56 = vld [vmem:[%s14531_s1 + $0xa8] sm:$0xff]  }
 0x1cb   : >> { %1532 = vmatpush1.bf16.msra.mxu0 %v10772_v9  ;;  %10262 = vmatpush1.bf16.msra.mxu1 %v10772_v9  ;;  %v10788_v58 = vld [vmem:[%s14531_s1 + $0xa0] sm:$0xff]   ;;  %v10801_v59 = vld [vmem:[%s14531_s1 + $0x108] sm:$0xff]   ;;  %v1297_v60 = vld [vmem:[%s11683_s24 + $0x50] sm:$0xff] }
 0x1cc   : >> { %1533 = vmatprep.subr.bf16.mxu0 %v11092_v63  ;;  %10251 = vmatprep.subr.bf16.mxu1 %v11092_v63  ;;  %v10800_v55 = vld [vmem:[%s14531_s1 + $0x100] sm:$0xff]   ;;  %v1333_v61 = vld [vmem:[%s11683_s24 + $0x170] sm:$0xff]  ;;  %v1300_v28 = vld [vmem:[%s11683_s24 + $0x68] sm:$0xff] }
 0x1cd   : >> { %v1336_v0 = vld [vmem:[%s11683_s24 + $0x188] sm:$0xff]  ;;  %v10790_v2 = vld [vmem:[%s14531_s1 + $0xb0] sm:$0xff]   ;;  %v10791_v3 = vld [vmem:[%s14531_s1 + $0xb8] sm:$0xff]  }
 0x1ce   : >> { %v10802_v27 = vld [vmem:[%s14531_s1 + $0x110] sm:$0xff]   ;;  %v10803_v62 = vld [vmem:[%s14531_s1 + $0x118] sm:$0xff]   ;;  %v1299_v4 = vld [vmem:[%s11683_s24 + $0x60] sm:$0xff] }
 0x1cf   : >> { %1534 = vmatpush1.bf16.msra.mxu0 %v10773_v12  ;;  %10263 = vmatpush1.bf16.msra.mxu1 %v10773_v12  ;;  %v1335_v5 = vld [vmem:[%s11683_s24 + $0x180] sm:$0xff]  ;;  %v1302_v6 = vld [vmem:[%s11683_s24 + $0x78] sm:$0xff]  ;;  %v1301_v8 = vld [vmem:[%s11683_s24 + $0x70] sm:$0xff] }
 0x1d0   : >> { %1535 = vmatprep.subr.bf16.mxu0 %v11092_v63  ;;  %10252 = vmatprep.subr.bf16.mxu1 %v11092_v63  ;;  %v1338_v7 = vld [vmem:[%s11683_s24 + $0x198] sm:$0xff]  ;;  %v1337_v9 = vld [vmem:[%s11683_s24 + $0x190] sm:$0xff]  ;;  %v1304_v12 = vld [vmem:[%s11683_s24 + $0x88] sm:$0xff] }
 0x1d1   : > { %vm14253_vm9 = vmpackc.low (%p1277_p5), %vm11095_vm8, %vm4553_vm7 }
 0x1d3   : >> { %1536 = vmatpush1.bf16.msra.mxu0 %v10774_v13  ;;  %10264 = vmatpush1.bf16.msra.mxu1 %v10774_v13  ;;  %v1340_v13 = vld [vmem:[%s11683_s24 + $0x1a8] sm:$0xff] }
 0x1d4   : >> { %1537 = vmatprep.subr.bf16.mxu0 %v11092_v63  ;;  %10253 = vmatprep.subr.bf16.mxu1 %v11092_v63 }
 0x1d7   : >> { %1538 = vmatpush1.bf16.msra.mxu0 %v10775_v34  ;;  %10265 = vmatpush1.bf16.msra.mxu1 %v10775_v34  ;;  %v1303_v34 = vld [vmem:[%s11683_s24 + $0x80] sm:$0xff] }
 0x1d8   : >> { %1539 = vmatprep.subr.bf16.mxu0 %v11092_v63  ;;  %10254 = vmatprep.subr.bf16.mxu1 %v11092_v63 }
 0x1db   : >> { %1540 = vmatpush1.bf16.msra.mxu0 %v10776_v14  ;;  %10266 = vmatpush1.bf16.msra.mxu1 %v10776_v14  ;;  %v1339_v14 = vld [vmem:[%s11683_s24 + $0x1a0] sm:$0xff] }
 0x1dc   : >> { %1541 = vmatprep.subr.bf16.mxu0 %v11092_v63  ;;  %10255 = vmatprep.subr.bf16.mxu1 %v11092_v63 }
 0x1df   : >> { %1542 = vmatpush1.bf16.msra.mxu0 %v10777_v15  ;;  %10267 = vmatpush1.bf16.msra.mxu1 %v10777_v15  ;;  %v1306_v15 = vld [vmem:[%s11683_s24 + $0x98] sm:$0xff] }
 0x1e0   : >> { %1543 = vmatprep.subr.bf16.mxu0 %v11092_v63  ;;  %10256 = vmatprep.subr.bf16.mxu1 %v11092_v63 }
 0x1e3   : >> { %1544 = vmatpush1.bf16.msra.mxu0 %v10778_v18  ;;  %10268 = vmatpush1.bf16.msra.mxu1 %v10778_v18  ;;  %v1342_v18 = vld [vmem:[%s11683_s24 + $0x1b8] sm:$0xff] }
 0x1e4   : >> { %1545 = vmatprep.subr.bf16.mxu0 %v11092_v63  ;;  %10257 = vmatprep.subr.bf16.mxu1 %v11092_v63 }
 0x1e7   : >> { %1546 = vmatpush1.bf16.msra.mxu0 %v10779_v49  ;;  %10269 = vmatpush1.bf16.msra.mxu1 %v10779_v49  ;;  %v1305_v49 = vld [vmem:[%s11683_s24 + $0x90] sm:$0xff] }
 0x1e8   : >> { %2079 = vmatprep.subr.bf16.mxu1 %v11092_v63  ;;  %2747 = vmatprep.subr.bf16.mxu0 %v11092_v63 }
 0x1ea   : >> { %1556 = vmatmul.mubr.bf16.vlgmr.msra.gmra.mrb[0].mxu0 %v1287_v20  ;;  %1700 = vmatmul.mubr.bf16.vlgmr.msra.gmra.mrb[0].mxu1 %v1323_v21  ;;  %v1341_v20 = vld [vmem:[%s11683_s24 + $0x1b0] sm:$0xff]  ;;  %v1308_v21 = vld [vmem:[%s11683_s24 + $0xa8] sm:$0xff] }
 0x1eb   : >> { %9143 = vmatprep.mubr.msk.bf16.mxu0 %vm1034_vm0, %v1290_v22  ;;  %9161 = vmatprep.mubr.msk.bf16.mxu1 %vm1034_vm0, %v1326_v23  ;;  %v1843_v22 = vld [vmem:[%s11883_s30 + $0x8] sm:$0xff]  ;;  %v1307_v23 = vld [vmem:[%s11683_s24 + $0xa0] sm:$0xff] }
 0x1ec   : >> { %2080 = vmatpush1.bf16.msra.mxu1 %v10780_v24  ;;  %2748 = vmatpush1.bf16.msra.mxu0 %v10792_v57  ;;  %v1842_v24 = vld [vmem:[%s11883_s30] sm:$0xff]  ;;  %v1310_v57 = vld [vmem:[%s11683_s24 + $0xb8] sm:$0xff] }
 0x1ed   : >> { %2081 = vmatprep.subr.bf16.mxu1 %v11092_v63  ;;  %2749 = vmatprep.subr.bf16.mxu0 %v11092_v63 }
 0x1f0   : >> { %2082 = vmatpush1.bf16.msra.mxu1 %v10781_v25  ;;  %2750 = vmatpush1.bf16.msra.mxu0 %v10793_v26  ;;  %v1845_v25 = vld [vmem:[%s11883_s30 + $0x18] sm:$0xff]  ;;  %v1309_v26 = vld [vmem:[%s11683_s24 + $0xb0] sm:$0xff] }
 0x1f1   : >> { %2083 = vmatprep.subr.bf16.mxu1 %v11092_v63  ;;  %2751 = vmatprep.subr.bf16.mxu0 %v11092_v63 }
 0x1f2   : >> { %1564 = vmatmul.mubr.bf16.gmra.mrb[4].mxu0 %v1289_v29  ;;  %1708 = vmatmul.mubr.bf16.gmra.mrb[4].mxu1 %v1325_v30  ;;  %v1844_v29 = vld [vmem:[%s11883_s30 + $0x10] sm:$0xff]  ;;  %v1312_v30 = vld [vmem:[%s11683_s24 + $0xc8] sm:$0xff] }
 0x1f3   : >> { %9144 = vmatprep.mubr.msk.bf16.mxu0 %vm1034_vm0, %v1292_v31  ;;  %9162 = vmatprep.mubr.msk.bf16.mxu1 %vm1034_vm0, %v1328_v36  ;;  %v1847_v31 = vld [vmem:[%s11883_s30 + $0x28] sm:$0xff]  ;;  %v1311_v36 = vld [vmem:[%s11683_s24 + $0xc0] sm:$0xff] }
 0x1f4   : >> { %2084 = vmatpush1.bf16.msra.mxu1 %v10782_v38  ;;  %2752 = vmatpush1.bf16.msra.mxu0 %v10794_v11  ;;  %v1846_v38 = vld [vmem:[%s11883_s30 + $0x20] sm:$0xff]  ;;  %v1314_v11 = vld [vmem:[%s11683_s24 + $0xd8] sm:$0xff] }
 0x1f5   : >> { %2085 = vmatprep.subr.bf16.mxu1 %v11092_v63  ;;  %2753 = vmatprep.subr.bf16.mxu0 %v11092_v63 }
 0x1f8   : >> { %2086 = vmatpush1.bf16.msra.mxu1 %v10783_v39  ;;  %2754 = vmatpush1.bf16.msra.mxu0 %v10795_v10  ;;  %v1849_v39 = vld [vmem:[%s11883_s30 + $0x38] sm:$0xff]  ;;  %v1313_v10 = vld [vmem:[%s11683_s24 + $0xd0] sm:$0xff] }
 0x1f9   : >> { %2087 = vmatprep.subr.bf16.mxu1 %v11092_v63  ;;  %2755 = vmatprep.subr.bf16.mxu0 %v11092_v63 }
 0x1fa   : >> { %1572 = vmatmul.mubr.bf16.gmra.mrb[8].mxu0 %v1291_v40  ;;  %1716 = vmatmul.mubr.bf16.gmra.mrb[8].mxu1 %v1327_v42  ;;  %v1848_v40 = vld [vmem:[%s11883_s30 + $0x30] sm:$0xff]  ;;  %v1316_v42 = vld [vmem:[%s11683_s24 + $0xe8] sm:$0xff] }
 0x1fb   : >> { %9145 = vmatprep.mubr.msk.bf16.mxu0 %vm1034_vm0, %v1294_v43  ;;  %9163 = vmatprep.mubr.msk.bf16.mxu1 %vm1034_vm0, %v1330_v17  ;;  %v1851_v43 = vld [vmem:[%s11883_s30 + $0x48] sm:$0xff]  ;;  %v1315_v17 = vld [vmem:[%s11683_s24 + $0xe0] sm:$0xff] }
 0x1fc   : >> { %2088 = vmatpush1.bf16.msra.mxu1 %v10784_v19  ;;  %2756 = vmatpush1.bf16.msra.mxu0 %v10796_v45  ;;  %v1850_v19 = vld [vmem:[%s11883_s30 + $0x40] sm:$0xff]  ;;  %v1318_v45 = vld [vmem:[%s11683_s24 + $0xf8] sm:$0xff] }
 0x1fd   : >> { %2089 = vmatprep.subr.bf16.mxu1 %v11092_v63  ;;  %2757 = vmatprep.subr.bf16.mxu0 %v11092_v63 }
 0x200   : >> { %2090 = vmatpush1.bf16.msra.mxu1 %v10785_v16  ;;  %2758 = vmatpush1.bf16.msra.mxu0 %v10797_v46  ;;  %v1853_v16 = vld [vmem:[%s11883_s30 + $0x58] sm:$0xff]  ;;  %v1317_v46 = vld [vmem:[%s11683_s24 + $0xf0] sm:$0xff] }
 0x201   : >> { %2091 = vmatprep.subr.bf16.mxu1 %v11092_v63  ;;  %2759 = vmatprep.subr.bf16.mxu0 %v11092_v63 }
 0x202   : >> { %1580 = vmatmul.mubr.bf16.gmra.mrb[12].mxu0 %v1293_v47  ;;  %1724 = vmatmul.mubr.bf16.gmra.mrb[12].mxu1 %v1329_v33  ;;  %v1852_v47 = vld [vmem:[%s11883_s30 + $0x50] sm:$0xff]  ;;  %v1320_v33 = vld [vmem:[%s11683_s24 + $0x108] sm:$0xff] }
 0x203   : >> { %9146 = vmatprep.mubr.msk.bf16.mxu0 %vm1034_vm0, %v1296_v37  ;;  %9164 = vmatprep.mubr.msk.bf16.mxu1 %vm1034_vm0, %v1332_v48  ;;  %v1855_v37 = vld [vmem:[%s11883_s30 + $0x68] sm:$0xff]  ;;  %v1319_v48 = vld [vmem:[%s11683_s24 + $0x100] sm:$0xff] }
 0x204   : >> { %2092 = vmatpush1.bf16.msra.mxu1 %v10786_v44  ;;  %2760 = vmatpush1.bf16.msra.mxu0 %v10798_v51  ;;  %v1854_v44 = vld [vmem:[%s11883_s30 + $0x60] sm:$0xff]  ;;  %v1322_v51 = vld [vmem:[%s11683_s24 + $0x118] sm:$0xff] }
 0x205   : >> { %2093 = vmatprep.subr.bf16.mxu1 %v11092_v63  ;;  %2761 = vmatprep.subr.bf16.mxu0 %v11092_v63 }
 0x208   : >> { %2094 = vmatpush1.bf16.msra.mxu1 %v10787_v53  ;;  %2762 = vmatpush1.bf16.msra.mxu0 %v10799_v41  ;;  %v1857_v53 = vld [vmem:[%s11883_s30 + $0x78] sm:$0xff]  ;;  %v1321_v41 = vld [vmem:[%s11683_s24 + $0x110] sm:$0xff]  ;;  %s10023_s24 = sadd.s32 32, %s10022_s25 }
 0x209   : >> { %2095 = vmatprep.subr.bf16.mxu1 %v11092_v63  ;;  %2763 = vmatprep.subr.bf16.mxu0 %v11092_v63  ;;  %s3635_s29 = sshra.s32 %s10023_s24, 4 }
 0x20a   : >> { %1588 = vmatmul.mubr.bf16.gmra.mrb[16].mxu0 %v1295_v35  ;;  %1732 = vmatmul.mubr.bf16.gmra.mrb[16].mxu1 %v1331_v50  ;;  %v1856_v35 = vld [vmem:[%s11883_s30 + $0x70] sm:$0xff]  ;;  %v1859_v50 = vld [vmem:[%s11883_s30 + $0x88] sm:$0xff]  ;;  %s10024_s0 = sshll.u32 %s3635_s29, 4 }
 0x20b   : >> { %9147 = vmatprep.mubr.msk.bf16.mxu0 %vm1034_vm0, %v1298_v52  ;;  %9165 = vmatprep.mubr.msk.bf16.mxu1 %vm1034_vm0, %v1334_v54  ;;  %v2511_v52 = vld [vmem:[%s11934_s3 + $0x8] sm:$0xff]  ;;  %v1858_v54 = vld [vmem:[%s11883_s30 + $0x80] sm:$0xff]  ;;  %s3639_s23 = scalar_lea.vmem [#allocation6], %s10024_s0 }
 0x20c   : >> { %2096 = vmatpush1.bf16.msra.mxu1 %v10788_v58  ;;  %2764 = vmatpush1.bf16.msra.mxu0 %v10800_v55  ;;  %v2510_v58 = vld [vmem:[%s11934_s3] sm:$0xff]  ;;  %v1861_v55 = vld [vmem:[%s11883_s30 + $0x98] sm:$0xff] }
 0x20d   : >> { %2097 = vmatprep.subr.bf16.mxu1 %v11092_v63  ;;  %2765 = vmatprep.subr.bf16.mxu0 %v11092_v63 }
 0x210   : >> { %2098 = vmatpush1.bf16.msra.mxu1 %v10789_v56  ;;  %2766 = vmatpush1.bf16.msra.mxu0 %v10801_v59  ;;  %v2513_v56 = vld [vmem:[%s11934_s3 + $0x18] sm:$0xff]  ;;  %v1860_v59 = vld [vmem:[%s11883_s30 + $0x90] sm:$0xff] }
 0x211   : >> { %2099 = vmatprep.subr.bf16.mxu1 %v11092_v63  ;;  %2767 = vmatprep.subr.bf16.mxu0 %v11092_v63 }
 0x212   : >> { %1596 = vmatmul.mubr.bf16.gmra.mrb[20].mxu0 %v1297_v60  ;;  %1740 = vmatmul.mubr.bf16.gmra.mrb[20].mxu1 %v1333_v61  ;;  %v2512_v60 = vld [vmem:[%s11934_s3 + $0x10] sm:$0xff]  ;;  %v1863_v61 = vld [vmem:[%s11883_s30 + $0xa8] sm:$0xff] }
 0x213   : >> { %9148 = vmatprep.mubr.msk.bf16.mxu0 %vm1034_vm0, %v1300_v28  ;;  %9166 = vmatprep.mubr.msk.bf16.mxu1 %vm1034_vm0, %v1336_v0  ;;  %v2515_v28 = vld [vmem:[%s11934_s3 + $0x28] sm:$0xff]  ;;  %v1862_v0 = vld [vmem:[%s11883_s30 + $0xa0] sm:$0xff] }
 0x214   : >> { %2100 = vmatpush1.bf16.msra.mxu1 %v10790_v2  ;;  %2768 = vmatpush1.bf16.msra.mxu0 %v10802_v27  ;;  %v2514_v2 = vld [vmem:[%s11934_s3 + $0x20] sm:$0xff]  ;;  %v1865_v27 = vld [vmem:[%s11883_s30 + $0xb8] sm:$0xff] }
 0x215   : >> { %2101 = vmatprep.subr.bf16.mxu1 %v11092_v63  ;;  %2769 = vmatprep.subr.bf16.mxu0 %v11092_v63 }
 0x218   : >> { %2102 = vmatpush1.bf16.msra.mxu1 %v10791_v3  ;;  %2770 = vmatpush1.bf16.msra.mxu0 %v10803_v62  ;;  %v2517_v3 = vld [vmem:[%s11934_s3 + $0x38] sm:$0xff]  ;;  %v1864_v62 = vld [vmem:[%s11883_s30 + $0xb0] sm:$0xff] }
 0x219   : > { %3823 = vmatprep.subr.bf16.mxu0 (%p1277_p5), %v11091_v32 }
 0x21a   : >> { %1604 = vmatmul.mubr.bf16.gmra.mrb[24].mxu0 %v1299_v4  ;;  %1748 = vmatmul.mubr.bf16.gmra.mrb[24].mxu1 %v1335_v5  ;;  %v2516_v4 = vld [vmem:[%s11934_s3 + $0x30] sm:$0xff]  ;;  %v1867_v5 = vld [vmem:[%s11883_s30 + $0xc8] sm:$0xff] }
 0x21b   : >> { %9149 = vmatprep.mubr.msk.bf16.mxu0 %vm1034_vm0, %v1302_v6  ;;  %9167 = vmatprep.mubr.msk.bf16.mxu1 %vm1034_vm0, %v1338_v7  ;;  %v2519_v6 = vld [vmem:[%s11934_s3 + $0x48] sm:$0xff]  ;;  %v1866_v7 = vld [vmem:[%s11883_s30 + $0xc0] sm:$0xff] }
 0x222   : >> { %1612 = vmatmul.mubr.bf16.gmra.mrb[28].mxu0 %v1301_v8  ;;  %1756 = vmatmul.mubr.bf16.gmra.mrb[28].mxu1 %v1337_v9  ;;  %v2518_v8 = vld [vmem:[%s11934_s3 + $0x40] sm:$0xff]  ;;  %v1869_v9 = vld [vmem:[%s11883_s30 + $0xd8] sm:$0xff] }
 0x223   : >> { %9150 = vmatprep.mubr.msk.bf16.mxu0 %vm1034_vm0, %v1304_v12  ;;  %9168 = vmatprep.mubr.msk.bf16.mxu1 %vm1034_vm0, %v1340_v13  ;;  %v2521_v12 = vld [vmem:[%s11934_s3 + $0x58] sm:$0xff]  ;;  %v1868_v13 = vld [vmem:[%s11883_s30 + $0xd0] sm:$0xff] }
 0x22a   : >> { %1620 = vmatmul.mubr.bf16.gmra.mrb[32].mxu0 %v1303_v34  ;;  %1764 = vmatmul.mubr.bf16.gmra.mrb[32].mxu1 %v1339_v14  ;;  %v2520_v34 = vld [vmem:[%s11934_s3 + $0x50] sm:$0xff]  ;;  %v1871_v14 = vld [vmem:[%s11883_s30 + $0xe8] sm:$0xff] }
 0x22b   : >> { %9151 = vmatprep.mubr.msk.bf16.mxu0 %vm1034_vm0, %v1306_v15  ;;  %9169 = vmatprep.mubr.msk.bf16.mxu1 %vm1034_vm0, %v1342_v18  ;;  %v2523_v15 = vld [vmem:[%s11934_s3 + $0x68] sm:$0xff]  ;;  %v1870_v18 = vld [vmem:[%s11883_s30 + $0xe0] sm:$0xff] }
 0x232   : >> { %1628 = vmatmul.mubr.bf16.gmra.mrb[36].mxu0 %v1305_v49  ;;  %1772 = vmatmul.mubr.bf16.gmra.mrb[36].mxu1 %v1341_v20  ;;  %v2522_v49 = vld [vmem:[%s11934_s3 + $0x60] sm:$0xff]  ;;  %v1873_v20 = vld [vmem:[%s11883_s30 + $0xf8] sm:$0xff] }
 0x233   : >> { %9152 = vmatprep.mubr.msk.bf16.mxu0 %vm1034_vm0, %v1308_v21  ;;  %9208 = vmatprep.mubr.msk.bf16.mxu1 %vm1034_vm0, %v1843_v22  ;;  %v2525_v21 = vld [vmem:[%s11934_s3 + $0x78] sm:$0xff]  ;;  %v1872_v22 = vld [vmem:[%s11883_s30 + $0xf0] sm:$0xff] }
 0x23a   : >> { %1636 = vmatmul.mubr.bf16.gmra.mrb[40].mxu0 %v1307_v23  ;;  %2112 = vmatmul.mubr.bf16.vlgmr.msra.gmra.mrb[40].mxu1 %v1842_v24  ;;  %v2524_v23 = vld [vmem:[%s11934_s3 + $0x70] sm:$0xff]  ;;  %v1875_v24 = vld [vmem:[%s11883_s30 + $0x108] sm:$0xff] }
 0x23b   : >> { %9153 = vmatprep.mubr.msk.bf16.mxu0 %vm1034_vm0, %v1310_v57  ;;  %9209 = vmatprep.mubr.msk.bf16.mxu1 %vm1034_vm0, %v1845_v25  ;;  %v2527_v57 = vld [vmem:[%s11934_s3 + $0x88] sm:$0xff]  ;;  %v1874_v25 = vld [vmem:[%s11883_s30 + $0x100] sm:$0xff] }
 0x242   : >> { %1644 = vmatmul.mubr.bf16.gmra.mrb[44].mxu0 %v1309_v26  ;;  %2120 = vmatmul.mubr.bf16.gmra.mrb[44].mxu1 %v1844_v29  ;;  %v2526_v26 = vld [vmem:[%s11934_s3 + $0x80] sm:$0xff]  ;;  %v1877_v29 = vld [vmem:[%s11883_s30 + $0x118] sm:$0xff] }
 0x243   : >> { %9154 = vmatprep.mubr.msk.bf16.mxu0 %vm1034_vm0, %v1312_v30  ;;  %9210 = vmatprep.mubr.msk.bf16.mxu1 %vm1034_vm0, %v1847_v31  ;;  %v2529_v30 = vld [vmem:[%s11934_s3 + $0x98] sm:$0xff] }
 0x24a   : >> { %1652 = vmatmul.mubr.bf16.gmra.mrb[48].mxu0 %v1311_v36  ;;  %2128 = vmatmul.mubr.bf16.gmra.mrb[48].mxu1 %v1846_v38 }
 0x24b   : >> { %9155 = vmatprep.mubr.msk.bf16.mxu0 %vm1034_vm0, %v1314_v11  ;;  %9211 = vmatprep.mubr.msk.bf16.mxu1 %vm1034_vm0, %v1849_v39 }
 0x252   : >> { %1660 = vmatmul.mubr.bf16.gmra.mrb[52].mxu0 %v1313_v10  ;;  %2136 = vmatmul.mubr.bf16.gmra.mrb[52].mxu1 %v1848_v40  ;;  %v1876_v10 = vld [vmem:[%s11883_s30 + $0x110] sm:$0xff] }
 0x253   : >> { %9156 = vmatprep.mubr.msk.bf16.mxu0 %vm1034_vm0, %v1316_v42  ;;  %9212 = vmatprep.mubr.msk.bf16.mxu1 %vm1034_vm0, %v1851_v43  ;;  %v2528_v40 = vld [vmem:[%s11934_s3 + $0x90] sm:$0xff] }
 0x25a   : >> { %1668 = vmatmul.mubr.bf16.gmra.mrb[56].mxu0 %v1315_v17  ;;  %2144 = vmatmul.mubr.bf16.gmra.mrb[56].mxu1 %v1850_v19  ;;  %v1879_v17 = vld [vmem:[%s11883_s30 + $0x128] sm:$0xff] }
 0x25b   : >> { %9157 = vmatprep.mubr.msk.bf16.mxu0 %vm1034_vm0, %v1318_v45  ;;  %9213 = vmatprep.mubr.msk.bf16.mxu1 %vm1034_vm0, %v1853_v16  ;;  %v2531_v19 = vld [vmem:[%s11934_s3 + $0xa8] sm:$0xff] }
 0x262   : >> { %1676 = vmatmul.mubr.bf16.gmra.mrb[60].mxu0 %v1317_v46  ;;  %2152 = vmatmul.mubr.bf16.gmra.mrb[60].mxu1 %v1852_v47 }
 0x263   : >> { %9158 = vmatprep.mubr.msk.bf16.mxu0 %vm1034_vm0, %v1320_v33  ;;  %9214 = vmatprep.mubr.msk.bf16.mxu1 %vm1034_vm0, %v1855_v37 }
 0x26a   : >> { %1684 = vmatmul.mubr.bf16.gmra.mrb[64].mxu0 %v1319_v48  ;;  %2160 = vmatmul.mubr.bf16.gmra.mrb[64].mxu1 %v1854_v44  ;;  %v1878_v48 = vld [vmem:[%s11883_s30 + $0x120] sm:$0xff] }
 0x26b   : >> { %9159 = vmatprep.mubr.msk.bf16.mxu0 %vm1034_vm0, %v1322_v51  ;;  %9215 = vmatprep.mubr.msk.bf16.mxu1 %vm1034_vm0, %v1857_v53  ;;  %v2530_v44 = vld [vmem:[%s11934_s3 + $0xa0] sm:$0xff] }
 0x272   : >> { %1692 = vmatmul.mubr.bf16.gmra.mrb[68].mxu0 %v1321_v41  ;;  %2168 = vmatmul.mubr.bf16.gmra.mrb[68].mxu1 %v1856_v35  ;;  %v1881_v41 = vld [vmem:[%s11883_s30 + $0x138] sm:$0xff] }
 0x273   : >> { %9216 = vmatprep.mubr.msk.bf16.mxu1 %vm1034_vm0, %v1859_v50  ;;  %9274 = vmatprep.mubr.msk.bf16.mxu0 %vm1034_vm0, %v2511_v52  ;;  %v2533_v35 = vld [vmem:[%s11934_s3 + $0xb8] sm:$0xff] }
 0x27a   : >> { %2176 = vmatmul.mubr.bf16.gmra.mrb[72].mxu1 %v1858_v54  ;;  %2780 = vmatmul.mubr.bf16.vlgmr.msra.gmra.mrb[72].mxu0 %v2510_v58 }
 0x27b   : >> { %9217 = vmatprep.mubr.msk.bf16.mxu1 %vm1034_vm0, %v1861_v55  ;;  %9275 = vmatprep.mubr.msk.bf16.mxu0 %vm1034_vm0, %v2513_v56 }
 0x282   : >> { %2184 = vmatmul.mubr.bf16.gmra.mrb[76].mxu1 %v1860_v59  ;;  %2788 = vmatmul.mubr.bf16.gmra.mrb[76].mxu0 %v2512_v60  ;;  %v1880_v59 = vld [vmem:[%s11883_s30 + $0x130] sm:$0xff] }
 0x283   : >> { %9218 = vmatprep.mubr.msk.bf16.mxu1 %vm1034_vm0, %v1863_v61  ;;  %9276 = vmatprep.mubr.msk.bf16.mxu0 %vm1034_vm0, %v2515_v28  ;;  %v2532_v60 = vld [vmem:[%s11934_s3 + $0xb0] sm:$0xff] }
 0x28a   : >> { %2192 = vmatmul.mubr.bf16.gmra.mrb[80].mxu1 %v1862_v0  ;;  %2796 = vmatmul.mubr.bf16.gmra.mrb[80].mxu0 %v2514_v2  ;;  %v1883_v0 = vld [vmem:[%s11883_s30 + $0x148] sm:$0xff] }
 0x28b   : >> { %9219 = vmatprep.mubr.msk.bf16.mxu1 %vm1034_vm0, %v1865_v27  ;;  %9277 = vmatprep.mubr.msk.bf16.mxu0 %vm1034_vm0, %v2517_v3  ;;  %v2535_v2 = vld [vmem:[%s11934_s3 + $0xc8] sm:$0xff] }
 0x292   : >> { %2200 = vmatmul.mubr.bf16.gmra.mrb[84].mxu1 %v1864_v62  ;;  %2804 = vmatmul.mubr.bf16.gmra.mrb[84].mxu0 %v2516_v4 }
 0x293   : >> { %9220 = vmatprep.mubr.msk.bf16.mxu1 %vm1034_vm0, %v1867_v5  ;;  %9278 = vmatprep.mubr.msk.bf16.mxu0 %vm1034_vm0, %v2519_v6 }
 0x29a   : >> { %2208 = vmatmul.mubr.bf16.gmra.mrb[88].mxu1 %v1866_v7  ;;  %2812 = vmatmul.mubr.bf16.gmra.mrb[88].mxu0 %v2518_v8  ;;  %v1882_v7 = vld [vmem:[%s11883_s30 + $0x140] sm:$0xff] }
 0x29b   : >> { %9221 = vmatprep.mubr.msk.bf16.mxu1 %vm1034_vm0, %v1869_v9  ;;  %9279 = vmatprep.mubr.msk.bf16.mxu0 %vm1034_vm0, %v2521_v12  ;;  %v2534_v8 = vld [vmem:[%s11934_s3 + $0xc0] sm:$0xff] }
 0x2a2   : >> { %2216 = vmatmul.mubr.bf16.gmra.mrb[92].mxu1 %v1868_v13  ;;  %2820 = vmatmul.mubr.bf16.gmra.mrb[92].mxu0 %v2520_v34  ;;  %v1885_v13 = vld [vmem:[%s11883_s30 + $0x158] sm:$0xff] }
 0x2a3   : >> { %9222 = vmatprep.mubr.msk.bf16.mxu1 %vm1034_vm0, %v1871_v14  ;;  %9280 = vmatprep.mubr.msk.bf16.mxu0 %vm1034_vm0, %v2523_v15  ;;  %v2537_v34 = vld [vmem:[%s11934_s3 + $0xd8] sm:$0xff] }
 0x2aa   : >> { %2224 = vmatmul.mubr.bf16.gmra.mrb[96].mxu1 %v1870_v18  ;;  %2828 = vmatmul.mubr.bf16.gmra.mrb[96].mxu0 %v2522_v49 }
 0x2ab   : >> { %9223 = vmatprep.mubr.msk.bf16.mxu1 %vm1034_vm0, %v1873_v20  ;;  %9281 = vmatprep.mubr.msk.bf16.mxu0 %vm1034_vm0, %v2525_v21 }
 0x2b2   : >> { %2232 = vmatmul.mubr.bf16.gmra.mrb[100].mxu1 %v1872_v22  ;;  %2836 = vmatmul.mubr.bf16.gmra.mrb[100].mxu0 %v2524_v23  ;;  %v1884_v22 = vld [vmem:[%s11883_s30 + $0x150] sm:$0xff] }
 0x2b3   : >> { %9224 = vmatprep.mubr.msk.bf16.mxu1 %vm1034_vm0, %v1875_v24  ;;  %9282 = vmatprep.mubr.msk.bf16.mxu0 %vm1034_vm0, %v2527_v57  ;;  %v2536_v23 = vld [vmem:[%s11934_s3 + $0xd0] sm:$0xff] }
 0x2ba   : >> { %2240 = vmatmul.mubr.bf16.gmra.mrb[104].mxu1 %v1874_v25  ;;  %2844 = vmatmul.mubr.bf16.gmra.mrb[104].mxu0 %v2526_v26  ;;  %v1887_v25 = vld [vmem:[%s11883_s30 + $0x168] sm:$0xff] }
 0x2bb   : >> { %9225 = vmatprep.mubr.msk.bf16.mxu1 %vm1034_vm0, %v1877_v29  ;;  %9283 = vmatprep.mubr.msk.bf16.mxu0 %vm1034_vm0, %v2529_v30  ;;  %v2539_v26 = vld [vmem:[%s11934_s3 + $0xe8] sm:$0xff] }
 0x2bd   : >> { %v1557_v31 = vpop.f32.mrb[0].mxu0  ;;  %v1701_v36 = vpop.f32.mrb[0].mxu1 }
 0x2be   : >> { %1780 = vst.msk [vmem:[#allocation5] sm:$0xff] %vm1034_vm0, %v1557_v31  ;;  %v1559_v38 = vpop.f32.mrb[1].mxu0  ;;  %1816 = vst.msk [vmem:[#allocation5 + $0x120] sm:$0xff] %vm1034_vm0, %v1701_v36  ;;  %v1703_v11 = vpop.f32.mrb[1].mxu1 }
 0x2bf   : >> { %v1560_v39 = vpop.f32.mrb[2].mxu0  ;;  %v1704_v42 = vpop.f32.mrb[2].mxu1 }
 0x2c0   : >> { %1781 = vst.msk [vmem:[#allocation5 + $0x8] sm:$0xff] %vm1034_vm0, %v1560_v39  ;;  %v1562_v43 = vpop.f32.mrb[3].mxu0  ;;  %1817 = vst.msk [vmem:[#allocation5 + $0x128] sm:$0xff] %vm1034_vm0, %v1704_v42  ;;  %v1706_v45 = vpop.f32.mrb[3].mxu1  ;;  %v1886_v39 = vld [vmem:[%s11883_s30 + $0x160] sm:$0xff] }
 0x2c1   : >> { %v1889_v43 = vld [vmem:[%s11883_s30 + $0x178] sm:$0xff] }
 0x2c2   : >> { %2248 = vmatmul.mubr.bf16.gmra.mrb[108].mxu1 %v1876_v10  ;;  %2852 = vmatmul.mubr.bf16.gmra.mrb[108].mxu0 %v2528_v40  ;;  %v2538_v10 = vld [vmem:[%s11934_s3 + $0xe0] sm:$0xff] }
 0x2c3   : >> { %9226 = vmatprep.mubr.msk.bf16.mxu1 %vm1034_vm0, %v1879_v17  ;;  %9284 = vmatprep.mubr.msk.bf16.mxu0 %vm1034_vm0, %v2531_v19  ;;  %v2541_v17 = vld [vmem:[%s11934_s3 + $0xf8] sm:$0xff] }
 0x2c5   : >> { %v1565_v16 = vpop.f32.mrb[4].mxu0  ;;  %v1709_v46 = vpop.f32.mrb[4].mxu1 }
 0x2c6   : >> { %1782 = vst.msk [vmem:[#allocation5 + $0x10] sm:$0xff] %vm1034_vm0, %v1565_v16  ;;  %v1567_v47 = vpop.f32.mrb[5].mxu0  ;;  %1818 = vst.msk [vmem:[#allocation5 + $0x130] sm:$0xff] %vm1034_vm0, %v1709_v46  ;;  %v1711_v33 = vpop.f32.mrb[5].mxu1 }
 0x2c7   : >> { %v1568_v37 = vpop.f32.mrb[6].mxu0  ;;  %v1712_v51 = vpop.f32.mrb[6].mxu1 }
 0x2c8   : >> { %1783 = vst.msk [vmem:[#allocation5 + $0x18] sm:$0xff] %vm1034_vm0, %v1568_v37  ;;  %v1570_v53 = vpop.f32.mrb[7].mxu0  ;;  %1819 = vst.msk [vmem:[#allocation5 + $0x138] sm:$0xff] %vm1034_vm0, %v1712_v51  ;;  %v1714_v50 = vpop.f32.mrb[7].mxu1  ;;  %v1888_v37 = vld [vmem:[%s11883_s30 + $0x170] sm:$0xff] }
 0x2c9   : >> { %v1891_v53 = vld [vmem:[%s11883_s30 + $0x188] sm:$0xff] }
 0x2ca   : >> { %2256 = vmatmul.mubr.bf16.gmra.mrb[112].mxu1 %v1878_v48  ;;  %2860 = vmatmul.mubr.bf16.gmra.mrb[112].mxu0 %v2530_v44  ;;  %v2540_v48 = vld [vmem:[%s11934_s3 + $0xf0] sm:$0xff] }
 0x2cb   : >> { %9227 = vmatprep.mubr.msk.bf16.mxu1 %vm1034_vm0, %v1881_v41  ;;  %9285 = vmatprep.mubr.msk.bf16.mxu0 %vm1034_vm0, %v2533_v35  ;;  %v2543_v41 = vld [vmem:[%s11934_s3 + $0x108] sm:$0xff] }
 0x2cd   : >> { %v1573_v52 = vpop.f32.mrb[8].mxu0  ;;  %v1717_v54 = vpop.f32.mrb[8].mxu1 }
 0x2ce   : >> { %1784 = vst.msk [vmem:[#allocation5 + $0x20] sm:$0xff] %vm1034_vm0, %v1573_v52  ;;  %v1575_v58 = vpop.f32.mrb[9].mxu0  ;;  %1820 = vst.msk [vmem:[#allocation5 + $0x140] sm:$0xff] %vm1034_vm0, %v1717_v54  ;;  %v1719_v55 = vpop.f32.mrb[9].mxu1 }
 0x2cf   : >> { %v1576_v56 = vpop.f32.mrb[10].mxu0  ;;  %v1720_v61 = vpop.f32.mrb[10].mxu1 }
 0x2d0   : >> { %1785 = vst.msk [vmem:[#allocation5 + $0x28] sm:$0xff] %vm1034_vm0, %v1576_v56  ;;  %v1578_v28 = vpop.f32.mrb[11].mxu0  ;;  %1821 = vst.msk [vmem:[#allocation5 + $0x148] sm:$0xff] %vm1034_vm0, %v1720_v61  ;;  %v1722_v27 = vpop.f32.mrb[11].mxu1  ;;  %v1890_v56 = vld [vmem:[%s11883_s30 + $0x180] sm:$0xff] }
 0x2d1   : >> { %v1893_v28 = vld [vmem:[%s11883_s30 + $0x198] sm:$0xff] }
 0x2d2   : >> { %2264 = vmatmul.mubr.bf16.gmra.mrb[116].mxu1 %v1880_v59  ;;  %2868 = vmatmul.mubr.bf16.gmra.mrb[116].mxu0 %v2532_v60  ;;  %v2542_v59 = vld [vmem:[%s11934_s3 + $0x100] sm:$0xff] }
 0x2d3   : >> { %9228 = vmatprep.mubr.msk.bf16.mxu1 %vm1034_vm0, %v1883_v0  ;;  %9286 = vmatprep.mubr.msk.bf16.mxu0 %vm1034_vm0, %v2535_v2  ;;  %v2545_v0 = vld [vmem:[%s11934_s3 + $0x118] sm:$0xff] }
 0x2d5   : >> { %v1581_v3 = vpop.f32.mrb[12].mxu0  ;;  %v1725_v62 = vpop.f32.mrb[12].mxu1 }
 0x2d6   : >> { %1786 = vst.msk [vmem:[#allocation5 + $0x30] sm:$0xff] %vm1034_vm0, %v1581_v3  ;;  %v1583_v4 = vpop.f32.mrb[13].mxu0  ;;  %1822 = vst.msk [vmem:[#allocation5 + $0x150] sm:$0xff] %vm1034_vm0, %v1725_v62  ;;  %v1727_v5 = vpop.f32.mrb[13].mxu1 }
 0x2d7   : >> { %v1584_v6 = vpop.f32.mrb[14].mxu0  ;;  %v1728_v9 = vpop.f32.mrb[14].mxu1 }
 0x2d8   : >> { %1787 = vst.msk [vmem:[#allocation5 + $0x38] sm:$0xff] %vm1034_vm0, %v1584_v6  ;;  %v1586_v12 = vpop.f32.mrb[15].mxu0  ;;  %1823 = vst.msk [vmem:[#allocation5 + $0x158] sm:$0xff] %vm1034_vm0, %v1728_v9  ;;  %v1730_v14 = vpop.f32.mrb[15].mxu1  ;;  %v1892_v6 = vld [vmem:[%s11883_s30 + $0x190] sm:$0xff] }
 0x2da   : >> { %2272 = vmatmul.mubr.bf16.gmra.mrb[120].mxu1 %v1882_v7  ;;  %2876 = vmatmul.mubr.bf16.gmra.mrb[120].mxu0 %v2534_v8  ;;  %v2544_v7 = vld [vmem:[%s11934_s3 + $0x110] sm:$0xff] }
 0x2db   : >> { %9229 = vmatprep.mubr.msk.bf16.mxu1 %vm1034_vm0, %v1885_v13  ;;  %9287 = vmatprep.mubr.msk.bf16.mxu0 %vm1034_vm0, %v2537_v34  ;;  %v1895_v13 = vld [vmem:[%s11883_s30 + $0x1a8] sm:$0xff] }
 0x2dc   : >> { %v2547_v34 = vld [vmem:[%s11934_s3 + $0x128] sm:$0xff] }
 0x2dd   : >> { %v1589_v15 = vpop.f32.mrb[16].mxu0  ;;  %v1733_v18 = vpop.f32.mrb[16].mxu1 }
 0x2de   : >> { %1788 = vst.msk [vmem:[#allocation5 + $0x40] sm:$0xff] %vm1034_vm0, %v1589_v15  ;;  %v1591_v49 = vpop.f32.mrb[17].mxu0  ;;  %1824 = vst.msk [vmem:[#allocation5 + $0x160] sm:$0xff] %vm1034_vm0, %v1733_v18  ;;  %v1735_v20 = vpop.f32.mrb[17].mxu1 }
 0x2df   : >> { %v1592_v21 = vpop.f32.mrb[18].mxu0  ;;  %v1736_v24 = vpop.f32.mrb[18].mxu1 }
 0x2e0   : >> { %1789 = vst.msk [vmem:[#allocation5 + $0x48] sm:$0xff] %vm1034_vm0, %v1592_v21  ;;  %v1594_v57 = vpop.f32.mrb[19].mxu0  ;;  %1825 = vst.msk [vmem:[#allocation5 + $0x168] sm:$0xff] %vm1034_vm0, %v1736_v24  ;;  %v1738_v29 = vpop.f32.mrb[19].mxu1  ;;  %v1894_v21 = vld [vmem:[%s11883_s30 + $0x1a0] sm:$0xff] }
 0x2e2   : >> { %2280 = vmatmul.mubr.bf16.gmra.mrb[124].mxu1 %v1884_v22  ;;  %2884 = vmatmul.mubr.bf16.gmra.mrb[124].mxu0 %v2536_v23  ;;  %v2546_v22 = vld [vmem:[%s11934_s3 + $0x120] sm:$0xff] }
 0x2e3   : >> { %9230 = vmatprep.mubr.msk.bf16.mxu1 %vm1034_vm0, %v1887_v25  ;;  %9288 = vmatprep.mubr.msk.bf16.mxu0 %vm1034_vm0, %v2539_v26  ;;  %v1897_v25 = vld [vmem:[%s11883_s30 + $0x1b8] sm:$0xff] }
 0x2e4   : >> { %v2549_v26 = vld [vmem:[%s11934_s3 + $0x138] sm:$0xff] }
 0x2e5   : >> { %v1597_v30 = vpop.f32.mrb[20].mxu0  ;;  %v1741_v31 = vpop.f32.mrb[20].mxu1 }
 0x2e6   : >> { %1790 = vst.msk [vmem:[#allocation5 + $0x50] sm:$0xff] %vm1034_vm0, %v1597_v30  ;;  %v1599_v36 = vpop.f32.mrb[21].mxu0  ;;  %1826 = vst.msk [vmem:[#allocation5 + $0x170] sm:$0xff] %vm1034_vm0, %v1741_v31  ;;  %v1743_v38 = vpop.f32.mrb[21].mxu1  ;;  %v2336_v31 = vld [vmem:[#allocation5] sm:$0xff] }
 0x2e7   : >> { %v1600_v11 = vpop.f32.mrb[22].mxu0  ;;  %v1744_v40 = vpop.f32.mrb[22].mxu1 }
 0x2e8   : >> { %1791 = vst.msk [vmem:[#allocation5 + $0x58] sm:$0xff] %vm1034_vm0, %v1600_v11  ;;  %v1602_v42 = vpop.f32.mrb[23].mxu0  ;;  %1827 = vst.msk [vmem:[#allocation5 + $0x178] sm:$0xff] %vm1034_vm0, %v1744_v40  ;;  %v1746_v19 = vpop.f32.mrb[23].mxu1  ;;  %v2337_v40 = vld [vmem:[#allocation5 + $0x8] sm:$0xff] }
 0x2e9   : >> { %v1896_v42 = vld [vmem:[%s11883_s30 + $0x1b0] sm:$0xff]  ;;  %s14532_s30 = sld [smem:[#allocation14_spill]] }
 0x2ea   : >> { %2288 = vmatmul.mubr.bf16.gmra.mrb[128].mxu1 %v1886_v39  ;;  %2892 = vmatmul.mubr.bf16.gmra.mrb[128].mxu0 %v2538_v10 }
 0x2eb   : >> { %9231 = vmatprep.mubr.msk.bf16.mxu1 %vm1034_vm0, %v1889_v43  ;;  %9289 = vmatprep.mubr.msk.bf16.mxu0 %vm1034_vm0, %v2541_v17  ;;  %v2548_v43 = vld [vmem:[%s11934_s3 + $0x130] sm:$0xff] }
 0x2ed   : >> { %v1605_v45 = vpop.f32.mrb[24].mxu0  ;;  %v1749_v16 = vpop.f32.mrb[24].mxu1 }
 0x2ee   : >> { %1792 = vst.msk [vmem:[#allocation5 + $0x60] sm:$0xff] %vm1034_vm0, %v1605_v45  ;;  %v1607_v46 = vpop.f32.mrb[25].mxu0  ;;  %1828 = vst.msk [vmem:[#allocation5 + $0x180] sm:$0xff] %vm1034_vm0, %v1749_v16  ;;  %v1751_v47 = vpop.f32.mrb[25].mxu1  ;;  %v2551_v16 = vld [vmem:[%s11934_s3 + $0x148] sm:$0xff] }
 0x2ef   : >> { %v1608_v33 = vpop.f32.mrb[26].mxu0  ;;  %v1752_v44 = vpop.f32.mrb[26].mxu1 }
 0x2f0   : >> { %1793 = vst.msk [vmem:[#allocation5 + $0x68] sm:$0xff] %vm1034_vm0, %v1608_v33  ;;  %v1610_v51 = vpop.f32.mrb[27].mxu0  ;;  %1829 = vst.msk [vmem:[#allocation5 + $0x188] sm:$0xff] %vm1034_vm0, %v1752_v44  ;;  %v1754_v35 = vpop.f32.mrb[27].mxu1  ;;  %v2338_v33 = vld [vmem:[#allocation5 + $0x10] sm:$0xff] }
 0x2f1   : >> { %v2550_v35 = vld [vmem:[%s11934_s3 + $0x140] sm:$0xff] }
 0x2f2   : >> { %2296 = vmatmul.mubr.bf16.gmra.mrb[132].mxu1 %v1888_v37  ;;  %2900 = vmatmul.mubr.bf16.gmra.mrb[132].mxu0 %v2540_v48 }
 0x2f3   : >> { %9232 = vmatprep.mubr.msk.bf16.mxu1 %vm1034_vm0, %v1891_v53  ;;  %9290 = vmatprep.mubr.msk.bf16.mxu0 %vm1034_vm0, %v2543_v41  ;;  %v2339_v41 = vld [vmem:[#allocation5 + $0x18] sm:$0xff] }
 0x2f5   : >> { %v1613_v50 = vpop.f32.mrb[28].mxu0  ;;  %v1757_v52 = vpop.f32.mrb[28].mxu1 }
 0x2f6   : >> { %1794 = vst.msk [vmem:[#allocation5 + $0x70] sm:$0xff] %vm1034_vm0, %v1613_v50  ;;  %v1615_v54 = vpop.f32.mrb[29].mxu0  ;;  %1830 = vst.msk [vmem:[#allocation5 + $0x190] sm:$0xff] %vm1034_vm0, %v1757_v52  ;;  %v1759_v58 = vpop.f32.mrb[29].mxu1 }
 0x2f7   : >> { %v1616_v55 = vpop.f32.mrb[30].mxu0  ;;  %v1760_v60 = vpop.f32.mrb[30].mxu1  ;;  %v2553_v58 = vld [vmem:[%s11934_s3 + $0x158] sm:$0xff] }
 0x2f8   : >> { %1795 = vst.msk [vmem:[#allocation5 + $0x78] sm:$0xff] %vm1034_vm0, %v1616_v55  ;;  %v1618_v61 = vpop.f32.mrb[31].mxu0  ;;  %1831 = vst.msk [vmem:[#allocation5 + $0x198] sm:$0xff] %vm1034_vm0, %v1760_v60  ;;  %v1762_v2 = vpop.f32.mrb[31].mxu1 }
 0x2fa   : >> { %2304 = vmatmul.mubr.bf16.gmra.mrb[136].mxu1 %v1890_v56  ;;  %2908 = vmatmul.mubr.bf16.gmra.mrb[136].mxu0 %v2542_v59  ;;  %v2340_v59 = vld [vmem:[#allocation5 + $0x20] sm:$0xff] }
 0x2fb   : >> { %9233 = vmatprep.mubr.msk.bf16.mxu1 %vm1034_vm0, %v1893_v28  ;;  %9291 = vmatprep.mubr.msk.bf16.mxu0 %vm1034_vm0, %v2545_v0 }
 0x2fd   : >> { %v1621_v27 = vpop.f32.mrb[32].mxu0  ;;  %v1765_v3 = vpop.f32.mrb[32].mxu1 }
 0x2fe   : >> { %1796 = vst.msk [vmem:[#allocation5 + $0x80] sm:$0xff] %vm1034_vm0, %v1621_v27  ;;  %v1623_v62 = vpop.f32.mrb[33].mxu0  ;;  %1832 = vst.msk [vmem:[#allocation5 + $0x1a0] sm:$0xff] %vm1034_vm0, %v1765_v3  ;;  %v1767_v4 = vpop.f32.mrb[33].mxu1  ;;  %v2341_v27 = vld [vmem:[#allocation5 + $0x28] sm:$0xff]  ;;  %v2552_v3 = vld [vmem:[%s11934_s3 + $0x150] sm:$0xff] }
 0x2ff   : >> { %v1624_v5 = vpop.f32.mrb[34].mxu0  ;;  %v1768_v8 = vpop.f32.mrb[34].mxu1 }
 0x300   : >> { %1797 = vst.msk [vmem:[#allocation5 + $0x88] sm:$0xff] %vm1034_vm0, %v1624_v5  ;;  %v1626_v9 = vpop.f32.mrb[35].mxu0  ;;  %1833 = vst.msk [vmem:[#allocation5 + $0x1a8] sm:$0xff] %vm1034_vm0, %v1768_v8  ;;  %v1770_v12 = vpop.f32.mrb[35].mxu1 }
 0x301   : >> { %v2342_v9 = vld [vmem:[#allocation5 + $0x30] sm:$0xff] }
 0x302   : >> { %2312 = vmatmul.mubr.bf16.gmra.mrb[140].mxu1 %v1892_v6  ;;  %2916 = vmatmul.mubr.bf16.gmra.mrb[140].mxu0 %v2544_v7  ;;  %v2555_v6 = vld [vmem:[%s11934_s3 + $0x168] sm:$0xff] }
 0x303   : >> { %9234 = vmatprep.mubr.msk.bf16.mxu1 %vm1034_vm0, %v1895_v13  ;;  %9292 = vmatprep.mubr.msk.bf16.mxu0 %vm1034_vm0, %v2547_v34 }
 0x305   : >> { %v1629_v14 = vpop.f32.mrb[36].mxu0  ;;  %v1773_v15 = vpop.f32.mrb[36].mxu1 }
 0x306   : >> { %1798 = vst.msk [vmem:[#allocation5 + $0x90] sm:$0xff] %vm1034_vm0, %v1629_v14  ;;  %v1631_v18 = vpop.f32.mrb[37].mxu0  ;;  %1834 = vst.msk [vmem:[#allocation5 + $0x1b0] sm:$0xff] %vm1034_vm0, %v1773_v15  ;;  %v1775_v49 = vpop.f32.mrb[37].mxu1 }
 0x307   : >> { %v1632_v20 = vpop.f32.mrb[38].mxu0  ;;  %v1776_v23 = vpop.f32.mrb[38].mxu1  ;;  %v2343_v18 = vld [vmem:[#allocation5 + $0x38] sm:$0xff]  ;;  %v2554_v49 = vld [vmem:[%s11934_s3 + $0x160] sm:$0xff] }
 0x308   : >> { %1799 = vst.msk [vmem:[#allocation5 + $0x98] sm:$0xff] %vm1034_vm0, %v1632_v20  ;;  %v1634_v24 = vpop.f32.mrb[39].mxu0  ;;  %1835 = vst.msk [vmem:[#allocation5 + $0x1b8] sm:$0xff] %vm1034_vm0, %v1776_v23  ;;  %v1778_v57 = vpop.f32.mrb[39].mxu1  ;;  %v2557_v23 = vld [vmem:[%s11934_s3 + $0x178] sm:$0xff] }
 0x30a   : >> { %2320 = vmatmul.mubr.bf16.gmra.mrb[144].mxu1 %v1894_v21  ;;  %2924 = vmatmul.mubr.bf16.gmra.mrb[144].mxu0 %v2546_v22 }
 0x30b   : >> { %9235 = vmatprep.mubr.msk.bf16.mxu1 %vm1034_vm0, %v1897_v25  ;;  %9293 = vmatprep.mubr.msk.bf16.mxu0 %vm1034_vm0, %v2549_v26  ;;  %v2344_v25 = vld [vmem:[#allocation5 + $0x40] sm:$0xff] }
 0x30d   : >> { %v1637_v29 = vpop.f32.mrb[40].mxu0  ;;  %v2113_v30 = vpop.f32.mrb[40].mxu1 }
 0x30e   : >> { %1800 = vst.msk [vmem:[#allocation5 + $0xa0] sm:$0xff] %vm1034_vm0, %v1637_v29  ;;  %v2392_v36 = vadd.f32 %v2336_v31, %v2113_v30  ;;  %v1639_v38 = vpop.f32.mrb[41].mxu0  ;;  %v2115_v11 = vpop.f32.mrb[41].mxu1 }
 0x30f   : >> { %v1640_v39 = vpop.f32.mrb[42].mxu0  ;;  %v2116_v10 = vpop.f32.mrb[42].mxu1  ;;  %v2345_v38 = vld [vmem:[#allocation5 + $0x48] sm:$0xff]  ;;  %v2556_v11 = vld [vmem:[%s11934_s3 + $0x170] sm:$0xff] }
 0x310   : >> { %2448 = vst.msk [vmem:[#allocation5] sm:$0xff] %vm1034_vm0, %v2392_v36  ;;  %1801 = vst.msk [vmem:[#allocation5 + $0xa8] sm:$0xff] %vm1034_vm0, %v1640_v39  ;;  %v2393_v17 = vadd.f32 %v2337_v40, %v2116_v10  ;;  %v1642_v19 = vpop.f32.mrb[43].mxu0  ;;  %v2118_v45 = vpop.f32.mrb[43].mxu1 }
 0x311   : >> { %v2346_v19 = vld [vmem:[#allocation5 + $0x50] sm:$0xff] }
 0x312   : >> { %2449 = vst.msk [vmem:[#allocation5 + $0x8] sm:$0xff] %vm1034_vm0, %v2393_v17  ;;  %2328 = vmatmul.mubr.bf16.gmra.mrb[148].mxu1 %v1896_v42  ;;  %2932 = vmatmul.mubr.bf16.gmra.mrb[148].mxu0 %v2548_v43  ;;  %v2559_v42 = vld [vmem:[%s11934_s3 + $0x188] sm:$0xff] }
 0x313   : >> { %9294 = vmatprep.mubr.msk.bf16.mxu0 %vm1034_vm0, %v2551_v16 }
 0x315   : >> { %v1645_v46 = vpop.f32.mrb[44].mxu0  ;;  %v2121_v47 = vpop.f32.mrb[44].mxu1 }
 0x316   : >> { %1802 = vst.msk [vmem:[#allocation5 + $0xb0] sm:$0xff] %vm1034_vm0, %v1645_v46  ;;  %v2394_v37 = vadd.f32 %v2338_v33, %v2121_v47  ;;  %v1647_v48 = vpop.f32.mrb[45].mxu0  ;;  %v2123_v44 = vpop.f32.mrb[45].mxu1 }
 0x317   : >> { %v1648_v51 = vpop.f32.mrb[46].mxu0  ;;  %v2124_v53 = vpop.f32.mrb[46].mxu1  ;;  %v2558_v48 = vld [vmem:[%s11934_s3 + $0x180] sm:$0xff] }
 0x318   : >> { %2450 = vst.msk [vmem:[#allocation5 + $0x10] sm:$0xff] %vm1034_vm0, %v2394_v37  ;;  %1803 = vst.msk [vmem:[#allocation5 + $0xb8] sm:$0xff] %vm1034_vm0, %v1648_v51  ;;  %v2395_v50 = vadd.f32 %v2339_v41, %v2124_v53  ;;  %v1650_v52 = vpop.f32.mrb[47].mxu0  ;;  %v2126_v54 = vpop.f32.mrb[47].mxu1  ;;  %v2347_v37 = vld [vmem:[#allocation5 + $0x58] sm:$0xff] }
 0x319   : >> { %v2561_v41 = vld [vmem:[%s11934_s3 + $0x198] sm:$0xff]  ;;  %v2348_v52 = vld [vmem:[#allocation5 + $0x60] sm:$0xff] }
 0x31a   : >> { %2451 = vst.msk [vmem:[#allocation5 + $0x18] sm:$0xff] %vm1034_vm0, %v2395_v50  ;;  %2940 = vmatmul.mubr.bf16.gmra.mrb[152].mxu0 %v2550_v35 }
 0x31b   : >> { %9295 = vmatprep.mubr.msk.bf16.mxu0 %vm1034_vm0, %v2553_v58 }
 0x31d   : >> { %v1653_v55 = vpop.f32.mrb[48].mxu0  ;;  %v2129_v56 = vpop.f32.mrb[48].mxu1 }
 0x31e   : >> { %1804 = vst.msk [vmem:[#allocation5 + $0xc0] sm:$0xff] %vm1034_vm0, %v1653_v55  ;;  %v2396_v60 = vadd.f32 %v2340_v59, %v2129_v56  ;;  %v1655_v61 = vpop.f32.mrb[49].mxu0  ;;  %v2131_v28 = vpop.f32.mrb[49].mxu1 }
 0x31f   : >> { %v1656_v0 = vpop.f32.mrb[50].mxu0  ;;  %v2132_v2 = vpop.f32.mrb[50].mxu1  ;;  %v2560_v61 = vld [vmem:[%s11934_s3 + $0x190] sm:$0xff] }
 0x320   : >> { %2452 = vst.msk [vmem:[#allocation5 + $0x20] sm:$0xff] %vm1034_vm0, %v2396_v60  ;;  %1805 = vst.msk [vmem:[#allocation5 + $0xc8] sm:$0xff] %vm1034_vm0, %v1656_v0  ;;  %v2397_v62 = vadd.f32 %v2341_v27, %v2132_v2  ;;  %v1658_v4 = vpop.f32.mrb[51].mxu0  ;;  %v2134_v5 = vpop.f32.mrb[51].mxu1  ;;  %v2349_v60 = vld [vmem:[#allocation5 + $0x68] sm:$0xff] }
 0x321   : >> { %v2563_v27 = vld [vmem:[%s11934_s3 + $0x1a8] sm:$0xff]  ;;  %v2350_v4 = vld [vmem:[#allocation5 + $0x70] sm:$0xff] }
 0x322   : >> { %2453 = vst.msk [vmem:[#allocation5 + $0x28] sm:$0xff] %vm1034_vm0, %v2397_v62  ;;  %2948 = vmatmul.mubr.bf16.gmra.mrb[156].mxu0 %v2552_v3 }
 0x323   : >> { %9296 = vmatprep.mubr.msk.bf16.mxu0 %vm1034_vm0, %v2555_v6 }
 0x325   : >> { %v1661_v7 = vpop.f32.mrb[52].mxu0  ;;  %v2137_v8 = vpop.f32.mrb[52].mxu1 }
 0x326   : >> { %1806 = vst.msk [vmem:[#allocation5 + $0xd0] sm:$0xff] %vm1034_vm0, %v1661_v7  ;;  %v2398_v12 = vadd.f32 %v2342_v9, %v2137_v8  ;;  %v1663_v13 = vpop.f32.mrb[53].mxu0  ;;  %v2139_v34 = vpop.f32.mrb[53].mxu1 }
 0x327   : >> { %v1664_v14 = vpop.f32.mrb[54].mxu0  ;;  %v2140_v15 = vpop.f32.mrb[54].mxu1  ;;  %v2562_v13 = vld [vmem:[%s11934_s3 + $0x1a0] sm:$0xff] }
 0x328   : >> { %2454 = vst.msk [vmem:[#allocation5 + $0x30] sm:$0xff] %vm1034_vm0, %v2398_v12  ;;  %1807 = vst.msk [vmem:[#allocation5 + $0xd8] sm:$0xff] %vm1034_vm0, %v1664_v14  ;;  %v2399_v20 = vadd.f32 %v2343_v18, %v2140_v15  ;;  %v1666_v21 = vpop.f32.mrb[55].mxu0  ;;  %v2142_v22 = vpop.f32.mrb[55].mxu1  ;;  %v2351_v12 = vld [vmem:[#allocation5 + $0x78] sm:$0xff] }
 0x329   : >> { %v2565_v18 = vld [vmem:[%s11934_s3 + $0x1b8] sm:$0xff]  ;;  %v3004_v22 = vld [vmem:[#allocation5] sm:$0xff] }
 0x32a   : >> { %2455 = vst.msk [vmem:[#allocation5 + $0x38] sm:$0xff] %vm1034_vm0, %v2399_v20  ;;  %2956 = vmatmul.mubr.bf16.gmra.mrb[160].mxu0 %v2554_v49  ;;  %v2352_v20 = vld [vmem:[#allocation5 + $0x80] sm:$0xff] }
 0x32b   : >> { %9297 = vmatprep.mubr.msk.bf16.mxu0 %vm1034_vm0, %v2557_v23 }
 0x32d   : >> { %v1669_v24 = vpop.f32.mrb[56].mxu0  ;;  %v2145_v57 = vpop.f32.mrb[56].mxu1 }
 0x32e   : >> { %1808 = vst.msk [vmem:[#allocation5 + $0xe0] sm:$0xff] %vm1034_vm0, %v1669_v24  ;;  %v2400_v26 = vadd.f32 %v2344_v25, %v2145_v57  ;;  %v1671_v29 = vpop.f32.mrb[57].mxu0  ;;  %v2147_v30 = vpop.f32.mrb[57].mxu1 }
 0x32f   : >> { %v1672_v31 = vpop.f32.mrb[58].mxu0  ;;  %v2148_v36 = vpop.f32.mrb[58].mxu1  ;;  %v2353_v29 = vld [vmem:[#allocation5 + $0x88] sm:$0xff] }
 0x330   : >> { %2456 = vst.msk [vmem:[#allocation5 + $0x40] sm:$0xff] %vm1034_vm0, %v2400_v26  ;;  %1809 = vst.msk [vmem:[#allocation5 + $0xe8] sm:$0xff] %vm1034_vm0, %v1672_v31  ;;  %v2401_v39 = vadd.f32 %v2345_v38, %v2148_v36  ;;  %v1674_v10 = vpop.f32.mrb[59].mxu0  ;;  %v2150_v40 = vpop.f32.mrb[59].mxu1  ;;  %v3005_v31 = vld [vmem:[#allocation5 + $0x8] sm:$0xff]  ;;  %v2564_v36 = vld [vmem:[%s11934_s3 + $0x1b0] sm:$0xff] }
 0x332   : >> { %2457 = vst.msk [vmem:[#allocation5 + $0x48] sm:$0xff] %vm1034_vm0, %v2401_v39  ;;  %2964 = vmatmul.mubr.bf16.gmra.mrb[164].mxu0 %v2556_v11 }
 0x333   : >> { %9298 = vmatprep.mubr.msk.bf16.mxu0 %vm1034_vm0, %v2559_v42  ;;  %v2354_v42 = vld [vmem:[#allocation5 + $0x90] sm:$0xff] }
 0x335   : >> { %v1677_v43 = vpop.f32.mrb[60].mxu0  ;;  %v2153_v17 = vpop.f32.mrb[60].mxu1 }
 0x336   : >> { %1810 = vst.msk [vmem:[#allocation5 + $0xf0] sm:$0xff] %vm1034_vm0, %v1677_v43  ;;  %v2402_v45 = vadd.f32 %v2346_v19, %v2153_v17  ;;  %v1679_v16 = vpop.f32.mrb[61].mxu0  ;;  %v2155_v46 = vpop.f32.mrb[61].mxu1  ;;  %v3006_v17 = vld [vmem:[#allocation5 + $0x10] sm:$0xff] }
 0x337   : >> { %v1680_v47 = vpop.f32.mrb[62].mxu0  ;;  %v2156_v33 = vpop.f32.mrb[62].mxu1 }
 0x338   : >> { %2458 = vst.msk [vmem:[#allocation5 + $0x50] sm:$0xff] %vm1034_vm0, %v2402_v45  ;;  %1811 = vst.msk [vmem:[#allocation5 + $0xf8] sm:$0xff] %vm1034_vm0, %v1680_v47  ;;  %v2403_v44 = vadd.f32 %v2347_v37, %v2156_v33  ;;  %v1682_v51 = vpop.f32.mrb[63].mxu0  ;;  %v2158_v53 = vpop.f32.mrb[63].mxu1  ;;  %v2355_v33 = vld [vmem:[#allocation5 + $0x98] sm:$0xff] }
 0x33a   : >> { %2459 = vst.msk [vmem:[#allocation5 + $0x58] sm:$0xff] %vm1034_vm0, %v2403_v44  ;;  %2972 = vmatmul.mubr.bf16.gmra.mrb[168].mxu0 %v2558_v48  ;;  %v3007_v48 = vld [vmem:[#allocation5 + $0x18] sm:$0xff] }
 0x33b   : >> { %9299 = vmatprep.mubr.msk.bf16.mxu0 %vm1034_vm0, %v2561_v41 }
 0x33d   : >> { %v1685_v35 = vpop.f32.mrb[64].mxu0  ;;  %v2161_v50 = vpop.f32.mrb[64].mxu1 }
 0x33e   : >> { %1812 = vst.msk [vmem:[#allocation5 + $0x100] sm:$0xff] %vm1034_vm0, %v1685_v35  ;;  %v2404_v54 = vadd.f32 %v2348_v52, %v2161_v50  ;;  %v1687_v58 = vpop.f32.mrb[65].mxu0  ;;  %v2163_v55 = vpop.f32.mrb[65].mxu1  ;;  %v2356_v50 = vld [vmem:[#allocation5 + $0xa0] sm:$0xff] }
 0x33f   : >> { %v1688_v56 = vpop.f32.mrb[66].mxu0  ;;  %v2164_v59 = vpop.f32.mrb[66].mxu1 }
 0x340   : >> { %2460 = vst.msk [vmem:[#allocation5 + $0x60] sm:$0xff] %vm1034_vm0, %v2404_v54  ;;  %1813 = vst.msk [vmem:[#allocation5 + $0x108] sm:$0xff] %vm1034_vm0, %v1688_v56  ;;  %v2405_v28 = vadd.f32 %v2349_v60, %v2164_v59  ;;  %v1690_v0 = vpop.f32.mrb[67].mxu0  ;;  %v2166_v2 = vpop.f32.mrb[67].mxu1  ;;  %v3008_v54 = vld [vmem:[#allocation5 + $0x20] sm:$0xff] }
 0x341   : >> { %v3009_v0 = vld [vmem:[#allocation5 + $0x28] sm:$0xff]  ;;  %v10806_v2 = vld [vmem:[%s14503_s7 + $0x4] ss:$16 sps:$4 sm:$0xff]  }
 0x342   : >> { %2461 = vst.msk [vmem:[#allocation5 + $0x68] sm:$0xff] %vm1034_vm0, %v2405_v28  ;;  %2980 = vmatmul.mubr.bf16.gmra.mrb[172].mxu0 %v2560_v61  ;;  %v2357_v61 = vld [vmem:[#allocation5 + $0xa8] sm:$0xff]  ;;  %3522 = vmatprep.mubr.bf16.mxu1 %v10806_v2 }
 0x343   : >> { %9300 = vmatprep.mubr.msk.bf16.mxu0 %vm1034_vm0, %v2563_v27 }
 0x345   : >> { %v1693_v3 = vpop.f32.mrb[68].mxu0  ;;  %v2169_v62 = vpop.f32.mrb[68].mxu1 }
 0x346   : >> { %1814 = vst.msk [vmem:[#allocation5 + $0x110] sm:$0xff] %vm1034_vm0, %v1693_v3  ;;  %v2406_v5 = vadd.f32 %v2350_v4, %v2169_v62  ;;  %v1695_v6 = vpop.f32.mrb[69].mxu0  ;;  %v2171_v7 = vpop.f32.mrb[69].mxu1 }
 0x347   : >> { %v1696_v8 = vpop.f32.mrb[70].mxu0  ;;  %v2172_v9 = vpop.f32.mrb[70].mxu1  ;;  %v2358_v6 = vld [vmem:[#allocation5 + $0xb0] sm:$0xff] }
 0x348   : >> { %2462 = vst.msk [vmem:[#allocation5 + $0x70] sm:$0xff] %vm1034_vm0, %v2406_v5  ;;  %1815 = vst.msk [vmem:[#allocation5 + $0x118] sm:$0xff] %vm1034_vm0, %v1696_v8  ;;  %v2407_v34 = vadd.f32 %v2351_v12, %v2172_v9  ;;  %v1698_v14 = vpop.f32.mrb[71].mxu0  ;;  %v2174_v15 = vpop.f32.mrb[71].mxu1  ;;  %v3010_v8 = vld [vmem:[#allocation5 + $0x30] sm:$0xff] }
 0x349   : >> { %v2359_v15 = vld [vmem:[#allocation5 + $0xb8] sm:$0xff] }
 0x34a   : >> { %2463 = vst.msk [vmem:[#allocation5 + $0x78] sm:$0xff] %vm1034_vm0, %v2407_v34  ;;  %2988 = vmatmul.mubr.bf16.gmra.mrb[176].mxu0 %v2562_v13 }
 0x34b   : >> { %9301 = vmatprep.mubr.msk.bf16.mxu0 %vm1034_vm0, %v2565_v18 }
 0x34d   : >> { %v2177_v49 = vpop.f32.mrb[72].mxu1  ;;  %v2781_v21 = vpop.f32.mrb[72].mxu0 }
 0x34e   : >> { %v2408_v23 = vadd.f32 %v2352_v20, %v2177_v49  ;;  %v3060_v24 = vadd.f32 %v3004_v22, %v2781_v21  ;;  %v2179_v57 = vpop.f32.mrb[73].mxu1  ;;  %v2783_v25 = vpop.f32.mrb[73].mxu0  ;;  %v3011_v49 = vld [vmem:[#allocation5 + $0x38] sm:$0xff] }
 0x34f   : >> { %v2180_v26 = vpop.f32.mrb[74].mxu1  ;;  %v2784_v30 = vpop.f32.mrb[74].mxu0  ;;  %v2360_v57 = vld [vmem:[#allocation5 + $0xc0] sm:$0xff] }
 0x350   : >> { %2464 = vst.msk [vmem:[#allocation5 + $0x80] sm:$0xff] %vm1034_vm0, %v2408_v23  ;;  %3116 = vst.msk [vmem:[#allocation5] sm:$0xff] %vm1034_vm0, %v3060_v24  ;;  %v2409_v38 = vadd.f32 %v2353_v29, %v2180_v26  ;;  %v3061_v11 = vadd.f32 %v3005_v31, %v2784_v30  ;;  %v2786_v39 = vpop.f32.mrb[75].mxu0  ;;  %v2182_v10 = vpop.f32.mrb[75].mxu1  ;;  %v3012_v26 = vld [vmem:[#allocation5 + $0x40] sm:$0xff] }
 0x351   : >> { %v3013_v10 = vld [vmem:[#allocation5 + $0x48] sm:$0xff] }
 0x352   : >> { %2465 = vst.msk [vmem:[#allocation5 + $0x88] sm:$0xff] %vm1034_vm0, %v2409_v38  ;;  %3117 = vst.msk [vmem:[#allocation5 + $0x8] sm:$0xff] %vm1034_vm0, %v3061_v11  ;;  %2996 = vmatmul.mubr.bf16.gmra.mrb[180].mxu0 %v2564_v36  ;;  %v2361_v11 = vld [vmem:[#allocation5 + $0xc8] sm:$0xff] }
 0x355   : >> { %v2185_v40 = vpop.f32.mrb[76].mxu1  ;;  %v2789_v43 = vpop.f32.mrb[76].mxu0 }
 0x356   : >> { %v2410_v19 = vadd.f32 %v2354_v42, %v2185_v40  ;;  %v3062_v45 = vadd.f32 %v3006_v17, %v2789_v43  ;;  %v2187_v16 = vpop.f32.mrb[77].mxu1  ;;  %v2791_v46 = vpop.f32.mrb[77].mxu0 }
 0x357   : >> { %v2188_v47 = vpop.f32.mrb[78].mxu1  ;;  %v2792_v37 = vpop.f32.mrb[78].mxu0  ;;  %v3014_v46 = vld [vmem:[#allocation5 + $0x50] sm:$0xff] }
 0x358   : >> { %2466 = vst.msk [vmem:[#allocation5 + $0x90] sm:$0xff] %vm1034_vm0, %v2410_v19  ;;  %3118 = vst.msk [vmem:[#allocation5 + $0x10] sm:$0xff] %vm1034_vm0, %v3062_v45  ;;  %v2411_v44 = vadd.f32 %v2355_v33, %v2188_v47  ;;  %v3063_v51 = vadd.f32 %v3007_v48, %v2792_v37  ;;  %v2794_v53 = vpop.f32.mrb[79].mxu0  ;;  %v2190_v41 = vpop.f32.mrb[79].mxu1  ;;  %v2362_v45 = vld [vmem:[#allocation5 + $0xd0] sm:$0xff] }
 0x359   : >> { %v3015_v41 = vld [vmem:[#allocation5 + $0x58] sm:$0xff] }
 0x35a   : >> { %2467 = vst.msk [vmem:[#allocation5 + $0x98] sm:$0xff] %vm1034_vm0, %v2411_v44  ;;  %3119 = vst.msk [vmem:[#allocation5 + $0x18] sm:$0xff] %vm1034_vm0, %v3063_v51  ;;  %v2363_v51 = vld [vmem:[#allocation5 + $0xd8] sm:$0xff] }
 0x35d   : >> { %v2193_v35 = vpop.f32.mrb[80].mxu1  ;;  %v2797_v52 = vpop.f32.mrb[80].mxu0 }
 0x35e   : >> { %v2412_v58 = vadd.f32 %v2356_v50, %v2193_v35  ;;  %v3064_v55 = vadd.f32 %v3008_v54, %v2797_v52  ;;  %v2195_v56 = vpop.f32.mrb[81].mxu1  ;;  %v2799_v59 = vpop.f32.mrb[81].mxu0 }
 0x35f   : >> { %v2196_v60 = vpop.f32.mrb[82].mxu1  ;;  %v2800_v28 = vpop.f32.mrb[82].mxu0  ;;  %v3016_v59 = vld [vmem:[#allocation5 + $0x60] sm:$0xff] }
 0x360   : >> { %2468 = vst.msk [vmem:[#allocation5 + $0xa0] sm:$0xff] %vm1034_vm0, %v2412_v58  ;;  %3120 = vst.msk [vmem:[#allocation5 + $0x20] sm:$0xff] %vm1034_vm0, %v3064_v55  ;;  %v2413_v27 = vadd.f32 %v2357_v61, %v2196_v60  ;;  %v3065_v3 = vadd.f32 %v3009_v0, %v2800_v28  ;;  %v2802_v62 = vpop.f32.mrb[83].mxu0  ;;  %v2198_v4 = vpop.f32.mrb[83].mxu1  ;;  %v2364_v55 = vld [vmem:[#allocation5 + $0xe0] sm:$0xff] }
 0x361   : >> { %v3017_v62 = vld [vmem:[#allocation5 + $0x68] sm:$0xff] }
 0x362   : >> { %2469 = vst.msk [vmem:[#allocation5 + $0xa8] sm:$0xff] %vm1034_vm0, %v2413_v27  ;;  %3121 = vst.msk [vmem:[#allocation5 + $0x28] sm:$0xff] %vm1034_vm0, %v3065_v3  ;;  %v2365_v27 = vld [vmem:[#allocation5 + $0xe8] sm:$0xff] }
 0x365   : >> { %v2201_v5 = vpop.f32.mrb[84].mxu1  ;;  %v2805_v7 = vpop.f32.mrb[84].mxu0 }
 0x366   : >> { %v2414_v9 = vadd.f32 %v2358_v6, %v2201_v5  ;;  %v3066_v12 = vadd.f32 %v3010_v8, %v2805_v7  ;;  %v2203_v13 = vpop.f32.mrb[85].mxu1  ;;  %v2807_v34 = vpop.f32.mrb[85].mxu0 }
 0x367   : >> { %v2204_v14 = vpop.f32.mrb[86].mxu1  ;;  %v2808_v18 = vpop.f32.mrb[86].mxu0  ;;  %v3018_v13 = vld [vmem:[#allocation5 + $0x70] sm:$0xff] }
 0x368   : >> { %2470 = vst.msk [vmem:[#allocation5 + $0xb0] sm:$0xff] %vm1034_vm0, %v2414_v9  ;;  %3122 = vst.msk [vmem:[#allocation5 + $0x30] sm:$0xff] %vm1034_vm0, %v3066_v12  ;;  %v2415_v20 = vadd.f32 %v2359_v15, %v2204_v14  ;;  %v3067_v21 = vadd.f32 %v3011_v49, %v2808_v18  ;;  %v2810_v22 = vpop.f32.mrb[87].mxu0  ;;  %v2206_v23 = vpop.f32.mrb[87].mxu1  ;;  %v2366_v9 = vld [vmem:[#allocation5 + $0xf0] sm:$0xff] }
 0x369   : >> { %v3019_v22 = vld [vmem:[#allocation5 + $0x78] sm:$0xff] }
 0x36a   : >> { %2471 = vst.msk [vmem:[#allocation5 + $0xb8] sm:$0xff] %vm1034_vm0, %v2415_v20  ;;  %3123 = vst.msk [vmem:[#allocation5 + $0x38] sm:$0xff] %vm1034_vm0, %v3067_v21  ;;  %v2367_v20 = vld [vmem:[#allocation5 + $0xf8] sm:$0xff] }
 0x36d   : >> { %v2209_v24 = vpop.f32.mrb[88].mxu1  ;;  %v2813_v25 = vpop.f32.mrb[88].mxu0 }
 0x36e   : >> { %v2416_v29 = vadd.f32 %v2360_v57, %v2209_v24  ;;  %v3068_v30 = vadd.f32 %v3012_v26, %v2813_v25  ;;  %v2211_v31 = vpop.f32.mrb[89].mxu1  ;;  %v2815_v36 = vpop.f32.mrb[89].mxu0 }
 0x36f   : >> { %v2212_v38 = vpop.f32.mrb[90].mxu1  ;;  %v2816_v39 = vpop.f32.mrb[90].mxu0  ;;  %v3020_v31 = vld [vmem:[#allocation5 + $0x80] sm:$0xff] }
 0x370   : >> { %2472 = vst.msk [vmem:[#allocation5 + $0xc0] sm:$0xff] %vm1034_vm0, %v2416_v29  ;;  %3124 = vst.msk [vmem:[#allocation5 + $0x40] sm:$0xff] %vm1034_vm0, %v3068_v30  ;;  %v2417_v40 = vadd.f32 %v2361_v11, %v2212_v38  ;;  %v3069_v42 = vadd.f32 %v3013_v10, %v2816_v39  ;;  %v2818_v43 = vpop.f32.mrb[91].mxu0  ;;  %v2214_v17 = vpop.f32.mrb[91].mxu1  ;;  %v2368_v29 = vld [vmem:[#allocation5 + $0x100] sm:$0xff] }
 0x371   : >> { %v3021_v43 = vld [vmem:[#allocation5 + $0x88] sm:$0xff] }
 0x372   : >> { %2473 = vst.msk [vmem:[#allocation5 + $0xc8] sm:$0xff] %vm1034_vm0, %v2417_v40  ;;  %3125 = vst.msk [vmem:[#allocation5 + $0x48] sm:$0xff] %vm1034_vm0, %v3069_v42  ;;  %v2369_v40 = vld [vmem:[#allocation5 + $0x108] sm:$0xff] }
 0x375   : >> { %v2217_v19 = vpop.f32.mrb[92].mxu1  ;;  %v2821_v16 = vpop.f32.mrb[92].mxu0 }
 0x376   : >> { %v2418_v47 = vadd.f32 %v2362_v45, %v2217_v19  ;;  %v3070_v33 = vadd.f32 %v3014_v46, %v2821_v16  ;;  %v2219_v37 = vpop.f32.mrb[93].mxu1  ;;  %v2823_v48 = vpop.f32.mrb[93].mxu0  ;;  %v3173_v46 = vld [vmem:[#allocation5 + $0x8] sm:$0xff] }
 0x377   : >> { %v2220_v44 = vpop.f32.mrb[94].mxu1  ;;  %v2824_v53 = vpop.f32.mrb[94].mxu0  ;;  %v2370_v48 = vld [vmem:[#allocation5 + $0x110] sm:$0xff] }
 0x378   : >> { %2474 = vst.msk [vmem:[#allocation5 + $0xd0] sm:$0xff] %vm1034_vm0, %v2418_v47  ;;  %3126 = vst.msk [vmem:[#allocation5 + $0x50] sm:$0xff] %vm1034_vm0, %v3070_v33  ;;  %v2419_v35 = vadd.f32 %v2363_v51, %v2220_v44  ;;  %v3071_v50 = vadd.f32 %v3015_v41, %v2824_v53  ;;  %v2826_v52 = vpop.f32.mrb[95].mxu0  ;;  %v2222_v54 = vpop.f32.mrb[95].mxu1  ;;  %v12193_v47 = vld [vmem:[%s14532_s30] ss:$0 sm:$0xff] }
 0x379   : >> { %v3172_v33 = vld [vmem:[#allocation5] sm:$0xff]  ;;  %v3022_v51 = vld [vmem:[#allocation5 + $0x90] sm:$0xff]  ;;  %v3236_v53 = vmul.f32 %v12193_v47, %v3173_v46 }
 0x37a   : >> { %2475 = vst.msk [vmem:[#allocation5 + $0xd8] sm:$0xff] %vm1034_vm0, %v2419_v35  ;;  %3127 = vst.msk [vmem:[#allocation5 + $0x58] sm:$0xff] %vm1034_vm0, %v3071_v50 }
 0x37d   : >> { %v2225_v58 = vpop.f32.mrb[96].mxu1  ;;  %v2829_v56 = vpop.f32.mrb[96].mxu0 }
 0x37e   : >> { %v2420_v60 = vadd.f32 %v2364_v55, %v2225_v58  ;;  %v3072_v61 = vadd.f32 %v3016_v59, %v2829_v56  ;;  %v2227_v28 = vpop.f32.mrb[97].mxu1  ;;  %v2831_v0 = vpop.f32.mrb[97].mxu0  ;;  %v2371_v58 = vld [vmem:[#allocation5 + $0x118] sm:$0xff] }
 0x37f   : >> { %v2228_v2 = vpop.f32.mrb[98].mxu1  ;;  %v2832_v3 = vpop.f32.mrb[98].mxu0  ;;  %v3023_v56 = vld [vmem:[#allocation5 + $0x98] sm:$0xff] }
 0x380   : >> { %2476 = vst.msk [vmem:[#allocation5 + $0xe0] sm:$0xff] %vm1034_vm0, %v2420_v60  ;;  %3128 = vst.msk [vmem:[#allocation5 + $0x60] sm:$0xff] %vm1034_vm0, %v3072_v61  ;;  %v2421_v4 = vadd.f32 %v2365_v27, %v2228_v2  ;;  %v3073_v5 = vadd.f32 %v3017_v62, %v2832_v3  ;;  %v2834_v6 = vpop.f32.mrb[99].mxu0  ;;  %v2230_v7 = vpop.f32.mrb[99].mxu1  ;;  %v3235_v60 = vmul.f32 %v12193_v47, %v3172_v33  ;;  %v12203_v3 = vld [vmem:[%s14502_s6] ss:$0 sm:$0xff] }
 0x381   : >> { %v3175_v7 = vld [vmem:[#allocation5 + $0x18] sm:$0xff]  ;;  %v3177_v33 = vld [vmem:[#allocation5 + $0x28] sm:$0xff] }
 0x382   : >> { %2477 = vst.msk [vmem:[#allocation5 + $0xe8] sm:$0xff] %vm1034_vm0, %v2421_v4  ;;  %3129 = vst.msk [vmem:[#allocation5 + $0x68] sm:$0xff] %vm1034_vm0, %v3073_v5  ;;  %v3299_v4 = vadd.f32 %v12203_v3, %v3236_v53  ;;  %v2374_v53 = vld [vmem:[#allocation5 + $0x130] sm:$0xff] }
 0x385   : >> { %v2233_v8 = vpop.f32.mrb[100].mxu1  ;;  %v2837_v12 = vpop.f32.mrb[100].mxu0 }
 0x386   : >> { %v2422_v34 = vadd.f32 %v2366_v9, %v2233_v8  ;;  %v3074_v14 = vadd.f32 %v3018_v13, %v2837_v12  ;;  %v2235_v15 = vpop.f32.mrb[101].mxu1  ;;  %v2839_v18 = vpop.f32.mrb[101].mxu0  ;;  %v3298_v8 = vadd.f32 %v12203_v3, %v3235_v60  ;;  %v3174_v12 = vld [vmem:[#allocation5 + $0x10] sm:$0xff] }
 0x387   : >> { %v2236_v49 = vpop.f32.mrb[102].mxu1  ;;  %v2840_v21 = vpop.f32.mrb[102].mxu0  ;;  %v3024_v15 = vld [vmem:[#allocation5 + $0xa0] sm:$0xff]  ;;  %v3355_v18 = vmax.f32 %v3299_v4, 0.0 }
 0x388   : >> { %2478 = vst.msk [vmem:[#allocation5 + $0xf0] sm:$0xff] %vm1034_vm0, %v2422_v34  ;;  %3130 = vst.msk [vmem:[#allocation5 + $0x70] sm:$0xff] %vm1034_vm0, %v3074_v14  ;;  %v2423_v23 = vadd.f32 %v2367_v20, %v2236_v49  ;;  %v3075_v24 = vadd.f32 %v3019_v22, %v2840_v21  ;;  %v2842_v57 = vpop.f32.mrb[103].mxu0  ;;  %v2238_v25 = vpop.f32.mrb[103].mxu1  ;;  %v2372_v34 = vld [vmem:[#allocation5 + $0x120] sm:$0xff]  ;;  %v3238_v49 = vmul.f32 %v12193_v47, %v3175_v7 }
 0x38a   : >> { %2479 = vst.msk [vmem:[#allocation5 + $0xf8] sm:$0xff] %vm1034_vm0, %v2423_v23  ;;  %3131 = vst.msk [vmem:[#allocation5 + $0x78] sm:$0xff] %vm1034_vm0, %v3075_v24 }
 0x38d   : >> { %v2241_v26 = vpop.f32.mrb[104].mxu1  ;;  %v2845_v30 = vpop.f32.mrb[104].mxu0 }
 0x38e   : >> { %v2424_v36 = vadd.f32 %v2368_v29, %v2241_v26  ;;  %v3076_v38 = vadd.f32 %v3020_v31, %v2845_v30  ;;  %v2243_v11 = vpop.f32.mrb[105].mxu1  ;;  %v2847_v39 = vpop.f32.mrb[105].mxu0  ;;  %v2373_v26 = vld [vmem:[#allocation5 + $0x128] sm:$0xff]  ;;  %v3354_v31 = vmax.f32 %v3298_v8, 0.0 }
 0x38f   : >> { %v2244_v10 = vpop.f32.mrb[106].mxu1  ;;  %v2848_v42 = vpop.f32.mrb[106].mxu0  ;;  %v3025_v30 = vld [vmem:[#allocation5 + $0xa8] sm:$0xff] }
 0x390   : >> { %2480 = vst.msk [vmem:[#allocation5 + $0x100] sm:$0xff] %vm1034_vm0, %v2424_v36  ;;  %3132 = vst.msk [vmem:[#allocation5 + $0x80] sm:$0xff] %vm1034_vm0, %v3076_v38  ;;  %v2425_v17 = vadd.f32 %v2369_v40, %v2244_v10  ;;  %v3077_v19 = vadd.f32 %v3021_v43, %v2848_v42  ;;  %v2850_v45 = vpop.f32.mrb[107].mxu0  ;;  %v2246_v16 = vpop.f32.mrb[107].mxu1  ;;  %v3237_v38 = vmul.f32 %v12193_v47, %v3174_v12 }
 0x391   : >> { %v3301_v45 = vadd.f32 %v12203_v3, %v3238_v49  ;;  %v3179_v49 = vld [vmem:[#allocation5 + $0x38] sm:$0xff] }
 0x392   : >> { %2481 = vst.msk [vmem:[#allocation5 + $0x108] sm:$0xff] %vm1034_vm0, %v2425_v17  ;;  %3133 = vst.msk [vmem:[#allocation5 + $0x88] sm:$0xff] %vm1034_vm0, %v3077_v19  ;;  %v3410_v17 = vpack.c.bf16 %v3355_v18, %v3354_v31 }
 0x395   : >> { %v2249_v37 = vpop.f32.mrb[108].mxu1  ;;  %v2853_v44 = vpop.f32.mrb[108].mxu0 }
 0x396   : >> { %v2426_v41 = vadd.f32 %v2370_v48, %v2249_v37  ;;  %v3078_v35 = vadd.f32 %v3022_v51, %v2853_v44  ;;  %v2251_v50 = vpop.f32.mrb[109].mxu1  ;;  %v2855_v52 = vpop.f32.mrb[109].mxu0  ;;  %v3300_v37 = vadd.f32 %v12203_v3, %v3237_v38  ;;  %v3176_v44 = vld [vmem:[#allocation5 + $0x20] sm:$0xff] }
 0x397   : >> { %v2252_v54 = vpop.f32.mrb[110].mxu1  ;;  %v2856_v55 = vpop.f32.mrb[110].mxu0  ;;  %v3188_v59 = vld [vmem:[#allocation5 + $0x80] sm:$0xff]  ;;  %v3357_v50 = vmax.f32 %v3301_v45, 0.0  ;;  %v3240_v52 = vmul.f32 %v12193_v47, %v3177_v33  ;;  %v3239_v4 = vmul.f32 %v12193_v47, %v3176_v44 }
 0x398   : >> { %2482 = vst.msk [vmem:[#allocation5 + $0x110] sm:$0xff] %vm1034_vm0, %v2426_v41  ;;  %3134 = vst.msk [vmem:[#allocation5 + $0x90] sm:$0xff] %vm1034_vm0, %v3078_v35  ;;  %v2427_v61 = vadd.f32 %v2371_v58, %v2252_v54  ;;  %v3079_v28 = vadd.f32 %v3023_v56, %v2856_v55  ;;  %v2254_v0 = vpop.f32.mrb[111].mxu1  ;;  %v2858_v2 = vpop.f32.mrb[111].mxu0  ;;  %v3251_v27 = vmul.f32 %v12193_v47, %v3188_v59  ;;  %v3026_v35 = vld [vmem:[#allocation5 + $0xb0] sm:$0xff] }
 0x399   : >> { %v3189_v62 = vld [vmem:[#allocation5 + $0x88] sm:$0xff]  ;;  %v3027_v2 = vld [vmem:[#allocation5 + $0xb8] sm:$0xff] }
 0x39a   : >> { %2483 = vst.msk [vmem:[#allocation5 + $0x118] sm:$0xff] %vm1034_vm0, %v2427_v61  ;;  %3135 = vst.msk [vmem:[#allocation5 + $0x98] sm:$0xff] %vm1034_vm0, %v3079_v28  ;;  %v3252_v5 = vmul.f32 %v12193_v47, %v3189_v62  ;;  %v3314_v6 = vadd.f32 %v12203_v3, %v3251_v27  ;;  %v2375_v28 = vld [vmem:[#allocation5 + $0x138] sm:$0xff]  ;;  %v3356_v27 = vmax.f32 %v3300_v37, 0.0 }
 0x39c   : >> { %v3315_v9 = vadd.f32 %v12203_v3, %v3252_v5  ;;  %v3370_v24 = vmax.f32 %v3314_v6, 0.0 }
 0x39d   : >> { %v2257_v13 = vpop.f32.mrb[112].mxu1  ;;  %v2861_v14 = vpop.f32.mrb[112].mxu0 }
 0x39e   : >> { %v2428_v20 = vadd.f32 %v2372_v34, %v2257_v13  ;;  %v3080_v21 = vadd.f32 %v3024_v15, %v2861_v14  ;;  %v2259_v22 = vpop.f32.mrb[113].mxu1  ;;  %v2863_v23 = vpop.f32.mrb[113].mxu0  ;;  %v3371_v57 = vmax.f32 %v3315_v9, 0.0  ;;  %v3411_v13 = vpack.c.bf16 %v3357_v50, %v3356_v27 }
 0x39f   : >> { %v2260_v25 = vpop.f32.mrb[114].mxu1  ;;  %v2864_v29 = vpop.f32.mrb[114].mxu0  ;;  %v3190_v36 = vld [vmem:[#allocation5 + $0x90] sm:$0xff]  ;;  %v3303_v14 = vadd.f32 %v12203_v3, %v3240_v52  ;;  %v3181_v52 = vld [vmem:[#allocation5 + $0x48] sm:$0xff] }
 0x3a0   : >> { %2484 = vst.msk [vmem:[#allocation5 + $0x120] sm:$0xff] %vm1034_vm0, %v2428_v20  ;;  %3136 = vst.msk [vmem:[#allocation5 + $0xa0] sm:$0xff] %vm1034_vm0, %v3080_v21  ;;  %v2429_v11 = vadd.f32 %v2373_v26, %v2260_v25  ;;  %v3081_v39 = vadd.f32 %v3025_v30, %v2864_v29  ;;  %v3418_v10 = vpack.c.bf16 %v3371_v57, %v3370_v24  ;;  %v2262_v40 = vpop.f32.mrb[115].mxu1  ;;  %v2866_v42 = vpop.f32.mrb[115].mxu0  ;;  %v3178_v22 = vld [vmem:[#allocation5 + $0x30] sm:$0xff]  ;;  %v2376_v24 = vld [vmem:[#allocation5 + $0x140] sm:$0xff] }
 0x3a1   : >> { %v3253_v43 = vmul.f32 %v12193_v47, %v3190_v36  ;;  %v3191_v19 = vld [vmem:[#allocation5 + $0x98] sm:$0xff]  ;;  %v3302_v20 = vadd.f32 %v12203_v3, %v3239_v4  ;;  %v3028_v25 = vld [vmem:[#allocation5 + $0xc0] sm:$0xff]  ;;  %v3359_v26 = vmax.f32 %v3303_v14, 0.0  ;;  %v3242_v29 = vmul.f32 %v12193_v47, %v3179_v49  ;;  %v2377_v40 = vld [vmem:[#allocation5 + $0x148] sm:$0xff] }
 0x3a2   : >> { %2485 = vst.msk [vmem:[#allocation5 + $0x128] sm:$0xff] %vm1034_vm0, %v2429_v11  ;;  %3137 = vst.msk [vmem:[#allocation5 + $0xa8] sm:$0xff] %vm1034_vm0, %v3081_v39  ;;  %10040 = vmatprep.subr.bf16.mxu1 %v3418_v10  ;;  %v3254_v16 = vmul.f32 %v12193_v47, %v3191_v19  ;;  %v3241_v45 = vmul.f32 %v12193_v47, %v3178_v22 }
 0x3a3   : >> { %v3316_v46 = vadd.f32 %v12203_v3, %v3253_v43  ;;  %10041 = vmatpush3.bf16.msra.mxu1 %v3410_v17  ;;  %v3029_v43 = vld [vmem:[#allocation5 + $0xc8] sm:$0xff]  ;;  %v3358_v17 = vmax.f32 %v3302_v20, 0.0 }
 0x3a4   : >> { %v3317_v48 = vadd.f32 %v12203_v3, %v3254_v16 }
 0x3a5   : >> { %v2265_v51 = vpop.f32.mrb[116].mxu1  ;;  %v2869_v41 = vpop.f32.mrb[116].mxu0  ;;  %v3372_v59 = vmax.f32 %v3316_v46, 0.0 }
 0x3a6   : >> { %v2430_v54 = vadd.f32 %v2374_v53, %v2265_v51  ;;  %v3082_v58 = vadd.f32 %v3026_v35, %v2869_v41  ;;  %v2267_v55 = vpop.f32.mrb[117].mxu1  ;;  %v2871_v56 = vpop.f32.mrb[117].mxu0  ;;  %v3373_v60 = vmax.f32 %v3317_v48, 0.0  ;;  %v3412_v51 = vpack.c.bf16 %v3359_v26, %v3358_v17 }
 0x3a7   : >> { %v2268_v61 = vpop.f32.mrb[118].mxu1  ;;  %v2872_v0 = vpop.f32.mrb[118].mxu0  ;;  %v3192_v62 = vld [vmem:[#allocation5 + $0xa0] sm:$0xff]  ;;  %v3305_v41 = vadd.f32 %v12203_v3, %v3242_v29  ;;  %v3183_v29 = vld [vmem:[#allocation5 + $0x58] sm:$0xff] }
 0x3a8   : >> { %2486 = vst.msk [vmem:[#allocation5 + $0x130] sm:$0xff] %vm1034_vm0, %v2430_v54  ;;  %3138 = vst.msk [vmem:[#allocation5 + $0xb0] sm:$0xff] %vm1034_vm0, %v3082_v58  ;;  %v2431_v5 = vadd.f32 %v2375_v28, %v2268_v61  ;;  %v3083_v6 = vadd.f32 %v3027_v2, %v2872_v0  ;;  %v3419_v7 = vpack.c.bf16 %v3373_v60, %v3372_v59  ;;  %v2270_v8 = vpop.f32.mrb[119].mxu1  ;;  %v2874_v9 = vpop.f32.mrb[119].mxu0  ;;  %v3180_v55 = vld [vmem:[#allocation5 + $0x40] sm:$0xff]  ;;  %v2378_v59 = vld [vmem:[#allocation5 + $0x150] sm:$0xff] }
 0x3a9   : >> { %v3255_v12 = vmul.f32 %v12193_v47, %v3192_v62  ;;  %v3193_v34 = vld [vmem:[#allocation5 + $0xa8] sm:$0xff]  ;;  %v3304_v54 = vadd.f32 %v12203_v3, %v3241_v45  ;;  %v3030_v61 = vld [vmem:[#allocation5 + $0xd0] sm:$0xff]  ;;  %v3361_v28 = vmax.f32 %v3305_v41, 0.0  ;;  %v3244_v0 = vmul.f32 %v12193_v47, %v3181_v52  ;;  %v2379_v8 = vld [vmem:[#allocation5 + $0x158] sm:$0xff] }
 0x3aa   : >> { %2487 = vst.msk [vmem:[#allocation5 + $0x138] sm:$0xff] %vm1034_vm0, %v2431_v5  ;;  %3139 = vst.msk [vmem:[#allocation5 + $0xb8] sm:$0xff] %vm1034_vm0, %v3083_v6  ;;  %10042 = vmatprep.subr.bf16.mxu1 %v3419_v7  ;;  %v3256_v15 = vmul.f32 %v12193_v47, %v3193_v34  ;;  %v3243_v14 = vmul.f32 %v12193_v47, %v3180_v55 }
 0x3ab   : >> { %v3318_v18 = vadd.f32 %v12203_v3, %v3255_v12  ;;  %10043 = vmatpush3.bf16.msra.mxu1 %v3411_v13  ;;  %v3031_v12 = vld [vmem:[#allocation5 + $0xd8] sm:$0xff]  ;;  %v3360_v13 = vmax.f32 %v3304_v54, 0.0 }
 0x3ac   : >> { %v3319_v21 = vadd.f32 %v12203_v3, %v3256_v15 }
 0x3ad   : >> { %v2273_v23 = vpop.f32.mrb[120].mxu1  ;;  %v2877_v57 = vpop.f32.mrb[120].mxu0  ;;  %v3374_v11 = vmax.f32 %v3318_v18, 0.0 }
 0x3ae   : >> { %v2432_v30 = vadd.f32 %v2376_v24, %v2273_v23  ;;  %v3084_v31 = vadd.f32 %v3028_v25, %v2877_v57  ;;  %v2275_v36 = vpop.f32.mrb[121].mxu1  ;;  %v2879_v38 = vpop.f32.mrb[121].mxu0  ;;  %v3375_v39 = vmax.f32 %v3319_v21, 0.0  ;;  %v3413_v23 = vpack.c.bf16 %v3361_v28, %v3360_v13 }
 0x3af   : >> { %v2276_v10 = vpop.f32.mrb[122].mxu1  ;;  %v2880_v42 = vpop.f32.mrb[122].mxu0  ;;  %v3194_v19 = vld [vmem:[#allocation5 + $0xb0] sm:$0xff]  ;;  %v3307_v57 = vadd.f32 %v12203_v3, %v3244_v0  ;;  %v3185_v0 = vld [vmem:[#allocation5 + $0x68] sm:$0xff] }
 0x3b0   : >> { %2488 = vst.msk [vmem:[#allocation5 + $0x140] sm:$0xff] %vm1034_vm0, %v2432_v30  ;;  %3140 = vst.msk [vmem:[#allocation5 + $0xc0] sm:$0xff] %vm1034_vm0, %v3084_v31  ;;  %v2433_v16 = vadd.f32 %v2377_v40, %v2276_v10  ;;  %v3085_v46 = vadd.f32 %v3029_v43, %v2880_v42  ;;  %v3420_v33 = vpack.c.bf16 %v3375_v39, %v3374_v11  ;;  %v2278_v37 = vpop.f32.mrb[123].mxu1  ;;  %v2882_v48 = vpop.f32.mrb[123].mxu0  ;;  %v3182_v36 = vld [vmem:[#allocation5 + $0x50] sm:$0xff]  ;;  %v2380_v11 = vld [vmem:[#allocation5 + $0x160] sm:$0xff] }
 0x3b1   : >> { %v3257_v44 = vmul.f32 %v12193_v47, %v3194_v19  ;;  %v3195_v53 = vld [vmem:[#allocation5 + $0xb8] sm:$0xff]  ;;  %v3306_v30 = vadd.f32 %v12203_v3, %v3243_v14  ;;  %v3032_v10 = vld [vmem:[#allocation5 + $0xe0] sm:$0xff]  ;;  %v3363_v40 = vmax.f32 %v3307_v57, 0.0  ;;  %v3246_v42 = vmul.f32 %v12193_v47, %v3183_v29  ;;  %v2381_v37 = vld [vmem:[#allocation5 + $0x168] sm:$0xff] }
 0x3b2   : >> { %2489 = vst.msk [vmem:[#allocation5 + $0x148] sm:$0xff] %vm1034_vm0, %v2433_v16  ;;  %3141 = vst.msk [vmem:[#allocation5 + $0xc8] sm:$0xff] %vm1034_vm0, %v3085_v46  ;;  %10044 = vmatprep.subr.bf16.mxu1 %v3420_v33  ;;  %v3258_v35 = vmul.f32 %v12193_v47, %v3195_v53  ;;  %v3245_v41 = vmul.f32 %v12193_v47, %v3182_v36 }
 0x3b3   : >> { %v3320_v50 = vadd.f32 %v12203_v3, %v3257_v44  ;;  %10045 = vmatpush3.bf16.msra.mxu1 %v3412_v51  ;;  %v3033_v44 = vld [vmem:[#allocation5 + $0xe8] sm:$0xff]  ;;  %v3362_v51 = vmax.f32 %v3306_v30, 0.0 }
 0x3b4   : >> { %v3321_v58 = vadd.f32 %v12203_v3, %v3258_v35 }
 0x3b5   : >> { %v2281_v56 = vpop.f32.mrb[124].mxu1  ;;  %v2885_v60 = vpop.f32.mrb[124].mxu0  ;;  %v3376_v5 = vmax.f32 %v3320_v50, 0.0 }
 0x3b6   : >> { %v2434_v2 = vadd.f32 %v2378_v59, %v2281_v56  ;;  %v3086_v27 = vadd.f32 %v3030_v61, %v2885_v60  ;;  %v2283_v62 = vpop.f32.mrb[125].mxu1  ;;  %v2887_v4 = vpop.f32.mrb[125].mxu0  ;;  %v3377_v6 = vmax.f32 %v3321_v58, 0.0  ;;  %v3414_v56 = vpack.c.bf16 %v3363_v40, %v3362_v51 }
 0x3b7   : >> { %v2284_v7 = vpop.f32.mrb[126].mxu1  ;;  %v2888_v9 = vpop.f32.mrb[126].mxu0  ;;  %v3196_v34 = vld [vmem:[#allocation5 + $0xc0] sm:$0xff]  ;;  %v3309_v60 = vadd.f32 %v12203_v3, %v3246_v42  ;;  %v3187_v42 = vld [vmem:[#allocation5 + $0x78] sm:$0xff] }
 0x3b8   : >> { %2490 = vst.msk [vmem:[#allocation5 + $0x150] sm:$0xff] %vm1034_vm0, %v2434_v2  ;;  %3142 = vst.msk [vmem:[#allocation5 + $0xd0] sm:$0xff] %vm1034_vm0, %v3086_v27  ;;  %v2435_v15 = vadd.f32 %v2379_v8, %v2284_v7  ;;  %v3087_v18 = vadd.f32 %v3031_v12, %v2888_v9  ;;  %v3421_v49 = vpack.c.bf16 %v3377_v6, %v3376_v5  ;;  %v2286_v20 = vpop.f32.mrb[127].mxu1  ;;  %v2890_v21 = vpop.f32.mrb[127].mxu0  ;;  %v3184_v62 = vld [vmem:[#allocation5 + $0x60] sm:$0xff]  ;;  %v2382_v5 = vld [vmem:[#allocation5 + $0x170] sm:$0xff] }
 0x3b9   : >> { %v3259_v22 = vmul.f32 %v12193_v47, %v3196_v34  ;;  %v3197_v24 = vld [vmem:[#allocation5 + $0xc8] sm:$0xff]  ;;  %v3308_v2 = vadd.f32 %v12203_v3, %v3245_v41  ;;  %v3034_v7 = vld [vmem:[#allocation5 + $0xf0] sm:$0xff]  ;;  %v3365_v8 = vmax.f32 %v3309_v60, 0.0  ;;  %v3248_v9 = vmul.f32 %v12193_v47, %v3185_v0  ;;  %v2383_v20 = vld [vmem:[#allocation5 + $0x178] sm:$0xff] }
 0x3ba   : >> { %2491 = vst.msk [vmem:[#allocation5 + $0x158] sm:$0xff] %vm1034_vm0, %v2435_v15  ;;  %3143 = vst.msk [vmem:[#allocation5 + $0xd8] sm:$0xff] %vm1034_vm0, %v3087_v18  ;;  %10046 = vmatprep.subr.bf16.mxu1 %v3421_v49  ;;  %v3260_v25 = vmul.f32 %v12193_v47, %v3197_v24  ;;  %v3247_v57 = vmul.f32 %v12193_v47, %v3184_v62 }
 0x3bb   : >> { %v3322_v26 = vadd.f32 %v12203_v3, %v3259_v22  ;;  %10047 = vmatpush3.bf16.msra.mxu1 %v3413_v23  ;;  %v3035_v22 = vld [vmem:[#allocation5 + $0xf8] sm:$0xff]  ;;  %v3364_v23 = vmax.f32 %v3308_v2, 0.0 }
 0x3bc   : >> { %v3323_v31 = vadd.f32 %v12203_v3, %v3260_v25 }
 0x3bd   : >> { %v2289_v38 = vpop.f32.mrb[128].mxu1  ;;  %v2893_v39 = vpop.f32.mrb[128].mxu0  ;;  %v3378_v16 = vmax.f32 %v3322_v26, 0.0 }
 0x3be   : >> { %v2436_v43 = vadd.f32 %v2380_v11, %v2289_v38  ;;  %v3088_v17 = vadd.f32 %v3032_v10, %v2893_v39  ;;  %v2291_v19 = vpop.f32.mrb[129].mxu1  ;;  %v2895_v45 = vpop.f32.mrb[129].mxu0  ;;  %v3379_v46 = vmax.f32 %v3323_v31, 0.0  ;;  %v3415_v38 = vpack.c.bf16 %v3365_v8, %v3364_v23 }
 0x3bf   : >> { %v2292_v33 = vpop.f32.mrb[130].mxu1  ;;  %v2896_v48 = vpop.f32.mrb[130].mxu0  ;;  %v3198_v53 = vld [vmem:[#allocation5 + $0xd0] sm:$0xff]  ;;  %v3311_v39 = vadd.f32 %v12203_v3, %v3248_v9 }
 0x3c0   : >> { %2492 = vst.msk [vmem:[#allocation5 + $0x160] sm:$0xff] %vm1034_vm0, %v2436_v43  ;;  %3144 = vst.msk [vmem:[#allocation5 + $0xe0] sm:$0xff] %vm1034_vm0, %v3088_v17  ;;  %v2437_v35 = vadd.f32 %v2381_v37, %v2292_v33  ;;  %v3089_v50 = vadd.f32 %v3033_v44, %v2896_v48  ;;  %v3422_v52 = vpack.c.bf16 %v3379_v46, %v3378_v16  ;;  %v2294_v54 = vpop.f32.mrb[131].mxu1  ;;  %v2898_v58 = vpop.f32.mrb[131].mxu0  ;;  %v3186_v19 = vld [vmem:[#allocation5 + $0x70] sm:$0xff]  ;;  %v2384_v16 = vld [vmem:[#allocation5 + $0x180] sm:$0xff] }
 0x3c1   : >> { %v3261_v55 = vmul.f32 %v12193_v47, %v3198_v53  ;;  %v3199_v59 = vld [vmem:[#allocation5 + $0xd8] sm:$0xff]  ;;  %v3310_v43 = vadd.f32 %v12203_v3, %v3247_v57  ;;  %v3036_v33 = vld [vmem:[#allocation5 + $0x100] sm:$0xff]  ;;  %v3367_v37 = vmax.f32 %v3311_v39, 0.0  ;;  %v3250_v48 = vmul.f32 %v12193_v47, %v3187_v42  ;;  %v2385_v54 = vld [vmem:[#allocation5 + $0x188] sm:$0xff] }
 0x3c2   : >> { %2493 = vst.msk [vmem:[#allocation5 + $0x168] sm:$0xff] %vm1034_vm0, %v2437_v35  ;;  %3145 = vst.msk [vmem:[#allocation5 + $0xe8] sm:$0xff] %vm1034_vm0, %v3089_v50  ;;  %10048 = vmatprep.subr.bf16.mxu1 %v3422_v52  ;;  %v3262_v61 = vmul.f32 %v12193_v47, %v3199_v59  ;;  %v3249_v60 = vmul.f32 %v12193_v47, %v3186_v19 }
 0x3c3   : >> { %v3324_v28 = vadd.f32 %v12203_v3, %v3261_v55  ;;  %10049 = vmatpush3.bf16.msra.mxu1 %v3414_v56  ;;  %v3037_v55 = vld [vmem:[#allocation5 + $0x108] sm:$0xff]  ;;  %v3366_v56 = vmax.f32 %v3310_v43, 0.0 }
 0x3c4   : >> { %v3325_v27 = vadd.f32 %v12203_v3, %v3262_v61  ;;  %v3312_v9 = vadd.f32 %v12203_v3, %v3249_v60 }
 0x3c5   : >> { %v2297_v4 = vpop.f32.mrb[132].mxu1  ;;  %v2901_v6 = vpop.f32.mrb[132].mxu0  ;;  %v3380_v15 = vmax.f32 %v3324_v28, 0.0 }
 0x3c6   : >> { %v2438_v12 = vadd.f32 %v2382_v5, %v2297_v4  ;;  %v3090_v13 = vadd.f32 %v3034_v7, %v2901_v6  ;;  %v2299_v34 = vpop.f32.mrb[133].mxu1  ;;  %v2903_v14 = vpop.f32.mrb[133].mxu0  ;;  %v3381_v18 = vmax.f32 %v3325_v27, 0.0  ;;  %v3416_v4 = vpack.c.bf16 %v3367_v37, %v3366_v56  ;;  %v2388_v37 = vld [vmem:[#allocation5 + $0x1a0] sm:$0xff]  ;;  %v3041_v56 = vld [vmem:[#allocation5 + $0x128] sm:$0xff] }
 0x3c7   : >> { %v2300_v49 = vpop.f32.mrb[134].mxu1  ;;  %v2904_v21 = vpop.f32.mrb[134].mxu0  ;;  %v3200_v24 = vld [vmem:[#allocation5 + $0xe0] sm:$0xff]  ;;  %v3313_v6 = vadd.f32 %v12203_v3, %v3250_v48  ;;  %v2386_v34 = vld [vmem:[#allocation5 + $0x190] sm:$0xff] }
 0x3c8   : >> { %2494 = vst.msk [vmem:[#allocation5 + $0x170] sm:$0xff] %vm1034_vm0, %v2438_v12  ;;  %3146 = vst.msk [vmem:[#allocation5 + $0xf0] sm:$0xff] %vm1034_vm0, %v3090_v13  ;;  %v2439_v25 = vadd.f32 %v2383_v20, %v2300_v49  ;;  %v3091_v26 = vadd.f32 %v3035_v22, %v2904_v21  ;;  %v3423_v29 = vpack.c.bf16 %v3381_v18, %v3380_v15  ;;  %v2302_v30 = vpop.f32.mrb[135].mxu1  ;;  %v2906_v31 = vpop.f32.mrb[135].mxu0  ;;  %v3038_v15 = vld [vmem:[#allocation5 + $0x110] sm:$0xff] }
 0x3c9   : >> { %v3263_v36 = vmul.f32 %v12193_v47, %v3200_v24  ;;  %v3201_v11 = vld [vmem:[#allocation5 + $0xe8] sm:$0xff]  ;;  %v3369_v18 = vmax.f32 %v3313_v6, 0.0  ;;  %v3368_v30 = vmax.f32 %v3312_v9, 0.0  ;;  %v10809_v6 = vld [vmem:[%s14503_s7 + $0x20] ss:$16 sps:$4 sm:$0x1f]  }
 0x3ca   : >> { %2495 = vst.msk [vmem:[#allocation5 + $0x178] sm:$0xff] %vm1034_vm0, %v2439_v25  ;;  %3147 = vst.msk [vmem:[#allocation5 + $0xf8] sm:$0xff] %vm1034_vm0, %v3091_v26  ;;  %10050 = vmatprep.subr.bf16.mxu1 %v3423_v29  ;;  %v3264_v10 = vmul.f32 %v12193_v47, %v3201_v11  ;;  %v2387_v25 = vld [vmem:[#allocation5 + $0x198] sm:$0xff] }
 0x3cb   : >> { %v3326_v40 = vadd.f32 %v12203_v3, %v3263_v36  ;;  %10051 = vmatpush3.bf16.msra.mxu1 %v3415_v38  ;;  %v3039_v29 = vld [vmem:[#allocation5 + $0x118] sm:$0xff]  ;;  %v3417_v42 = vpack.c.bf16 %v3369_v18, %v3368_v30 }
 0x3cc   : >> { %v3327_v17 = vadd.f32 %v12203_v3, %v3264_v10 }
 0x3cd   : >> { %v2305_v45 = vpop.f32.mrb[136].mxu1  ;;  %v2909_v46 = vpop.f32.mrb[136].mxu0  ;;  %v3382_v35 = vmax.f32 %v3326_v40, 0.0 }
 0x3ce   : >> { %v2440_v44 = vadd.f32 %v2384_v16, %v2305_v45  ;;  %v3092_v51 = vadd.f32 %v3036_v33, %v2909_v46  ;;  %v2307_v53 = vpop.f32.mrb[137].mxu1  ;;  %v2911_v41 = vpop.f32.mrb[137].mxu0  ;;  %v3383_v50 = vmax.f32 %v3327_v17, 0.0  ;;  %v10804_v17 = vld [vmem:[%s14503_s7] ss:$16 sps:$4 sm:$0xff]  }
 0x3cf   : >> { %v2308_v52 = vpop.f32.mrb[138].mxu1  ;;  %v2912_v58 = vpop.f32.mrb[138].mxu0  ;;  %v3202_v59 = vld [vmem:[#allocation5 + $0xf0] sm:$0xff] }
 0x3d0   : >> { %2496 = vst.msk [vmem:[#allocation5 + $0x180] sm:$0xff] %vm1034_vm0, %v2440_v44  ;;  %3148 = vst.msk [vmem:[#allocation5 + $0x100] sm:$0xff] %vm1034_vm0, %v3092_v51  ;;  %v2441_v61 = vadd.f32 %v2385_v54, %v2308_v52  ;;  %v3093_v28 = vadd.f32 %v3037_v55, %v2912_v58  ;;  %v3424_v0 = vpack.c.bf16 %v3383_v50, %v3382_v35  ;;  %v2310_v2 = vpop.f32.mrb[139].mxu1  ;;  %v2914_v27 = vpop.f32.mrb[139].mxu0  ;;  %v3040_v44 = vld [vmem:[#allocation5 + $0x120] sm:$0xff]  ;;  %v2389_v58 = vld [vmem:[#allocation5 + $0x1a8] sm:$0xff] }
 0x3d1   : >> { %v3265_v62 = vmul.f32 %v12193_v47, %v3202_v59  ;;  %v3203_v5 = vld [vmem:[#allocation5 + $0xf8] sm:$0xff]  ;;  %v10807_v16 = vld [vmem:[%s14503_s7 + $0x24] ss:$16 sps:$4 sm:$0x1f]  }
 0x3d2   : >> { %2497 = vst.msk [vmem:[#allocation5 + $0x188] sm:$0xff] %vm1034_vm0, %v2441_v61  ;;  %3149 = vst.msk [vmem:[#allocation5 + $0x108] sm:$0xff] %vm1034_vm0, %v3093_v28  ;;  %10052 = vmatprep.subr.bf16.mxu1 %v3424_v0  ;;  %v3266_v7 = vmul.f32 %v12193_v47, %v3203_v5 }
 0x3d3   : >> { %v3328_v8 = vadd.f32 %v12203_v3, %v3265_v62  ;;  %10053 = vmatpush3.bf16.msra.mxu1 %v3416_v4 }
 0x3d4   : >> { %v3329_v12 = vadd.f32 %v12203_v3, %v3266_v7  ;;  %v10812_v7 = vld [vmem:[%s14503_s7 + $0xc] ss:$16 sps:$4 sm:$0xff]  }
 0x3d5   : >> { %v2313_v13 = vpop.f32.mrb[140].mxu1  ;;  %v2917_v14 = vpop.f32.mrb[140].mxu0  ;;  %v3384_v23 = vmax.f32 %v3328_v8, 0.0 }
 0x3d6   : >> { %v2442_v49 = vadd.f32 %v2386_v34, %v2313_v13  ;;  %v3094_v20 = vadd.f32 %v3038_v15, %v2917_v14  ;;  %v2315_v21 = vpop.f32.mrb[141].mxu1  ;;  %v2919_v22 = vpop.f32.mrb[141].mxu0  ;;  %v3385_v24 = vmax.f32 %v3329_v12, 0.0  ;;  %v2390_v12 = vld [vmem:[#allocation5 + $0x1b0] sm:$0xff] }
 0x3d7   : >> { %v2316_v57 = vpop.f32.mrb[142].mxu1  ;;  %v2920_v26 = vpop.f32.mrb[142].mxu0  ;;  %v3204_v31 = vld [vmem:[#allocation5 + $0x100] sm:$0xff]  ;;  %v3042_v34 = vld [vmem:[#allocation5 + $0x130] sm:$0xff] }
 0x3d8   : >> { %2498 = vst.msk [vmem:[#allocation5 + $0x190] sm:$0xff] %vm1034_vm0, %v2442_v49  ;;  %3150 = vst.msk [vmem:[#allocation5 + $0x110] sm:$0xff] %vm1034_vm0, %v3094_v20  ;;  %v2443_v36 = vadd.f32 %v2387_v25, %v2316_v57  ;;  %v3095_v38 = vadd.f32 %v3039_v29, %v2920_v26  ;;  %v3425_v11 = vpack.c.bf16 %v3385_v24, %v3384_v23  ;;  %v2318_v39 = vpop.f32.mrb[143].mxu1  ;;  %v2922_v10 = vpop.f32.mrb[143].mxu0  ;;  %v2391_v23 = vld [vmem:[#allocation5 + $0x1b8] sm:$0xff] }
 0x3d9   : >> { %v3267_v40 = vmul.f32 %v12193_v47, %v3204_v31  ;;  %v3205_v43 = vld [vmem:[#allocation5 + $0x108] sm:$0xff]  ;;  %v3043_v57 = vld [vmem:[#allocation5 + $0x138] sm:$0xff] }
 0x3da   : >> { %2499 = vst.msk [vmem:[#allocation5 + $0x198] sm:$0xff] %vm1034_vm0, %v2443_v36  ;;  %3151 = vst.msk [vmem:[#allocation5 + $0x118] sm:$0xff] %vm1034_vm0, %v3095_v38  ;;  %10054 = vmatprep.subr.bf16.mxu1 %v3425_v11  ;;  %v3268_v19 = vmul.f32 %v12193_v47, %v3205_v43  ;;  %v3044_v43 = vld [vmem:[#allocation5 + $0x140] sm:$0xff] }
 0x3db   : >> { %v3330_v45 = vadd.f32 %v12203_v3, %v3267_v40  ;;  %10055 = vmatpush3.bf16.msra.mxu1 %v3417_v42 }
 0x3dc   : >> { %3539 = vmatprep.subr.bf16.mxu1 %v11092_v63  ;;  %v3331_v46 = vadd.f32 %v12203_v3, %v3268_v19 }
 0x3dd   : >> { %v2321_v33 = vpop.f32.mrb[144].mxu1  ;;  %v2925_v48 = vpop.f32.mrb[144].mxu0  ;;  %v3386_v50 = vmax.f32 %v3330_v45, 0.0 }
 0x3de   : >> { %v2444_v51 = vadd.f32 %v2388_v37, %v2321_v33  ;;  %v3096_v53 = vadd.f32 %v3040_v44, %v2925_v48  ;;  %v2323_v41 = vpop.f32.mrb[145].mxu1  ;;  %v2927_v35 = vpop.f32.mrb[145].mxu0  ;;  %3523 = vmatmul.mubr.bf16.vlgmr.msra.gmra.mrb[152].mxu1 %v10804_v17  ;;  %v3387_v52 = vmax.f32 %v3331_v46, 0.0  ;;  %v3045_v33 = vld [vmem:[#allocation5 + $0x148] sm:$0xff] }
 0x3df   : >> { %v2324_v54 = vpop.f32.mrb[146].mxu1  ;;  %v2928_v55 = vpop.f32.mrb[146].mxu0  ;;  %v3206_v59 = vld [vmem:[#allocation5 + $0x110] sm:$0xff]  ;;  %3530 = vmatprep.mubr.bf16.mxu1 %v10807_v16 }
 0x3e0   : >> { %2500 = vst.msk [vmem:[#allocation5 + $0x1a0] sm:$0xff] %vm1034_vm0, %v2444_v51  ;;  %3152 = vst.msk [vmem:[#allocation5 + $0x120] sm:$0xff] %vm1034_vm0, %v3096_v53  ;;  %v2445_v60 = vadd.f32 %v2389_v58, %v2324_v54  ;;  %v3097_v61 = vadd.f32 %v3041_v56, %v2928_v55  ;;  %v3426_v28 = vpack.c.bf16 %v3387_v52, %v3386_v50  ;;  %v2326_v0 = vpop.f32.mrb[147].mxu1  ;;  %v2930_v2 = vpop.f32.mrb[147].mxu0  ;;  %v3046_v58 = vld [vmem:[#allocation5 + $0x150] sm:$0xff] }
 0x3e1   : >> { %v3269_v27 = vmul.f32 %v12193_v47, %v3206_v59  ;;  %v3207_v62 = vld [vmem:[#allocation5 + $0x118] sm:$0xff] }
 0x3e2   : >> { %2501 = vst.msk [vmem:[#allocation5 + $0x1a8] sm:$0xff] %vm1034_vm0, %v2445_v60  ;;  %3153 = vst.msk [vmem:[#allocation5 + $0x128] sm:$0xff] %vm1034_vm0, %v3097_v61  ;;  %3540 = vmatpush1.bf16.msra.mxu1 %v3426_v28  ;;  %v3270_v4 = vmul.f32 %v12193_v47, %v3207_v62  ;;  %v3047_v28 = vld [vmem:[#allocation5 + $0x158] sm:$0xff] }
 0x3e3   : >> { %v3332_v5 = vadd.f32 %v12203_v3, %v3269_v27  ;;  %3541 = vmatprep.subr.bf16.mxu1 %v11092_v63 }
 0x3e4   : >> { %v3333_v8 = vadd.f32 %v12203_v3, %v3270_v4 }
 0x3e5   : >> { %v2329_v9 = vpop.f32.mrb[148].mxu1  ;;  %v2933_v13 = vpop.f32.mrb[148].mxu0  ;;  %v3388_v20 = vmax.f32 %v3332_v5, 0.0 }
 0x3e6   : >> { %v2446_v14 = vadd.f32 %v2390_v12, %v2329_v9  ;;  %v3098_v15 = vadd.f32 %v3042_v34, %v2933_v13  ;;  %v2331_v18 = vpop.f32.mrb[149].mxu1  ;;  %v2935_v49 = vpop.f32.mrb[149].mxu0  ;;  %v3389_v21 = vmax.f32 %v3333_v8, 0.0  ;;  %3531 = vmatmul.mubr.bf16.gmra.mrb[156].mxu1 %v10809_v6  ;;  %v3048_v12 = vld [vmem:[#allocation5 + $0x160] sm:$0xff] }
 0x3e7   : >> { %v2332_v22 = vpop.f32.mrb[150].mxu1  ;;  %v2936_v24 = vpop.f32.mrb[150].mxu0  ;;  %v3208_v25 = vld [vmem:[#allocation5 + $0x120] sm:$0xff]  ;;  %9312 = vmatprep.mubr.msk.bf16.mxu1 %vm1034_vm0, %v10812_v7  ;;  %v3049_v49 = vld [vmem:[#allocation5 + $0x168] sm:$0xff] }
 0x3e8   : >> { %2502 = vst.msk [vmem:[#allocation5 + $0x1b0] sm:$0xff] %vm1034_vm0, %v2446_v14  ;;  %3154 = vst.msk [vmem:[#allocation5 + $0x130] sm:$0xff] %vm1034_vm0, %v3098_v15  ;;  %v2447_v26 = vadd.f32 %v2391_v23, %v2332_v22  ;;  %v3099_v29 = vadd.f32 %v3043_v57, %v2936_v24  ;;  %v3427_v30 = vpack.c.bf16 %v3389_v21, %v3388_v20  ;;  %v2938_v31 = vpop.f32.mrb[151].mxu0  ;;  %v2334_v38 = vpop.f32.mrb[151].mxu1 }
 0x3e9   : >> { %v3271_v36 = vmul.f32 %v12193_v47, %v3208_v25  ;;  %v3209_v11 = vld [vmem:[#allocation5 + $0x128] sm:$0xff]  ;;  %v3050_v31 = vld [vmem:[#allocation5 + $0x170] sm:$0xff] }
 0x3ea   : >> { %2503 = vst.msk [vmem:[#allocation5 + $0x1b8] sm:$0xff] %vm1034_vm0, %v2447_v26  ;;  %3155 = vst.msk [vmem:[#allocation5 + $0x138] sm:$0xff] %vm1034_vm0, %v3099_v29  ;;  %3542 = vmatpush1.bf16.msra.mxu1 %v3427_v30  ;;  %v3272_v39 = vmul.f32 %v12193_v47, %v3209_v11 }
 0x3eb   : >> { %v3334_v10 = vadd.f32 %v12203_v3, %v3271_v36  ;;  %3543 = vmatprep.subr.bf16.mxu1 %v11092_v63 }
 0x3ec   : >> { %v3335_v40 = vadd.f32 %v12203_v3, %v3272_v39 }
 0x3ed   : >> { %v2941_v42 = vpop.f32.mrb[152].mxu0  ;;  %v3390_v45 = vmax.f32 %v3334_v10, 0.0 }
 0x3ee   : >> { %v3100_v17 = vadd.f32 %v3044_v43, %v2941_v42  ;;  %v2943_v19 = vpop.f32.mrb[153].mxu0  ;;  %v3391_v16 = vmax.f32 %v3335_v40, 0.0  ;;  %v3051_v40 = vld [vmem:[#allocation5 + $0x178] sm:$0xff] }
 0x3ef   : >> { %v2944_v46 = vpop.f32.mrb[154].mxu0  ;;  %v3210_v37 = vld [vmem:[#allocation5 + $0x130] sm:$0xff] }
 0x3f0   : >> { %3156 = vst.msk [vmem:[#allocation5 + $0x140] sm:$0xff] %vm1034_vm0, %v3100_v17  ;;  %v3101_v48 = vadd.f32 %v3045_v33, %v2944_v46  ;;  %v3428_v44 = vpack.c.bf16 %v3391_v16, %v3390_v45  ;;  %v2946_v51 = vpop.f32.mrb[155].mxu0  ;;  %v3273_v53 = vmul.f32 %v12193_v47, %v3210_v37 }
 0x3f1   : >> { %v3211_v41 = vld [vmem:[#allocation5 + $0x138] sm:$0xff] }
 0x3f2   : >> { %3157 = vst.msk [vmem:[#allocation5 + $0x148] sm:$0xff] %vm1034_vm0, %v3101_v48  ;;  %3544 = vmatpush1.bf16.msra.mxu1 %v3428_v44  ;;  %v3274_v35 = vmul.f32 %v12193_v47, %v3211_v41  ;;  %v3336_v50 = vadd.f32 %v12203_v3, %v3273_v53  ;;  %v3052_v44 = vld [vmem:[#allocation5 + $0x180] sm:$0xff] }
 0x3f3   : >> { %3545 = vmatprep.subr.bf16.mxu1 %v11092_v63 }
 0x3f4   : >> { %v3337_v52 = vadd.f32 %v12203_v3, %v3274_v35  ;;  %v3392_v59 = vmax.f32 %v3336_v50, 0.0 }
 0x3f5   : >> { %v2949_v54 = vpop.f32.mrb[156].mxu0 }
 0x3f6   : >> { %v3102_v55 = vadd.f32 %v3046_v58, %v2949_v54  ;;  %v2951_v56 = vpop.f32.mrb[157].mxu0  ;;  %v3393_v60 = vmax.f32 %v3337_v52, 0.0  ;;  %v3053_v52 = vld [vmem:[#allocation5 + $0x188] sm:$0xff] }
 0x3f7   : >> { %v2952_v61 = vpop.f32.mrb[158].mxu0  ;;  %v3212_v0 = vld [vmem:[#allocation5 + $0x140] sm:$0xff] }
 0x3f8   : >> { %3158 = vst.msk [vmem:[#allocation5 + $0x150] sm:$0xff] %vm1034_vm0, %v3102_v55  ;;  %v3103_v2 = vadd.f32 %v3047_v28, %v2952_v61  ;;  %v3429_v27 = vpack.c.bf16 %v3393_v60, %v3392_v59  ;;  %v2954_v62 = vpop.f32.mrb[159].mxu0  ;;  %v3275_v4 = vmul.f32 %v12193_v47, %v3212_v0  ;;  %v12368_v56 = vld [vmem:[%s14532_s30] ss:$0 sm:$0xff] }
 0x3f9   : >> { %v3213_v5 = vld [vmem:[#allocation5 + $0x148] sm:$0xff] }
 0x3fa   : >> { %3159 = vst.msk [vmem:[#allocation5 + $0x158] sm:$0xff] %vm1034_vm0, %v3103_v2  ;;  %3546 = vmatpush1.bf16.msra.mxu1 %v3429_v27  ;;  %v3276_v6 = vmul.f32 %v12193_v47, %v3213_v5  ;;  %v3338_v7 = vadd.f32 %v12203_v3, %v3275_v4  ;;  %v3054_v27 = vld [vmem:[#allocation5 + $0x190] sm:$0xff] }
 0x3fb   : >> { %3547 = vmatprep.subr.bf16.mxu1 %v11092_v63 }
 0x3fc   : >> { %v3339_v8 = vadd.f32 %v12203_v3, %v3276_v6  ;;  %v3394_v14 = vmax.f32 %v3338_v7, 0.0 }
 0x3fd   : >> { %v2957_v9 = vpop.f32.mrb[160].mxu0 }
 0x3fe   : >> { %v3104_v13 = vadd.f32 %v3048_v12, %v2957_v9  ;;  %v2959_v34 = vpop.f32.mrb[161].mxu0  ;;  %v3395_v15 = vmax.f32 %v3339_v8, 0.0  ;;  %v3055_v8 = vld [vmem:[#allocation5 + $0x198] sm:$0xff] }
 0x3ff   : >> { %v2960_v18 = vpop.f32.mrb[162].mxu0  ;;  %v3214_v20 = vld [vmem:[#allocation5 + $0x150] sm:$0xff] }
 0x400   : >> { %3160 = vst.msk [vmem:[#allocation5 + $0x160] sm:$0xff] %vm1034_vm0, %v3104_v13  ;;  %v3105_v21 = vadd.f32 %v3049_v49, %v2960_v18  ;;  %v3430_v22 = vpack.c.bf16 %v3395_v15, %v3394_v14  ;;  %v2962_v23 = vpop.f32.mrb[163].mxu0  ;;  %v3277_v24 = vmul.f32 %v12193_v47, %v3214_v20  ;;  %v10817_v18 = vld [vmem:[%s14502_s6] ss:$0 sm:$0xff] }
 0x401   : >> { %v3215_v57 = vld [vmem:[#allocation5 + $0x158] sm:$0xff] }
 0x402   : >> { %3161 = vst.msk [vmem:[#allocation5 + $0x168] sm:$0xff] %vm1034_vm0, %v3105_v21  ;;  %3548 = vmatpush1.bf16.msra.mxu1 %v3430_v22  ;;  %v3278_v25 = vmul.f32 %v12193_v47, %v3215_v57  ;;  %v3340_v26 = vadd.f32 %v12203_v3, %v3277_v24  ;;  %v3056_v22 = vld [vmem:[#allocation5 + $0x1a0] sm:$0xff] }
 0x403   : >> { %3549 = vmatprep.subr.bf16.mxu1 %v11092_v63 }
 0x404   : >> { %v3341_v29 = vadd.f32 %v12203_v3, %v3278_v25  ;;  %v3396_v11 = vmax.f32 %v3340_v26, 0.0 }
 0x405   : >> { %v2965_v30 = vpop.f32.mrb[164].mxu0 }
 0x406   : >> { %v3106_v36 = vadd.f32 %v3050_v31, %v2965_v30  ;;  %v2967_v38 = vpop.f32.mrb[165].mxu0  ;;  %v3397_v39 = vmax.f32 %v3341_v29, 0.0  ;;  %v3057_v29 = vld [vmem:[#allocation5 + $0x1a8] sm:$0xff] }
 0x407   : >> { %v2968_v10 = vpop.f32.mrb[166].mxu0  ;;  %v3216_v42 = vld [vmem:[#allocation5 + $0x160] sm:$0xff] }
 0x408   : >> { %3162 = vst.msk [vmem:[#allocation5 + $0x170] sm:$0xff] %vm1034_vm0, %v3106_v36  ;;  %v3107_v43 = vadd.f32 %v3051_v40, %v2968_v10  ;;  %v3431_v17 = vpack.c.bf16 %v3397_v39, %v3396_v11  ;;  %v2970_v19 = vpop.f32.mrb[167].mxu0  ;;  %v3279_v45 = vmul.f32 %v12193_v47, %v3216_v42 }
 0x409   : >> { %v3217_v16 = vld [vmem:[#allocation5 + $0x168] sm:$0xff] }
 0x40a   : >> { %3163 = vst.msk [vmem:[#allocation5 + $0x178] sm:$0xff] %vm1034_vm0, %v3107_v43  ;;  %3550 = vmatpush1.bf16.msra.mxu1 %v3431_v17  ;;  %v3280_v46 = vmul.f32 %v12193_v47, %v3217_v16  ;;  %v3342_v33 = vadd.f32 %v12203_v3, %v3279_v45  ;;  %v3058_v17 = vld [vmem:[#allocation5 + $0x1b0] sm:$0xff] }
 0x40b   : >> { %3551 = vmatprep.subr.bf16.mxu1 %v11092_v63 }
 0x40c   : >> { %v3343_v37 = vadd.f32 %v12203_v3, %v3280_v46  ;;  %v3398_v41 = vmax.f32 %v3342_v33, 0.0 }
 0x40d   : >> { %v2973_v48 = vpop.f32.mrb[168].mxu0 }
 0x40e   : >> { %v3108_v51 = vadd.f32 %v3052_v44, %v2973_v48  ;;  %v2975_v53 = vpop.f32.mrb[169].mxu0  ;;  %v3399_v35 = vmax.f32 %v3343_v37, 0.0  ;;  %v3059_v37 = vld [vmem:[#allocation5 + $0x1b8] sm:$0xff] }
 0x40f   : >> { %v2976_v50 = vpop.f32.mrb[170].mxu0  ;;  %v3218_v54 = vld [vmem:[#allocation5 + $0x170] sm:$0xff] }
 0x410   : >> { %3164 = vst.msk [vmem:[#allocation5 + $0x180] sm:$0xff] %vm1034_vm0, %v3108_v51  ;;  %v3109_v58 = vadd.f32 %v3053_v52, %v2976_v50  ;;  %v3432_v55 = vpack.c.bf16 %v3399_v35, %v3398_v41  ;;  %v2978_v47 = vpop.f32.mrb[171].mxu0  ;;  %v3281_v59 = vmul.f32 %v12368_v56, %v3218_v54 }
 0x411   : >> { %v3219_v60 = vld [vmem:[#allocation5 + $0x178] sm:$0xff] }
 0x412   : >> { %3165 = vst.msk [vmem:[#allocation5 + $0x188] sm:$0xff] %vm1034_vm0, %v3109_v58  ;;  %3552 = vmatpush1.bf16.msra.mxu1 %v3432_v55  ;;  %v3282_v61 = vmul.f32 %v12368_v56, %v3219_v60  ;;  %v3344_v28 = vadd.f32 %v12203_v3, %v3281_v59 }
 0x413   : >> { %3553 = vmatprep.subr.bf16.mxu1 %v11092_v63 }
 0x414   : >> { %v3345_v0 = vadd.f32 %v12203_v3, %v3282_v61  ;;  %v3400_v5 = vmax.f32 %v3344_v28, 0.0 }
 0x415   : >> { %v2981_v2 = vpop.f32.mrb[172].mxu0 }
 0x416   : >> { %v3110_v62 = vadd.f32 %v3054_v27, %v2981_v2  ;;  %v2983_v4 = vpop.f32.mrb[173].mxu0  ;;  %v3401_v6 = vmax.f32 %v3345_v0, 0.0 }
 0x417   : >> { %v2984_v7 = vpop.f32.mrb[174].mxu0  ;;  %v3220_v9 = vld [vmem:[#allocation5 + $0x180] sm:$0xff] }
 0x418   : >> { %3166 = vst.msk [vmem:[#allocation5 + $0x190] sm:$0xff] %vm1034_vm0, %v3110_v62  ;;  %v3111_v12 = vadd.f32 %v3055_v8, %v2984_v7  ;;  %v3433_v13 = vpack.c.bf16 %v3401_v6, %v3400_v5  ;;  %v2986_v34 = vpop.f32.mrb[175].mxu0  ;;  %v3283_v14 = vmul.f32 %v12368_v56, %v3220_v9  ;;  %v10810_v5 = vld [vmem:[%s14503_s7 + $0x8] ss:$16 sps:$4 sm:$0xff]  }
 0x419   : >> { %v3221_v15 = vld [vmem:[#allocation5 + $0x188] sm:$0xff] }
 0x41a   : >> { %3167 = vst.msk [vmem:[#allocation5 + $0x198] sm:$0xff] %vm1034_vm0, %v3111_v12  ;;  %3554 = vmatpush1.bf16.msra.mxu1 %v3433_v13  ;;  %v3284_v3 = vmul.f32 %v12368_v56, %v3221_v15  ;;  %v3346_v49 = vadd.f32 %v10817_v18, %v3283_v14  ;;  %v10813_v6 = vld [vmem:[%s14503_s7 + $0x2c] ss:$16 sps:$4 sm:$0x1f]  }
 0x41b   : >> { %3555 = vmatprep.subr.bf16.mxu1 %v11092_v63 }
 0x41c   : >> { %v3347_v20 = vadd.f32 %v10817_v18, %v3284_v3  ;;  %v3402_v57 = vmax.f32 %v3346_v49, 0.0 }
 0x41d   : >> { %v2989_v21 = vpop.f32.mrb[176].mxu0 }
 0x41e   : >> { %v3112_v23 = vadd.f32 %v3056_v22, %v2989_v21  ;;  %v2991_v24 = vpop.f32.mrb[177].mxu0  ;;  %v3403_v25 = vmax.f32 %v3347_v20, 0.0 }
 0x41f   : >> { %v2992_v26 = vpop.f32.mrb[178].mxu0  ;;  %v3222_v30 = vld [vmem:[#allocation5 + $0x190] sm:$0xff] }
 0x420   : >> { %3168 = vst.msk [vmem:[#allocation5 + $0x1a0] sm:$0xff] %vm1034_vm0, %v3112_v23  ;;  %v3113_v31 = vadd.f32 %v3057_v29, %v2992_v26  ;;  %v3434_v36 = vpack.c.bf16 %v3403_v25, %v3402_v57  ;;  %v2994_v38 = vpop.f32.mrb[179].mxu0  ;;  %v3285_v11 = vmul.f32 %v12368_v56, %v3222_v30 }
 0x421   : >> { %v3223_v39 = vld [vmem:[#allocation5 + $0x198] sm:$0xff] }
 0x422   : >> { %3169 = vst.msk [vmem:[#allocation5 + $0x1a8] sm:$0xff] %vm1034_vm0, %v3113_v31  ;;  %3556 = vmatpush1.bf16.msra.mxu1 %v3434_v36  ;;  %v3286_v10 = vmul.f32 %v12368_v56, %v3223_v39  ;;  %v3348_v40 = vadd.f32 %v10817_v18, %v3285_v11 }
 0x423   : >> { %3557 = vmatprep.subr.bf16.mxu1 %v11092_v63 }
 0x424   : >> { %v3349_v42 = vadd.f32 %v10817_v18, %v3286_v10  ;;  %v3404_v16 = vmax.f32 %v3348_v40, 0.0 }
 0x425   : >> { %v2997_v43 = vpop.f32.mrb[180].mxu0 }
 0x426   : >> { %v3114_v19 = vadd.f32 %v3058_v17, %v2997_v43  ;;  %v2999_v45 = vpop.f32.mrb[181].mxu0  ;;  %v3405_v46 = vmax.f32 %v3349_v42, 0.0 }
 0x427   : >> { %v3000_v33 = vpop.f32.mrb[182].mxu0  ;;  %v3224_v48 = vld [vmem:[#allocation5 + $0x1a0] sm:$0xff] }
 0x428   : >> { %3170 = vst.msk [vmem:[#allocation5 + $0x1b0] sm:$0xff] %vm1034_vm0, %v3114_v19  ;;  %v3115_v44 = vadd.f32 %v3059_v37, %v3000_v33  ;;  %v3435_v51 = vpack.c.bf16 %v3405_v46, %v3404_v16  ;;  %v3287_v53 = vmul.f32 %v12368_v56, %v3224_v48  ;;  %v3002_v41 = vpop.f32.mrb[183].mxu0 }
 0x429   : >> { %v3225_v35 = vld [vmem:[#allocation5 + $0x1a8] sm:$0xff] }
 0x42a   : >> { %3171 = vst.msk [vmem:[#allocation5 + $0x1b8] sm:$0xff] %vm1034_vm0, %v3115_v44  ;;  %3558 = vmatpush1.bf16.msra.mxu1 %v3435_v51  ;;  %v3288_v50 = vmul.f32 %v12368_v56, %v3225_v35  ;;  %v3350_v52 = vadd.f32 %v10817_v18, %v3287_v53  ;;  %v11094_v44 = vmov 0.0  }
 0x42b   : >> { %3559 = vmatprep.subr.bf16.mxu1 %v11092_v63 }
 0x42c   : >> { %v3351_v54 = vadd.f32 %v10817_v18, %v3288_v50  ;;  %v3406_v58 = vmax.f32 %v3350_v52, 0.0 }
 0x42e   : >> { %v3407_v55 = vmax.f32 %v3351_v54, 0.0 }
 0x42f   : >> { %v3226_v47 = vld [vmem:[#allocation5 + $0x1b0] sm:$0xff] }
 0x430   : >> { %v3436_v59 = vpack.c.bf16 %v3407_v55, %v3406_v58  ;;  %v3289_v60 = vmul.f32 %v12368_v56, %v3226_v47 }
 0x431   : >> { %v3227_v61 = vld [vmem:[#allocation5 + $0x1b8] sm:$0xff] }
 0x432   : >> { %3560 = vmatpush1.bf16.msra.mxu1 %v3436_v59  ;;  %v3290_v28 = vmul.f32 %v12368_v56, %v3227_v61  ;;  %v3352_v0 = vadd.f32 %v10817_v18, %v3289_v60 }
 0x433   : >> { %3561 = vmatprep.subr.bf16.mxu1 %v11092_v63  ;;  %v10815_v63 = vld [vmem:[%s14503_s7 + $0x28] ss:$16 sps:$4 sm:$0x1f]  }
 0x434   : >> { %v3353_v2 = vadd.f32 %v10817_v18, %v3290_v28  ;;  %v3408_v27 = vmax.f32 %v3352_v0, 0.0 }
 0x436   : >> { %v3409_v62 = vmax.f32 %v3353_v2, 0.0  ;;  %v10818_v2 = vld [vmem:[%s14504_s8 + $0x60] sm:$0xff] (%p1277_p5)  }
 0x437   : > { %3824 = vmatpush1.bf16.msra.mxu0 (%p1277_p5), %v10818_v2 }
 0x438   : >> { %v3437_v4 = vpack.c.bf16 %v3409_v62, %v3408_v27  ;;  %v10819_v27 = vld [vmem:[%s14504_s8 + $0x68] sm:$0xff] (%p1277_p5)   ;;  %3825 = vmatprep.subr.bf16.mxu0 (%p1277_p5), %v11091_v32  ;;  %v10820_v62 = vld [vmem:[%s14504_s8 + $0x70] sm:$0xff] (%p1277_p5)  }
 0x43a   : >> { %3562 = vmatpush1.bf16.msra.mxu1 %v3437_v4  ;;  %v10821_v4 = vld [vmem:[%s14504_s8 + $0x78] sm:$0xff] (%p1277_p5)  }
 0x43b   : > { %4502 = vmatprep.subr.bf16.mxu1 (%p1277_p5), %v11091_v32  ;;  %3826 = vmatpush1.bf16.msra.mxu0 (%p1277_p5), %v10819_v27 }
 0x43c   : > { %3827 = vmatprep.subr.bf16.mxu0 (%p1277_p5), %v11091_v32 }
 0x43d   : >> { %3572 = vmatmul.mubr.bf16.vlgmr.msra.gmra.mrb[160].mxu1 %v10810_v5 }
 0x43e   : >> { %9313 = vmatprep.mubr.msk.bf16.mxu1 %vm1034_vm0, %v10813_v6  ;;  %v10822_v6 = vld [vmem:[%s14504_s8 + $0x80] sm:$0xff] (%p1277_p5)  }
 0x43f   : > { %3828 = vmatpush1.bf16.msra.mxu0 (%p1277_p5), %v10820_v62  ;;  %v12714_v62 = vld [vmem:[%s14507_s11] sm:$0x77] (%p1277_p5) }
 0x440   : > { %3829 = vmatprep.subr.bf16.mxu0 (%p1277_p5), %v11091_v32 }
 0x443   : > { %3830 = vmatpush1.bf16.msra.mxu0 (%p1277_p5), %v10821_v4  ;;  %v9434_v4 = vcombine.high (%p1277_p5), %v12714_v62, %v12714_v62 }
 0x444   : > { %3831 = vmatprep.subr.bf16.mxu0 (%p1277_p5), %v11091_v32 }
 0x445   : >> { %3580 = vmatmul.mubr.bf16.gmra.mrb[164].mxu1 %v10815_v63  ;;  %v10823_v63 = vld [vmem:[%s14504_s8 + $0x88] sm:$0xff] (%p1277_p5)  }
 0x446   : > { %9435 = vmatprep.mubr.msk.bf16.mxu1 (%p1277_p5), %vm4498_vm6, %v9434_v4 }
 0x447   : > { %3832 = vmatpush1.bf16.msra.mxu0 (%p1277_p5), %v10822_v6 }
 0x448   : > { %3833 = vmatprep.subr.bf16.mxu0 (%p1277_p5), %v11091_v32 }
 0x44b   : > { %3834 = vmatpush1.bf16.msra.mxu0 (%p1277_p5), %v10823_v63  ;;  %v12727_v63 = vld [vmem:[%s14506_s10] ss:$0 sm:$0xff] (%p1277_p5) }
 0x44c   : > { %3835 = vmatprep.subr.bf16.mxu0 (%p1277_p5), %v11091_v32 }
 0x4b1   : >> { %v10056_v56 = vpop.f32.mrb[152].mxu1 }
 0x4b2   : >> { %v10057_v7 = vpop.f32.mrb[153].mxu1 }
 0x4b3   : >> { %v10058_v8 = vadd.f32 %v10057_v7, %v10056_v56  ;;  %v10059_v9 = vpop.f32.mrb[154].mxu1  ;;  %v10824_v56 = vld [vmem:[%s14504_s8 + $0x90] sm:$0xff] (%p1277_p5)   ;;  %v10825_v7 = vld [vmem:[%s14504_s8 + $0x98] sm:$0xff] (%p1277_p5)  }
 0x4b4   : >> { %v10060_v12 = vpop.f32.mrb[155].mxu1  ;;  %3836 = vmatpush1.bf16.msra.mxu0 (%p1277_p5), %v10824_v56 }
 0x4b5   : >> { %v10061_v13 = vadd.f32 %v10060_v12, %v10059_v9  ;;  %3837 = vmatprep.subr.bf16.mxu0 (%p1277_p5), %v11091_v32  ;;  %v10827_v9 = vld [vmem:[%s14504_s8 + $0xa8] sm:$0xff] (%p1277_p5)   ;;  %v10828_v12 = vld [vmem:[%s14504_s8 + $0xb0] sm:$0xff] (%p1277_p5)  }
 0x4b8   : > { %3838 = vmatpush1.bf16.msra.mxu0 (%p1277_p5), %v10825_v7 }
 0x4b9   : >> { %v10062_v34 = vpop.f32.mrb[156].mxu1  ;;  %3839 = vmatprep.subr.bf16.mxu0 (%p1277_p5), %v11091_v32 }
 0x4ba   : >> { %v10063_v14 = vpop.f32.mrb[157].mxu1 }
 0x4bb   : >> { %v10064_v15 = vadd.f32 %v10063_v14, %v10062_v34  ;;  %v10065_v3 = vpop.f32.mrb[158].mxu1  ;;  %v10830_v14 = vld [vmem:[%s14504_s8] sm:$0xff] (%p1277_p5)  }
 0x4bc   : >> { %v10066_v18 = vpop.f32.mrb[159].mxu1 }
 0x4bd   : >> { %v10067_v49 = vadd.f32 %v10066_v18, %v10065_v3  ;;  %v10831_v3 = vld [vmem:[%s14504_s8 + $0x8] sm:$0xff] (%p1277_p5)  }
 0x510   : >> { %v3573_v20 = vpop.f32.mrb[160].mxu1 }
 0x511   : >> { %v3574_v21 = vadd.f32 %v10058_v8, %v3573_v20  ;;  %v3575_v22 = vpop.f32.mrb[161].mxu1  ;;  %v10826_v8 = vld [vmem:[%s14504_s8 + $0xa0] sm:$0xff] (%p1277_p5)  }
 0x512   : >> { %v3576_v23 = vpop.f32.mrb[162].mxu1  ;;  %3840 = vmatpush1.bf16.msra.mxu0 (%p1277_p5), %v10826_v8 }
 0x513   : >> { %v3577_v24 = vadd.f32 %v10061_v13, %v3576_v23  ;;  %v3578_v57 = vpop.f32.mrb[163].mxu1  ;;  %v3591_v25 = vrot.slane %v3574_v21, 7  ;;  %v3602_v26 = vrot.slane %v3574_v21, 1  ;;  %3841 = vmatprep.subr.bf16.mxu0 (%p1277_p5), %v11091_v32  ;;  %v10829_v13 = vld [vmem:[%s14504_s8 + $0xb8] sm:$0xff] (%p1277_p5)   ;;  %v10834_v23 = vld [vmem:[%s14504_s8 + $0x20] sm:$0xff] (%p1277_p5)  }
 0x514   : > { %v10835_v57 = vld [vmem:[%s14504_s8 + $0x28] sm:$0xff] (%p1277_p5)  }
 0x515   : >> { %v3592_v29 = vrot.slane %v3577_v24, 7  ;;  %v3603_v30 = vrot.slane %v3577_v24, 1  ;;  %v3600_v55 = vsel %vm914_vm5, 0.0, %v3591_v25 }
 0x516   : > { %3842 = vmatpush1.bf16.msra.mxu0 (%p1277_p5), %v10827_v9 }
 0x517   : >> { %v3604_v31 = vsel %vm954_vm2, %v3602_v26, %v3603_v30  ;;  %v3593_v36 = vsel %vm914_vm5, %v3591_v25, %v3592_v29  ;;  %3843 = vmatprep.subr.bf16.mxu0 (%p1277_p5), %v11091_v32  ;;  %v10836_v26 = vld [vmem:[%s14504_s8 + $0x30] sm:$0xff] (%p1277_p5)  }
 0x518   : >> { %v3581_v38 = vpop.f32.mrb[164].mxu1 }
 0x519   : >> { %v3582_v11 = vadd.f32 %v10064_v15, %v3581_v38  ;;  %v3583_v39 = vpop.f32.mrb[165].mxu1 }
 0x51a   : >> { %v3584_v10 = vpop.f32.mrb[166].mxu1  ;;  %3844 = vmatpush1.bf16.msra.mxu0 (%p1277_p5), %v10828_v12 }
 0x51b   : >> { %v3594_v40 = vrot.slane %v3582_v11, 7  ;;  %v3605_v42 = vrot.slane %v3582_v11, 1  ;;  %v3585_v43 = vadd.f32 %v10067_v49, %v3584_v10  ;;  %v10763_v17 = vpack.i.bf16 %v3582_v11, %v3577_v24  ;;  %v3586_v19 = vpop.f32.mrb[167].mxu1  ;;  %3845 = vmatprep.subr.bf16.mxu0 (%p1277_p5), %v11091_v32  ;;  %v10832_v49 = vld [vmem:[%s14504_s8 + $0x10] sm:$0xff] (%p1277_p5)   ;;  %v10839_v11 = vld [vmem:[%s14504_s8 + $0x48] sm:$0xff] (%p1277_p5)  }
 0x51c   : > { %v10840_v10 = vld [vmem:[%s14504_s8 + $0x50] sm:$0xff] (%p1277_p5)  }
 0x51d   : >> { %v3606_v45 = vsel %vm954_vm2, %v3603_v30, %v3605_v42  ;;  %v3607_v16 = vrot.slane %v3585_v43, 1  ;;  %v10758_v46 = vpack.i.bf16 %v3574_v21, %v3585_v43  ;;  %v3595_v33 = vsel %vm914_vm5, %v3592_v29, %v3594_v40  ;;  %v10833_v21 = vld [vmem:[%s14504_s8 + $0x18] sm:$0xff] (%p1277_p5)  }
 0x51e   : >> { %v3630_v37 = vpack.c.bf16 %v3606_v45, %v3604_v31  ;;  %3846 = vmatpush1.bf16.msra.mxu0 (%p1277_p5), %v10829_v13  ;;  %v10837_v30 = vld [vmem:[%s14504_s8 + $0x38] sm:$0xff] (%p1277_p5)  }
 0x51f   : >> { %v3608_v48 = vsel %vm954_vm2, %v3605_v42, %v3607_v16  ;;  %10759 = vrot.lane.b32.xlu0 %v10758_v46, %s11093_s5  ;;  %4014 = vmatprep.subr.bf16.mxu0 (%p1277_p5), %v11091_v32  ;;  %v10841_v42 = vld [vmem:[%s14504_s8 + $0x58] sm:$0xff] (%p1277_p5)  }
 0x520   : >> { %v3632_v51 = vpack.c.bf16 %v11094_v44, %v3608_v48  ;;  %3641 = vst.msk [vmem:[%s3639_s23 + $0x8] sm:$0xff] %vm1034_vm0, %v3630_v37  ;;  %v10842_v44 = vld [vmem:[%s14504_s8 + $0xc0] sm:$0xff] (%p1277_p5)  }
 0x522   : >> { %3643 = vst.msk [vmem:[%s3639_s23 + $0x18] sm:$0xff] %vm1034_vm0, %v3632_v51 }
 0x523   : >> { %10764 = vrot.lane.b32.xlu0 %v10763_v17, %s11093_s5 }
 0x591   : >> { %v10760_v53 = vpop.permute.xlu0 %10759 }
 0x592   : >> { %v10761_v41 = vunpack.i.l.bf16 %v10760_v53  ;;  %v10762_v35 = vunpack.i.h.bf16 %v10760_v53  ;;  %v10843_v53 = vld [vmem:[%s14504_s8 + $0xc8] sm:$0xff] (%p1277_p5)  }
 0x594   : >> { %v3627_v50 = vsel %vm1034_vm0, %v3594_v40, %v10761_v41  ;;  %v3624_v47 = vsel %vm1034_vm0, %v3600_v55, %v10762_v35  ;;  %v10844_v35 = vld [vmem:[%s14504_s8 + $0xd0] sm:$0xff] (%p1277_p5)  }
 0x595   : >> { %v10765_v52 = vpop.permute.xlu0 %10764  ;;  %v3628_v59 = vsel %vm914_vm5, %v3627_v50, 0.0  ;;  %1279 = sbr.rel (!%p1277_p5) target bundleno = 436 (0x1b4), region = 171  ;;  %v10845_v50 = vld [vmem:[%s14504_s8 + $0xd8] sm:$0xff] (%p1277_p5)   ;;  %v10848_v55 = vld [vmem:[%s14504_s8 + $0xf0] sm:$0xff] (%p1277_p5)  }
 0x596   : >> { %v10767_v54 = vunpack.i.h.bf16 %v10765_v52  ;;  %v10766_v58 = vunpack.i.l.bf16 %v10765_v52  ;;  %v10846_v52 = vld [vmem:[%s14504_s8 + $0xe0] sm:$0xff] (%p1277_p5)  }
 0x598   : >> { %v3626_v60 = vsel %vm1034_vm0, %v3595_v33, %v10767_v54  ;;  %v3625_v61 = vsel %vm1034_vm0, %v3593_v36, %v10766_v58  ;;  %v10838_v36 = vld [vmem:[%s14504_s8 + $0x40] sm:$0xff] (%p1277_p5)   ;;  %v10847_v54 = vld [vmem:[%s14504_s8 + $0xe8] sm:$0xff] (%p1277_p5)  }
 0x599   : >> { %v3629_v28 = vpack.c.bf16 %v3625_v61, %v3624_v47  ;;  %v3631_v0 = vpack.c.bf16 %v3628_v59, %v3626_v60  ;;  %v12626_v58 = vld [vmem:[#allocation7] sm:$0xff] (%p1277_p5)  ;;  %v10851_v59 = vld [vmem:[%s14504_s8 + $0x108] sm:$0xff] (%p1277_p5)   ;;  %v10852_v60 = vld [vmem:[%s14504_s8 + $0x110] sm:$0xff] (%p1277_p5)  }
 0x59a   : > { %v10850_v47 = vld [vmem:[%s14504_s8 + $0x100] sm:$0xff] (%p1277_p5)   ;;  %v10853_v61 = vld [vmem:[%s14504_s8 + $0x118] sm:$0xff] (%p1277_p5)  }
 0x59b   : >> { %3640 = vst [vmem:[%s3639_s23] sm:$0xff] %v3629_v28  ;;  %3642 = vst [vmem:[%s3639_s23 + $0x10] sm:$0xff] %v3631_v0 }
 0x5a2   : > { %v12446_v5 = vld [vmem:[#allocation6 + $0x28] sm:$0xff]  ;;  %v12482_v34 = vld [vmem:[#allocation6 + $0x20] sm:$0xff]  ;;  %v12487_v15 = vld [vmem:[#allocation6 + $0x38] sm:$0xff] }
 0x5a3   : > { %9353 = vmatprep.mubr.msk.bf16.mxu0 %vm1034_vm0, %v12446_v5  ;;  %v12497_v18 = vld [vmem:[#allocation6 + $0x30] sm:$0xff]  ;;  %v12502_v20 = vld [vmem:[#allocation6 + $0x48] sm:$0xff]  ;;  %v12512_v22 = vld [vmem:[#allocation6 + $0x40] sm:$0xff] }
 0x5a4   : > { %3856 = vmatmul.mubr.bf16.vlgmr.msra.gmra.mrb[0].mxu0 %v12482_v34  ;;  %v12517_v24 = vld [vmem:[#allocation6 + $0x58] sm:$0xff]  ;;  %v12527_v25 = vld [vmem:[#allocation6 + $0x50] sm:$0xff]  ;;  %v12532_v29 = vld [vmem:[#allocation6 + $0x68] sm:$0xff] }
 0x5a5   : > { %4015 = vmatpush1.bf16.msra.mxu0 %v10830_v14  ;;  %9354 = vmatprep.mubr.msk.bf16.mxu0 %vm1034_vm0, %v12487_v15  ;;  %v12542_v31 = vld [vmem:[#allocation6 + $0x60] sm:$0xff]  ;;  %v12547_v38 = vld [vmem:[#allocation6 + $0x78] sm:$0xff]  ;;  %v12557_v39 = vld [vmem:[#allocation6 + $0x70] sm:$0xff] }
 0x5a6   : > { %4016 = vmatprep.subr.bf16.mxu0 %v11091_v32  ;;  %v12562_v40 = vld [vmem:[#allocation6 + $0x88] sm:$0xff]  ;;  %v12572_v43 = vld [vmem:[#allocation6 + $0x80] sm:$0xff]  ;;  %v12574_v17 = vld [vmem:[#allocation6 + $0x98] sm:$0xff] }
 0x5a7   : > { %v12580_v19 = vld [vmem:[#allocation6 + $0x90] sm:$0xff]  ;;  %v12582_v45 = vld [vmem:[#allocation6 + $0xa8] sm:$0xff]  ;;  %v12587_v16 = vld [vmem:[#allocation6 + $0xa0] sm:$0xff] }
 0x5a8   : > { %v12589_v46 = vld [vmem:[#allocation6 + $0xb8] sm:$0xff]  ;;  %v12594_v33 = vld [vmem:[#allocation6 + $0xb0] sm:$0xff]  ;;  %v3649_v37 = vld [vmem:[#allocation6 + $0x8] sm:$0xff] }
 0x5a9   : > { %4017 = vmatpush1.bf16.msra.mxu0 %v10831_v3  ;;  %v3648_v48 = vld [vmem:[#allocation6] sm:$0xff]  ;;  %v3651_v51 = vld [vmem:[#allocation6 + $0x18] sm:$0xff]  ;;  %v3650_v41 = vld [vmem:[#allocation6 + $0x10] sm:$0xff] }
 0x5aa   : > { %4018 = vmatprep.subr.bf16.mxu0 %v11091_v32  ;;  %v12696_v28 = vld [vmem:[#allocation6 + $0xc8] sm:$0xff]  ;;  %v12701_v0 = vld [vmem:[#allocation6 + $0xc0] sm:$0xff]  ;;  %v12703_v2 = vld [vmem:[#allocation6 + $0xd8] sm:$0xff] }
 0x5ab   : > { %v12708_v27 = vld [vmem:[#allocation6 + $0xd0] sm:$0xff] }
 0x5ac   : > { %3864 = vmatmul.mubr.bf16.gmra.mrb[4].mxu0 %v12497_v18 }
 0x5ad   : > { %9355 = vmatprep.mubr.msk.bf16.mxu0 %vm1034_vm0, %v12502_v20  ;;  %4019 = vmatpush1.bf16.msra.mxu0 %v10832_v49 }
 0x5ae   : > { %4020 = vmatprep.subr.bf16.mxu0 %v11091_v32 }
 0x5b1   : > { %4021 = vmatpush1.bf16.msra.mxu0 %v10833_v21 }
 0x5b2   : > { %4022 = vmatprep.subr.bf16.mxu0 %v11091_v32 }
 0x5b4   : > { %3872 = vmatmul.mubr.bf16.gmra.mrb[8].mxu0 %v12512_v22 }
 0x5b5   : > { %9356 = vmatprep.mubr.msk.bf16.mxu0 %vm1034_vm0, %v12517_v24  ;;  %4023 = vmatpush1.bf16.msra.mxu0 %v10834_v23 }
 0x5b6   : > { %4024 = vmatprep.subr.bf16.mxu0 %v11091_v32 }
 0x5b9   : > { %4025 = vmatpush1.bf16.msra.mxu0 %v10835_v57 }
 0x5ba   : > { %4026 = vmatprep.subr.bf16.mxu0 %v11091_v32 }
 0x5bc   : > { %3880 = vmatmul.mubr.bf16.gmra.mrb[12].mxu0 %v12527_v25 }
 0x5bd   : > { %9357 = vmatprep.mubr.msk.bf16.mxu0 %vm1034_vm0, %v12532_v29  ;;  %4027 = vmatpush1.bf16.msra.mxu0 %v10836_v26 }
 0x5be   : > { %4028 = vmatprep.subr.bf16.mxu0 %v11091_v32 }
 0x5c1   : > { %4029 = vmatpush1.bf16.msra.mxu0 %v10837_v30 }
 0x5c2   : > { %4030 = vmatprep.subr.bf16.mxu0 %v11091_v32 }
 0x5c4   : > { %3888 = vmatmul.mubr.bf16.gmra.mrb[16].mxu0 %v12542_v31 }
 0x5c5   : > { %9358 = vmatprep.mubr.msk.bf16.mxu0 %vm1034_vm0, %v12547_v38  ;;  %4031 = vmatpush1.bf16.msra.mxu0 %v10838_v36 }
 0x5c6   : > { %4032 = vmatprep.subr.bf16.mxu0 %v11091_v32 }
 0x5c9   : > { %4033 = vmatpush1.bf16.msra.mxu0 %v10839_v11 }
 0x5ca   : > { %4034 = vmatprep.subr.bf16.mxu0 %v11091_v32 }
 0x5cc   : > { %3896 = vmatmul.mubr.bf16.gmra.mrb[20].mxu0 %v12557_v39 }
 0x5cd   : > { %9359 = vmatprep.mubr.msk.bf16.mxu0 %vm1034_vm0, %v12562_v40  ;;  %4035 = vmatpush1.bf16.msra.mxu0 %v10840_v10 }
 0x5ce   : > { %4036 = vmatprep.subr.bf16.mxu0 %v11091_v32 }
 0x5d1   : > { %4037 = vmatpush1.bf16.msra.mxu0 %v10841_v42 }
 0x5d2   : > { %4274 = vmatprep.subr.bf16.mxu0 %v11091_v32 }
 0x5d4   : > { %3904 = vmatmul.mubr.bf16.gmra.mrb[24].mxu0 %v12572_v43 }
 0x5d5   : > { %9360 = vmatprep.mubr.msk.bf16.mxu0 %vm1034_vm0, %v12574_v17 }
 0x5dc   : > { %3912 = vmatmul.mubr.bf16.gmra.mrb[28].mxu0 %v12580_v19 }
 0x5dd   : > { %9361 = vmatprep.mubr.msk.bf16.mxu0 %vm1034_vm0, %v12582_v45 }
 0x5e4   : > { %3920 = vmatmul.mubr.bf16.gmra.mrb[32].mxu0 %v12587_v16 }
 0x5e5   : > { %9362 = vmatprep.mubr.msk.bf16.mxu0 %vm1034_vm0, %v12589_v46 }
 0x5ec   : > { %3928 = vmatmul.mubr.bf16.gmra.mrb[36].mxu0 %v12594_v33 }
 0x5ed   : > { %9375 = vmatprep.mubr.msk.bf16.mxu0 %vm1034_vm0, %v3649_v37 }
 0x5f4   : > { %4047 = vmatmul.mubr.bf16.vlgmr.msra.gmra.mrb[0].mxu0 %v3648_v48 }
 0x5f5   : > { %4275 = vmatpush1.bf16.msra.mxu0 %v10842_v44  ;;  %9376 = vmatprep.mubr.msk.bf16.mxu0 %vm1034_vm0, %v3651_v51 }
 0x5f6   : > { %4276 = vmatprep.subr.bf16.mxu0 %v11091_v32 }
 0x5f9   : > { %4277 = vmatpush1.bf16.msra.mxu0 %v10843_v53 }
 0x5fa   : > { %4278 = vmatprep.subr.bf16.mxu0 %v11091_v32 }
 0x5fc   : > { %4055 = vmatmul.mubr.bf16.gmra.mrb[4].mxu0 %v3650_v41 }
 0x5fd   : > { %9377 = vmatprep.mubr.msk.bf16.mxu0 %vm1034_vm0, %v12446_v5  ;;  %4279 = vmatpush1.bf16.msra.mxu0 %v10844_v35  ;;  %v12722_v5 = vld [vmem:[%s14505_s9] ss:$0 sm:$0xff] }
 0x5fe   : > { %4280 = vmatprep.subr.bf16.mxu0 %v11091_v32 }
 0x601   : > { %4281 = vmatpush1.bf16.msra.mxu0 %v10845_v50 }
 0x602   : > { %4282 = vmatprep.subr.bf16.mxu0 %v11091_v32  ;;  %v10849_v32 = vld [vmem:[%s14504_s8 + $0xf8] sm:$0xff]  }
 0x604   : > { %4063 = vmatmul.mubr.bf16.gmra.mrb[8].mxu0 %v12482_v34 }
 0x605   : > { %9378 = vmatprep.mubr.msk.bf16.mxu0 %vm1034_vm0, %v12487_v15  ;;  %4283 = vmatpush1.bf16.msra.mxu0 %v10846_v52 }
 0x606   : > { %4284 = vmatprep.subr.bf16.mxu0 %v12626_v58 }
 0x609   : > { %4285 = vmatpush1.bf16.msra.mxu0 %v10847_v54 }
 0x60a   : > { %4286 = vmatprep.subr.bf16.mxu0 %v12626_v58 }
 0x60c   : > { %4071 = vmatmul.mubr.bf16.gmra.mrb[12].mxu0 %v12497_v18 }
 0x60d   : > { %9379 = vmatprep.mubr.msk.bf16.mxu0 %vm1034_vm0, %v12502_v20  ;;  %4287 = vmatpush1.bf16.msra.mxu0 %v10848_v55 }
 0x60e   : > { %4288 = vmatprep.subr.bf16.mxu0 %v12626_v58 }
 0x611   : > { %4289 = vmatpush1.bf16.msra.mxu0 %v10849_v32 }
 0x612   : > { %4290 = vmatprep.subr.bf16.mxu0 %v12626_v58 }
 0x614   : > { %4079 = vmatmul.mubr.bf16.gmra.mrb[16].mxu0 %v12512_v22 }
 0x615   : > { %9380 = vmatprep.mubr.msk.bf16.mxu0 %vm1034_vm0, %v12517_v24  ;;  %4291 = vmatpush1.bf16.msra.mxu0 %v10850_v47 }
 0x616   : > { %4292 = vmatprep.subr.bf16.mxu0 %v12626_v58 }
 0x619   : > { %4293 = vmatpush1.bf16.msra.mxu0 %v10851_v59 }
 0x61a   : > { %4294 = vmatprep.subr.bf16.mxu0 %v12626_v58 }
 0x61c   : > { %4087 = vmatmul.mubr.bf16.gmra.mrb[20].mxu0 %v12527_v25 }
 0x61d   : > { %9381 = vmatprep.mubr.msk.bf16.mxu0 %vm1034_vm0, %v12532_v29  ;;  %4295 = vmatpush1.bf16.msra.mxu0 %v10852_v60 }
 0x61e   : > { %4296 = vmatprep.subr.bf16.mxu0 %v12626_v58 }
 0x621   : > { %4297 = vmatpush1.bf16.msra.mxu0 %v10853_v61 }
 0x622   : > { %5411 = vmatprep.subr.bf16.mxu0 %v12626_v58 }
 0x624   : > { %4095 = vmatmul.mubr.bf16.gmra.mrb[24].mxu0 %v12542_v31 }
 0x625   : > { %9382 = vmatprep.mubr.msk.bf16.mxu0 %vm1034_vm0, %v12547_v38 }
 0x62c   : > { %4103 = vmatmul.mubr.bf16.gmra.mrb[28].mxu0 %v12557_v39 }
 0x62d   : > { %9383 = vmatprep.mubr.msk.bf16.mxu0 %vm1034_vm0, %v12562_v40 }
 0x634   : > { %4111 = vmatmul.mubr.bf16.gmra.mrb[32].mxu0 %v12572_v43 }
 0x635   : > { %9384 = vmatprep.mubr.msk.bf16.mxu0 %vm1034_vm0, %v12574_v17 }
 0x63c   : > { %4119 = vmatmul.mubr.bf16.gmra.mrb[36].mxu0 %v12580_v19 }
 0x63d   : > { %9421 = vmatprep.mubr.msk.bf16.mxu0 %vm1034_vm0, %v12502_v20 }
 0x644   : > { %4307 = vmatmul.mubr.bf16.vlgmr.msra.gmra.mrb[0].mxu0 %v12512_v22 }
 0x645   : > { %9422 = vmatprep.mubr.msk.bf16.mxu0 %vm1034_vm0, %v12517_v24 }
 0x64c   : > { %4315 = vmatmul.mubr.bf16.gmra.mrb[4].mxu0 %v12527_v25 }
 0x64d   : > { %9423 = vmatprep.mubr.msk.bf16.mxu0 %vm1034_vm0, %v12532_v29 }
 0x654   : > { %4323 = vmatmul.mubr.bf16.gmra.mrb[8].mxu0 %v12542_v31 }
 0x655   : > { %9424 = vmatprep.mubr.msk.bf16.mxu0 %vm1034_vm0, %v12547_v38 }
 0x65c   : > { %4331 = vmatmul.mubr.bf16.gmra.mrb[12].mxu0 %v12557_v39 }
 0x65d   : > { %9425 = vmatprep.mubr.msk.bf16.mxu0 %vm1034_vm0, %v12562_v40 }
 0x664   : > { %4339 = vmatmul.mubr.bf16.gmra.mrb[16].mxu0 %v12572_v43 }
 0x665   : > { %9426 = vmatprep.mubr.msk.bf16.mxu0 %vm1034_vm0, %v12574_v17 }
 0x66c   : > { %4347 = vmatmul.mubr.bf16.gmra.mrb[20].mxu0 %v12580_v19 }
 0x66d   : > { %9427 = vmatprep.mubr.msk.bf16.mxu0 %vm1034_vm0, %v12582_v45 }
 0x674   : > { %4355 = vmatmul.mubr.bf16.gmra.mrb[24].mxu0 %v12587_v16 }
 0x675   : > { %9428 = vmatprep.mubr.msk.bf16.mxu0 %vm1034_vm0, %v12589_v46 }
 0x67c   : > { %4363 = vmatmul.mubr.bf16.gmra.mrb[28].mxu0 %v12594_v33 }
 0x67d   : > { %9429 = vmatprep.mubr.msk.bf16.mxu0 %vm1034_vm0, %v12696_v28 }
 0x684   : > { %4371 = vmatmul.mubr.bf16.gmra.mrb[32].mxu0 %v12701_v0 }
 0x685   : > { %9430 = vmatprep.mubr.msk.bf16.mxu0 %vm1034_vm0, %v12703_v2 }
 0x68c   : > { %4379 = vmatmul.mubr.bf16.gmra.mrb[36].mxu0 %v12708_v27 }
 0x717   : > { %v4308_v6 = vpop.f32.mrb[0].mxu0 }
 0x718   : > { %v4414_v56 = vmul.f32 %v12722_v5, %v4308_v6  ;;  %v4310_v7 = vpop.f32.mrb[1].mxu0 }
 0x719   : > { %v4311_v8 = vpop.f32.mrb[2].mxu0 }
 0x71a   : > { %v4441_v9 = vadd.f32 %v12727_v63, %v4414_v56  ;;  %v4415_v12 = vmul.f32 %v12722_v5, %v4311_v8  ;;  %v4313_v13 = vpop.f32.mrb[3].mxu0 }
 0x71c   : > { %v4442_v34 = vadd.f32 %v12727_v63, %v4415_v12  ;;  %v4461_v14 = vmax.f32 %v4441_v9, 0.0 }
 0x71e   : > { %v4462_v15 = vmax.f32 %v4442_v34, 0.0 }
 0x71f   : > { %v4316_v3 = vpop.f32.mrb[4].mxu0 }
 0x720   : > { %v4416_v18 = vmul.f32 %v12722_v5, %v4316_v3  ;;  %v4318_v49 = vpop.f32.mrb[5].mxu0  ;;  %v4481_v20 = vpack.c.bf16 %v4462_v15, %v4461_v14 }
 0x721   : > { %v4319_v21 = vpop.f32.mrb[6].mxu0 }
 0x722   : > { %v4443_v22 = vadd.f32 %v12727_v63, %v4416_v18  ;;  %v4417_v23 = vmul.f32 %v12722_v5, %v4319_v21  ;;  %v4321_v24 = vpop.f32.mrb[7].mxu0  ;;  %4503 = vmatpush1.bf16.msra.mxu1 %v4481_v20 }
 0x723   : > { %4504 = vmatprep.subr.bf16.mxu1 %v12626_v58 }
 0x724   : > { %v4444_v57 = vadd.f32 %v12727_v63, %v4417_v23  ;;  %v4463_v25 = vmax.f32 %v4443_v22, 0.0 }
 0x726   : > { %v4464_v26 = vmax.f32 %v4444_v57, 0.0 }
 0x727   : > { %v4324_v29 = vpop.f32.mrb[8].mxu0 }
 0x728   : > { %v4418_v30 = vmul.f32 %v12722_v5, %v4324_v29  ;;  %v4326_v31 = vpop.f32.mrb[9].mxu0  ;;  %v4482_v36 = vpack.c.bf16 %v4464_v26, %v4463_v25 }
 0x729   : > { %v4327_v38 = vpop.f32.mrb[10].mxu0 }
 0x72a   : > { %v4445_v11 = vadd.f32 %v12727_v63, %v4418_v30  ;;  %v4419_v39 = vmul.f32 %v12722_v5, %v4327_v38  ;;  %v4329_v10 = vpop.f32.mrb[11].mxu0  ;;  %4505 = vmatpush1.bf16.msra.mxu1 %v4482_v36 }
 0x72b   : > { %4506 = vmatprep.subr.bf16.mxu1 %v12626_v58 }
 0x72c   : > { %v4446_v40 = vadd.f32 %v12727_v63, %v4419_v39  ;;  %v4465_v42 = vmax.f32 %v4445_v11, 0.0 }
 0x72e   : > { %v4466_v43 = vmax.f32 %v4446_v40, 0.0 }
 0x72f   : > { %v4332_v17 = vpop.f32.mrb[12].mxu0 }
 0x730   : > { %v4420_v19 = vmul.f32 %v12722_v5, %v4332_v17  ;;  %v4334_v45 = vpop.f32.mrb[13].mxu0  ;;  %v4483_v37 = vpack.c.bf16 %v4466_v43, %v4465_v42 }
 0x731   : > { %v4335_v48 = vpop.f32.mrb[14].mxu0 }
 0x732   : > { %v4447_v44 = vadd.f32 %v12727_v63, %v4420_v19  ;;  %v4421_v51 = vmul.f32 %v12722_v5, %v4335_v48  ;;  %v4337_v53 = vpop.f32.mrb[15].mxu0  ;;  %4507 = vmatpush1.bf16.msra.mxu1 %v4483_v37 }
 0x733   : > { %4508 = vmatprep.subr.bf16.mxu1 %v12626_v58 }
 0x734   : > { %v4448_v41 = vadd.f32 %v12727_v63, %v4421_v51  ;;  %v4467_v35 = vmax.f32 %v4447_v44, 0.0 }
 0x736   : > { %v4468_v50 = vmax.f32 %v4448_v41, 0.0 }
 0x737   : > { %v4340_v52 = vpop.f32.mrb[16].mxu0 }
 0x738   : > { %v4422_v54 = vmul.f32 %v12722_v5, %v4340_v52  ;;  %v4342_v55 = vpop.f32.mrb[17].mxu0  ;;  %v4484_v32 = vpack.c.bf16 %v4468_v50, %v4467_v35 }
 0x739   : > { %v4343_v47 = vpop.f32.mrb[18].mxu0 }
 0x73a   : > { %v4449_v59 = vadd.f32 %v12727_v63, %v4422_v54  ;;  %v4423_v60 = vmul.f32 %v12722_v5, %v4343_v47  ;;  %v4345_v61 = vpop.f32.mrb[19].mxu0  ;;  %4509 = vmatpush1.bf16.msra.mxu1 %v4484_v32 }
 0x73b   : > { %4510 = vmatprep.subr.bf16.mxu1 %v12626_v58 }
 0x73c   : > { %v4450_v4 = vadd.f32 %v12727_v63, %v4423_v60  ;;  %v4469_v6 = vmax.f32 %v4449_v59, 0.0 }
 0x73e   : > { %v4470_v56 = vmax.f32 %v4450_v4, 0.0 }
 0x73f   : > { %v4348_v7 = vpop.f32.mrb[20].mxu0 }
 0x740   : > { %v4424_v8 = vmul.f32 %v12722_v5, %v4348_v7  ;;  %v4350_v9 = vpop.f32.mrb[21].mxu0  ;;  %v4485_v12 = vpack.c.bf16 %v4470_v56, %v4469_v6 }
 0x741   : > { %v4351_v13 = vpop.f32.mrb[22].mxu0 }
 0x742   : > { %v4451_v34 = vadd.f32 %v12727_v63, %v4424_v8  ;;  %v4425_v14 = vmul.f32 %v12722_v5, %v4351_v13  ;;  %v4353_v15 = vpop.f32.mrb[23].mxu0  ;;  %4511 = vmatpush1.bf16.msra.mxu1 %v4485_v12  ;;  %v9433_v13 = vcombine.low %v12714_v62, %v12714_v62  ;;  %v10858_v62 = vld [vmem:[%s14504_s8 + $0x70] sm:$0xff]  }
 0x743   : > { %4512 = vmatprep.subr.bf16.mxu1 %v12626_v58  ;;  %v10861_v15 = vld [vmem:[%s14504_s8 + $0x88] sm:$0xff]  }
 0x744   : > { %v4452_v3 = vadd.f32 %v12727_v63, %v4425_v14  ;;  %v4471_v18 = vmax.f32 %v4451_v34, 0.0  ;;  %v10856_v34 = vld [vmem:[%s14504_s8 + $0x60] sm:$0xff]  }
 0x745   : > { %v10860_v14 = vld [vmem:[%s14504_s8 + $0x80] sm:$0xff]  }
 0x746   : > { %v4472_v49 = vmax.f32 %v4452_v3, 0.0  ;;  %v10862_v3 = vld [vmem:[%s14504_s8 + $0x90] sm:$0xff]  }
 0x747   : > { %v4356_v20 = vpop.f32.mrb[24].mxu0 }
 0x748   : > { %v4426_v21 = vmul.f32 %v12722_v5, %v4356_v20  ;;  %v4358_v22 = vpop.f32.mrb[25].mxu0  ;;  %v4486_v23 = vpack.c.bf16 %v4472_v49, %v4471_v18  ;;  %v10863_v18 = vld [vmem:[%s14504_s8 + $0x98] sm:$0xff]   ;;  %v10864_v49 = vld [vmem:[%s14504_s8 + $0xa0] sm:$0xff]   ;;  %v10865_v20 = vld [vmem:[%s14504_s8 + $0xa8] sm:$0xff]  }
 0x749   : > { %v4359_v24 = vpop.f32.mrb[26].mxu0  ;;  %v10867_v22 = vld [vmem:[%s14504_s8 + $0xb8] sm:$0xff]  }
 0x74a   : > { %v4453_v57 = vadd.f32 %v12727_v63, %v4426_v21  ;;  %v4427_v25 = vmul.f32 %v12722_v5, %v4359_v24  ;;  %v4361_v26 = vpop.f32.mrb[27].mxu0  ;;  %4513 = vmatpush1.bf16.msra.mxu1 %v4486_v23  ;;  %v10866_v21 = vld [vmem:[%s14504_s8 + $0xb0] sm:$0xff]   ;;  %v10868_v23 = vld [vmem:[%s14504_s8] sm:$0xff]   ;;  %v10869_v24 = vld [vmem:[%s14504_s8 + $0x8] sm:$0xff]  }
 0x74b   : > { %4514 = vmatprep.subr.bf16.mxu1 %v12626_v58  ;;  %v10871_v26 = vld [vmem:[%s14504_s8 + $0x18] sm:$0xff]  }
 0x74c   : > { %v4454_v29 = vadd.f32 %v12727_v63, %v4427_v25  ;;  %v4473_v30 = vmax.f32 %v4453_v57, 0.0  ;;  %v10870_v57 = vld [vmem:[%s14504_s8 + $0x10] sm:$0xff]   ;;  %v12844_v25 = vld [vmem:[#allocation6 + $0xe8] sm:$0xff] }
 0x74e   : > { %v4474_v31 = vmax.f32 %v4454_v29, 0.0  ;;  %v12854_v29 = vld [vmem:[#allocation6 + $0xe0] sm:$0xff] }
 0x74f   : > { %v4364_v36 = vpop.f32.mrb[28].mxu0 }
 0x750   : > { %v4428_v38 = vmul.f32 %v12722_v5, %v4364_v36  ;;  %v4366_v11 = vpop.f32.mrb[29].mxu0  ;;  %v4487_v39 = vpack.c.bf16 %v4474_v31, %v4473_v30  ;;  %v10872_v30 = vld [vmem:[%s14504_s8 + $0x20] sm:$0xff]   ;;  %v12859_v31 = vld [vmem:[#allocation6 + $0xf8] sm:$0xff]  ;;  %v10873_v36 = vld [vmem:[%s14504_s8 + $0x28] sm:$0xff]  }
 0x751   : > { %v4367_v10 = vpop.f32.mrb[30].mxu0  ;;  %v10874_v11 = vld [vmem:[%s14504_s8 + $0x30] sm:$0xff]  }
 0x752   : > { %v4455_v40 = vadd.f32 %v12727_v63, %v4428_v38  ;;  %v4429_v42 = vmul.f32 %v12722_v5, %v4367_v10  ;;  %v4369_v43 = vpop.f32.mrb[31].mxu0  ;;  %4515 = vmatpush1.bf16.msra.mxu1 %v4487_v39  ;;  %v12869_v38 = vld [vmem:[#allocation6 + $0xf0] sm:$0xff]  ;;  %v12874_v39 = vld [vmem:[#allocation6 + $0x108] sm:$0xff]  ;;  %v10875_v10 = vld [vmem:[%s14504_s8 + $0x38] sm:$0xff]  }
 0x753   : > { %4516 = vmatprep.subr.bf16.mxu1 %v12626_v58  ;;  %v12889_v43 = vld [vmem:[#allocation6 + $0x118] sm:$0xff] }
 0x754   : > { %v4456_v17 = vadd.f32 %v12727_v63, %v4429_v42  ;;  %v4475_v19 = vmax.f32 %v4455_v40, 0.0  ;;  %v12884_v40 = vld [vmem:[#allocation6 + $0x100] sm:$0xff] }
 0x755   : > { %v10876_v42 = vld [vmem:[%s14504_s8 + $0x40] sm:$0xff]  }
 0x756   : > { %v4476_v45 = vmax.f32 %v4456_v17, 0.0  ;;  %v10877_v17 = vld [vmem:[%s14504_s8 + $0x48] sm:$0xff]  }
 0x757   : > { %v4372_v37 = vpop.f32.mrb[32].mxu0 }
 0x758   : > { %v4430_v48 = vmul.f32 %v12722_v5, %v4372_v37  ;;  %v4374_v44 = vpop.f32.mrb[33].mxu0  ;;  %v4488_v51 = vpack.c.bf16 %v4476_v45, %v4475_v19  ;;  %v12899_v19 = vld [vmem:[#allocation6 + $0x110] sm:$0xff]  ;;  %v12904_v37 = vld [vmem:[#allocation6 + $0x128] sm:$0xff] }
 0x759   : > { %v4375_v53 = vpop.f32.mrb[34].mxu0  ;;  %v10878_v45 = vld [vmem:[%s14504_s8 + $0x50] sm:$0xff]   ;;  %v12914_v44 = vld [vmem:[#allocation6 + $0x120] sm:$0xff] }
 0x75a   : > { %v4457_v41 = vadd.f32 %v12727_v63, %v4430_v48  ;;  %v4431_v35 = vmul.f32 %v12722_v5, %v4375_v53  ;;  %v4377_v50 = vpop.f32.mrb[35].mxu0  ;;  %4517 = vmatpush1.bf16.msra.mxu1 %v4488_v51  ;;  %v10879_v48 = vld [vmem:[%s14504_s8 + $0x58] sm:$0xff]   ;;  %v12922_v53 = vld [vmem:[#allocation6 + $0x130] sm:$0xff] }
 0x75b   : > { %4518 = vmatprep.subr.bf16.mxu1 %v12626_v58  ;;  %v12916_v51 = vld [vmem:[#allocation6 + $0x138] sm:$0xff] }
 0x75c   : > { %v4458_v52 = vadd.f32 %v12727_v63, %v4431_v35  ;;  %v4477_v54 = vmax.f32 %v4457_v41, 0.0  ;;  %v12924_v41 = vld [vmem:[#allocation6 + $0x148] sm:$0xff]  ;;  %v12929_v35 = vld [vmem:[#allocation6 + $0x140] sm:$0xff]  ;;  %v12931_v50 = vld [vmem:[#allocation6 + $0x158] sm:$0xff] }
 0x75e   : > { %v4478_v55 = vmax.f32 %v4458_v52, 0.0  ;;  %v12936_v52 = vld [vmem:[#allocation6 + $0x150] sm:$0xff] }
 0x75f   : > { %v4380_v32 = vpop.f32.mrb[36].mxu0 }
 0x760   : > { %v4432_v47 = vmul.f32 %v12722_v5, %v4380_v32  ;;  %v4382_v59 = vpop.f32.mrb[37].mxu0  ;;  %v4489_v60 = vpack.c.bf16 %v4478_v55, %v4477_v54  ;;  %v11045_v54 = vld [vmem:[#allocation6 + $0xa8] sm:$0xff]  ;;  %v10880_v55 = vld [vmem:[%s14504_s8 + $0xc0] sm:$0xff]  }
 0x761   : > { %v4383_v61 = vpop.f32.mrb[38].mxu0  ;;  %v10881_v32 = vld [vmem:[%s14504_s8 + $0xc8] sm:$0xff]   ;;  %v10890_v59 = vld [vmem:[%s14504_s8 + $0x110] sm:$0xff]  }
 0x762   : > { %v4459_v4 = vadd.f32 %v12727_v63, %v4432_v47  ;;  %v4433_v6 = vmul.f32 %v12722_v5, %v4383_v61  ;;  %v4385_v56 = vpop.f32.mrb[39].mxu0  ;;  %4519 = vmatpush1.bf16.msra.mxu1 %v4489_v60  ;;  %v10857_v5 = vld [vmem:[%s14504_s8 + $0x68] sm:$0xff]   ;;  %v10882_v47 = vld [vmem:[%s14504_s8 + $0xd0] sm:$0xff]   ;;  %v10891_v60 = vld [vmem:[%s14504_s8 + $0x118] sm:$0xff]  }
 0x763   : > { %4520 = vmatprep.subr.bf16.mxu1 %v12626_v58  ;;  %v10892_v61 = vld [vmem:[%s14504_s8 + $0x60] sm:$0xff]  }
 0x764   : > { %v4460_v7 = vadd.f32 %v12727_v63, %v4433_v6  ;;  %v4479_v8 = vmax.f32 %v4459_v4, 0.0  ;;  %v10859_v63 = vld [vmem:[%s14504_s8 + $0x78] sm:$0xff]   ;;  %v10893_v4 = vld [vmem:[%s14504_s8 + $0x68] sm:$0xff]  }
 0x766   : > { %v4480_v9 = vmax.f32 %v4460_v7, 0.0 }
 0x768   : > { %v4490_v12 = vpack.c.bf16 %v4480_v9, %v4479_v8  ;;  %v10894_v9 = vld [vmem:[%s14504_s8 + $0x70] sm:$0xff]  }
 0x76a   : > { %4521 = vmatpush1.bf16.msra.mxu1 %v4490_v12 }
 0x76b   : > { %4734 = vmatprep.subr.bf16.mxu1 %v12626_v58 }
 0x76d   : > { %4535 = vmatmul.mubr.bf16.vlgmr.msra.gmra.mrb[0].mxu1 %v9433_v13 }
 0x76e   : > { %4735 = vmatpush1.bf16.msra.mxu1 %v10856_v34  ;;  %9472 = vmatprep.mubr.msk.bf16.mxu1 %vm1034_vm0, %v12696_v28 }
 0x76f   : > { %4736 = vmatprep.subr.bf16.mxu1 %v12626_v58 }
 0x772   : > { %4737 = vmatpush1.bf16.msra.mxu1 %v10857_v5 }
 0x773   : > { %4738 = vmatprep.subr.bf16.mxu1 %v12626_v58 }
 0x776   : > { %4739 = vmatpush1.bf16.msra.mxu1 %v10858_v62  ;;  %v10895_v62 = vld [vmem:[%s14504_s8 + $0x78] sm:$0xff]  }
 0x777   : > { %4740 = vmatprep.subr.bf16.mxu1 %v12626_v58 }
 0x77a   : > { %4741 = vmatpush1.bf16.msra.mxu1 %v10859_v63  ;;  %v10896_v63 = vld [vmem:[%s14504_s8 + $0x80] sm:$0xff]  }
 0x77b   : > { %4742 = vmatprep.subr.bf16.mxu1 %v12626_v58 }
 0x77e   : > { %4743 = vmatpush1.bf16.msra.mxu1 %v10860_v14  ;;  %v10897_v14 = vld [vmem:[%s14504_s8 + $0x88] sm:$0xff]  }
 0x77f   : > { %4744 = vmatprep.subr.bf16.mxu1 %v12626_v58 }
 0x782   : > { %4745 = vmatpush1.bf16.msra.mxu1 %v10861_v15  ;;  %v10898_v15 = vld [vmem:[%s14504_s8 + $0x90] sm:$0xff]  }
 0x783   : > { %4746 = vmatprep.subr.bf16.mxu1 %v12626_v58 }
 0x786   : > { %4747 = vmatpush1.bf16.msra.mxu1 %v10862_v3  ;;  %v10899_v3 = vld [vmem:[%s14504_s8 + $0x98] sm:$0xff]  }
 0x787   : > { %4748 = vmatprep.subr.bf16.mxu1 %v12626_v58 }
 0x78a   : > { %4749 = vmatpush1.bf16.msra.mxu1 %v10863_v18  ;;  %v10900_v18 = vld [vmem:[%s14504_s8 + $0xa0] sm:$0xff]  }
 0x78b   : > { %4750 = vmatprep.subr.bf16.mxu1 %v12626_v58 }
 0x78e   : > { %4751 = vmatpush1.bf16.msra.mxu1 %v10864_v49  ;;  %v10901_v49 = vld [vmem:[%s14504_s8 + $0xa8] sm:$0xff]  }
 0x78f   : > { %4752 = vmatprep.subr.bf16.mxu1 %v12626_v58 }
 0x792   : > { %4753 = vmatpush1.bf16.msra.mxu1 %v10865_v20  ;;  %v10902_v20 = vld [vmem:[%s14504_s8 + $0xb0] sm:$0xff]  }
 0x793   : > { %4754 = vmatprep.subr.bf16.mxu1 %v12626_v58 }
 0x796   : > { %4755 = vmatpush1.bf16.msra.mxu1 %v10866_v21  ;;  %v10903_v21 = vld [vmem:[%s14504_s8 + $0xb8] sm:$0xff]  }
 0x797   : > { %4756 = vmatprep.subr.bf16.mxu1 %v12626_v58 }
 0x79a   : > { %4757 = vmatpush1.bf16.msra.mxu1 %v10867_v22  ;;  %v13096_v22 = vld [vmem:[#allocation6 + $0x168] sm:$0xff] }
 0x79b   : > { %4925 = vmatprep.subr.bf16.mxu1 %v12626_v58 }
 0x79d   : > { %4767 = vmatmul.mubr.bf16.vlgmr.msra.gmra.mrb[4].mxu1 %v12701_v0 }
 0x79e   : > { %4926 = vmatpush1.bf16.msra.mxu1 %v10868_v23  ;;  %9473 = vmatprep.mubr.msk.bf16.mxu1 %vm1034_vm0, %v12703_v2  ;;  %v13101_v23 = vld [vmem:[#allocation6 + $0x160] sm:$0xff] }
 0x79f   : > { %4927 = vmatprep.subr.bf16.mxu1 %v12626_v58 }
 0x7a2   : > { %4928 = vmatpush1.bf16.msra.mxu1 %v10869_v24  ;;  %v13103_v24 = vld [vmem:[#allocation6 + $0x178] sm:$0xff] }
 0x7a3   : > { %4929 = vmatprep.subr.bf16.mxu1 %v12626_v58 }
 0x7a5   : > { %4775 = vmatmul.mubr.bf16.gmra.mrb[8].mxu1 %v12708_v27 }
 0x7a6   : > { %9474 = vmatprep.mubr.msk.bf16.mxu1 %vm1034_vm0, %v12844_v25  ;;  %4930 = vmatpush1.bf16.msra.mxu1 %v10870_v57  ;;  %v13108_v57 = vld [vmem:[#allocation6 + $0x170] sm:$0xff] }
 0x7a7   : > { %4931 = vmatprep.subr.bf16.mxu1 %v12626_v58 }
 0x7aa   : > { %4932 = vmatpush1.bf16.msra.mxu1 %v10871_v26  ;;  %v10905_v26 = vld [vmem:[%s14504_s8 + $0x8] sm:$0xff]  }
 0x7ab   : > { %4933 = vmatprep.subr.bf16.mxu1 %v12626_v58 }
 0x7ad   : > { %4783 = vmatmul.mubr.bf16.gmra.mrb[12].mxu1 %v12854_v29 }
 0x7ae   : > { %9475 = vmatprep.mubr.msk.bf16.mxu1 %vm1034_vm0, %v12859_v31  ;;  %4934 = vmatpush1.bf16.msra.mxu1 %v10872_v30  ;;  %v13126_v30 = vld [vmem:[#allocation6 + $0x188] sm:$0xff] }
 0x7af   : > { %4935 = vmatprep.subr.bf16.mxu1 %v12626_v58 }
 0x7b2   : > { %4936 = vmatpush1.bf16.msra.mxu1 %v10873_v36  ;;  %v13136_v36 = vld [vmem:[#allocation6 + $0x180] sm:$0xff] }
 0x7b3   : > { %4937 = vmatprep.subr.bf16.mxu1 %v12626_v58 }
 0x7b5   : > { %4791 = vmatmul.mubr.bf16.gmra.mrb[16].mxu1 %v12869_v38 }
 0x7b6   : > { %9476 = vmatprep.mubr.msk.bf16.mxu1 %vm1034_vm0, %v12874_v39  ;;  %4938 = vmatpush1.bf16.msra.mxu1 %v10874_v11  ;;  %v13141_v11 = vld [vmem:[#allocation6 + $0x198] sm:$0xff] }
 0x7b7   : > { %4939 = vmatprep.subr.bf16.mxu1 %v12626_v58 }
 0x7ba   : > { %4940 = vmatpush1.bf16.msra.mxu1 %v10875_v10  ;;  %v13151_v10 = vld [vmem:[#allocation6 + $0x190] sm:$0xff] }
 0x7bb   : > { %4941 = vmatprep.subr.bf16.mxu1 %v12626_v58 }
 0x7bd   : > { %4799 = vmatmul.mubr.bf16.gmra.mrb[20].mxu1 %v12884_v40 }
 0x7be   : > { %9477 = vmatprep.mubr.msk.bf16.mxu1 %vm1034_vm0, %v12889_v43  ;;  %4942 = vmatpush1.bf16.msra.mxu1 %v10876_v42  ;;  %v13156_v42 = vld [vmem:[#allocation6 + $0x1a8] sm:$0xff] }
 0x7bf   : > { %4943 = vmatprep.subr.bf16.mxu1 %v12626_v58 }
 0x7c2   : > { %4944 = vmatpush1.bf16.msra.mxu1 %v10877_v17  ;;  %v13168_v17 = vld [vmem:[#allocation6 + $0x1a0] sm:$0xff] }
 0x7c3   : > { %4945 = vmatprep.subr.bf16.mxu1 %v12626_v58 }
 0x7c5   : > { %4807 = vmatmul.mubr.bf16.gmra.mrb[24].mxu1 %v12899_v19 }
 0x7c6   : > { %9478 = vmatprep.mubr.msk.bf16.mxu1 %vm1034_vm0, %v12904_v37  ;;  %4946 = vmatpush1.bf16.msra.mxu1 %v10878_v45  ;;  %v13173_v45 = vld [vmem:[#allocation6 + $0x1b8] sm:$0xff] }
 0x7c7   : > { %4947 = vmatprep.subr.bf16.mxu1 %v12626_v58 }
 0x7ca   : > { %4948 = vmatpush1.bf16.msra.mxu1 %v10879_v48 }
 0x7cb   : > { %5184 = vmatprep.subr.bf16.mxu1 %v12626_v58 }
 0x7cd   : > { %4815 = vmatmul.mubr.bf16.gmra.mrb[28].mxu1 %v12914_v44 }
 0x7ce   : > { %9479 = vmatprep.mubr.msk.bf16.mxu1 %vm1034_vm0, %v12916_v51 }
 0x7d5   : > { %4823 = vmatmul.mubr.bf16.gmra.mrb[32].mxu1 %v12922_v53 }
 0x7d6   : > { %9480 = vmatprep.mubr.msk.bf16.mxu1 %vm1034_vm0, %v12924_v41 }
 0x7dd   : > { %4831 = vmatmul.mubr.bf16.gmra.mrb[36].mxu1 %v12929_v35 }
 0x7de   : > { %9481 = vmatprep.mubr.msk.bf16.mxu1 %vm1034_vm0, %v12931_v50 }
 0x7e5   : > { %4839 = vmatmul.mubr.bf16.gmra.mrb[40].mxu1 %v12936_v52 }
 0x7e6   : > { %9494 = vmatprep.mubr.msk.bf16.mxu1 %vm1034_vm0, %v11045_v54 }
 0x7ed   : > { %4958 = vmatmul.mubr.bf16.vlgmr.msra.gmra.mrb[4].mxu1 %v12587_v16  ;;  %v10883_v16 = vld [vmem:[%s14504_s8 + $0xd8] sm:$0xff]  }
 0x7ee   : > { %5185 = vmatpush1.bf16.msra.mxu1 %v10880_v55  ;;  %9495 = vmatprep.mubr.msk.bf16.mxu1 %vm1034_vm0, %v12589_v46  ;;  %v10884_v46 = vld [vmem:[%s14504_s8 + $0xe0] sm:$0xff]   ;;  %v13190_v55 = vld [vmem:[#allocation6 + $0x1c8] sm:$0xff] }
 0x7ef   : > { %5186 = vmatprep.subr.bf16.mxu1 %v12626_v58 }
 0x7f2   : > { %5187 = vmatpush1.bf16.msra.mxu1 %v10881_v32 }
 0x7f3   : > { %5188 = vmatprep.subr.bf16.mxu1 %v12626_v58 }
 0x7f5   : > { %4966 = vmatmul.mubr.bf16.gmra.mrb[8].mxu1 %v12594_v33  ;;  %v10885_v33 = vld [vmem:[%s14504_s8 + $0xe8] sm:$0xff]  }
 0x7f6   : > { %9496 = vmatprep.mubr.msk.bf16.mxu1 %vm1034_vm0, %v12696_v28  ;;  %5189 = vmatpush1.bf16.msra.mxu1 %v10882_v47  ;;  %v10886_v28 = vld [vmem:[%s14504_s8 + $0xf0] sm:$0xff]  }
 0x7f7   : > { %5190 = vmatprep.subr.bf16.mxu1 %v12626_v58 }
 0x7fa   : > { %5191 = vmatpush1.bf16.msra.mxu1 %v10883_v16 }
 0x7fb   : > { %5192 = vmatprep.subr.bf16.mxu1 %v12626_v58 }
 0x7fd   : > { %4974 = vmatmul.mubr.bf16.gmra.mrb[12].mxu1 %v12701_v0  ;;  %v10887_v0 = vld [vmem:[%s14504_s8 + $0xf8] sm:$0xff]  }
 0x7fe   : > { %9497 = vmatprep.mubr.msk.bf16.mxu1 %vm1034_vm0, %v12703_v2  ;;  %5193 = vmatpush1.bf16.msra.mxu1 %v10884_v46  ;;  %v10888_v2 = vld [vmem:[%s14504_s8 + $0x100] sm:$0xff]   ;;  %v10915_v46 = vld [vmem:[%s14504_s8 + $0x58] sm:$0xff]  }
 0x7ff   : > { %5194 = vmatprep.subr.bf16.mxu1 %v12626_v58 }
 0x802   : > { %5195 = vmatpush1.bf16.msra.mxu1 %v10885_v33  ;;  %v13203_v33 = vld [vmem:[#allocation6 + $0x1c0] sm:$0xff] }
 0x803   : > { %5196 = vmatprep.subr.bf16.mxu1 %v12626_v58 }
 0x805   : > { %4982 = vmatmul.mubr.bf16.gmra.mrb[16].mxu1 %v12708_v27  ;;  %v10889_v27 = vld [vmem:[%s14504_s8 + $0x108] sm:$0xff]  }
 0x806   : > { %9498 = vmatprep.mubr.msk.bf16.mxu1 %vm1034_vm0, %v12844_v25  ;;  %5197 = vmatpush1.bf16.msra.mxu1 %v10886_v28  ;;  %v13205_v28 = vld [vmem:[#allocation6 + $0x1d8] sm:$0xff] }
 0x807   : > { %5198 = vmatprep.subr.bf16.mxu1 %v12626_v58 }
 0x80a   : > { %5199 = vmatpush1.bf16.msra.mxu1 %v10887_v0  ;;  %v13211_v0 = vld [vmem:[#allocation6 + $0x1d0] sm:$0xff] }
 0x80b   : > { %5200 = vmatprep.subr.bf16.mxu1 %v12626_v58 }
 0x80d   : > { %4990 = vmatmul.mubr.bf16.gmra.mrb[20].mxu1 %v12854_v29 }
 0x80e   : > { %9499 = vmatprep.mubr.msk.bf16.mxu1 %vm1034_vm0, %v12859_v31  ;;  %5201 = vmatpush1.bf16.msra.mxu1 %v10888_v2  ;;  %v13213_v2 = vld [vmem:[#allocation6 + $0x1e8] sm:$0xff] }
 0x80f   : > { %5202 = vmatprep.subr.bf16.mxu1 %v12626_v58 }
 0x812   : > { %5203 = vmatpush1.bf16.msra.mxu1 %v10889_v27  ;;  %v13218_v27 = vld [vmem:[#allocation6 + $0x1e0] sm:$0xff] }
 0x813   : > { %5204 = vmatprep.subr.bf16.mxu1 %v12626_v58 }
 0x815   : > { %4998 = vmatmul.mubr.bf16.gmra.mrb[24].mxu1 %v12869_v38 }
 0x816   : > { %9500 = vmatprep.mubr.msk.bf16.mxu1 %vm1034_vm0, %v12874_v39  ;;  %5205 = vmatpush1.bf16.msra.mxu1 %v10890_v59  ;;  %v13220_v59 = vld [vmem:[#allocation6 + $0x1f8] sm:$0xff] }
 0x817   : > { %5206 = vmatprep.subr.bf16.mxu1 %v12626_v58 }
 0x81a   : > { %5207 = vmatpush1.bf16.msra.mxu1 %v10891_v60  ;;  %v13225_v60 = vld [vmem:[#allocation6 + $0x1f0] sm:$0xff] }
 0x81b   : > { %5642 = vmatprep.subr.bf16.mxu1 %v12626_v58 }
 0x81d   : > { %5006 = vmatmul.mubr.bf16.gmra.mrb[28].mxu1 %v12884_v40 }
 0x81e   : > { %9501 = vmatprep.mubr.msk.bf16.mxu1 %vm1034_vm0, %v12889_v43 }
 0x825   : > { %5014 = vmatmul.mubr.bf16.gmra.mrb[32].mxu1 %v12899_v19 }
 0x826   : > { %9502 = vmatprep.mubr.msk.bf16.mxu1 %vm1034_vm0, %v12904_v37 }
 0x82d   : > { %5022 = vmatmul.mubr.bf16.gmra.mrb[36].mxu1 %v12914_v44 }
 0x82e   : > { %9503 = vmatprep.mubr.msk.bf16.mxu1 %vm1034_vm0, %v12916_v51 }
 0x835   : > { %5030 = vmatmul.mubr.bf16.gmra.mrb[40].mxu1 %v12922_v53 }
 0x836   : > { %9540 = vmatprep.mubr.msk.bf16.mxu1 %vm1034_vm0, %v12844_v25  ;;  %v10904_v25 = vld [vmem:[%s14504_s8] sm:$0xff]  }
 0x83d   : > { %5217 = vmatmul.mubr.bf16.vlgmr.msra.gmra.mrb[4].mxu1 %v12854_v29  ;;  %v10906_v29 = vld [vmem:[%s14504_s8 + $0x10] sm:$0xff]  }
 0x83e   : > { %5643 = vmatpush1.bf16.msra.mxu1 %v10892_v61  ;;  %9541 = vmatprep.mubr.msk.bf16.mxu1 %vm1034_vm0, %v12859_v31  ;;  %v10907_v31 = vld [vmem:[%s14504_s8 + $0x18] sm:$0xff]   ;;  %v10916_v61 = vld [vmem:[%s14504_s8 + $0xc0] sm:$0xff]  }
 0x83f   : > { %5644 = vmatprep.subr.bf16.mxu1 %v12626_v58 }
 0x840   : > { %v13028_v6 = vpop.f32.mrb[0].mxu1 }
 0x841   : > { %v4546_v56 = vrot.slane %v13028_v6, 1  ;;  %4549 = vrot.lane.b32.xlu0 %v13028_v6, %s11090_s20  ;;  %v4538_v7 = vpop.f32.mrb[1].mxu1  ;;  %v4543_v48 = vrot.slane %v13028_v6, 7  ;;  %v10922_v6 = vld [vmem:[%s14504_s8 + $0xf0] sm:$0xff]  }
 0x842   : > { %v4539_v8 = vpop.f32.mrb[2].mxu1  ;;  %5645 = vmatpush1.bf16.msra.mxu1 %v10893_v4  ;;  %v10917_v4 = vld [vmem:[%s14504_s8 + $0xc8] sm:$0xff]   ;;  %v10923_v7 = vld [vmem:[%s14504_s8 + $0xf8] sm:$0xff]  }
 0x843   : > { %v4548_v12 = vsel %vm1048_vm3, %v4546_v56, 0.0  ;;  %v4540_v13 = vpop.f32.mrb[3].mxu1  ;;  %5646 = vmatprep.subr.bf16.mxu1 %v12626_v58  ;;  %v4545_v54 = vsel %vm914_vm5, 0.0, %v4543_v48  ;;  %v13270_v56 = vld [vmem:[%s14507_s11] sm:$0x77] }
 0x844   : > { %v4555_v34 = vsel %vm4553_vm7, %v4548_v12, 0.0  ;;  %v9553_v8 = vcombine.high %v13270_v56, %v13270_v56  ;;  %v10925_v12 = vld [vmem:[%s14504_s8 + $0x108] sm:$0xff]   ;;  %v10926_v13 = vld [vmem:[%s14504_s8 + $0x110] sm:$0xff]  }
 0x845   : > { %v4557_v5 = vpack.c.bf16 %v11088_v1, %v4555_v34  ;;  %5225 = vmatmul.mubr.bf16.gmra.mrb[8].mxu1 %v12869_v38  ;;  %v10908_v38 = vld [vmem:[%s14504_s8 + $0x20] sm:$0xff]   ;;  %v10927_v34 = vld [vmem:[%s14504_s8 + $0x118] sm:$0xff]  }
 0x846   : > { %9542 = vmatprep.mubr.msk.bf16.mxu1 %vm1034_vm0, %v12874_v39  ;;  %5647 = vmatpush1.bf16.msra.mxu1 %v10894_v9  ;;  %v10909_v39 = vld [vmem:[%s14504_s8 + $0x28] sm:$0xff]   ;;  %v10924_v9 = vld [vmem:[%s14504_s8 + $0x100] sm:$0xff]  }
 0x847   : > { %4559 = vst.msk [vmem:[#allocation7 + $0x18] sm:$0xff] %vm1034_vm0, %v4557_v5  ;;  %5648 = vmatprep.subr.bf16.mxu1 %v12626_v58  ;;  %9554 = vmatprep.mubr.msk.bf16.mxu0 %vm4498_vm6, %v9553_v8  ;;  %v13308_v5 = vld [vmem:[%s14505_s9] ss:$0 sm:$0xff] }
 0x84a   : > { %5649 = vmatpush1.bf16.msra.mxu1 %v10895_v62 }
 0x84b   : > { %5650 = vmatprep.subr.bf16.mxu1 %v12626_v58 }
 0x84d   : > { %5233 = vmatmul.mubr.bf16.gmra.mrb[12].mxu1 %v12884_v40  ;;  %v10910_v40 = vld [vmem:[%s14504_s8 + $0x30] sm:$0xff]  }
 0x84e   : > { %9543 = vmatprep.mubr.msk.bf16.mxu1 %vm1034_vm0, %v12889_v43  ;;  %5651 = vmatpush1.bf16.msra.mxu1 %v10896_v63  ;;  %v13158_v43 = vld [vmem:[#allocation7] sm:$0xff] }
 0x84f   : > { %5652 = vmatprep.subr.bf16.mxu1 %v12626_v58  ;;  %v13315_v63 = vld [vmem:[%s14506_s10] ss:$0 sm:$0xff] }
 0x852   : > { %5653 = vmatpush1.bf16.msra.mxu1 %v10897_v14 }
 0x853   : > { %5654 = vmatprep.subr.bf16.mxu1 %v12626_v58 }
 0x855   : > { %5241 = vmatmul.mubr.bf16.gmra.mrb[16].mxu1 %v12899_v19  ;;  %v10912_v19 = vld [vmem:[%s14504_s8 + $0x40] sm:$0xff]  }
 0x856   : > { %9544 = vmatprep.mubr.msk.bf16.mxu1 %vm1034_vm0, %v12904_v37  ;;  %5655 = vmatpush1.bf16.msra.mxu1 %v10898_v15  ;;  %v10913_v37 = vld [vmem:[%s14504_s8 + $0x48] sm:$0xff]  }
 0x857   : > { %5656 = vmatprep.subr.bf16.mxu1 %v12626_v58 }
 0x85a   : > { %5657 = vmatpush1.bf16.msra.mxu1 %v10899_v3 }
 0x85b   : > { %5658 = vmatprep.subr.bf16.mxu1 %v12626_v58 }
 0x85d   : > { %5249 = vmatmul.mubr.bf16.gmra.mrb[20].mxu1 %v12914_v44  ;;  %v13184_v44 = vld [vmem:[#allocation6 + $0x1b0] sm:$0xff] }
 0x85e   : > { %9545 = vmatprep.mubr.msk.bf16.mxu1 %vm1034_vm0, %v12916_v51  ;;  %5659 = vmatpush1.bf16.msra.mxu1 %v10900_v18  ;;  %v10914_v51 = vld [vmem:[%s14504_s8 + $0x50] sm:$0xff]  }
 0x85f   : > { %5660 = vmatprep.subr.bf16.mxu1 %v12626_v58 }
 0x862   : > { %5661 = vmatpush1.bf16.msra.mxu1 %v10901_v49 }
 0x863   : > { %5662 = vmatprep.subr.bf16.mxu1 %v12626_v58 }
 0x865   : > { %5257 = vmatmul.mubr.bf16.gmra.mrb[24].mxu1 %v12922_v53 }
 0x866   : > { %9546 = vmatprep.mubr.msk.bf16.mxu1 %vm1034_vm0, %v12924_v41  ;;  %5663 = vmatpush1.bf16.msra.mxu1 %v10902_v20 }
 0x867   : > { %5664 = vmatprep.subr.bf16.mxu1 %v12626_v58 }
 0x86a   : > { %5665 = vmatpush1.bf16.msra.mxu1 %v10903_v21 }
 0x86b   : > { %5833 = vmatprep.subr.bf16.mxu1 %v12626_v58 }
 0x86d   : > { %5265 = vmatmul.mubr.bf16.gmra.mrb[28].mxu1 %v12929_v35 }
 0x86e   : > { %9547 = vmatprep.mubr.msk.bf16.mxu1 %vm1034_vm0, %v12931_v50 }
 0x875   : > { %5273 = vmatmul.mubr.bf16.gmra.mrb[32].mxu1 %v12936_v52 }
 0x876   : > { %9548 = vmatprep.mubr.msk.bf16.mxu1 %vm1034_vm0, %v13096_v22 }
 0x87d   : > { %5281 = vmatmul.mubr.bf16.gmra.mrb[36].mxu1 %v13101_v23 }
 0x87e   : > { %9549 = vmatprep.mubr.msk.bf16.mxu1 %vm1034_vm0, %v13103_v24 }
 0x885   : > { %5289 = vmatmul.mubr.bf16.gmra.mrb[40].mxu1 %v13108_v57 }
 0x886   : > { %9591 = vmatprep.mubr.msk.bf16.mxu1 %vm1034_vm0, %v13096_v22 }
 0x88d   : > { %5675 = vmatmul.mubr.bf16.vlgmr.msra.gmra.mrb[44].mxu1 %v13101_v23 }
 0x88e   : > { %5834 = vmatpush1.bf16.msra.mxu1 %v10904_v25  ;;  %9592 = vmatprep.mubr.msk.bf16.mxu1 %vm1034_vm0, %v13103_v24 }
 0x88f   : > { %5835 = vmatprep.subr.bf16.mxu1 %v12626_v58 }
 0x892   : > { %5836 = vmatpush1.bf16.msra.mxu1 %v10905_v26 }
 0x893   : > { %5837 = vmatprep.subr.bf16.mxu1 %v12626_v58 }
 0x895   : > { %5683 = vmatmul.mubr.bf16.gmra.mrb[48].mxu1 %v13108_v57 }
 0x896   : > { %9593 = vmatprep.mubr.msk.bf16.mxu1 %vm1034_vm0, %v13126_v30  ;;  %5838 = vmatpush1.bf16.msra.mxu1 %v10906_v29 }
 0x897   : > { %5839 = vmatprep.subr.bf16.mxu1 %v12626_v58 }
 0x89a   : > { %5840 = vmatpush1.bf16.msra.mxu1 %v10907_v31 }
 0x89b   : > { %5841 = vmatprep.subr.bf16.mxu1 %v12626_v58 }
 0x89d   : > { %5691 = vmatmul.mubr.bf16.gmra.mrb[52].mxu1 %v13136_v36 }
 0x89e   : > { %9594 = vmatprep.mubr.msk.bf16.mxu1 %vm1034_vm0, %v13141_v11  ;;  %5842 = vmatpush1.bf16.msra.mxu1 %v10908_v38 }
 0x89f   : > { %5843 = vmatprep.subr.bf16.mxu1 %v12626_v58  ;;  %v10911_v58 = vld [vmem:[%s14504_s8 + $0x38] sm:$0xff]  }
 0x8a2   : > { %5844 = vmatpush1.bf16.msra.mxu1 %v10909_v39 }
 0x8a3   : > { %5845 = vmatprep.subr.bf16.mxu1 %v13158_v43 }
 0x8a5   : > { %5699 = vmatmul.mubr.bf16.gmra.mrb[56].mxu1 %v13151_v10 }
 0x8a6   : > { %9595 = vmatprep.mubr.msk.bf16.mxu1 %vm1034_vm0, %v13156_v42  ;;  %5846 = vmatpush1.bf16.msra.mxu1 %v10910_v40 }
 0x8a7   : > { %5847 = vmatprep.subr.bf16.mxu1 %v13158_v43 }
 0x8aa   : > { %5848 = vmatpush1.bf16.msra.mxu1 %v10911_v58 }
 0x8ab   : > { %5849 = vmatprep.subr.bf16.mxu1 %v13158_v43 }
 0x8ad   : > { %5707 = vmatmul.mubr.bf16.gmra.mrb[60].mxu1 %v13168_v17 }
 0x8ae   : > { %9596 = vmatprep.mubr.msk.bf16.mxu1 %vm1034_vm0, %v13173_v45  ;;  %5850 = vmatpush1.bf16.msra.mxu1 %v10912_v19 }
 0x8af   : > { %5851 = vmatprep.subr.bf16.mxu1 %v13158_v43 }
 0x8b2   : > { %5852 = vmatpush1.bf16.msra.mxu1 %v10913_v37 }
 0x8b3   : > { %v4550_v53 = vpop.permute.xlu0 %4549  ;;  %5853 = vmatprep.subr.bf16.mxu1 %v13158_v43 }
 0x8b4   : > { %v4552_v32 = vsel %vm1034_vm0, %v4545_v54, %v4550_v53 }
 0x8b5   : > { %v4554_v47 = vsel %vm4553_vm7, %v4552_v32, 0.0  ;;  %5715 = vmatmul.mubr.bf16.gmra.mrb[64].mxu1 %v13184_v44 }
 0x8b6   : > { %v4556_v16 = vpack.c.bf16 %v11088_v1, %v4554_v47  ;;  %9597 = vmatprep.mubr.msk.bf16.mxu1 %vm1034_vm0, %v13190_v55  ;;  %5854 = vmatpush1.bf16.msra.mxu1 %v10914_v51 }
 0x8b7   : > { %5855 = vmatprep.subr.bf16.mxu1 %v13158_v43 }
 0x8b8   : > { %4558 = vst [vmem:[#allocation7 + $0x10] sm:$0xff] %v4556_v16 }
 0x8ba   : > { %5856 = vmatpush1.bf16.msra.mxu1 %v10915_v46 }
 0x8bb   : > { %6092 = vmatprep.subr.bf16.mxu1 %v13158_v43 }
 0x8bd   : > { %5723 = vmatmul.mubr.bf16.gmra.mrb[68].mxu1 %v13203_v33 }
 0x8be   : > { %9598 = vmatprep.mubr.msk.bf16.mxu1 %vm1034_vm0, %v13205_v28 }
 0x8c5   : > { %5731 = vmatmul.mubr.bf16.gmra.mrb[72].mxu1 %v13211_v0 }
 0x8c6   : > { %9599 = vmatprep.mubr.msk.bf16.mxu1 %vm1034_vm0, %v13213_v2 }
 0x8cd   : > { %5739 = vmatmul.mubr.bf16.gmra.mrb[76].mxu1 %v13218_v27 }
 0x8ce   : > { %9600 = vmatprep.mubr.msk.bf16.mxu1 %vm1034_vm0, %v13220_v59 }
 0x8d5   : > { %5747 = vmatmul.mubr.bf16.gmra.mrb[80].mxu1 %v13225_v60 }
 0x8d6   : > { %9613 = vmatprep.mubr.msk.bf16.mxu1 %vm1034_vm0, %v12924_v41  ;;  %v10918_v41 = vld [vmem:[%s14504_s8 + $0xd0] sm:$0xff]  }
 0x8dd   : > { %5866 = vmatmul.mubr.bf16.vlgmr.msra.gmra.mrb[44].mxu1 %v12929_v35  ;;  %v10919_v35 = vld [vmem:[%s14504_s8 + $0xd8] sm:$0xff]  }
 0x8de   : > { %6093 = vmatpush1.bf16.msra.mxu1 %v10916_v61  ;;  %9614 = vmatprep.mubr.msk.bf16.mxu1 %vm1034_vm0, %v12931_v50  ;;  %v10920_v50 = vld [vmem:[%s14504_s8 + $0xe0] sm:$0xff]  }
 0x8df   : > { %6094 = vmatprep.subr.bf16.mxu1 %v13158_v43 }
 0x8e2   : > { %6095 = vmatpush1.bf16.msra.mxu1 %v10917_v4 }
 0x8e3   : > { %6096 = vmatprep.subr.bf16.mxu1 %v13158_v43 }
 0x8e5   : > { %5874 = vmatmul.mubr.bf16.gmra.mrb[48].mxu1 %v12936_v52  ;;  %v10921_v52 = vld [vmem:[%s14504_s8 + $0xe8] sm:$0xff]  }
 0x8e6   : > { %9615 = vmatprep.mubr.msk.bf16.mxu1 %vm1034_vm0, %v13096_v22  ;;  %6097 = vmatpush1.bf16.msra.mxu1 %v10918_v41 }
 0x8e7   : > { %6098 = vmatprep.subr.bf16.mxu1 %v13158_v43 }
 0x8ea   : > { %6099 = vmatpush1.bf16.msra.mxu1 %v10919_v35 }
 0x8eb   : > { %6100 = vmatprep.subr.bf16.mxu1 %v13158_v43 }
 0x8ed   : > { %5882 = vmatmul.mubr.bf16.gmra.mrb[52].mxu1 %v13101_v23 }
 0x8ee   : > { %9616 = vmatprep.mubr.msk.bf16.mxu1 %vm1034_vm0, %v13103_v24  ;;  %6101 = vmatpush1.bf16.msra.mxu1 %v10920_v50 }
 0x8ef   : > { %6102 = vmatprep.subr.bf16.mxu1 %v13158_v43 }
 0x8f2   : > { %6103 = vmatpush1.bf16.msra.mxu1 %v10921_v52 }
 0x8f3   : > { %6104 = vmatprep.subr.bf16.mxu1 %v13158_v43 }
 0x8f5   : > { %5890 = vmatmul.mubr.bf16.gmra.mrb[56].mxu1 %v13108_v57 }
 0x8f6   : > { %9617 = vmatprep.mubr.msk.bf16.mxu1 %vm1034_vm0, %v13126_v30  ;;  %6105 = vmatpush1.bf16.msra.mxu1 %v10922_v6 }
 0x8f7   : > { %6106 = vmatprep.subr.bf16.mxu1 %v13158_v43 }
 0x8fa   : > { %6107 = vmatpush1.bf16.msra.mxu1 %v10923_v7 }
 0x8fb   : > { %6108 = vmatprep.subr.bf16.mxu1 %v13158_v43 }
 0x8fd   : > { %5898 = vmatmul.mubr.bf16.gmra.mrb[60].mxu1 %v13136_v36 }
 0x8fe   : > { %9618 = vmatprep.mubr.msk.bf16.mxu1 %vm1034_vm0, %v13141_v11  ;;  %6109 = vmatpush1.bf16.msra.mxu1 %v10924_v9 }
 0x8ff   : > { %6110 = vmatprep.subr.bf16.mxu1 %v13158_v43 }
 0x902   : > { %6111 = vmatpush1.bf16.msra.mxu1 %v10925_v12 }
 0x903   : > { %6112 = vmatprep.subr.bf16.mxu1 %v13158_v43 }
 0x905   : > { %5906 = vmatmul.mubr.bf16.gmra.mrb[64].mxu1 %v13151_v10 }
 0x906   : > { %9619 = vmatprep.mubr.msk.bf16.mxu1 %vm1034_vm0, %v13156_v42  ;;  %6113 = vmatpush1.bf16.msra.mxu1 %v10926_v13 }
 0x907   : > { %6114 = vmatprep.subr.bf16.mxu1 %v13158_v43 }
 0x90a   : > { %6115 = vmatpush1.bf16.msra.mxu1 %v10927_v34 }
 0x90b   : > { %7227 = vmatprep.subr.bf16.mxu1 %v13158_v43 }
 0x90d   : > { %5914 = vmatmul.mubr.bf16.gmra.mrb[68].mxu1 %v13168_v17 }
 0x90e   : > { %9620 = vmatprep.mubr.msk.bf16.mxu1 %vm1034_vm0, %v13173_v45 }
 0x910   : > { %v5218_v62 = vpop.f32.mrb[4].mxu1 }
 0x911   : > { %v5324_v14 = vmul.f32 %v13308_v5, %v5218_v62  ;;  %v5220_v15 = vpop.f32.mrb[5].mxu1 }
 0x912   : > { %v5221_v3 = vpop.f32.mrb[6].mxu1 }
 0x913   : > { %v5351_v18 = vadd.f32 %v13315_v63, %v5324_v14  ;;  %v5325_v49 = vmul.f32 %v13308_v5, %v5221_v3  ;;  %v5223_v20 = vpop.f32.mrb[7].mxu1 }
 0x915   : > { %v5352_v21 = vadd.f32 %v13315_v63, %v5325_v49  ;;  %5922 = vmatmul.mubr.bf16.gmra.mrb[72].mxu1 %v13184_v44  ;;  %v5371_v22 = vmax.f32 %v5351_v18, 0.0 }
 0x916   : > { %9621 = vmatprep.mubr.msk.bf16.mxu1 %vm1034_vm0, %v13190_v55 }
 0x917   : > { %v5372_v23 = vmax.f32 %v5352_v21, 0.0 }
 0x918   : > { %v5226_v24 = vpop.f32.mrb[8].mxu1 }
 0x919   : > { %v5391_v57 = vpack.c.bf16 %v5372_v23, %v5371_v22  ;;  %v5326_v25 = vmul.f32 %v13308_v5, %v5226_v24  ;;  %v5228_v26 = vpop.f32.mrb[9].mxu1 }
 0x91a   : > { %v5229_v29 = vpop.f32.mrb[10].mxu1 }
 0x91b   : > { %v5353_v31 = vadd.f32 %v13315_v63, %v5326_v25  ;;  %v5327_v38 = vmul.f32 %v13308_v5, %v5229_v29  ;;  %v5231_v39 = vpop.f32.mrb[11].mxu1  ;;  %5412 = vmatpush1.bf16.msra.mxu0 %v5391_v57 }
 0x91c   : > { %5413 = vmatprep.subr.bf16.mxu0 %v13158_v43 }
 0x91d   : > { %v5354_v40 = vadd.f32 %v13315_v63, %v5327_v38  ;;  %5930 = vmatmul.mubr.bf16.gmra.mrb[76].mxu1 %v13203_v33  ;;  %v5373_v58 = vmax.f32 %v5353_v31, 0.0 }
 0x91e   : > { %9622 = vmatprep.mubr.msk.bf16.mxu1 %vm1034_vm0, %v13205_v28 }
 0x91f   : > { %v5374_v19 = vmax.f32 %v5354_v40, 0.0 }
 0x920   : > { %v5234_v37 = vpop.f32.mrb[12].mxu1 }
 0x921   : > { %v5392_v48 = vpack.c.bf16 %v5374_v19, %v5373_v58  ;;  %v5328_v51 = vmul.f32 %v13308_v5, %v5234_v37  ;;  %v5236_v53 = vpop.f32.mrb[13].mxu1 }
 0x922   : > { %v5237_v54 = vpop.f32.mrb[14].mxu1 }
 0x923   : > { %v5355_v32 = vadd.f32 %v13315_v63, %v5328_v51  ;;  %v5329_v47 = vmul.f32 %v13308_v5, %v5237_v54  ;;  %v5239_v16 = vpop.f32.mrb[15].mxu1  ;;  %5414 = vmatpush1.bf16.msra.mxu0 %v5392_v48 }
 0x924   : > { %5415 = vmatprep.subr.bf16.mxu0 %v13158_v43 }
 0x925   : > { %v5356_v46 = vadd.f32 %v13315_v63, %v5329_v47  ;;  %5938 = vmatmul.mubr.bf16.gmra.mrb[80].mxu1 %v13211_v0  ;;  %v5375_v61 = vmax.f32 %v5355_v32, 0.0 }
 0x926   : > { %9659 = vmatprep.mubr.msk.bf16.mxu1 %vm1034_vm0, %v13126_v30 }
 0x927   : > { %v5376_v4 = vmax.f32 %v5356_v46, 0.0 }
 0x928   : > { %v5242_v41 = vpop.f32.mrb[16].mxu1 }
 0x929   : > { %v5393_v35 = vpack.c.bf16 %v5376_v4, %v5375_v61  ;;  %v5330_v50 = vmul.f32 %v13308_v5, %v5242_v41  ;;  %v5244_v52 = vpop.f32.mrb[17].mxu1 }
 0x92a   : > { %v5245_v6 = vpop.f32.mrb[18].mxu1 }
 0x92b   : > { %v5357_v7 = vadd.f32 %v13315_v63, %v5330_v50  ;;  %v5331_v8 = vmul.f32 %v13308_v5, %v5245_v6  ;;  %v5247_v9 = vpop.f32.mrb[19].mxu1  ;;  %5416 = vmatpush1.bf16.msra.mxu0 %v5393_v35 }
 0x92c   : > { %5417 = vmatprep.subr.bf16.mxu0 %v13158_v43 }
 0x92d   : > { %v5358_v12 = vadd.f32 %v13315_v63, %v5331_v8  ;;  %6125 = vmatmul.mubr.bf16.vlgmr.msra.gmra.mrb[44].mxu1 %v13136_v36  ;;  %v5377_v30 = vmax.f32 %v5357_v7, 0.0 }
 0x92e   : > { %9660 = vmatprep.mubr.msk.bf16.mxu1 %vm1034_vm0, %v13141_v11 }
 0x92f   : > { %v5378_v13 = vmax.f32 %v5358_v12, 0.0 }
 0x930   : > { %v5250_v34 = vpop.f32.mrb[20].mxu1 }
 0x931   : > { %v5394_v62 = vpack.c.bf16 %v5378_v13, %v5377_v30  ;;  %v5332_v14 = vmul.f32 %v13308_v5, %v5250_v34  ;;  %v5252_v15 = vpop.f32.mrb[21].mxu1 }
 0x932   : > { %v5253_v3 = vpop.f32.mrb[22].mxu1 }
 0x933   : > { %v5359_v18 = vadd.f32 %v13315_v63, %v5332_v14  ;;  %v5333_v49 = vmul.f32 %v13308_v5, %v5253_v3  ;;  %v5255_v20 = vpop.f32.mrb[23].mxu1  ;;  %5418 = vmatpush1.bf16.msra.mxu0 %v5394_v62 }
 0x934   : > { %5419 = vmatprep.subr.bf16.mxu0 %v13158_v43 }
 0x935   : > { %v5360_v36 = vadd.f32 %v13315_v63, %v5333_v49  ;;  %6133 = vmatmul.mubr.bf16.gmra.mrb[48].mxu1 %v13151_v10  ;;  %v5379_v11 = vmax.f32 %v5359_v18, 0.0 }
 0x936   : > { %9661 = vmatprep.mubr.msk.bf16.mxu1 %vm1034_vm0, %v13156_v42 }
 0x937   : > { %v5380_v21 = vmax.f32 %v5360_v36, 0.0 }
 0x938   : > { %v5258_v22 = vpop.f32.mrb[24].mxu1 }
 0x939   : > { %v5395_v23 = vpack.c.bf16 %v5380_v21, %v5379_v11  ;;  %v5334_v24 = vmul.f32 %v13308_v5, %v5258_v22  ;;  %v5260_v57 = vpop.f32.mrb[25].mxu1  ;;  %v9552_v22 = vcombine.low %v13270_v56, %v13270_v56  ;;  %v13411_v56 = vld [vmem:[#allocation6 + $0x210] sm:$0xff] }
 0x93a   : > { %v5261_v25 = vpop.f32.mrb[26].mxu1 }
 0x93b   : > { %v5361_v26 = vadd.f32 %v13315_v63, %v5334_v24  ;;  %v5335_v29 = vmul.f32 %v13308_v5, %v5261_v25  ;;  %v5263_v31 = vpop.f32.mrb[27].mxu1  ;;  %5420 = vmatpush1.bf16.msra.mxu0 %v5395_v23  ;;  %v13398_v23 = vld [vmem:[#allocation6 + $0x208] sm:$0xff] }
 0x93c   : > { %5421 = vmatprep.subr.bf16.mxu0 %v13158_v43 }
 0x93d   : > { %v5362_v10 = vadd.f32 %v13315_v63, %v5335_v29  ;;  %6141 = vmatmul.mubr.bf16.gmra.mrb[52].mxu1 %v13168_v17  ;;  %v5381_v42 = vmax.f32 %v5361_v26, 0.0 }
 0x93e   : > { %9662 = vmatprep.mubr.msk.bf16.mxu1 %vm1034_vm0, %v13173_v45 }
 0x93f   : > { %v5382_v38 = vmax.f32 %v5362_v10, 0.0 }
 0x940   : > { %v5266_v39 = vpop.f32.mrb[28].mxu1 }
 0x941   : > { %v5396_v40 = vpack.c.bf16 %v5382_v38, %v5381_v42  ;;  %v5336_v58 = vmul.f32 %v13308_v5, %v5266_v39  ;;  %v5268_v19 = vpop.f32.mrb[29].mxu1 }
 0x942   : > { %v5269_v37 = vpop.f32.mrb[30].mxu1 }
 0x943   : > { %v5363_v48 = vadd.f32 %v13315_v63, %v5336_v58  ;;  %v5337_v51 = vmul.f32 %v13308_v5, %v5269_v37  ;;  %v5271_v53 = vpop.f32.mrb[31].mxu1  ;;  %5422 = vmatpush1.bf16.msra.mxu0 %v5396_v40 }
 0x944   : > { %5423 = vmatprep.subr.bf16.mxu0 %v13158_v43 }
 0x945   : > { %v5364_v17 = vadd.f32 %v13315_v63, %v5337_v51  ;;  %6149 = vmatmul.mubr.bf16.gmra.mrb[56].mxu1 %v13184_v44  ;;  %v5383_v45 = vmax.f32 %v5363_v48, 0.0 }
 0x946   : > { %9663 = vmatprep.mubr.msk.bf16.mxu1 %vm1034_vm0, %v13190_v55 }
 0x947   : > { %v5384_v54 = vmax.f32 %v5364_v17, 0.0 }
 0x948   : > { %v5274_v32 = vpop.f32.mrb[32].mxu1 }
 0x949   : > { %v5397_v47 = vpack.c.bf16 %v5384_v54, %v5383_v45  ;;  %v5338_v16 = vmul.f32 %v13308_v5, %v5274_v32  ;;  %v5276_v46 = vpop.f32.mrb[33].mxu1 }
 0x94a   : > { %v5277_v61 = vpop.f32.mrb[34].mxu1 }
 0x94b   : > { %v5365_v4 = vadd.f32 %v13315_v63, %v5338_v16  ;;  %v5339_v41 = vmul.f32 %v13308_v5, %v5277_v61  ;;  %v5279_v35 = vpop.f32.mrb[35].mxu1  ;;  %5424 = vmatpush1.bf16.msra.mxu0 %v5397_v47 }
 0x94c   : > { %5425 = vmatprep.subr.bf16.mxu0 %v13158_v43 }
 0x94d   : > { %v5366_v44 = vadd.f32 %v13315_v63, %v5339_v41  ;;  %6157 = vmatmul.mubr.bf16.gmra.mrb[60].mxu1 %v13203_v33  ;;  %v5385_v55 = vmax.f32 %v5365_v4, 0.0 }
 0x94e   : > { %9664 = vmatprep.mubr.msk.bf16.mxu1 %vm1034_vm0, %v13205_v28 }
 0x94f   : > { %v5386_v50 = vmax.f32 %v5366_v44, 0.0 }
 0x950   : > { %v5282_v52 = vpop.f32.mrb[36].mxu1 }
 0x951   : > { %v5398_v6 = vpack.c.bf16 %v5386_v50, %v5385_v55  ;;  %v5340_v7 = vmul.f32 %v13308_v5, %v5282_v52  ;;  %v5284_v8 = vpop.f32.mrb[37].mxu1 }
 0x952   : > { %v5285_v9 = vpop.f32.mrb[38].mxu1 }
 0x953   : > { %v5367_v12 = vadd.f32 %v13315_v63, %v5340_v7  ;;  %v5341_v30 = vmul.f32 %v13308_v5, %v5285_v9  ;;  %v5287_v13 = vpop.f32.mrb[39].mxu1  ;;  %5426 = vmatpush1.bf16.msra.mxu0 %v5398_v6 }
 0x954   : > { %5427 = vmatprep.subr.bf16.mxu0 %v13158_v43 }
 0x955   : > { %v5368_v33 = vadd.f32 %v13315_v63, %v5341_v30  ;;  %6165 = vmatmul.mubr.bf16.gmra.mrb[64].mxu1 %v13211_v0  ;;  %v5387_v28 = vmax.f32 %v5367_v12, 0.0 }
 0x956   : > { %9665 = vmatprep.mubr.msk.bf16.mxu1 %vm1034_vm0, %v13213_v2 }
 0x957   : > { %v5388_v34 = vmax.f32 %v5368_v33, 0.0 }
 0x958   : > { %v5290_v62 = vpop.f32.mrb[40].mxu1 }
 0x959   : > { %v5399_v14 = vpack.c.bf16 %v5388_v34, %v5387_v28  ;;  %v5342_v15 = vmul.f32 %v13308_v5, %v5290_v62  ;;  %v5292_v3 = vpop.f32.mrb[41].mxu1 }
 0x95a   : > { %v5293_v18 = vpop.f32.mrb[42].mxu1 }
 0x95b   : > { %v5369_v49 = vadd.f32 %v13315_v63, %v5342_v15  ;;  %v5343_v20 = vmul.f32 %v13308_v5, %v5293_v18  ;;  %v5295_v36 = vpop.f32.mrb[43].mxu1  ;;  %5428 = vmatpush1.bf16.msra.mxu0 %v5399_v14 }
 0x95c   : > { %5429 = vmatprep.subr.bf16.mxu0 %v13158_v43 }
 0x95d   : > { %v5370_v0 = vadd.f32 %v13315_v63, %v5343_v20  ;;  %6173 = vmatmul.mubr.bf16.gmra.mrb[68].mxu1 %v13218_v27  ;;  %v5389_v2 = vmax.f32 %v5369_v49, 0.0  ;;  %v13404_v27 = vld [vmem:[#allocation6 + $0x200] sm:$0xff] }
 0x95e   : > { %9666 = vmatprep.mubr.msk.bf16.mxu1 %vm1034_vm0, %v13220_v59  ;;  %v13406_v59 = vld [vmem:[#allocation6 + $0x218] sm:$0xff] }
 0x95f   : > { %v5390_v11 = vmax.f32 %v5370_v0, 0.0 }
 0x961   : > { %v5400_v21 = vpack.c.bf16 %v5390_v11, %v5389_v2 }
 0x963   : > { %5430 = vmatpush1.bf16.msra.mxu0 %v5400_v21 }
 0x964   : > { %6319 = vmatprep.subr.bf16.mxu0 %v13158_v43 }
 0x965   : > { %6181 = vmatmul.mubr.bf16.gmra.mrb[72].mxu1 %v13225_v60  ;;  %v13417_v60 = vld [vmem:[%s14507_s11] sm:$0x77] }
 0x966   : > { %9667 = vmatprep.mubr.msk.bf16.mxu1 %vm1034_vm0, %v13398_v23  ;;  %5444 = vmatmul.mubr.bf16.vlgmr.msra.gmra.mrb[40].mxu0 %v9552_v22  ;;  %v9672_v24 = vcombine.high %v13417_v60, %v13417_v60 }
 0x968   : > { %9673 = vmatprep.mubr.msk.bf16.mxu0 %vm4498_vm6, %v9672_v24 }
 0x96d   : > { %6189 = vmatmul.mubr.bf16.gmra.mrb[76].mxu1 %v13404_v27 }
 0x96e   : > { %9668 = vmatprep.mubr.msk.bf16.mxu1 %vm1034_vm0, %v13406_v59 }
 0x975   : > { %6197 = vmatmul.mubr.bf16.gmra.mrb[80].mxu1 %v13411_v56 }
 0xa00   : > { %v6126_v57 = vpop.f32.mrb[44].mxu1 }
 0xa01   : > { %v6232_v25 = vmul.f32 %v13308_v5, %v6126_v57  ;;  %v6128_v26 = vpop.f32.mrb[45].mxu1 }
 0xa02   : > { %v6129_v29 = vpop.f32.mrb[46].mxu1 }
 0xa03   : > { %v6259_v31 = vadd.f32 %v13315_v63, %v6232_v25  ;;  %v6233_v10 = vmul.f32 %v13308_v5, %v6129_v29  ;;  %v6131_v42 = vpop.f32.mrb[47].mxu1 }
 0xa05   : > { %v6260_v38 = vadd.f32 %v13315_v63, %v6233_v10  ;;  %v6279_v39 = vmax.f32 %v6259_v31, 0.0 }
 0xa07   : > { %v6280_v40 = vmax.f32 %v6260_v38, 0.0 }
 0xa08   : > { %v6134_v58 = vpop.f32.mrb[48].mxu1 }
 0xa09   : > { %v6299_v19 = vpack.c.bf16 %v6280_v40, %v6279_v39  ;;  %v6234_v37 = vmul.f32 %v13308_v5, %v6134_v58  ;;  %v6136_v48 = vpop.f32.mrb[49].mxu1 }
 0xa0a   : > { %v6137_v51 = vpop.f32.mrb[50].mxu1 }
 0xa0b   : > { %v6261_v53 = vadd.f32 %v13315_v63, %v6234_v37  ;;  %v6235_v17 = vmul.f32 %v13308_v5, %v6137_v51  ;;  %v6139_v45 = vpop.f32.mrb[51].mxu1  ;;  %6320 = vmatpush1.bf16.msra.mxu0 %v6299_v19 }
 0xa0c   : > { %6321 = vmatprep.subr.bf16.mxu0 %v13158_v43 }
 0xa0d   : > { %v6262_v54 = vadd.f32 %v13315_v63, %v6235_v17  ;;  %v6281_v32 = vmax.f32 %v6261_v53, 0.0 }
 0xa0f   : > { %v6282_v47 = vmax.f32 %v6262_v54, 0.0 }
 0xa10   : > { %v6142_v16 = vpop.f32.mrb[52].mxu1 }
 0xa11   : > { %v6300_v46 = vpack.c.bf16 %v6282_v47, %v6281_v32  ;;  %v6236_v61 = vmul.f32 %v13308_v5, %v6142_v16  ;;  %v6144_v4 = vpop.f32.mrb[53].mxu1 }
 0xa12   : > { %v6145_v41 = vpop.f32.mrb[54].mxu1 }
 0xa13   : > { %v6263_v35 = vadd.f32 %v13315_v63, %v6236_v61  ;;  %v6237_v44 = vmul.f32 %v13308_v5, %v6145_v41  ;;  %v6147_v55 = vpop.f32.mrb[55].mxu1  ;;  %6322 = vmatpush1.bf16.msra.mxu0 %v6300_v46 }
 0xa14   : > { %6323 = vmatprep.subr.bf16.mxu0 %v13158_v43 }
 0xa15   : > { %v6264_v50 = vadd.f32 %v13315_v63, %v6237_v44  ;;  %v6283_v52 = vmax.f32 %v6263_v35, 0.0 }
 0xa17   : > { %v6284_v6 = vmax.f32 %v6264_v50, 0.0 }
 0xa18   : > { %v6150_v7 = vpop.f32.mrb[56].mxu1 }
 0xa19   : > { %v6301_v8 = vpack.c.bf16 %v6284_v6, %v6283_v52  ;;  %v6238_v9 = vmul.f32 %v13308_v5, %v6150_v7  ;;  %v6152_v12 = vpop.f32.mrb[57].mxu1 }
 0xa1a   : > { %v6153_v30 = vpop.f32.mrb[58].mxu1 }
 0xa1b   : > { %v6265_v13 = vadd.f32 %v13315_v63, %v6238_v9  ;;  %v6239_v33 = vmul.f32 %v13308_v5, %v6153_v30  ;;  %v6155_v28 = vpop.f32.mrb[59].mxu1  ;;  %6324 = vmatpush1.bf16.msra.mxu0 %v6301_v8 }
 0xa1c   : > { %6325 = vmatprep.subr.bf16.mxu0 %v13158_v43 }
 0xa1d   : > { %v6266_v34 = vadd.f32 %v13315_v63, %v6239_v33  ;;  %v6285_v62 = vmax.f32 %v6265_v13, 0.0 }
 0xa1f   : > { %v6286_v14 = vmax.f32 %v6266_v34, 0.0 }
 0xa20   : > { %v6158_v15 = vpop.f32.mrb[60].mxu1 }
 0xa21   : > { %v6302_v3 = vpack.c.bf16 %v6286_v14, %v6285_v62  ;;  %v6240_v18 = vmul.f32 %v13308_v5, %v6158_v15  ;;  %v6160_v49 = vpop.f32.mrb[61].mxu1 }
 0xa22   : > { %v6161_v20 = vpop.f32.mrb[62].mxu1 }
 0xa23   : > { %v6267_v36 = vadd.f32 %v13315_v63, %v6240_v18  ;;  %v6241_v0 = vmul.f32 %v13308_v5, %v6161_v20  ;;  %v6163_v2 = vpop.f32.mrb[63].mxu1  ;;  %6326 = vmatpush1.bf16.msra.mxu0 %v6302_v3 }
 0xa24   : > { %6327 = vmatprep.subr.bf16.mxu0 %v13158_v43 }
 0xa25   : > { %v6268_v11 = vadd.f32 %v13315_v63, %v6241_v0  ;;  %v6287_v21 = vmax.f32 %v6267_v36, 0.0 }
 0xa27   : > { %v6288_v22 = vmax.f32 %v6268_v11, 0.0 }
 0xa28   : > { %v6166_v24 = vpop.f32.mrb[64].mxu1 }
 0xa29   : > { %v6303_v57 = vpack.c.bf16 %v6288_v22, %v6287_v21  ;;  %v6242_v25 = vmul.f32 %v13308_v5, %v6166_v24  ;;  %v6168_v26 = vpop.f32.mrb[65].mxu1 }
 0xa2a   : > { %v6169_v29 = vpop.f32.mrb[66].mxu1 }
 0xa2b   : > { %v6269_v31 = vadd.f32 %v13315_v63, %v6242_v25  ;;  %v6243_v10 = vmul.f32 %v13308_v5, %v6169_v29  ;;  %v6171_v42 = vpop.f32.mrb[67].mxu1  ;;  %6328 = vmatpush1.bf16.msra.mxu0 %v6303_v57 }
 0xa2c   : > { %6329 = vmatprep.subr.bf16.mxu0 %v13158_v43 }
 0xa2d   : > { %v6270_v38 = vadd.f32 %v13315_v63, %v6243_v10  ;;  %v6289_v39 = vmax.f32 %v6269_v31, 0.0 }
 0xa2f   : > { %v6290_v40 = vmax.f32 %v6270_v38, 0.0 }
 0xa30   : > { %v6174_v58 = vpop.f32.mrb[68].mxu1 }
 0xa31   : > { %v6304_v19 = vpack.c.bf16 %v6290_v40, %v6289_v39  ;;  %v6244_v37 = vmul.f32 %v13308_v5, %v6174_v58  ;;  %v6176_v48 = vpop.f32.mrb[69].mxu1  ;;  %v9671_v39 = vcombine.low %v13417_v60, %v13417_v60  ;;  %v10932_v40 = vld [vmem:[%s14504_s8 + $0x60] sm:$0xff]   ;;  %v10935_v60 = vld [vmem:[%s14504_s8 + $0x78] sm:$0xff]  }
 0xa32   : > { %v6177_v51 = vpop.f32.mrb[70].mxu1  ;;  %v10936_v58 = vld [vmem:[%s14504_s8 + $0x80] sm:$0xff]   ;;  %v10939_v48 = vld [vmem:[%s14504_s8 + $0x98] sm:$0xff]  }
 0xa33   : > { %v6271_v53 = vadd.f32 %v13315_v63, %v6244_v37  ;;  %v6245_v17 = vmul.f32 %v13308_v5, %v6177_v51  ;;  %v6179_v45 = vpop.f32.mrb[71].mxu1  ;;  %6330 = vmatpush1.bf16.msra.mxu0 %v6304_v19  ;;  %v10937_v19 = vld [vmem:[%s14504_s8 + $0x88] sm:$0xff]   ;;  %v10938_v37 = vld [vmem:[%s14504_s8 + $0x90] sm:$0xff]   ;;  %v10940_v51 = vld [vmem:[%s14504_s8 + $0xa0] sm:$0xff]  }
 0xa34   : > { %6331 = vmatprep.subr.bf16.mxu0 %v13158_v43  ;;  %v10943_v45 = vld [vmem:[%s14504_s8 + $0xb8] sm:$0xff]  }
 0xa35   : > { %v6272_v54 = vadd.f32 %v13315_v63, %v6245_v17  ;;  %v6291_v32 = vmax.f32 %v6271_v53, 0.0  ;;  %v10941_v53 = vld [vmem:[%s14504_s8 + $0xa8] sm:$0xff]   ;;  %v10942_v17 = vld [vmem:[%s14504_s8 + $0xb0] sm:$0xff]  }
 0xa37   : > { %v6292_v47 = vmax.f32 %v6272_v54, 0.0  ;;  %v10944_v54 = vld [vmem:[%s14504_s8] sm:$0xff]  }
 0xa38   : > { %v6182_v16 = vpop.f32.mrb[72].mxu1 }
 0xa39   : > { %v6305_v46 = vpack.c.bf16 %v6292_v47, %v6291_v32  ;;  %v6246_v61 = vmul.f32 %v13308_v5, %v6182_v16  ;;  %v6184_v4 = vpop.f32.mrb[73].mxu1  ;;  %v13457_v41 = vpop.f32.mrb[40].mxu0  ;;  %v10945_v32 = vld [vmem:[%s14504_s8 + $0x8] sm:$0xff]   ;;  %v10946_v47 = vld [vmem:[%s14504_s8 + $0x10] sm:$0xff]  }
 0xa3a   : > { %v6185_v35 = vpop.f32.mrb[74].mxu1  ;;  %v5455_v44 = vrot.slane %v13457_v41, 1  ;;  %5458 = vrot.lane.b32.xlu0 %v13457_v41, %s11090_s20  ;;  %v5447_v55 = vpop.f32.mrb[41].mxu0  ;;  %v13546_v16 = vld [vmem:[#allocation6 + $0x228] sm:$0xff]  ;;  %v10948_v4 = vld [vmem:[%s14504_s8 + $0x20] sm:$0xff]  }
 0xa3b   : > { %v6273_v50 = vadd.f32 %v13315_v63, %v6246_v61  ;;  %v6247_v52 = vmul.f32 %v13308_v5, %v6185_v35  ;;  %v6187_v6 = vpop.f32.mrb[75].mxu1  ;;  %6332 = vmatpush1.bf16.msra.mxu0 %v6305_v46  ;;  %v5448_v7 = vpop.f32.mrb[42].mxu0  ;;  %v10947_v46 = vld [vmem:[%s14504_s8 + $0x18] sm:$0xff]   ;;  %v13556_v61 = vld [vmem:[#allocation6 + $0x220] sm:$0xff]  ;;  %v13571_v55 = vld [vmem:[#allocation6 + $0x230] sm:$0xff] }
 0xa3c   : > { %6333 = vmatprep.subr.bf16.mxu0 %v13158_v43  ;;  %v5457_v8 = vsel %vm1048_vm3, %v5455_v44, 0.0  ;;  %v5449_v9 = vpop.f32.mrb[43].mxu0  ;;  %v13561_v35 = vld [vmem:[#allocation6 + $0x238] sm:$0xff]  ;;  %v10949_v44 = vld [vmem:[%s14504_s8 + $0x28] sm:$0xff]   ;;  %v13586_v7 = vld [vmem:[#allocation6 + $0x240] sm:$0xff] }
 0xa3d   : > { %v6274_v12 = vadd.f32 %v13315_v63, %v6247_v52  ;;  %v5463_v30 = vsel %vm4553_vm7, %v5457_v8, 0.0  ;;  %v6293_v33 = vmax.f32 %v6273_v50, 0.0  ;;  %v10950_v50 = vld [vmem:[%s14504_s8 + $0x30] sm:$0xff]   ;;  %v13576_v52 = vld [vmem:[#allocation6 + $0x248] sm:$0xff]  ;;  %v10951_v6 = vld [vmem:[%s14504_s8 + $0x38] sm:$0xff]  }
 0xa3e   : > { %v5465_v13 = vpack.c.bf16 %v11088_v1, %v5463_v30  ;;  %v10952_v8 = vld [vmem:[%s14504_s8 + $0x40] sm:$0xff]   ;;  %v13591_v9 = vld [vmem:[#allocation6 + $0x258] sm:$0xff]  ;;  %v10953_v30 = vld [vmem:[%s14504_s8 + $0x48] sm:$0xff]  }
 0xa3f   : > { %v6294_v28 = vmax.f32 %v6274_v12, 0.0  ;;  %v5452_v12 = vrot.slane %v13457_v41, 7  ;;  %v13608_v41 = vld [vmem:[#allocation6 + $0x268] sm:$0xff] }
 0xa40   : > { %v6190_v34 = vpop.f32.mrb[76].mxu1  ;;  %5467 = vst.msk [vmem:[#allocation7 + $0x28] sm:$0xff] %vm1034_vm0, %v5465_v13 }
 0xa41   : > { %v6306_v62 = vpack.c.bf16 %v6294_v28, %v6293_v33  ;;  %v6248_v14 = vmul.f32 %v13308_v5, %v6190_v34  ;;  %v6192_v15 = vpop.f32.mrb[77].mxu1  ;;  %v5454_v13 = vsel %vm914_vm5, 0.0, %v5452_v12  ;;  %v13603_v33 = vld [vmem:[#allocation6 + $0x250] sm:$0xff]  ;;  %v10983_v12 = vld [vmem:[%s14504_s8 + $0x18] sm:$0xff]  }
 0xa42   : > { %v6193_v3 = vpop.f32.mrb[78].mxu1  ;;  %v10954_v28 = vld [vmem:[%s14504_s8 + $0x50] sm:$0xff]   ;;  %v10955_v15 = vld [vmem:[%s14504_s8 + $0x58] sm:$0xff]  }
 0xa43   : > { %v6275_v18 = vadd.f32 %v13315_v63, %v6248_v14  ;;  %v6249_v49 = vmul.f32 %v13308_v5, %v6193_v3  ;;  %v6195_v20 = vpop.f32.mrb[79].mxu1  ;;  %6334 = vmatpush1.bf16.msra.mxu0 %v6306_v62 }
 0xa44   : > { %6335 = vmatprep.subr.bf16.mxu0 %v13158_v43  ;;  %v13625_v20 = vld [vmem:[#allocation7] sm:$0xff] }
 0xa45   : > { %v6276_v36 = vadd.f32 %v13315_v63, %v6249_v49  ;;  %v6295_v0 = vmax.f32 %v6275_v18, 0.0  ;;  %v13621_v18 = vld [vmem:[#allocation6 + $0x260] sm:$0xff]  ;;  %v13623_v49 = vld [vmem:[#allocation6 + $0x278] sm:$0xff] }
 0xa47   : > { %v6296_v2 = vmax.f32 %v6276_v36, 0.0  ;;  %v13631_v36 = vld [vmem:[#allocation6 + $0x270] sm:$0xff] }
 0xa48   : > { %v6198_v11 = vpop.f32.mrb[80].mxu1 }
 0xa49   : > { %v6307_v21 = vpack.c.bf16 %v6296_v2, %v6295_v0  ;;  %v6250_v22 = vmul.f32 %v13308_v5, %v6198_v11  ;;  %v6200_v24 = vpop.f32.mrb[81].mxu1  ;;  %v13633_v0 = vld [vmem:[#allocation6 + $0x288] sm:$0xff]  ;;  %v13640_v2 = vld [vmem:[#allocation6 + $0x298] sm:$0xff]  ;;  %v13645_v11 = vld [vmem:[#allocation6 + $0x290] sm:$0xff] }
 0xa4a   : > { %v6201_v57 = vpop.f32.mrb[82].mxu1  ;;  %v10956_v24 = vld [vmem:[%s14504_s8 + $0xc0] sm:$0xff]  }
 0xa4b   : > { %v6277_v25 = vadd.f32 %v13315_v63, %v6250_v22  ;;  %v6251_v26 = vmul.f32 %v13308_v5, %v6201_v57  ;;  %v6203_v29 = vpop.f32.mrb[83].mxu1  ;;  %6336 = vmatpush1.bf16.msra.mxu0 %v6307_v21  ;;  %v10933_v5 = vld [vmem:[%s14504_s8 + $0x68] sm:$0xff]   ;;  %v6376_v22 = vld [vmem:[#allocation6 + $0x1e0] sm:$0xff]  ;;  %v6379_v57 = vld [vmem:[#allocation6 + $0x1f8] sm:$0xff] }
 0xa4c   : > { %6337 = vmatprep.subr.bf16.mxu0 %v13158_v43  ;;  %v6377_v21 = vld [vmem:[#allocation6 + $0x1e8] sm:$0xff]  ;;  %v10958_v29 = vld [vmem:[%s14504_s8 + $0xd0] sm:$0xff]  }
 0xa4d   : > { %v6278_v31 = vadd.f32 %v13315_v63, %v6251_v26  ;;  %v6297_v10 = vmax.f32 %v6277_v25, 0.0  ;;  %v10934_v63 = vld [vmem:[%s14504_s8 + $0x70] sm:$0xff]   ;;  %v10957_v25 = vld [vmem:[%s14504_s8 + $0xc8] sm:$0xff]  }
 0xa4e   : > { %v6378_v26 = vld [vmem:[#allocation6 + $0x1f0] sm:$0xff] }
 0xa4f   : > { %v6298_v42 = vmax.f32 %v6278_v31, 0.0  ;;  %v10959_v31 = vld [vmem:[%s14504_s8 + $0xd8] sm:$0xff]  }
 0xa51   : > { %v6308_v38 = vpack.c.bf16 %v6298_v42, %v6297_v10  ;;  %v10960_v10 = vld [vmem:[%s14504_s8 + $0xe0] sm:$0xff]   ;;  %v10962_v42 = vld [vmem:[%s14504_s8 + $0xf0] sm:$0xff]  }
 0xa53   : > { %6338 = vmatpush1.bf16.msra.mxu0 %v6308_v38  ;;  %v10966_v38 = vld [vmem:[%s14504_s8 + $0x110] sm:$0xff]  }
 0xa54   : > { %6550 = vmatprep.subr.bf16.mxu0 %v13158_v43 }
 0xa56   : > { %6352 = vmatmul.mubr.bf16.vlgmr.msra.gmra.mrb[44].mxu0 %v9671_v39  ;;  %v10967_v39 = vld [vmem:[%s14504_s8 + $0x118] sm:$0xff]  }
 0xa57   : > { %6551 = vmatpush1.bf16.msra.mxu0 %v10932_v40  ;;  %9710 = vmatprep.mubr.msk.bf16.mxu0 %vm1034_vm0, %v13398_v23  ;;  %v10968_v40 = vld [vmem:[%s14504_s8 + $0x60] sm:$0xff]  }
 0xa58   : > { %6552 = vmatprep.subr.bf16.mxu0 %v13158_v43 }
 0xa5b   : > { %6553 = vmatpush1.bf16.msra.mxu0 %v10933_v5  ;;  %v10969_v5 = vld [vmem:[%s14504_s8 + $0x68] sm:$0xff]  }
 0xa5c   : > { %6554 = vmatprep.subr.bf16.mxu0 %v13158_v43 }
 0xa5f   : > { %6555 = vmatpush1.bf16.msra.mxu0 %v10934_v63 }
 0xa60   : > { %6556 = vmatprep.subr.bf16.mxu0 %v13158_v43 }
 0xa63   : > { %6557 = vmatpush1.bf16.msra.mxu0 %v10935_v60 }
 0xa64   : > { %6558 = vmatprep.subr.bf16.mxu0 %v13158_v43 }
 0xa67   : > { %6559 = vmatpush1.bf16.msra.mxu0 %v10936_v58 }
 0xa68   : > { %6560 = vmatprep.subr.bf16.mxu0 %v13158_v43 }
 0xa6b   : > { %6561 = vmatpush1.bf16.msra.mxu0 %v10937_v19 }
 0xa6c   : > { %6562 = vmatprep.subr.bf16.mxu0 %v13158_v43 }
 0xa6f   : > { %6563 = vmatpush1.bf16.msra.mxu0 %v10938_v37  ;;  %v10970_v37 = vld [vmem:[%s14504_s8 + $0x70] sm:$0xff]  }
 0xa70   : > { %6564 = vmatprep.subr.bf16.mxu0 %v13158_v43 }
 0xa73   : > { %6565 = vmatpush1.bf16.msra.mxu0 %v10939_v48 }
 0xa74   : > { %6566 = vmatprep.subr.bf16.mxu0 %v13158_v43 }
 0xa77   : > { %6567 = vmatpush1.bf16.msra.mxu0 %v10940_v51 }
 0xa78   : > { %6568 = vmatprep.subr.bf16.mxu0 %v13158_v43 }
 0xa7b   : > { %6569 = vmatpush1.bf16.msra.mxu0 %v10941_v53 }
 0xa7c   : > { %6570 = vmatprep.subr.bf16.mxu0 %v13158_v43 }
 0xa7f   : > { %6571 = vmatpush1.bf16.msra.mxu0 %v10942_v17 }
 0xa80   : > { %6572 = vmatprep.subr.bf16.mxu0 %v13158_v43 }
 0xa83   : > { %6573 = vmatpush1.bf16.msra.mxu0 %v10943_v45  ;;  %v10971_v45 = vld [vmem:[%s14504_s8 + $0x78] sm:$0xff]  }
 0xa84   : > { %6741 = vmatprep.subr.bf16.mxu0 %v13158_v43 }
 0xa86   : > { %6583 = vmatmul.mubr.bf16.vlgmr.msra.gmra.mrb[48].mxu0 %v13404_v27 }
 0xa87   : > { %6742 = vmatpush1.bf16.msra.mxu0 %v10944_v54  ;;  %9711 = vmatprep.mubr.msk.bf16.mxu0 %vm1034_vm0, %v13406_v59  ;;  %v10972_v54 = vld [vmem:[%s14504_s8 + $0x80] sm:$0xff]  }
 0xa88   : > { %6743 = vmatprep.subr.bf16.mxu0 %v13158_v43 }
 0xa8b   : > { %6744 = vmatpush1.bf16.msra.mxu0 %v10945_v32  ;;  %v10973_v32 = vld [vmem:[%s14504_s8 + $0x88] sm:$0xff]  }
 0xa8c   : > { %6745 = vmatprep.subr.bf16.mxu0 %v13158_v43 }
 0xa8e   : > { %6591 = vmatmul.mubr.bf16.gmra.mrb[52].mxu0 %v13411_v56 }
 0xa8f   : > { %9712 = vmatprep.mubr.msk.bf16.mxu0 %vm1034_vm0, %v13546_v16  ;;  %6746 = vmatpush1.bf16.msra.mxu0 %v10946_v47  ;;  %v10974_v47 = vld [vmem:[%s14504_s8 + $0x90] sm:$0xff]  }
 0xa90   : > { %6747 = vmatprep.subr.bf16.mxu0 %v13158_v43 }
 0xa93   : > { %6748 = vmatpush1.bf16.msra.mxu0 %v10947_v46  ;;  %v10976_v46 = vld [vmem:[%s14504_s8 + $0xa0] sm:$0xff]  }
 0xa94   : > { %6749 = vmatprep.subr.bf16.mxu0 %v13158_v43 }
 0xa96   : > { %6599 = vmatmul.mubr.bf16.gmra.mrb[56].mxu0 %v13556_v61 }
 0xa97   : > { %9713 = vmatprep.mubr.msk.bf16.mxu0 %vm1034_vm0, %v13561_v35  ;;  %6750 = vmatpush1.bf16.msra.mxu0 %v10948_v4  ;;  %v10978_v4 = vld [vmem:[%s14504_s8 + $0xb0] sm:$0xff]  }
 0xa98   : > { %6751 = vmatprep.subr.bf16.mxu0 %v13158_v43 }
 0xa9b   : > { %6752 = vmatpush1.bf16.msra.mxu0 %v10949_v44  ;;  %v13802_v44 = vld [vmem:[#allocation6 + $0x2a8] sm:$0xff] }
 0xa9c   : > { %6753 = vmatprep.subr.bf16.mxu0 %v13158_v43 }
 0xa9e   : > { %6607 = vmatmul.mubr.bf16.gmra.mrb[60].mxu0 %v13571_v55 }
 0xa9f   : > { %9714 = vmatprep.mubr.msk.bf16.mxu0 %vm1034_vm0, %v13576_v52  ;;  %6754 = vmatpush1.bf16.msra.mxu0 %v10950_v50  ;;  %v13809_v50 = vld [vmem:[#allocation6 + $0x2b8] sm:$0xff] }
 0xaa0   : > { %6755 = vmatprep.subr.bf16.mxu0 %v13158_v43 }
 0xaa3   : > { %6756 = vmatpush1.bf16.msra.mxu0 %v10951_v6  ;;  %v10980_v6 = vld [vmem:[%s14504_s8] sm:$0xff]  }
 0xaa4   : > { %6757 = vmatprep.subr.bf16.mxu0 %v13158_v43 }
 0xaa6   : > { %6615 = vmatmul.mubr.bf16.gmra.mrb[64].mxu0 %v13586_v7 }
 0xaa7   : > { %9715 = vmatprep.mubr.msk.bf16.mxu0 %vm1034_vm0, %v13591_v9  ;;  %6758 = vmatpush1.bf16.msra.mxu0 %v10952_v8  ;;  %v10982_v8 = vld [vmem:[%s14504_s8 + $0x10] sm:$0xff]  }
 0xaa8   : > { %6759 = vmatprep.subr.bf16.mxu0 %v13158_v43 }
 0xaab   : > { %6760 = vmatpush1.bf16.msra.mxu0 %v10953_v30  ;;  %v13842_v30 = vld [vmem:[#allocation6 + $0x2c0] sm:$0xff] }
 0xaac   : > { %6761 = vmatprep.subr.bf16.mxu0 %v13158_v43  ;;  %v5459_v34 = vpop.permute.xlu0 %5458 }
 0xaad   : > { %v5461_v62 = vsel %vm1034_vm0, %v5454_v13, %v5459_v34  ;;  %v10984_v13 = vld [vmem:[%s14504_s8 + $0x20] sm:$0xff]   ;;  %v10986_v34 = vld [vmem:[%s14504_s8 + $0x30] sm:$0xff]  }
 0xaae   : > { %6623 = vmatmul.mubr.bf16.gmra.mrb[68].mxu0 %v13603_v33  ;;  %v5462_v14 = vsel %vm4553_vm7, %v5461_v62, 0.0  ;;  %v13862_v62 = vld [vmem:[#allocation6 + $0x2e8] sm:$0xff] }
 0xaaf   : > { %9716 = vmatprep.mubr.msk.bf16.mxu0 %vm1034_vm0, %v13608_v41  ;;  %6762 = vmatpush1.bf16.msra.mxu0 %v10954_v28  ;;  %v5464_v3 = vpack.c.bf16 %v11088_v1, %v5462_v14  ;;  %v10985_v28 = vld [vmem:[%s14504_s8 + $0x28] sm:$0xff]   ;;  %v10987_v14 = vld [vmem:[%s14504_s8 + $0x38] sm:$0xff]  }
 0xab0   : > { %6763 = vmatprep.subr.bf16.mxu0 %v13158_v43  ;;  %v13638_v43 = vld [vmem:[#allocation6 + $0x280] sm:$0xff] }
 0xab1   : > { %5466 = vst [vmem:[#allocation7 + $0x20] sm:$0xff] %v5464_v3  ;;  %v10988_v3 = vld [vmem:[%s14504_s8 + $0x40] sm:$0xff]  }
 0xab3   : > { %6764 = vmatpush1.bf16.msra.mxu0 %v10955_v15  ;;  %v13872_v15 = vld [vmem:[#allocation6 + $0x2e0] sm:$0xff] }
 0xab4   : > { %7000 = vmatprep.subr.bf16.mxu0 %v13625_v20 }
 0xab6   : > { %6631 = vmatmul.mubr.bf16.gmra.mrb[72].mxu0 %v13621_v18 }
 0xab7   : > { %9717 = vmatprep.mubr.msk.bf16.mxu0 %vm1034_vm0, %v13623_v49 }
 0xabe   : > { %6639 = vmatmul.mubr.bf16.gmra.mrb[76].mxu0 %v13631_v36 }
 0xabf   : > { %9718 = vmatprep.mubr.msk.bf16.mxu0 %vm1034_vm0, %v13633_v0 }
 0xac6   : > { %6647 = vmatmul.mubr.bf16.gmra.mrb[80].mxu0 %v13638_v43 }
 0xac7   : > { %9719 = vmatprep.mubr.msk.bf16.mxu0 %vm1034_vm0, %v13640_v2 }
 0xace   : > { %6655 = vmatmul.mubr.bf16.gmra.mrb[84].mxu0 %v13645_v11 }
 0xacf   : > { %9732 = vmatprep.mubr.msk.bf16.mxu0 %vm1034_vm0, %v6377_v21  ;;  %v13888_v21 = vld [vmem:[#allocation6 + $0x2f0] sm:$0xff] }
 0xad6   : > { %6774 = vmatmul.mubr.bf16.vlgmr.msra.gmra.mrb[48].mxu0 %v6376_v22  ;;  %v10990_v22 = vld [vmem:[%s14504_s8 + $0x50] sm:$0xff]  }
 0xad7   : > { %7001 = vmatpush1.bf16.msra.mxu0 %v10956_v24  ;;  %9733 = vmatprep.mubr.msk.bf16.mxu0 %vm1034_vm0, %v6379_v57 }
 0xad8   : > { %7002 = vmatprep.subr.bf16.mxu0 %v13625_v20 }
 0xadb   : > { %7003 = vmatpush1.bf16.msra.mxu0 %v10957_v25  ;;  %v13894_v25 = vld [vmem:[#allocation6 + $0x308] sm:$0xff] }
 0xadc   : > { %7004 = vmatprep.subr.bf16.mxu0 %v13625_v20 }
 0xade   : > { %6782 = vmatmul.mubr.bf16.gmra.mrb[52].mxu0 %v6378_v26 }
 0xadf   : > { %9734 = vmatprep.mubr.msk.bf16.mxu0 %vm1034_vm0, %v13398_v23  ;;  %7005 = vmatpush1.bf16.msra.mxu0 %v10958_v29  ;;  %v10961_v23 = vld [vmem:[%s14504_s8 + $0xe8] sm:$0xff]  }
 0xae0   : > { %7006 = vmatprep.subr.bf16.mxu0 %v13625_v20 }
 0xae3   : > { %7007 = vmatpush1.bf16.msra.mxu0 %v10959_v31 }
 0xae4   : > { %7008 = vmatprep.subr.bf16.mxu0 %v13625_v20 }
 0xae6   : > { %6790 = vmatmul.mubr.bf16.gmra.mrb[56].mxu0 %v13404_v27  ;;  %v10963_v27 = vld [vmem:[%s14504_s8 + $0xf8] sm:$0xff]  }
 0xae7   : > { %9735 = vmatprep.mubr.msk.bf16.mxu0 %vm1034_vm0, %v13406_v59  ;;  %7009 = vmatpush1.bf16.msra.mxu0 %v10960_v10  ;;  %v10964_v59 = vld [vmem:[%s14504_s8 + $0x100] sm:$0xff]   ;;  %v10991_v10 = vld [vmem:[%s14504_s8 + $0x58] sm:$0xff]  }
 0xae8   : > { %7010 = vmatprep.subr.bf16.mxu0 %v13625_v20 }
 0xaeb   : > { %7011 = vmatpush1.bf16.msra.mxu0 %v10961_v23  ;;  %v13907_v23 = vld [vmem:[#allocation6 + $0x300] sm:$0xff] }
 0xaec   : > { %7012 = vmatprep.subr.bf16.mxu0 %v13625_v20 }
 0xaee   : > { %6798 = vmatmul.mubr.bf16.gmra.mrb[60].mxu0 %v13411_v56  ;;  %v10965_v56 = vld [vmem:[%s14504_s8 + $0x108] sm:$0xff]  }
 0xaef   : > { %9736 = vmatprep.mubr.msk.bf16.mxu0 %vm1034_vm0, %v13546_v16  ;;  %7013 = vmatpush1.bf16.msra.mxu0 %v10962_v42  ;;  %v13909_v42 = vld [vmem:[#allocation6 + $0x318] sm:$0xff] }
 0xaf0   : > { %7014 = vmatprep.subr.bf16.mxu0 %v13625_v20 }
 0xaf3   : > { %7015 = vmatpush1.bf16.msra.mxu0 %v10963_v27  ;;  %v13915_v27 = vld [vmem:[#allocation6 + $0x310] sm:$0xff] }
 0xaf4   : > { %7016 = vmatprep.subr.bf16.mxu0 %v13625_v20 }
 0xaf6   : > { %6806 = vmatmul.mubr.bf16.gmra.mrb[64].mxu0 %v13556_v61 }
 0xaf7   : > { %9737 = vmatprep.mubr.msk.bf16.mxu0 %vm1034_vm0, %v13561_v35  ;;  %7017 = vmatpush1.bf16.msra.mxu0 %v10964_v59  ;;  %v13917_v59 = vld [vmem:[#allocation6 + $0x328] sm:$0xff] }
 0xaf8   : > { %7018 = vmatprep.subr.bf16.mxu0 %v13625_v20 }
 0xafb   : > { %7019 = vmatpush1.bf16.msra.mxu0 %v10965_v56  ;;  %v13922_v56 = vld [vmem:[#allocation6 + $0x320] sm:$0xff] }
 0xafc   : > { %7020 = vmatprep.subr.bf16.mxu0 %v13625_v20 }
 0xafe   : > { %6814 = vmatmul.mubr.bf16.gmra.mrb[68].mxu0 %v13571_v55 }
 0xaff   : > { %9738 = vmatprep.mubr.msk.bf16.mxu0 %vm1034_vm0, %v13576_v52  ;;  %7021 = vmatpush1.bf16.msra.mxu0 %v10966_v38  ;;  %v13924_v38 = vld [vmem:[#allocation6 + $0x338] sm:$0xff] }
 0xb00   : > { %7022 = vmatprep.subr.bf16.mxu0 %v13625_v20 }
 0xb03   : > { %7023 = vmatpush1.bf16.msra.mxu0 %v10967_v39  ;;  %v13929_v39 = vld [vmem:[#allocation6 + $0x330] sm:$0xff] }
 0xb04   : > { %7458 = vmatprep.subr.bf16.mxu0 %v13625_v20 }
 0xb06   : > { %6822 = vmatmul.mubr.bf16.gmra.mrb[72].mxu0 %v13586_v7 }
 0xb07   : > { %9739 = vmatprep.mubr.msk.bf16.mxu0 %vm1034_vm0, %v13591_v9 }
 0xb0e   : > { %6830 = vmatmul.mubr.bf16.gmra.mrb[76].mxu0 %v13603_v33 }
 0xb0f   : > { %9740 = vmatprep.mubr.msk.bf16.mxu0 %vm1034_vm0, %v13608_v41 }
 0xb16   : > { %6838 = vmatmul.mubr.bf16.gmra.mrb[80].mxu0 %v13621_v18 }
 0xb17   : > { %9741 = vmatprep.mubr.msk.bf16.mxu0 %vm1034_vm0, %v13623_v49 }
 0xb1e   : > { %6846 = vmatmul.mubr.bf16.gmra.mrb[84].mxu0 %v13631_v36 }
 0xb1f   : > { %9778 = vmatprep.mubr.msk.bf16.mxu0 %vm1034_vm0, %v13546_v16  ;;  %v10975_v16 = vld [vmem:[%s14504_s8 + $0x98] sm:$0xff]  }
 0xb26   : > { %7033 = vmatmul.mubr.bf16.vlgmr.msra.gmra.mrb[48].mxu0 %v13556_v61  ;;  %v10977_v61 = vld [vmem:[%s14504_s8 + $0xa8] sm:$0xff]  }
 0xb27   : > { %7459 = vmatpush1.bf16.msra.mxu0 %v10968_v40  ;;  %9779 = vmatprep.mubr.msk.bf16.mxu0 %vm1034_vm0, %v13561_v35  ;;  %v10979_v35 = vld [vmem:[%s14504_s8 + $0xb8] sm:$0xff]   ;;  %v10992_v40 = vld [vmem:[%s14504_s8 + $0xc0] sm:$0xff]  }
 0xb28   : > { %7460 = vmatprep.subr.bf16.mxu0 %v13625_v20 }
 0xb29   : > { %v13734_v63 = vpop.f32.mrb[44].mxu0 }
 0xb2a   : > { %v6363_v60 = vrot.slane %v13734_v63, 1  ;;  %6366 = vrot.lane.b32.xlu1 %v13734_v63, %s11090_s20  ;;  %v6355_v58 = vpop.f32.mrb[45].mxu0 }
 0xb2b   : > { %v6356_v19 = vpop.f32.mrb[46].mxu0  ;;  %7461 = vmatpush1.bf16.msra.mxu0 %v10969_v5  ;;  %v10993_v5 = vld [vmem:[%s14504_s8 + $0xc8] sm:$0xff]   ;;  %v10999_v58 = vld [vmem:[%s14504_s8 + $0xf8] sm:$0xff]  }
 0xb2c   : > { %v6365_v48 = vsel %vm1048_vm3, %v6363_v60, 0.0  ;;  %v6357_v51 = vpop.f32.mrb[47].mxu0  ;;  %7462 = vmatprep.subr.bf16.mxu0 %v13625_v20  ;;  %v13974_v60 = vld [vmem:[%s14507_s11] sm:$0x77] }
 0xb2d   : > { %v6371_v53 = vsel %vm4553_vm7, %v6365_v48, 0.0  ;;  %v9791_v19 = vcombine.high %v13974_v60, %v13974_v60  ;;  %v11001_v48 = vld [vmem:[%s14504_s8 + $0x108] sm:$0xff]   ;;  %v11002_v51 = vld [vmem:[%s14504_s8 + $0x110] sm:$0xff]  }
 0xb2e   : > { %v6373_v17 = vpack.c.bf16 %v11088_v1, %v6371_v53  ;;  %7041 = vmatmul.mubr.bf16.gmra.mrb[52].mxu0 %v13571_v55  ;;  %v13807_v55 = vld [vmem:[#allocation6 + $0x2a0] sm:$0xff]  ;;  %v11003_v53 = vld [vmem:[%s14504_s8 + $0x118] sm:$0xff]  }
 0xb2f   : > { %9780 = vmatprep.mubr.msk.bf16.mxu0 %vm1034_vm0, %v13576_v52  ;;  %7463 = vmatpush1.bf16.msra.mxu0 %v10970_v37  ;;  %v13814_v52 = vld [vmem:[#allocation6 + $0x2b0] sm:$0xff]  ;;  %v11000_v37 = vld [vmem:[%s14504_s8 + $0x100] sm:$0xff]  }
 0xb30   : > { %6375 = vst.msk [vmem:[#allocation7 + $0x38] sm:$0xff] %vm1034_vm0, %v6373_v17  ;;  %7464 = vmatprep.subr.bf16.mxu0 %v13625_v20  ;;  %9792 = vmatprep.mubr.msk.bf16.mxu1 %vm4498_vm6, %v9791_v19  ;;  %v14011_v17 = vld [vmem:[%s14505_s9] ss:$0 sm:$0xff] }
 0xb33   : > { %7465 = vmatpush1.bf16.msra.mxu0 %v10971_v45 }
 0xb34   : > { %7466 = vmatprep.subr.bf16.mxu0 %v13625_v20 }
 0xb36   : > { %7049 = vmatmul.mubr.bf16.gmra.mrb[56].mxu0 %v13586_v7  ;;  %v10981_v7 = vld [vmem:[%s14504_s8 + $0x8] sm:$0xff]  }
 0xb37   : > { %9781 = vmatprep.mubr.msk.bf16.mxu0 %vm1034_vm0, %v13591_v9  ;;  %7467 = vmatpush1.bf16.msra.mxu0 %v10972_v54  ;;  %v13832_v9 = vld [vmem:[#allocation6 + $0x2c8] sm:$0xff]  ;;  %v14018_v54 = vld [vmem:[%s14506_s10] ss:$0 sm:$0xff] }
 0xb38   : > { %7468 = vmatprep.subr.bf16.mxu0 %v13625_v20 }
 0xb3b   : > { %7469 = vmatpush1.bf16.msra.mxu0 %v10973_v32 }
 0xb3c   : > { %7470 = vmatprep.subr.bf16.mxu0 %v13625_v20 }
 0xb3e   : > { %7057 = vmatmul.mubr.bf16.gmra.mrb[60].mxu0 %v13603_v33  ;;  %v13847_v33 = vld [vmem:[#allocation6 + $0x2d8] sm:$0xff] }
 0xb3f   : > { %9782 = vmatprep.mubr.msk.bf16.mxu0 %vm1034_vm0, %v13608_v41  ;;  %7471 = vmatpush1.bf16.msra.mxu0 %v10974_v47  ;;  %v13857_v41 = vld [vmem:[#allocation6 + $0x2d0] sm:$0xff] }
 0xb40   : > { %7472 = vmatprep.subr.bf16.mxu0 %v13625_v20 }
 0xb43   : > { %7473 = vmatpush1.bf16.msra.mxu0 %v10975_v16 }
 0xb44   : > { %7474 = vmatprep.subr.bf16.mxu0 %v13625_v20 }
 0xb46   : > { %7065 = vmatmul.mubr.bf16.gmra.mrb[64].mxu0 %v13621_v18  ;;  %v13877_v18 = vld [vmem:[#allocation6 + $0x2f8] sm:$0xff] }
 0xb47   : > { %9783 = vmatprep.mubr.msk.bf16.mxu0 %vm1034_vm0, %v13623_v49  ;;  %7475 = vmatpush1.bf16.msra.mxu0 %v10976_v46  ;;  %v10989_v49 = vld [vmem:[%s14504_s8 + $0x48] sm:$0xff]  }
 0xb48   : > { %7476 = vmatprep.subr.bf16.mxu0 %v13625_v20 }
 0xb4b   : > { %7477 = vmatpush1.bf16.msra.mxu0 %v10977_v61 }
 0xb4c   : > { %7478 = vmatprep.subr.bf16.mxu0 %v13625_v20 }
 0xb4e   : > { %7073 = vmatmul.mubr.bf16.gmra.mrb[68].mxu0 %v13631_v36  ;;  %v6360_v36 = vrot.slane %v13734_v63, 7  ;;  %v10998_v63 = vld [vmem:[%s14504_s8 + $0xf0] sm:$0xff]  }
 0xb4f   : > { %9784 = vmatprep.mubr.msk.bf16.mxu0 %vm1034_vm0, %v13633_v0  ;;  %7479 = vmatpush1.bf16.msra.mxu0 %v10978_v4 }
 0xb50   : > { %7480 = vmatprep.subr.bf16.mxu0 %v13625_v20  ;;  %v6362_v57 = vsel %vm914_vm5, 0.0, %v6360_v36 }
 0xb53   : > { %7481 = vmatpush1.bf16.msra.mxu0 %v10979_v35 }
 0xb54   : > { %7649 = vmatprep.subr.bf16.mxu0 %v13625_v20 }
 0xb56   : > { %7081 = vmatmul.mubr.bf16.gmra.mrb[72].mxu0 %v13638_v43 }
 0xb57   : > { %9785 = vmatprep.mubr.msk.bf16.mxu0 %vm1034_vm0, %v13640_v2 }
 0xb5e   : > { %7089 = vmatmul.mubr.bf16.gmra.mrb[76].mxu0 %v13645_v11 }
 0xb5f   : > { %9786 = vmatprep.mubr.msk.bf16.mxu0 %vm1034_vm0, %v13802_v44 }
 0xb66   : > { %7097 = vmatmul.mubr.bf16.gmra.mrb[80].mxu0 %v13807_v55 }
 0xb67   : > { %9787 = vmatprep.mubr.msk.bf16.mxu0 %vm1034_vm0, %v13809_v50 }
 0xb6e   : > { %7105 = vmatmul.mubr.bf16.gmra.mrb[84].mxu0 %v13814_v52 }
 0xb6f   : > { %9829 = vmatprep.mubr.msk.bf16.mxu0 %vm1034_vm0, %v13802_v44 }
 0xb76   : > { %7491 = vmatmul.mubr.bf16.vlgmr.msra.gmra.mrb[88].mxu0 %v13807_v55 }
 0xb77   : > { %7650 = vmatpush1.bf16.msra.mxu0 %v10980_v6  ;;  %9830 = vmatprep.mubr.msk.bf16.mxu0 %vm1034_vm0, %v13809_v50 }
 0xb78   : > { %7651 = vmatprep.subr.bf16.mxu0 %v13625_v20 }
 0xb7b   : > { %7652 = vmatpush1.bf16.msra.mxu0 %v10981_v7 }
 0xb7c   : > { %7653 = vmatprep.subr.bf16.mxu0 %v13625_v20 }
 0xb7e   : > { %7499 = vmatmul.mubr.bf16.gmra.mrb[92].mxu0 %v13814_v52 }
 0xb7f   : > { %9831 = vmatprep.mubr.msk.bf16.mxu0 %vm1034_vm0, %v13832_v9  ;;  %7654 = vmatpush1.bf16.msra.mxu0 %v10982_v8 }
 0xb80   : > { %7655 = vmatprep.subr.bf16.mxu0 %v13625_v20 }
 0xb83   : > { %7656 = vmatpush1.bf16.msra.mxu0 %v10983_v12 }
 0xb84   : > { %7657 = vmatprep.subr.bf16.mxu0 %v13625_v20 }
 0xb86   : > { %7507 = vmatmul.mubr.bf16.gmra.mrb[96].mxu0 %v13842_v30 }
 0xb87   : > { %9832 = vmatprep.mubr.msk.bf16.mxu0 %vm1034_vm0, %v13847_v33  ;;  %7658 = vmatpush1.bf16.msra.mxu0 %v10984_v13 }
 0xb88   : > { %7659 = vmatprep.subr.bf16.mxu0 %v13625_v20 }
 0xb8b   : > { %7660 = vmatpush1.bf16.msra.mxu0 %v10985_v28 }
 0xb8c   : > { %7661 = vmatprep.subr.bf16.mxu0 %v13625_v20 }
 0xb8e   : > { %7515 = vmatmul.mubr.bf16.gmra.mrb[100].mxu0 %v13857_v41 }
 0xb8f   : > { %9833 = vmatprep.mubr.msk.bf16.mxu0 %vm1034_vm0, %v13862_v62  ;;  %7662 = vmatpush1.bf16.msra.mxu0 %v10986_v34 }
 0xb90   : > { %7663 = vmatprep.subr.bf16.mxu0 %v13625_v20 }
 0xb93   : > { %7664 = vmatpush1.bf16.msra.mxu0 %v10987_v14 }
 0xb94   : > { %7665 = vmatprep.subr.bf16.mxu0 %v13625_v20 }
 0xb96   : > { %7523 = vmatmul.mubr.bf16.gmra.mrb[104].mxu0 %v13872_v15 }
 0xb97   : > { %9834 = vmatprep.mubr.msk.bf16.mxu0 %vm1034_vm0, %v13877_v18  ;;  %7666 = vmatpush1.bf16.msra.mxu0 %v10988_v3 }
 0xb98   : > { %7667 = vmatprep.subr.bf16.mxu0 %v13625_v20 }
 0xb9b   : > { %7668 = vmatpush1.bf16.msra.mxu0 %v10989_v49 }
 0xb9c   : > { %v6367_v24 = vpop.permute.xlu1 %6366  ;;  %7669 = vmatprep.subr.bf16.mxu0 %v13625_v20 }
 0xb9d   : > { %v6369_v26 = vsel %vm1034_vm0, %v6362_v57, %v6367_v24 }
 0xb9e   : > { %v6370_v29 = vsel %vm4553_vm7, %v6369_v26, 0.0  ;;  %7531 = vmatmul.mubr.bf16.gmra.mrb[108].mxu0 %v13888_v21 }
 0xb9f   : > { %v6372_v31 = vpack.c.bf16 %v11088_v1, %v6370_v29  ;;  %9835 = vmatprep.mubr.msk.bf16.mxu0 %vm1034_vm0, %v13894_v25  ;;  %7670 = vmatpush1.bf16.msra.mxu0 %v10990_v22 }
 0xba0   : > { %7671 = vmatprep.subr.bf16.mxu0 %v13625_v20 }
 0xba1   : > { %6374 = vst [vmem:[#allocation7 + $0x30] sm:$0xff] %v6372_v31 }
 0xba3   : > { %7672 = vmatpush1.bf16.msra.mxu0 %v10991_v10 }
 0xba4   : > { %7908 = vmatprep.subr.bf16.mxu0 %v13625_v20 }
 0xba6   : > { %7539 = vmatmul.mubr.bf16.gmra.mrb[112].mxu0 %v13907_v23 }
 0xba7   : > { %9836 = vmatprep.mubr.msk.bf16.mxu0 %vm1034_vm0, %v13909_v42 }
 0xbae   : > { %7547 = vmatmul.mubr.bf16.gmra.mrb[116].mxu0 %v13915_v27 }
 0xbaf   : > { %9837 = vmatprep.mubr.msk.bf16.mxu0 %vm1034_vm0, %v13917_v59 }
 0xbb6   : > { %7555 = vmatmul.mubr.bf16.gmra.mrb[120].mxu0 %v13922_v56 }
 0xbb7   : > { %9838 = vmatprep.mubr.msk.bf16.mxu0 %vm1034_vm0, %v13924_v38 }
 0xbbe   : > { %7563 = vmatmul.mubr.bf16.gmra.mrb[124].mxu0 %v13929_v39 }
 0xbbf   : > { %9851 = vmatprep.mubr.msk.bf16.mxu0 %vm1034_vm0, %v13633_v0  ;;  %v10994_v0 = vld [vmem:[%s14504_s8 + $0xd0] sm:$0xff]  }
 0xbc6   : > { %7682 = vmatmul.mubr.bf16.vlgmr.msra.gmra.mrb[88].mxu0 %v13638_v43  ;;  %v10995_v43 = vld [vmem:[%s14504_s8 + $0xd8] sm:$0xff]  }
 0xbc7   : > { %7909 = vmatpush1.bf16.msra.mxu0 %v10992_v40  ;;  %9852 = vmatprep.mubr.msk.bf16.mxu0 %vm1034_vm0, %v13640_v2  ;;  %v10996_v2 = vld [vmem:[%s14504_s8 + $0xe0] sm:$0xff]  }
 0xbc8   : > { %7910 = vmatprep.subr.bf16.mxu0 %v13625_v20 }
 0xbcb   : > { %7911 = vmatpush1.bf16.msra.mxu0 %v10993_v5 }
 0xbcc   : > { %7912 = vmatprep.subr.bf16.mxu0 %v13625_v20 }
 0xbce   : > { %7690 = vmatmul.mubr.bf16.gmra.mrb[92].mxu0 %v13645_v11  ;;  %v10997_v11 = vld [vmem:[%s14504_s8 + $0xe8] sm:$0xff]  }
 0xbcf   : > { %9853 = vmatprep.mubr.msk.bf16.mxu0 %vm1034_vm0, %v13802_v44  ;;  %7913 = vmatpush1.bf16.msra.mxu0 %v10994_v0 }
 0xbd0   : > { %7914 = vmatprep.subr.bf16.mxu0 %v13625_v20 }
 0xbd3   : > { %7915 = vmatpush1.bf16.msra.mxu0 %v10995_v43 }
 0xbd4   : > { %7916 = vmatprep.subr.bf16.mxu0 %v13625_v20 }
 0xbd6   : > { %7698 = vmatmul.mubr.bf16.gmra.mrb[96].mxu0 %v13807_v55 }
 0xbd7   : > { %9854 = vmatprep.mubr.msk.bf16.mxu0 %vm1034_vm0, %v13809_v50  ;;  %7917 = vmatpush1.bf16.msra.mxu0 %v10996_v2 }
 0xbd8   : > { %7918 = vmatprep.subr.bf16.mxu0 %v13625_v20 }
 0xbdb   : > { %7919 = vmatpush1.bf16.msra.mxu0 %v10997_v11 }
 0xbdc   : > { %7920 = vmatprep.subr.bf16.mxu0 %v13625_v20 }
 0xbde   : > { %7706 = vmatmul.mubr.bf16.gmra.mrb[100].mxu0 %v13814_v52 }
 0xbdf   : > { %9855 = vmatprep.mubr.msk.bf16.mxu0 %vm1034_vm0, %v13832_v9  ;;  %7921 = vmatpush1.bf16.msra.mxu0 %v10998_v63 }
 0xbe0   : > { %7922 = vmatprep.subr.bf16.mxu0 %v13625_v20 }
 0xbe3   : > { %7923 = vmatpush1.bf16.msra.mxu0 %v10999_v58 }
 0xbe4   : > { %7924 = vmatprep.subr.bf16.mxu0 %v13625_v20 }
 0xbe6   : > { %7714 = vmatmul.mubr.bf16.gmra.mrb[104].mxu0 %v13842_v30 }
 0xbe7   : > { %9856 = vmatprep.mubr.msk.bf16.mxu0 %vm1034_vm0, %v13847_v33  ;;  %7925 = vmatpush1.bf16.msra.mxu0 %v11000_v37 }
 0xbe8   : > { %7926 = vmatprep.subr.bf16.mxu0 %v13625_v20 }
 0xbeb   : > { %7927 = vmatpush1.bf16.msra.mxu0 %v11001_v48 }
 0xbec   : > { %7928 = vmatprep.subr.bf16.mxu0 %v13625_v20 }
 0xbee   : > { %7722 = vmatmul.mubr.bf16.gmra.mrb[108].mxu0 %v13857_v41 }
 0xbef   : > { %9857 = vmatprep.mubr.msk.bf16.mxu0 %vm1034_vm0, %v13862_v62  ;;  %7929 = vmatpush1.bf16.msra.mxu0 %v11002_v51 }
 0xbf0   : > { %7930 = vmatprep.subr.bf16.mxu0 %v13625_v20 }
 0xbf3   : > { %7931 = vmatpush1.bf16.msra.mxu0 %v11003_v53 }
 0xbf6   : > { %7730 = vmatmul.mubr.bf16.gmra.mrb[112].mxu0 %v13872_v15 }
 0xbf7   : > { %9858 = vmatprep.mubr.msk.bf16.mxu0 %vm1034_vm0, %v13877_v18 }
 0xbf9   : > { %v7034_v45 = vpop.f32.mrb[48].mxu0 }
 0xbfa   : > { %v7140_v32 = vmul.f32 %v14011_v17, %v7034_v45  ;;  %v7036_v47 = vpop.f32.mrb[49].mxu0 }
 0xbfb   : > { %v7037_v16 = vpop.f32.mrb[50].mxu0 }
 0xbfc   : > { %v7167_v46 = vadd.f32 %v14018_v54, %v7140_v32  ;;  %v7141_v61 = vmul.f32 %v14011_v17, %v7037_v16  ;;  %v7039_v4 = vpop.f32.mrb[51].mxu0 }
 0xbfe   : > { %v7168_v35 = vadd.f32 %v14018_v54, %v7141_v61  ;;  %7738 = vmatmul.mubr.bf16.gmra.mrb[116].mxu0 %v13888_v21  ;;  %v7187_v44 = vmax.f32 %v7167_v46, 0.0 }
 0xbff   : > { %9859 = vmatprep.mubr.msk.bf16.mxu0 %vm1034_vm0, %v13894_v25 }
 0xc00   : > { %v7188_v55 = vmax.f32 %v7168_v35, 0.0 }
 0xc01   : > { %v7042_v50 = vpop.f32.mrb[52].mxu0 }
 0xc02   : > { %v7207_v52 = vpack.c.bf16 %v7188_v55, %v7187_v44  ;;  %v7142_v6 = vmul.f32 %v14011_v17, %v7042_v50  ;;  %v7044_v7 = vpop.f32.mrb[53].mxu0 }
 0xc03   : > { %v7045_v8 = vpop.f32.mrb[54].mxu0 }
 0xc04   : > { %v7169_v12 = vadd.f32 %v14018_v54, %v7142_v6  ;;  %v7143_v13 = vmul.f32 %v14011_v17, %v7045_v8  ;;  %v7047_v28 = vpop.f32.mrb[55].mxu0  ;;  %7228 = vmatpush1.bf16.msra.mxu1 %v7207_v52 }
 0xc05   : > { %7229 = vmatprep.subr.bf16.mxu1 %v13625_v20 }
 0xc06   : > { %v7170_v34 = vadd.f32 %v14018_v54, %v7143_v13  ;;  %7746 = vmatmul.mubr.bf16.gmra.mrb[120].mxu0 %v13907_v23  ;;  %v7189_v14 = vmax.f32 %v7169_v12, 0.0 }
 0xc07   : > { %9860 = vmatprep.mubr.msk.bf16.mxu0 %vm1034_vm0, %v13909_v42 }
 0xc08   : > { %v7190_v3 = vmax.f32 %v7170_v34, 0.0 }
 0xc09   : > { %v7050_v49 = vpop.f32.mrb[56].mxu0 }
 0xc0a   : > { %v7208_v36 = vpack.c.bf16 %v7190_v3, %v7189_v14  ;;  %v7144_v22 = vmul.f32 %v14011_v17, %v7050_v49  ;;  %v7052_v24 = vpop.f32.mrb[57].mxu0 }
 0xc0b   : > { %v7053_v57 = vpop.f32.mrb[58].mxu0 }
 0xc0c   : > { %v7171_v26 = vadd.f32 %v14018_v54, %v7144_v22  ;;  %v7145_v29 = vmul.f32 %v14011_v17, %v7053_v57  ;;  %v7055_v31 = vpop.f32.mrb[59].mxu0  ;;  %7230 = vmatpush1.bf16.msra.mxu1 %v7208_v36 }
 0xc0d   : > { %7231 = vmatprep.subr.bf16.mxu1 %v13625_v20 }
 0xc0e   : > { %v7172_v10 = vadd.f32 %v14018_v54, %v7145_v29  ;;  %7754 = vmatmul.mubr.bf16.gmra.mrb[124].mxu0 %v13915_v27  ;;  %v7191_v40 = vmax.f32 %v7171_v26, 0.0 }
 0xc0f   : > { %9897 = vmatprep.mubr.msk.bf16.mxu0 %vm1034_vm0, %v13832_v9 }
 0xc10   : > { %v7192_v5 = vmax.f32 %v7172_v10, 0.0 }
 0xc11   : > { %v7058_v0 = vpop.f32.mrb[60].mxu0 }
 0xc12   : > { %v7209_v43 = vpack.c.bf16 %v7192_v5, %v7191_v40  ;;  %v7146_v2 = vmul.f32 %v14011_v17, %v7058_v0  ;;  %v7060_v11 = vpop.f32.mrb[61].mxu0 }
 0xc13   : > { %v7061_v63 = vpop.f32.mrb[62].mxu0 }
 0xc14   : > { %v7173_v58 = vadd.f32 %v14018_v54, %v7146_v2  ;;  %v7147_v19 = vmul.f32 %v14011_v17, %v7061_v63  ;;  %v7063_v37 = vpop.f32.mrb[63].mxu0  ;;  %7232 = vmatpush1.bf16.msra.mxu1 %v7209_v43 }
 0xc15   : > { %7233 = vmatprep.subr.bf16.mxu1 %v13625_v20 }
 0xc16   : > { %v7174_v48 = vadd.f32 %v14018_v54, %v7147_v19  ;;  %7941 = vmatmul.mubr.bf16.vlgmr.msra.gmra.mrb[88].mxu0 %v13842_v30  ;;  %v7193_v9 = vmax.f32 %v7173_v58, 0.0 }
 0xc17   : > { %9898 = vmatprep.mubr.msk.bf16.mxu0 %vm1034_vm0, %v13847_v33 }
 0xc18   : > { %v7194_v51 = vmax.f32 %v7174_v48, 0.0 }
 0xc19   : > { %v7066_v53 = vpop.f32.mrb[64].mxu0 }
 0xc1a   : > { %v7210_v45 = vpack.c.bf16 %v7194_v51, %v7193_v9  ;;  %v7148_v32 = vmul.f32 %v14011_v17, %v7066_v53  ;;  %v7068_v47 = vpop.f32.mrb[65].mxu0 }
 0xc1b   : > { %v7069_v16 = vpop.f32.mrb[66].mxu0 }
 0xc1c   : > { %v7175_v46 = vadd.f32 %v14018_v54, %v7148_v32  ;;  %v7149_v61 = vmul.f32 %v14011_v17, %v7069_v16  ;;  %v7071_v4 = vpop.f32.mrb[67].mxu0  ;;  %7234 = vmatpush1.bf16.msra.mxu1 %v7210_v45 }
 0xc1d   : > { %7235 = vmatprep.subr.bf16.mxu1 %v13625_v20 }
 0xc1e   : > { %v7176_v30 = vadd.f32 %v14018_v54, %v7149_v61  ;;  %7949 = vmatmul.mubr.bf16.gmra.mrb[92].mxu0 %v13857_v41  ;;  %v7195_v33 = vmax.f32 %v7175_v46, 0.0 }
 0xc1f   : > { %9899 = vmatprep.mubr.msk.bf16.mxu0 %vm1034_vm0, %v13862_v62 }
 0xc20   : > { %v7196_v35 = vmax.f32 %v7176_v30, 0.0 }
 0xc21   : > { %v7074_v44 = vpop.f32.mrb[68].mxu0 }
 0xc22   : > { %v7211_v55 = vpack.c.bf16 %v7196_v35, %v7195_v33  ;;  %v7150_v50 = vmul.f32 %v14011_v17, %v7074_v44  ;;  %v7076_v52 = vpop.f32.mrb[69].mxu0  ;;  %v9790_v44 = vcombine.low %v13974_v60, %v13974_v60  ;;  %v14108_v60 = vld [vmem:[%s14507_s11] sm:$0x77] }
 0xc23   : > { %v7077_v6 = vpop.f32.mrb[70].mxu0  ;;  %v9910_v52 = vcombine.high %v14108_v60, %v14108_v60 }
 0xc24   : > { %v7177_v7 = vadd.f32 %v14018_v54, %v7150_v50  ;;  %v7151_v8 = vmul.f32 %v14011_v17, %v7077_v6  ;;  %v7079_v12 = vpop.f32.mrb[71].mxu0  ;;  %7236 = vmatpush1.bf16.msra.mxu1 %v7211_v55  ;;  %v7779_v55 = vld [vmem:[#allocation6 + $0x348] sm:$0xff]  ;;  %v7778_v50 = vld [vmem:[#allocation6 + $0x340] sm:$0xff] }
 0xc25   : > { %7237 = vmatprep.subr.bf16.mxu1 %v13625_v20 }
 0xc26   : > { %v7178_v41 = vadd.f32 %v14018_v54, %v7151_v8  ;;  %7957 = vmatmul.mubr.bf16.gmra.mrb[96].mxu0 %v13872_v15  ;;  %v7197_v62 = vmax.f32 %v7177_v7, 0.0 }
 0xc27   : > { %9900 = vmatprep.mubr.msk.bf16.mxu0 %vm1034_vm0, %v13877_v18 }
 0xc28   : > { %v7198_v13 = vmax.f32 %v7178_v41, 0.0 }
 0xc29   : > { %v7082_v28 = vpop.f32.mrb[72].mxu0 }
 0xc2a   : > { %v7212_v34 = vpack.c.bf16 %v7198_v13, %v7197_v62  ;;  %v7152_v14 = vmul.f32 %v14011_v17, %v7082_v28  ;;  %v7084_v3 = vpop.f32.mrb[73].mxu0 }
 0xc2b   : > { %v7085_v49 = vpop.f32.mrb[74].mxu0 }
 0xc2c   : > { %v7179_v36 = vadd.f32 %v14018_v54, %v7152_v14  ;;  %v7153_v22 = vmul.f32 %v14011_v17, %v7085_v49  ;;  %v7087_v24 = vpop.f32.mrb[75].mxu0  ;;  %7238 = vmatpush1.bf16.msra.mxu1 %v7212_v34 }
 0xc2d   : > { %7239 = vmatprep.subr.bf16.mxu1 %v13625_v20 }
 0xc2e   : > { %v7180_v15 = vadd.f32 %v14018_v54, %v7153_v22  ;;  %7965 = vmatmul.mubr.bf16.gmra.mrb[100].mxu0 %v13888_v21  ;;  %v7199_v18 = vmax.f32 %v7179_v36, 0.0 }
 0xc2f   : > { %9901 = vmatprep.mubr.msk.bf16.mxu0 %vm1034_vm0, %v13894_v25 }
 0xc30   : > { %v7200_v57 = vmax.f32 %v7180_v15, 0.0 }
 0xc31   : > { %v7090_v26 = vpop.f32.mrb[76].mxu0 }
 0xc32   : > { %v7213_v29 = vpack.c.bf16 %v7200_v57, %v7199_v18  ;;  %v7154_v31 = vmul.f32 %v14011_v17, %v7090_v26  ;;  %v7092_v10 = vpop.f32.mrb[77].mxu0 }
 0xc33   : > { %v7093_v40 = vpop.f32.mrb[78].mxu0 }
 0xc34   : > { %v7181_v5 = vadd.f32 %v14018_v54, %v7154_v31  ;;  %v7155_v0 = vmul.f32 %v14011_v17, %v7093_v40  ;;  %v7095_v43 = vpop.f32.mrb[79].mxu0  ;;  %7240 = vmatpush1.bf16.msra.mxu1 %v7213_v29 }
 0xc35   : > { %7241 = vmatprep.subr.bf16.mxu1 %v13625_v20 }
 0xc36   : > { %v7182_v21 = vadd.f32 %v14018_v54, %v7155_v0  ;;  %7973 = vmatmul.mubr.bf16.gmra.mrb[104].mxu0 %v13907_v23  ;;  %v7201_v25 = vmax.f32 %v7181_v5, 0.0 }
 0xc37   : > { %9902 = vmatprep.mubr.msk.bf16.mxu0 %vm1034_vm0, %v13909_v42 }
 0xc38   : > { %v7202_v2 = vmax.f32 %v7182_v21, 0.0 }
 0xc39   : > { %v7098_v11 = vpop.f32.mrb[80].mxu0 }
 0xc3a   : > { %v7214_v63 = vpack.c.bf16 %v7202_v2, %v7201_v25  ;;  %v7156_v58 = vmul.f32 %v14011_v17, %v7098_v11  ;;  %v7100_v19 = vpop.f32.mrb[81].mxu0 }
 0xc3b   : > { %v7101_v37 = vpop.f32.mrb[82].mxu0 }
 0xc3c   : > { %v7183_v48 = vadd.f32 %v14018_v54, %v7156_v58  ;;  %v7157_v9 = vmul.f32 %v14011_v17, %v7101_v37  ;;  %v7103_v51 = vpop.f32.mrb[83].mxu0  ;;  %7242 = vmatpush1.bf16.msra.mxu1 %v7214_v63 }
 0xc3d   : > { %7243 = vmatprep.subr.bf16.mxu1 %v13625_v20 }
 0xc3e   : > { %v7184_v23 = vadd.f32 %v14018_v54, %v7157_v9  ;;  %7981 = vmatmul.mubr.bf16.gmra.mrb[108].mxu0 %v13915_v27  ;;  %v7203_v42 = vmax.f32 %v7183_v48, 0.0 }
 0xc3f   : > { %9903 = vmatprep.mubr.msk.bf16.mxu0 %vm1034_vm0, %v13917_v59 }
 0xc40   : > { %v7204_v53 = vmax.f32 %v7184_v23, 0.0 }
 0xc41   : > { %v7106_v45 = vpop.f32.mrb[84].mxu0 }
 0xc42   : > { %v7215_v32 = vpack.c.bf16 %v7204_v53, %v7203_v42  ;;  %v7158_v47 = vmul.f32 %v14011_v17, %v7106_v45  ;;  %v7108_v16 = vpop.f32.mrb[85].mxu0 }
 0xc43   : > { %v7109_v46 = vpop.f32.mrb[86].mxu0 }
 0xc44   : > { %v7185_v61 = vadd.f32 %v14018_v54, %v7158_v47  ;;  %v7159_v4 = vmul.f32 %v14011_v17, %v7109_v46  ;;  %v7111_v30 = vpop.f32.mrb[87].mxu0  ;;  %7244 = vmatpush1.bf16.msra.mxu1 %v7215_v32 }
 0xc45   : > { %7245 = vmatprep.subr.bf16.mxu1 %v13625_v20 }
 0xc46   : > { %v7186_v27 = vadd.f32 %v14018_v54, %v7159_v4  ;;  %7989 = vmatmul.mubr.bf16.gmra.mrb[112].mxu0 %v13922_v56  ;;  %v7205_v59 = vmax.f32 %v7185_v61, 0.0  ;;  %v7781_v56 = vld [vmem:[#allocation6 + $0x358] sm:$0xff] }
 0xc47   : > { %9904 = vmatprep.mubr.msk.bf16.mxu0 %vm1034_vm0, %v13924_v38  ;;  %v7780_v38 = vld [vmem:[#allocation6 + $0x350] sm:$0xff] }
 0xc48   : > { %v7206_v33 = vmax.f32 %v7186_v27, 0.0 }
 0xc4a   : > { %v7216_v35 = vpack.c.bf16 %v7206_v33, %v7205_v59 }
 0xc4c   : > { %7246 = vmatpush1.bf16.msra.mxu1 %v7216_v35 }
 0xc4d   : > { %8135 = vmatprep.subr.bf16.mxu1 %v13625_v20 }
 0xc4e   : > { %7997 = vmatmul.mubr.bf16.gmra.mrb[116].mxu0 %v13929_v39 }
 0xc4f   : > { %9905 = vmatprep.mubr.msk.bf16.mxu0 %vm1034_vm0, %v7779_v55  ;;  %7260 = vmatmul.mubr.bf16.vlgmr.msra.gmra.mrb[84].mxu1 %v9790_v44 }
 0xc50   : > { %9911 = vmatprep.mubr.msk.bf16.mxu1 %vm4498_vm6, %v9910_v52 }
 0xc56   : > { %8005 = vmatmul.mubr.bf16.gmra.mrb[120].mxu0 %v7778_v50 }
 0xc57   : > { %9906 = vmatprep.mubr.msk.bf16.mxu0 %vm1034_vm0, %v7781_v56 }
 0xc5e   : > { %8013 = vmatmul.mubr.bf16.gmra.mrb[124].mxu0 %v7780_v38 }
 0xce9   : > { %v7942_v39 = vpop.f32.mrb[88].mxu0 }
 0xcea   : > { %v8048_v6 = vmul.f32 %v14011_v17, %v7942_v39  ;;  %v7944_v7 = vpop.f32.mrb[89].mxu0 }
 0xceb   : > { %v7945_v8 = vpop.f32.mrb[90].mxu0 }
 0xcec   : > { %v8075_v12 = vadd.f32 %v14018_v54, %v8048_v6  ;;  %v8049_v41 = vmul.f32 %v14011_v17, %v7945_v8  ;;  %v7947_v62 = vpop.f32.mrb[91].mxu0  ;;  %v14140_v8 = vld [vmem:[#allocation7] sm:$0xff] }
 0xcee   : > { %v8076_v13 = vadd.f32 %v14018_v54, %v8049_v41  ;;  %v8095_v28 = vmax.f32 %v8075_v12, 0.0 }
 0xcf0   : > { %v8096_v34 = vmax.f32 %v8076_v13, 0.0 }
 0xcf1   : > { %v7950_v14 = vpop.f32.mrb[92].mxu0 }
 0xcf2   : > { %v8115_v3 = vpack.c.bf16 %v8096_v34, %v8095_v28  ;;  %v8050_v49 = vmul.f32 %v14011_v17, %v7950_v14  ;;  %v7952_v36 = vpop.f32.mrb[93].mxu0 }
 0xcf3   : > { %v7953_v22 = vpop.f32.mrb[94].mxu0 }
 0xcf4   : > { %v8077_v24 = vadd.f32 %v14018_v54, %v8050_v49  ;;  %v8051_v15 = vmul.f32 %v14011_v17, %v7953_v22  ;;  %v7955_v18 = vpop.f32.mrb[95].mxu0  ;;  %8136 = vmatpush1.bf16.msra.mxu1 %v8115_v3 }
 0xcf5   : > { %8137 = vmatprep.subr.bf16.mxu1 %v13625_v20 }
 0xcf6   : > { %v8078_v57 = vadd.f32 %v14018_v54, %v8051_v15  ;;  %v8097_v26 = vmax.f32 %v8077_v24, 0.0 }
 0xcf8   : > { %v8098_v29 = vmax.f32 %v8078_v57, 0.0 }
 0xcf9   : > { %v7958_v31 = vpop.f32.mrb[96].mxu0 }
 0xcfa   : > { %v8116_v10 = vpack.c.bf16 %v8098_v29, %v8097_v26  ;;  %v8052_v40 = vmul.f32 %v14011_v17, %v7958_v31  ;;  %v7960_v5 = vpop.f32.mrb[97].mxu0 }
 0xcfb   : > { %v7961_v0 = vpop.f32.mrb[98].mxu0 }
 0xcfc   : > { %v8079_v43 = vadd.f32 %v14018_v54, %v8052_v40  ;;  %v8053_v21 = vmul.f32 %v14011_v17, %v7961_v0  ;;  %v7963_v25 = vpop.f32.mrb[99].mxu0  ;;  %8138 = vmatpush1.bf16.msra.mxu1 %v8116_v10 }
 0xcfd   : > { %8139 = vmatprep.subr.bf16.mxu1 %v13625_v20 }
 0xcfe   : > { %v8080_v2 = vadd.f32 %v14018_v54, %v8053_v21  ;;  %v8099_v11 = vmax.f32 %v8079_v43, 0.0 }
 0xd00   : > { %v8100_v63 = vmax.f32 %v8080_v2, 0.0 }
 0xd01   : > { %v7966_v58 = vpop.f32.mrb[100].mxu0 }
 0xd02   : > { %v8117_v19 = vpack.c.bf16 %v8100_v63, %v8099_v11  ;;  %v8054_v37 = vmul.f32 %v14011_v17, %v7966_v58  ;;  %v7968_v48 = vpop.f32.mrb[101].mxu0 }
 0xd03   : > { %v7969_v9 = vpop.f32.mrb[102].mxu0 }
 0xd04   : > { %v8081_v51 = vadd.f32 %v14018_v54, %v8054_v37  ;;  %v8055_v23 = vmul.f32 %v14011_v17, %v7969_v9  ;;  %v7971_v42 = vpop.f32.mrb[103].mxu0  ;;  %8140 = vmatpush1.bf16.msra.mxu1 %v8117_v19 }
 0xd05   : > { %8141 = vmatprep.subr.bf16.mxu1 %v13625_v20 }
 0xd06   : > { %v8082_v53 = vadd.f32 %v14018_v54, %v8055_v23  ;;  %v8101_v45 = vmax.f32 %v8081_v51, 0.0 }
 0xd08   : > { %v8102_v32 = vmax.f32 %v8082_v53, 0.0 }
 0xd09   : > { %v7974_v47 = vpop.f32.mrb[104].mxu0 }
 0xd0a   : > { %v8118_v16 = vpack.c.bf16 %v8102_v32, %v8101_v45  ;;  %v8056_v46 = vmul.f32 %v14011_v17, %v7974_v47  ;;  %v7976_v61 = vpop.f32.mrb[105].mxu0 }
 0xd0b   : > { %v7977_v4 = vpop.f32.mrb[106].mxu0 }
 0xd0c   : > { %v8083_v30 = vadd.f32 %v14018_v54, %v8056_v46  ;;  %v8057_v27 = vmul.f32 %v14011_v17, %v7977_v4  ;;  %v7979_v59 = vpop.f32.mrb[107].mxu0  ;;  %8142 = vmatpush1.bf16.msra.mxu1 %v8118_v16 }
 0xd0d   : > { %8143 = vmatprep.subr.bf16.mxu1 %v13625_v20 }
 0xd0e   : > { %v8084_v33 = vadd.f32 %v14018_v54, %v8057_v27  ;;  %v8103_v35 = vmax.f32 %v8083_v30, 0.0 }
 0xd10   : > { %v8104_v44 = vmax.f32 %v8084_v33, 0.0 }
 0xd11   : > { %v7982_v55 = vpop.f32.mrb[108].mxu0 }
 0xd12   : > { %v8119_v50 = vpack.c.bf16 %v8104_v44, %v8103_v35  ;;  %v8058_v56 = vmul.f32 %v14011_v17, %v7982_v55  ;;  %v7984_v38 = vpop.f32.mrb[109].mxu0 }
 0xd13   : > { %v7985_v52 = vpop.f32.mrb[110].mxu0 }
 0xd14   : > { %v8085_v39 = vadd.f32 %v14018_v54, %v8058_v56  ;;  %v8059_v6 = vmul.f32 %v14011_v17, %v7985_v52  ;;  %v7987_v7 = vpop.f32.mrb[111].mxu0  ;;  %8144 = vmatpush1.bf16.msra.mxu1 %v8119_v50 }
 0xd15   : > { %8145 = vmatprep.subr.bf16.mxu1 %v14140_v8  ;;  %v11011_v7 = vld [vmem:[%s14508_s12 + $0x78] sm:$0xff]  }
 0xd16   : > { %v8086_v20 = vadd.f32 %v14018_v54, %v8059_v6  ;;  %v8105_v12 = vmax.f32 %v8085_v39, 0.0  ;;  %v9909_v39 = vcombine.low %v14108_v60, %v14108_v60  ;;  %v11008_v6 = vld [vmem:[%s14508_s12 + $0x60] sm:$0xff]   ;;  %v11010_v60 = vld [vmem:[%s14508_s12 + $0x70] sm:$0xff]  }
 0xd18   : > { %v8106_v41 = vmax.f32 %v8086_v20, 0.0  ;;  %v11012_v20 = vld [vmem:[%s14508_s12 + $0x80] sm:$0xff]  }
 0xd19   : > { %v7990_v62 = vpop.f32.mrb[112].mxu0 }
 0xd1a   : > { %v8120_v13 = vpack.c.bf16 %v8106_v41, %v8105_v12  ;;  %v8060_v28 = vmul.f32 %v14011_v17, %v7990_v62  ;;  %v7992_v34 = vpop.f32.mrb[113].mxu0  ;;  %v11013_v12 = vld [vmem:[%s14508_s12 + $0x88] sm:$0xff]   ;;  %v11014_v41 = vld [vmem:[%s14508_s12 + $0x90] sm:$0xff]   ;;  %v11015_v62 = vld [vmem:[%s14508_s12 + $0x98] sm:$0xff]  }
 0xd1b   : > { %v7993_v14 = vpop.f32.mrb[114].mxu0  ;;  %v11018_v34 = vld [vmem:[%s14508_s12 + $0xb0] sm:$0xff]  }
 0xd1c   : > { %v8087_v3 = vadd.f32 %v14018_v54, %v8060_v28  ;;  %v8061_v49 = vmul.f32 %v14011_v17, %v7993_v14  ;;  %v7995_v36 = vpop.f32.mrb[115].mxu0  ;;  %8146 = vmatpush1.bf16.msra.mxu1 %v8120_v13  ;;  %v11016_v13 = vld [vmem:[%s14508_s12 + $0xa0] sm:$0xff]   ;;  %v11017_v28 = vld [vmem:[%s14508_s12 + $0xa8] sm:$0xff]   ;;  %v11019_v14 = vld [vmem:[%s14508_s12 + $0xb8] sm:$0xff]  }
 0xd1d   : > { %8147 = vmatprep.subr.bf16.mxu1 %v14140_v8  ;;  %v14235_v36 = vld [vmem:[#allocation7 + $0x20] sm:$0xff] }
 0xd1e   : > { %v8088_v22 = vadd.f32 %v14018_v54, %v8061_v49  ;;  %v8107_v24 = vmax.f32 %v8087_v3, 0.0  ;;  %v14228_v3 = vld [vmem:[#allocation7 + $0x10] sm:$0xff]  ;;  %v14231_v49 = vld [vmem:[#allocation7 + $0x28] sm:$0xff] }
 0xd20   : > { %v8108_v15 = vmax.f32 %v8088_v22, 0.0  ;;  %v14238_v22 = vld [vmem:[#allocation7 + $0x38] sm:$0xff] }
 0xd21   : > { %v7998_v18 = vpop.f32.mrb[116].mxu0 }
 0xd22   : > { %v8121_v57 = vpack.c.bf16 %v8108_v15, %v8107_v24  ;;  %v8062_v26 = vmul.f32 %v14011_v17, %v7998_v18  ;;  %v8000_v29 = vpop.f32.mrb[117].mxu0  ;;  %v14150_v31 = vpop.f32.mrb[84].mxu1  ;;  %v14244_v15 = vld [vmem:[#allocation7 + $0x30] sm:$0xff] }
 0xd23   : > { %v8001_v10 = vpop.f32.mrb[118].mxu0  ;;  %v7271_v40 = vrot.slane %v14150_v31, 1  ;;  %7274 = vrot.lane.b32.xlu1 %v14150_v31, %s11090_s20  ;;  %v7263_v5 = vpop.f32.mrb[85].mxu1  ;;  %v7268_v18 = vrot.slane %v14150_v31, 7  ;;  %v11020_v31 = vld [vmem:[%s14508_s12] sm:$0xff]  }
 0xd24   : > { %v8089_v0 = vadd.f32 %v14018_v54, %v8062_v26  ;;  %v8063_v43 = vmul.f32 %v14011_v17, %v8001_v10  ;;  %v8003_v21 = vpop.f32.mrb[119].mxu0  ;;  %8148 = vmatpush1.bf16.msra.mxu1 %v8121_v57  ;;  %v7264_v25 = vpop.f32.mrb[86].mxu1  ;;  %v11021_v5 = vld [vmem:[%s14508_s12 + $0x8] sm:$0xff]  }
 0xd25   : > { %8149 = vmatprep.subr.bf16.mxu1 %v14140_v8  ;;  %v7273_v2 = vsel %vm1048_vm3, %v7271_v40, 0.0  ;;  %v7265_v11 = vpop.f32.mrb[87].mxu1  ;;  %v7270_v57 = vsel %vm914_vm5, 0.0, %v7268_v18  ;;  %v11024_v21 = vld [vmem:[%s14508_s12 + $0x20] sm:$0xff]   ;;  %v11025_v25 = vld [vmem:[%s14508_s12 + $0x28] sm:$0xff]  }
 0xd26   : > { %v8090_v63 = vadd.f32 %v14018_v54, %v8063_v43  ;;  %v7279_v58 = vsel %vm4553_vm7, %v7273_v2, 0.0  ;;  %v8109_v37 = vmax.f32 %v8089_v0, 0.0  ;;  %v11022_v0 = vld [vmem:[%s14508_s12 + $0x10] sm:$0xff]   ;;  %v11023_v43 = vld [vmem:[%s14508_s12 + $0x18] sm:$0xff]  }
 0xd27   : > { %v7281_v19 = vpack.c.bf16 %v11088_v1, %v7279_v58  ;;  %v11026_v2 = vld [vmem:[%s14508_s12 + $0x30] sm:$0xff]   ;;  %v11027_v11 = vld [vmem:[%s14508_s12 + $0x38] sm:$0xff]   ;;  %v11029_v58 = vld [vmem:[%s14508_s12 + $0x48] sm:$0xff]  }
 0xd28   : > { %v8110_v48 = vmax.f32 %v8090_v63, 0.0  ;;  %v11028_v63 = vld [vmem:[%s14508_s12 + $0x40] sm:$0xff]  }
 0xd29   : > { %v8006_v9 = vpop.f32.mrb[120].mxu0  ;;  %7283 = vst.msk [vmem:[#allocation7 + $0x48] sm:$0xff] %vm1034_vm0, %v7281_v19  ;;  %v11030_v19 = vld [vmem:[%s14508_s12 + $0x50] sm:$0xff]  }
 0xd2a   : > { %v8122_v51 = vpack.c.bf16 %v8110_v48, %v8109_v37  ;;  %v8064_v23 = vmul.f32 %v14011_v17, %v8006_v9  ;;  %v8008_v42 = vpop.f32.mrb[121].mxu0  ;;  %v11031_v37 = vld [vmem:[%s14508_s12 + $0x58] sm:$0xff]  }
 0xd2b   : > { %v8009_v53 = vpop.f32.mrb[122].mxu0 }
 0xd2c   : > { %v8091_v45 = vadd.f32 %v14018_v54, %v8064_v23  ;;  %v8065_v32 = vmul.f32 %v14011_v17, %v8009_v53  ;;  %v8011_v47 = vpop.f32.mrb[123].mxu0  ;;  %8150 = vmatpush1.bf16.msra.mxu1 %v8122_v51 }
 0xd2d   : > { %8151 = vmatprep.subr.bf16.mxu1 %v14140_v8 }
 0xd2e   : > { %v8092_v16 = vadd.f32 %v14018_v54, %v8065_v32  ;;  %v8111_v46 = vmax.f32 %v8091_v45, 0.0 }
 0xd30   : > { %v8112_v61 = vmax.f32 %v8092_v16, 0.0  ;;  %v14242_v24 = vld [vmem:[#allocation7 + $0x48] sm:$0xff] }
 0xd31   : > { %v8014_v4 = vpop.f32.mrb[124].mxu0 }
 0xd32   : > { %v8123_v30 = vpack.c.bf16 %v8112_v61, %v8111_v46  ;;  %v8066_v27 = vmul.f32 %v14011_v17, %v8014_v4  ;;  %v8016_v59 = vpop.f32.mrb[125].mxu0 }
 0xd33   : > { %v8017_v33 = vpop.f32.mrb[126].mxu0  ;;  %v11032_v59 = vld [vmem:[%s14508_s12 + $0xc0] sm:$0xff]  }
 0xd34   : > { %v8093_v35 = vadd.f32 %v14018_v54, %v8066_v27  ;;  %v8067_v44 = vmul.f32 %v14011_v17, %v8017_v33  ;;  %v8019_v55 = vpop.f32.mrb[127].mxu0  ;;  %8152 = vmatpush1.bf16.msra.mxu1 %v8123_v30  ;;  %v14179_v17 = vld [vmem:[#allocation7 + $0x18] sm:$0xff]  ;;  %v8193_v30 = vld [vmem:[#allocation7 + $0x8] sm:$0xff] }
 0xd35   : > { %8153 = vmatprep.subr.bf16.mxu1 %v14140_v8  ;;  %v11033_v33 = vld [vmem:[%s14508_s12 + $0xc8] sm:$0xff]   ;;  %v11036_v55 = vld [vmem:[%s14508_s12 + $0xe0] sm:$0xff]  }
 0xd36   : > { %v8094_v50 = vadd.f32 %v14018_v54, %v8067_v44  ;;  %v8113_v56 = vmax.f32 %v8093_v35, 0.0  ;;  %v11009_v54 = vld [vmem:[%s14508_s12 + $0x68] sm:$0xff]   ;;  %v11034_v35 = vld [vmem:[%s14508_s12 + $0xd0] sm:$0xff]   ;;  %v11035_v44 = vld [vmem:[%s14508_s12 + $0xd8] sm:$0xff]  }
 0xd38   : > { %v8114_v38 = vmax.f32 %v8094_v50, 0.0  ;;  %v11037_v50 = vld [vmem:[%s14508_s12 + $0xe8] sm:$0xff]  }
 0xd3a   : > { %v8124_v52 = vpack.c.bf16 %v8114_v38, %v8113_v56  ;;  %v11038_v56 = vld [vmem:[%s14508_s12 + $0xf0] sm:$0xff]   ;;  %v11039_v38 = vld [vmem:[%s14508_s12 + $0xf8] sm:$0xff]  }
 0xd3c   : > { %8154 = vmatpush1.bf16.msra.mxu1 %v8124_v52  ;;  %v11040_v52 = vld [vmem:[%s14508_s12 + $0x100] sm:$0xff]  }
 0xd3d   : > { %8340 = vmatprep.subr.bf16.mxu1 %v14140_v8 }
 0xd3f   : > { %8168 = vmatmul.mubr.bf16.vlgmr.msra.gmra.mrb[88].mxu1 %v9909_v39  ;;  %v11041_v39 = vld [vmem:[%s14508_s12 + $0x108] sm:$0xff]  }
 0xd40   : > { %8341 = vmatpush1.bf16.msra.mxu1 %v11008_v6  ;;  %9948 = vmatprep.mubr.msk.bf16.mxu1 %vm1034_vm0, %v14179_v17  ;;  %v11042_v6 = vld [vmem:[%s14508_s12 + $0x110] sm:$0xff]  }
 0xd41   : > { %8342 = vmatprep.subr.bf16.mxu1 %v14140_v8 }
 0xd44   : > { %8343 = vmatpush1.bf16.msra.mxu1 %v11009_v54  ;;  %v8570_v54 = vld [vmem:[#allocation7 + $0x68] sm:$0xff] }
 0xd45   : > { %8344 = vmatprep.subr.bf16.mxu1 %v14140_v8 }
 0xd48   : > { %8345 = vmatpush1.bf16.msra.mxu1 %v11010_v60  ;;  %v10011_v60 = vld [vmem:[%s14509_s13] ss:$0 sm:$0xff] }
 0xd49   : > { %8346 = vmatprep.subr.bf16.mxu1 %v14140_v8 }
 0xd4c   : > { %8347 = vmatpush1.bf16.msra.mxu1 %v11011_v7 }
 0xd4d   : > { %8348 = vmatprep.subr.bf16.mxu1 %v14140_v8 }
 0xd50   : > { %8349 = vmatpush1.bf16.msra.mxu1 %v11012_v20  ;;  %v10012_v20 = vld [vmem:[%s14510_s14] ss:$0 sm:$0xff] }
 0xd51   : > { %8350 = vmatprep.subr.bf16.mxu1 %v14140_v8 }
 0xd54   : > { %8351 = vmatpush1.bf16.msra.mxu1 %v11013_v12 }
 0xd55   : > { %8352 = vmatprep.subr.bf16.mxu1 %v14140_v8 }
 0xd58   : > { %8353 = vmatpush1.bf16.msra.mxu1 %v11014_v41 }
 0xd59   : > { %8354 = vmatprep.subr.bf16.mxu1 %v14140_v8 }
 0xd5c   : > { %8355 = vmatpush1.bf16.msra.mxu1 %v11015_v62 }
 0xd5d   : > { %8356 = vmatprep.subr.bf16.mxu1 %v14140_v8 }
 0xd60   : > { %8357 = vmatpush1.bf16.msra.mxu1 %v11016_v13 }
 0xd61   : > { %8358 = vmatprep.subr.bf16.mxu1 %v14140_v8 }
 0xd64   : > { %8359 = vmatpush1.bf16.msra.mxu1 %v11017_v28 }
 0xd65   : > { %8360 = vmatprep.subr.bf16.mxu1 %v14140_v8 }
 0xd68   : > { %8361 = vmatpush1.bf16.msra.mxu1 %v11018_v34 }
 0xd69   : > { %8362 = vmatprep.subr.bf16.mxu1 %v14140_v8 }
 0xd6c   : > { %8363 = vmatpush1.bf16.msra.mxu1 %v11019_v14 }
 0xd6d   : > { %8488 = vmatprep.subr.bf16.mxu1 %v14140_v8 }
 0xd6f   : > { %8373 = vmatmul.mubr.bf16.vlgmr.msra.gmra.mrb[92].mxu1 %v14228_v3 }
 0xd70   : > { %9949 = vmatprep.mubr.msk.bf16.mxu1 %vm1034_vm0, %v14231_v49  ;;  %8489 = vmatpush1.bf16.msra.mxu1 %v11020_v31 }
 0xd71   : > { %8490 = vmatprep.subr.bf16.mxu1 %v14140_v8 }
 0xd74   : > { %8491 = vmatpush1.bf16.msra.mxu1 %v11021_v5 }
 0xd75   : > { %8492 = vmatprep.subr.bf16.mxu1 %v14140_v8 }
 0xd77   : > { %8381 = vmatmul.mubr.bf16.gmra.mrb[96].mxu1 %v14235_v36 }
 0xd78   : > { %9950 = vmatprep.mubr.msk.bf16.mxu1 %vm1034_vm0, %v14238_v22  ;;  %8493 = vmatpush1.bf16.msra.mxu1 %v11022_v0 }
 0xd79   : > { %8494 = vmatprep.subr.bf16.mxu1 %v14140_v8 }
 0xd7c   : > { %8495 = vmatpush1.bf16.msra.mxu1 %v11023_v43 }
 0xd7d   : > { %8496 = vmatprep.subr.bf16.mxu1 %v14140_v8 }
 0xd7f   : > { %8389 = vmatmul.mubr.bf16.gmra.mrb[100].mxu1 %v14244_v15 }
 0xd80   : > { %9951 = vmatprep.mubr.msk.bf16.mxu1 %vm1034_vm0, %v14242_v24  ;;  %8497 = vmatpush1.bf16.msra.mxu1 %v11024_v21 }
 0xd81   : > { %8498 = vmatprep.subr.bf16.mxu1 %v14140_v8 }
 0xd84   : > { %8499 = vmatpush1.bf16.msra.mxu1 %v11025_v25 }
 0xd85   : > { %8500 = vmatprep.subr.bf16.mxu1 %v14140_v8 }
 0xd88   : > { %8501 = vmatpush1.bf16.msra.mxu1 %v11026_v2 }
 0xd89   : > { %8502 = vmatprep.subr.bf16.mxu1 %v14140_v8 }
 0xd8c   : > { %8503 = vmatpush1.bf16.msra.mxu1 %v11027_v11 }
 0xd8d   : > { %8504 = vmatprep.subr.bf16.mxu1 %v14140_v8 }
 0xd90   : > { %8505 = vmatpush1.bf16.msra.mxu1 %v11028_v63 }
 0xd91   : > { %8506 = vmatprep.subr.bf16.mxu1 %v14140_v8 }
 0xd94   : > { %8507 = vmatpush1.bf16.msra.mxu1 %v11029_v58 }
 0xd95   : > { %v7275_v26 = vpop.permute.xlu1 %7274  ;;  %8508 = vmatprep.subr.bf16.mxu1 %v14140_v8 }
 0xd96   : > { %v7277_v29 = vsel %vm1034_vm0, %v7270_v57, %v7275_v26 }
 0xd97   : > { %v14258_v40 = vpack.c.bf16 %v11088_v1, %v7277_v29 }
 0xd98   : > { %8509 = vmatpush1.bf16.msra.mxu1 %v11030_v19 }
 0xd99   : > { %11051 = vmatmul.mubr.msk.bf16.gmra.mrb[104].mxu1 %vm14253_vm9, %v14258_v40  ;;  %8510 = vmatprep.subr.bf16.mxu1 %v14140_v8 }
 0xd9c   : > { %8511 = vmatpush1.bf16.msra.mxu1 %v11031_v37 }
 0xd9d   : > { %8683 = vmatprep.subr.bf16.mxu1 %v14140_v8 }
 0xe12   : > { %v8169_v48 = vpop.f32.mrb[88].mxu1 }
 0xe13   : > { %v8179_v9 = vrot.slane %v8169_v48, 1  ;;  %8182 = vrot.lane.b32.xlu0 %v8169_v48, %s11090_s20  ;;  %v8171_v51 = vpop.f32.mrb[89].mxu1  ;;  %v8176_v16 = vrot.slane %v8169_v48, 7 }
 0xe14   : > { %v8172_v23 = vpop.f32.mrb[90].mxu1 }
 0xe15   : > { %v8181_v42 = vsel %vm1048_vm3, %v8179_v9, 0.0  ;;  %v8173_v53 = vpop.f32.mrb[91].mxu1  ;;  %v8178_v61 = vsel %vm914_vm5, 0.0, %v8176_v16 }
 0xe16   : > { %v8187_v45 = vsel %vm4553_vm7, %v8181_v42, 0.0 }
 0xe17   : > { %v8189_v32 = vpack.c.bf16 %v11088_v1, %v8187_v45 }
 0xe19   : > { %8191 = vst.msk [vmem:[#allocation7 + $0x58] sm:$0xff] %vm1034_vm0, %v8189_v32 }
 0xe20   : > { %v8227_v47 = vld [vmem:[#allocation7 + $0x58] sm:$0xff] }
 0xe21   : > { %9952 = vmatprep.mubr.msk.bf16.mxu1 %vm1034_vm0, %v8227_v47 }
 0xe85   : > { %v8183_v46 = vpop.permute.xlu0 %8182 }
 0xe86   : > { %v8185_v4 = vsel %vm1034_vm0, %v8178_v61, %v8183_v46 }
 0xe87   : > { %v11053_v27 = vpack.c.bf16 %v11088_v1, %v8185_v4 }
 0xe89   : > { %11054 = vmatmul.mubr.msk.bf16.gmra.mrb[108].mxu1 %vm14253_vm9, %v11053_v27 }
 0xe8a   : > { %9965 = vmatprep.mubr.msk.bf16.mxu1 %vm1034_vm0, %v8193_v30 }
 0xe91   : > { %8521 = vmatmul.mubr.bf16.vlgmr.msra.gmra.mrb[92].mxu1 %v14140_v8 }
 0xe92   : > { %8684 = vmatpush1.bf16.msra.mxu1 %v11032_v59  ;;  %9966 = vmatprep.mubr.msk.bf16.mxu1 %vm1034_vm0, %v14179_v17  ;;  %v11043_v17 = vld [vmem:[%s14508_s12 + $0x118] sm:$0xff]  }
 0xe93   : > { %8685 = vmatprep.subr.bf16.mxu1 %v14140_v8 }
 0xe96   : > { %8686 = vmatpush1.bf16.msra.mxu1 %v11033_v33 }
 0xe97   : > { %8687 = vmatprep.subr.bf16.mxu1 %v14140_v8 }
 0xe99   : > { %8529 = vmatmul.mubr.bf16.gmra.mrb[96].mxu1 %v14228_v3 }
 0xe9a   : > { %8688 = vmatpush1.bf16.msra.mxu1 %v11034_v35  ;;  %9967 = vmatprep.mubr.msk.bf16.mxu1 %vm1034_vm0, %v14231_v49 }
 0xe9b   : > { %8689 = vmatprep.subr.bf16.mxu1 %v14140_v8 }
 0xe9e   : > { %8690 = vmatpush1.bf16.msra.mxu1 %v11035_v44 }
 0xe9f   : > { %8691 = vmatprep.subr.bf16.mxu1 %v14140_v8 }
 0xea1   : > { %8537 = vmatmul.mubr.bf16.gmra.mrb[100].mxu1 %v14235_v36 }
 0xea2   : > { %8692 = vmatpush1.bf16.msra.mxu1 %v11036_v55  ;;  %9968 = vmatprep.mubr.msk.bf16.mxu1 %vm1034_vm0, %v14238_v22 }
 0xea3   : > { %8693 = vmatprep.subr.bf16.mxu1 %v14140_v8 }
 0xea6   : > { %8694 = vmatpush1.bf16.msra.mxu1 %v11037_v50 }
 0xea7   : > { %8695 = vmatprep.subr.bf16.mxu1 %v14140_v8 }
 0xea9   : > { %8545 = vmatmul.mubr.bf16.gmra.mrb[104].mxu1 %v14244_v15 }
 0xeaa   : > { %8696 = vmatpush1.bf16.msra.mxu1 %v11038_v56  ;;  %9969 = vmatprep.mubr.msk.bf16.mxu1 %vm1034_vm0, %v14242_v24  ;;  %v8860_v56 = vld [vmem:[%s14512_s16] sm:$0xff] }
 0xeab   : > { %8697 = vmatprep.subr.bf16.mxu1 %v14140_v8 }
 0xeae   : > { %8698 = vmatpush1.bf16.msra.mxu1 %v11039_v38  ;;  %v8861_v38 = vld [vmem:[%s14512_s16 + $0x8] sm:$0xff] }
 0xeaf   : > { %8699 = vmatprep.subr.bf16.mxu1 %v14140_v8 }
 0xeb1   : > { %11057 = vmatmul.mubr.msk.bf16.gmra.mrb[108].mxu1 %vm14253_vm9, %v14258_v40 }
 0xeb2   : > { %8700 = vmatpush1.bf16.msra.mxu1 %v11040_v52  ;;  %10006 = vmatprep.mubr.msk.bf16.mxu1 %vm1034_vm0, %v14231_v49 }
 0xeb3   : > { %8701 = vmatprep.subr.bf16.mxu1 %v14140_v8 }
 0xeb6   : > { %8702 = vmatpush1.bf16.msra.mxu1 %v11041_v39  ;;  %v8815_v39 = vld [vmem:[%s14511_s15] sm:$0x1] }
 0xeb7   : > { %8703 = vmatprep.subr.bf16.mxu1 %v14140_v8 }
 0xeba   : > { %8704 = vmatpush1.bf16.msra.mxu1 %v11042_v6  ;;  %v10201_v6 = vpack.c.bf16 %v8861_v38, %v8860_v56 }
 0xebb   : > { %8705 = vmatprep.subr.bf16.mxu1 %v14140_v8 }
 0xebe   : > { %8706 = vmatpush1.bf16.msra.mxu1 %v11043_v17  ;;  %v11096_v17 = vmov 0.0|0.0  }
 0xebf   : > { %10140 = vmatprep.subr.bf16.mxu1 %v11088_v1 }
 0xec1   : > { %8716 = vmatmul.mubr.bf16.vlgmr.msra.gmra.mrb[92].mxu1 %v14235_v36 }
 0xec2   : > { %10007 = vmatprep.mubr.msk.bf16.mxu1 %vm1034_vm0, %v14238_v22 }
 0xec9   : > { %8724 = vmatmul.mubr.bf16.gmra.mrb[96].mxu1 %v14244_v15 }
 0xeca   : > { %10008 = vmatprep.mubr.msk.bf16.mxu1 %vm1034_vm0, %v14242_v24 }
 0xed1   : > { %11060 = vmatmul.mubr.msk.bf16.gmra.mrb[100].mxu1 %vm14253_vm9, %v14258_v40 }
 0xed2   : > { %10009 = vmatprep.mubr.msk.bf16.mxu1 %vm1034_vm0, %v8227_v47 }
 0xed9   : > { %11063 = vmatmul.mubr.msk.bf16.gmra.mrb[104].mxu1 %vm14253_vm9, %v11053_v27 }
 0xeda   : > { %10010 = vmatprep.mubr.msk.bf16.mxu1 %vm1034_vm0, %v8570_v54  ;;  %v8862_v54 = vld [vmem:[%s14512_s16 + $0x10] sm:$0xff] }
 0xee1   : > { %8748 = vmatmul.mubr.bf16.gmra.mrb[108].mxu1 %v14140_v8 }
 0xee2   : > { %10150 = vmatprep.mubr.msk.bf16.mxu1 %vm11089_vm1, %v11088_v1 }
 0xf94   : > { %v8717_v7 = vpop.f32.mrb[92].mxu1 }
 0xf95   : > { %v8773_v12 = vmul.f32 %v10011_v60, %v8717_v7  ;;  %v8719_v41 = vpop.f32.mrb[93].mxu1 }
 0xf96   : > { %v8720_v62 = vpop.f32.mrb[94].mxu1 }
 0xf97   : > { %v8790_v13 = vadd.f32 %v10012_v20, %v8773_v12  ;;  %v8774_v28 = vmul.f32 %v10011_v60, %v8720_v62  ;;  %v8722_v34 = vpop.f32.mrb[95].mxu1  ;;  %v8865_v12 = vld [vmem:[%s14512_s16 + $0x28] sm:$0xff]  ;;  %v8866_v62 = vld [vmem:[%s14512_s16 + $0x30] sm:$0xff] }
 0xf98   : > { %v8868_v34 = vld [vmem:[%s14512_s16 + $0x40] sm:$0xff] }
 0xf99   : > { %v8791_v14 = vadd.f32 %v10012_v20, %v8774_v28  ;;  %v8800_v8 = vmax.f32 %v8790_v13, 0.0  ;;  %v8867_v13 = vld [vmem:[%s14512_s16 + $0x38] sm:$0xff] }
 0xf9a   : > { %v10210_v28 = vpack.c.bf16 %v8867_v13, %v8866_v62 }
 0xf9b   : > { %v8801_v3 = vmax.f32 %v8791_v14, 0.0  ;;  %v8869_v14 = vld [vmem:[%s14512_s16 + $0x48] sm:$0xff] }
 0xf9c   : > { %v8725_v49 = vpop.f32.mrb[96].mxu1 }
 0xf9d   : > { %v8810_v36 = vpack.c.bf16 %v8801_v3, %v8800_v8  ;;  %v8775_v22 = vmul.f32 %v10011_v60, %v8725_v49  ;;  %v8727_v24 = vpop.f32.mrb[97].mxu1  ;;  %v10213_v8 = vpack.c.bf16 %v8869_v14, %v8868_v34  ;;  %v8870_v3 = vld [vmem:[%s14512_s16 + $0x50] sm:$0xff]  ;;  %v8871_v49 = vld [vmem:[%s14512_s16 + $0x58] sm:$0xff] }
 0xf9e   : > { %v8728_v15 = vpop.f32.mrb[98].mxu1  ;;  %v8873_v24 = vld [vmem:[%s14512_s16 + $0x68] sm:$0xff] }
 0xf9f   : > { %v8792_v18 = vadd.f32 %v10012_v20, %v8775_v22  ;;  %v8776_v57 = vmul.f32 %v10011_v60, %v8728_v15  ;;  %v8730_v26 = vpop.f32.mrb[99].mxu1  ;;  %10141 = vmatpush3.bf16.msra.mxu1 %v8810_v36  ;;  %v10216_v36 = vpack.c.bf16 %v8871_v49, %v8870_v3  ;;  %v8872_v22 = vld [vmem:[%s14512_s16 + $0x60] sm:$0xff] }
 0xfa0   : > { %10142 = vmatprep.subr.bf16.mxu1 %v11088_v1  ;;  %v10219_v15 = vpack.c.bf16 %v8873_v24, %v8872_v22 }
 0xfa1   : > { %v8793_v29 = vadd.f32 %v10012_v20, %v8776_v57  ;;  %v8802_v10 = vmax.f32 %v8792_v18, 0.0  ;;  %v8874_v18 = vld [vmem:[%s14512_s16 + $0x70] sm:$0xff]  ;;  %v8875_v57 = vld [vmem:[%s14512_s16 + $0x78] sm:$0xff] }
 0xfa2   : > { %v10222_v26 = vpack.c.bf16 %v8875_v57, %v8874_v18 }
 0xfa3   : > { %v8803_v40 = vmax.f32 %v8793_v29, 0.0 }
 0xfa4   : > { %v8733_v31 = vpop.f32.mrb[100].mxu1 }
 0xfa5   : > { %v8811_v5 = vpack.c.bf16 %v8803_v40, %v8802_v10  ;;  %v8777_v0 = vmul.f32 %v10011_v60, %v8733_v31  ;;  %v8735_v43 = vpop.f32.mrb[101].mxu1 }
 0xfa6   : > { %v8736_v21 = vpop.f32.mrb[102].mxu1 }
 0xfa7   : > { %v8794_v25 = vadd.f32 %v10012_v20, %v8777_v0  ;;  %v8778_v2 = vmul.f32 %v10011_v60, %v8736_v21  ;;  %v8738_v11 = vpop.f32.mrb[103].mxu1  ;;  %10143 = vmatpush3.bf16.msra.mxu1 %v8811_v5  ;;  %v8951_v5 = vld [vmem:[%s14515_s19] sm:$0xff]  ;;  %v8952_v0 = vld [vmem:[%s14515_s19 + $0x8] sm:$0xff]  ;;  %v8953_v21 = vld [vmem:[%s14515_s19 + $0x10] sm:$0xff] }
 0xfa8   : > { %10144 = vmatprep.subr.bf16.mxu1 %v11088_v1  ;;  %v10225_v43 = vpack.c.bf16 %v8952_v0, %v8951_v5 }
 0xfa9   : > { %v8795_v63 = vadd.f32 %v10012_v20, %v8778_v2  ;;  %v8804_v58 = vmax.f32 %v8794_v25, 0.0  ;;  %v8946_v2 = vld [vmem:[%s14513_s17] sm:$0x1] }
 0xfab   : > { %v8805_v19 = vmax.f32 %v8795_v63, 0.0  ;;  %v8948_v63 = vld [vmem:[%s14514_s18] sm:$0x1] }
 0xfac   : > { %v8741_v37 = vpop.f32.mrb[104].mxu1 }
 0xfad   : > { %v8812_v48 = vpack.c.bf16 %v8805_v19, %v8804_v58  ;;  %v8779_v9 = vmul.f32 %v10011_v60, %v8741_v37  ;;  %v8743_v51 = vpop.f32.mrb[105].mxu1 }
 0xfae   : > { %v8744_v23 = vpop.f32.mrb[106].mxu1 }
 0xfaf   : > { %v8796_v42 = vadd.f32 %v10012_v20, %v8779_v9  ;;  %v8780_v53 = vmul.f32 %v10011_v60, %v8744_v23  ;;  %v8746_v45 = vpop.f32.mrb[107].mxu1  ;;  %10145 = vmatpush3.bf16.msra.mxu1 %v8812_v48  ;;  %v8955_v9 = vld [vmem:[#allocation8] sm:$0x1] }
 0xfb0   : > { %10146 = vmatprep.subr.bf16.mxu1 %v11088_v1 }
 0xfb1   : > { %v8797_v32 = vadd.f32 %v10012_v20, %v8780_v53  ;;  %v8806_v47 = vmax.f32 %v8796_v42, 0.0 }
 0xfb3   : > { %v8807_v16 = vmax.f32 %v8797_v32, 0.0 }
 0xfb4   : > { %v8749_v46 = vpop.f32.mrb[108].mxu1 }
 0xfb5   : > { %v8813_v61 = vpack.c.bf16 %v8807_v16, %v8806_v47  ;;  %v8781_v4 = vmul.f32 %v10011_v60, %v8749_v46  ;;  %v8751_v30 = vpop.f32.mrb[109].mxu1 }
 0xfb6   : > { %v8752_v27 = vpop.f32.mrb[110].mxu1 }
 0xfb7   : > { %v8798_v59 = vadd.f32 %v10012_v20, %v8781_v4  ;;  %v8782_v33 = vmul.f32 %v10011_v60, %v8752_v27  ;;  %v8754_v35 = vpop.f32.mrb[111].mxu1  ;;  %10147 = vmatpush3.bf16.msra.mxu1 %v8813_v61  ;;  %v8863_v60 = vld [vmem:[%s14512_s16 + $0x18] sm:$0xff] }
 0xfb8   : > { %10148 = vmatprep.subr.bf16.mxu1 %v11088_v1  ;;  %v10204_v7 = vpack.c.bf16 %v8863_v60, %v8862_v54 }
 0xfb9   : > { %v8799_v44 = vadd.f32 %v10012_v20, %v8782_v33  ;;  %v8808_v55 = vmax.f32 %v8798_v59, 0.0  ;;  %v8864_v20 = vld [vmem:[%s14512_s16 + $0x20] sm:$0xff] }
 0xfba   : > { %v10207_v41 = vpack.c.bf16 %v8865_v12, %v8864_v20 }
 0xfbb   : > { %v8809_v50 = vmax.f32 %v8799_v44, 0.0 }
 0xfbd   : > { %v8814_v52 = vpack.c.bf16 %v8809_v50, %v8808_v55 }
 0xfbf   : > { %10149 = vmatpush3.bf16.msra.mxu1 %v8814_v52 }
 0xfc0   : > { %10200 = vmatprep.subr.bf16.mxu1 %v11096_v17 }
 0xfc2   : > { %10151 = vmatmul.mubr.msk.bf16.vlgmr.msra.gmra.mrb[112].mxu1 %vm8816_vm10, %v8815_v39 }
 0xfc3   : > { %10202 = vmatpush3.bf16.msra.mxu1 %v10201_v6  ;;  %10186 = vmatprep.mubr.msk.f32.mxu1 %vm11089_vm1, %v11088_v1 }
 0xfc4   : > { %10203 = vmatprep.subr.bf16.mxu1 %v11096_v17 }
 0xfc7   : > { %10205 = vmatpush3.bf16.msra.mxu1 %v10204_v7 }
 0xfc8   : > { %10206 = vmatprep.subr.bf16.mxu1 %v11096_v17 }
 0xfcb   : > { %10208 = vmatpush3.bf16.msra.mxu1 %v10207_v41 }
 0xfcc   : > { %10209 = vmatprep.subr.bf16.mxu1 %v11096_v17 }
 0xfcf   : > { %10211 = vmatpush3.bf16.msra.mxu1 %v10210_v28 }
 0xfd0   : > { %10212 = vmatprep.subr.bf16.mxu1 %v11096_v17 }
 0xfd3   : > { %10214 = vmatpush3.bf16.msra.mxu1 %v10213_v8 }
 0xfd4   : > { %10215 = vmatprep.subr.bf16.mxu1 %v11096_v17 }
 0xfd7   : > { %10217 = vmatpush3.bf16.msra.mxu1 %v10216_v36 }
 0xfd8   : > { %10218 = vmatprep.subr.bf16.mxu1 %v11096_v17 }
 0xfdb   : > { %10220 = vmatpush3.bf16.msra.mxu1 %v10219_v15 }
 0xfdc   : > { %10221 = vmatprep.subr.bf16.mxu1 %v11096_v17 }
 0xfdf   : > { %10223 = vmatpush3.bf16.msra.mxu1 %v10222_v26 }
 0xfe0   : > { %10224 = vmatprep.subr.bf16.mxu1 %v11096_v17 }
0x1095   : > { %v8854_v29 = vpop.f32.mrb[112].mxu1 }
0x1096   : > { %v10152_v10 = vpop.f32.mrb[113].mxu1  ;;  %10187 = vmatmul.mubr.f32.vlgmr.msra.gmra.mrb[116].mxu1 %v8854_v29 }
0x1097   : > { %v8857_v40 = vpop.f32.mrb[114].mxu1  ;;  %10197 = vmatprep.mubr.msk.f32.mxu1 %vm11089_vm1, %v11088_v1  ;;  %10226 = vmatpush3.bf16.msra.mxu1 %v10225_v43  ;;  %v8954_v1 = vld [vmem:[%s14515_s19 + $0x18] sm:$0xff] }
0x1098   : > { %v10153_v31 = vpop.f32.mrb[115].mxu1  ;;  %10227 = vmatprep.subr.bf16.mxu1 %v11096_v17  ;;  %v10228_v25 = vpack.c.bf16 %v8954_v1, %v8953_v21 }
0x109b   : > { %10229 = vmatpush3.bf16.msra.mxu1 %v10228_v25 }
0x1169   : > { %v8942_v11 = vpop.f32.mrb[116].mxu1 }
0x116a   : > { %v8947_v58 = vmul.f32 %v8946_v2, %v8942_v11  ;;  %v10188_v19 = vpop.f32.mrb[117].mxu1 }
0x116c   : > { %v8949_v37 = vadd.f32 %v8948_v63, %v8947_v58 }
0x116e   : > { %v8950_v48 = vmax.f32 %v8949_v37, 0.0 }
0x1170   : > { %10198 = vmatmul.mubr.msk.f32.vlgmr.msra.gmra.mrb[118].mxu1 %vm4498_vm6, %v8950_v48 }
0x1243   : > { %v9025_v51 = vpop.f32.mrb[118].mxu1 }
0x1244   : > { %v9026_v23 = vadd.f32 %v9025_v51, %v8955_v9  ;;  %v10199_v42 = vpop.f32.mrb[119].mxu1 }
0x1246   : > { %9030 = vst.msk [vmem:[%s654_s22] sm:$0x1] %vm9029_vm11, %v9026_v23 }
0x1247 PF: > { %s33_s26 = sadd.s32 1, %s11078_s26  }
0x1248   : > { %p30_p6 = scmp.ge.s32.totalorder %s33_s26, 4  }
0x124a   :  { %32 = sbr.rel (!%p30_p6) target bundleno = 7 (0x7), region = 182 }

</bundles_post_ra>
